<compile_context>
chip_gen: v6e
topology: v6e:2x2x1
jax: 0.10.0
libtpu: 0.0.40
codegen_flags: <defaults>
</compile_context>

<pallas_src>
import functools

import jax
import jax.numpy as jnp
from jax import lax
from jax.experimental import pallas as pl
from jax.experimental.pallas import tpu as pltpu

BN_EPS = 1e-5


# --------------------------------------------------------------------------
# Generation-aware configuration (queried once, outside the jit trace).
# --------------------------------------------------------------------------
def _vmem_capacity_bytes():
    try:
        info = pltpu.get_tpu_info()
        for name in ("vmem_capacity_bytes", "vmem_bytes", "vmem_size_bytes"):
            val = getattr(info, name, None)
            if val:
                return int(val)
    except Exception:
        pass
    return 64 * 1024 * 1024          # conservative (v7x-sized) fallback


_VMEM_CAP = _vmem_capacity_bytes()
# Leave headroom: v5e/v6e (128 MiB) -> 96 MiB scoped limit, v7x (64 MiB) -> 48 MiB.
_VMEM_LIMIT = min((_VMEM_CAP * 3) // 4, 96 * 1024 * 1024)
# Bigger row tiles amortise the ~0.35us/step pipeline overhead; cap lower on
# small-VMEM generations (v7x).
_ROW_TILE_TARGET = 8192 if _VMEM_CAP >= 100 * 1024 * 1024 else 4096


def _compiler_params():
    return pltpu.CompilerParams(dimension_semantics=("parallel",),
                                vmem_limit_bytes=_VMEM_LIMIT)


def _pick_row_tiling(r, target):
    """Fixed-size row tiles (multiple of 8) + padding; no divisor search."""
    n_tiles = max(1, -(-r // target))
    if n_tiles == 1 and r >= 4096:
        n_tiles = 2                  # keep both v7x TensorCores busy
    tr = -(-r // n_tiles)
    tr = ((tr + 7) // 8) * 8         # sublane multiple
    return tr, n_tiles, tr * n_tiles


# --------------------------------------------------------------------------
# In-kernel helpers
# --------------------------------------------------------------------------
def _tile_stats(z, R, TR):
    """Masked per-tile (sum, centred sum of squares) over the valid rows.

    Rows >= R are padding (the row dimension is padded to a multiple of TR in
    the wrapper) and are excluded so they never pollute the BN statistics.
    """
    i = pl.program_id(0)
    rows = z.shape[0]
    ridx = lax.broadcasted_iota(jnp.int32, (rows, 1), 0) + i * TR
    valid = ridx < R
    zm = jnp.where(valid, z, 0.0)
    s = jnp.sum(zm, axis=0, keepdims=True)                       # (1, C)
    nv = jnp.maximum(jnp.minimum(TR, R - i * TR), 1).astype(jnp.float32)
    d = jnp.where(valid, z - s / nv, 0.0)
    m2 = jnp.sum(d * d, axis=0, keepdims=True)                   # (1, C)
    return s, m2


# --------------------------------------------------------------------------
# Kernels
# --------------------------------------------------------------------------
def _conv1_kernel(xim_ref, w1_ref, z1_ref, s_ref, m2_ref, *, R, TR):
    # xim_ref: (TR, 9*Cin) bf16 mini-im2col rows -> one K=9*Cin MXU matmul.
    # Bias b1 dropped: cancels in training-mode BN1.
    z1 = jnp.dot(xim_ref[...], w1_ref[...], preferred_element_type=jnp.float32)
    z1_ref[...] = z1.astype(z1_ref.dtype)
    s, m2 = _tile_stats(z1, R, TR)
    s_ref[...] = s.reshape(1, 1, -1)
    m2_ref[...] = m2.reshape(1, 1, -1)


def _conv2_kernel(z1_ref, s1_ref, t1_ref, w2_ref, z2_ref, s_ref, m2_ref, *, R, TR):
    # BN1 (fused scale/shift FMA) + ReLU, then conv2 (1x1), + BN2 partials.
    r1 = jnp.maximum(z1_ref[...].astype(jnp.float32) * s1_ref[...] + t1_ref[...], 0.0)
    z2 = jnp.dot(r1.astype(w2_ref.dtype), w2_ref[...],
                 preferred_element_type=jnp.float32)
    z2_ref[...] = z2.astype(z2_ref.dtype)
    s, m2 = _tile_stats(z2, R, TR)
    s_ref[...] = s.reshape(1, 1, -1)
    m2_ref[...] = m2.reshape(1, 1, -1)


def _gate_conv3_kernel(z2_ref, cd_ref, s2_ref, t2_ref, w4_ref, b4_ref,
                       w3a_ref, w3b_ref, z3_ref, s_ref, m2_ref, *, R, TR):
    # BN2 + ReLU -> FS1; gate = sigmoid(conv4(relu(cd + FS1)));
    # conv3 on channel-concat([a*cd, (1-a)*FS1]) as a split matmul.
    fs1 = jnp.maximum(z2_ref[...].astype(jnp.float32) * s2_ref[...] + t2_ref[...], 0.0)
    cd = cd_ref[...].astype(jnp.float32)
    d3 = jnp.maximum(cd + fs1, 0.0)
    # conv4 (1x1 -> 1 channel): VPU multiply + lane reduction over Cout lanes.
    gate = jnp.sum(d3 * w4_ref[...], axis=-1, keepdims=True) + b4_ref[...]
    a = pl.reciprocal(1.0 + jnp.exp(-gate), approx=True)         # sigmoid (EUP)
    y = (a * cd).astype(w3a_ref.dtype)
    y1 = ((1.0 - a) * fs1).astype(w3b_ref.dtype)
    z3 = (jnp.dot(y, w3a_ref[...], preferred_element_type=jnp.float32)
          + jnp.dot(y1, w3b_ref[...], preferred_element_type=jnp.float32))
    z3_ref[...] = z3.astype(z3_ref.dtype)
    s, m2 = _tile_stats(z3, R, TR)
    s_ref[...] = s.reshape(1, 1, -1)
    m2_ref[...] = m2.reshape(1, 1, -1)


def _bn3_kernel(z3_ref, s3_ref, t3_ref, out_ref):
    # Final BN3: single fused FMA pass, output at true Cout width in f32.
    out_ref[...] = z3_ref[...].astype(jnp.float32) * s3_ref[...] + t3_ref[...]


# --------------------------------------------------------------------------
# Wrapper-side BN combine (tiny; merges per-tile centred partials)
# --------------------------------------------------------------------------
def _bn_scale_shift(s_parts, m2_parts, gamma, beta, R, TR):
    s_parts = s_parts[:, 0, :]                                   # (nR, C)
    m2_parts = m2_parts[:, 0, :]
    nR = s_parts.shape[0]
    raw = jnp.minimum(TR, R - jnp.arange(nR) * TR)
    counts = jnp.clip(raw, 0, TR).astype(jnp.float32)[:, None]   # (nR, 1)
    mean_t = s_parts / jnp.maximum(counts, 1.0)
    mean = jnp.sum(s_parts, axis=0) / R
    var = (jnp.sum(m2_parts, axis=0)
           + jnp.sum(counts * jnp.square(mean_t - mean), axis=0)) / R
    var = jnp.maximum(var, 0.0)
    scale = gamma.astype(jnp.float32) * lax.rsqrt(var + BN_EPS)
    shift = beta.astype(jnp.float32) - mean * scale
    return scale.reshape(1, -1), shift.reshape(1, -1)


# --------------------------------------------------------------------------
# Public entry point
# --------------------------------------------------------------------------
@jax.jit
def spatial_block(data_nchw, channel_nchw, params):
    """data: (N, Cin, H, W); channel_data: (N, Cout, H, W) -> (N, Cout, H, W).

    Note: conv biases b1/b2/b3 in `params` are intentionally unused -- a
    constant per-channel bias cancels exactly in training-mode BatchNorm.
    """
    N, Cin, H, W = data_nchw.shape
    Cout = channel_nchw.shape[1]
    R = N * H * W
    K1 = 9 * Cin

    TR, nR, Rp = _pick_row_tiling(R, _ROW_TILE_TARGET)

    # ---- layout glue (NCHW -> row-major pixel rows; bf16 matmul operands) ----
    x = jnp.transpose(data_nchw, (0, 2, 3, 1)).astype(jnp.bfloat16)      # (N,H,W,Cin)
    xpad = jnp.pad(x, ((0, 0), (1, 1), (1, 1), (0, 0)))                  # (N,H+2,W+2,Cin)
    # Mini-im2col: Cin is small so the (R, 9*Cin) stream is cheap, and it turns
    # conv1 into a single K=9*Cin matmul with no in-kernel shifted relayouts
    # and no triple-materialised H-halo views.
    taps = [xpad[:, dy:dy + H, dx:dx + W, :]
            for dy in range(3) for dx in range(3)]
    xim = jnp.concatenate(taps, axis=-1).reshape(R, K1)
    xim = jnp.pad(xim, ((0, Rp - R), (0, 0)))

    # channel_data as compact (Rp, Cout) rows (bf16: deliberate precision trade).
    cd = jnp.transpose(channel_nchw, (0, 2, 3, 1)).reshape(R, Cout)
    cd = jnp.pad(cd, ((0, Rp - R), (0, 0))).astype(jnp.bfloat16)

    # ---- parameters (true Cout width; bf16 matmul operands, f32 BN math) ----
    w1f = params["w1"].reshape(K1, Cout).astype(jnp.bfloat16)            # (9Cin,Cout)
    w2 = params["w2"].astype(jnp.bfloat16)                               # (Cout,Cout)
    w3a = params["w3"][:Cout].astype(jnp.bfloat16)                       # (Cout,Cout)
    w3b = params["w3"][Cout:].astype(jnp.bfloat16)                       # (Cout,Cout)
    w4 = params["w4"].reshape(1, Cout).astype(jnp.float32)
    b4 = params["b4"].reshape(1, 1).astype(jnp.float32)

    def row_spec(c):
        return pl.BlockSpec((TR, c), lambda i: (i, 0))

    def full_spec(shape):
        nd = len(shape)
        return pl.BlockSpec(shape, lambda i: (0,) * nd)

    stat_spec = pl.BlockSpec((1, 1, Cout), lambda i: (i, 0, 0))
    stat_shape = jax.ShapeDtypeStruct((nR, 1, Cout), jnp.float32)
    slab16 = jax.ShapeDtypeStruct((Rp, Cout), jnp.bfloat16)
    cp = _compiler_params()

    # ---- kernel A: conv1 (3x3, SAME) as one K=9*Cin matmul + BN1 partials ----
    z1, s1p, m1p = pl.pallas_call(
        functools.partial(_conv1_kernel, R=R, TR=TR),
        grid=(nR,),
        in_specs=[row_spec(K1), full_spec((K1, Cout))],
        out_specs=[row_spec(Cout), stat_spec, stat_spec],
        out_shape=[slab16, stat_shape, stat_shape],
        compiler_params=cp,
    )(xim, w1f)
    s1, t1 = _bn_scale_shift(s1p, m1p, params["g1"], params["be1"], R, TR)

    # ---- kernel B: BN1 + ReLU + conv2 (1x1) + BN2 partials ----
    z2, s2p, m2p = pl.pallas_call(
        functools.partial(_conv2_kernel, R=R, TR=TR),
        grid=(nR,),
        in_specs=[row_spec(Cout), full_spec((1, Cout)), full_spec((1, Cout)),
                  full_spec((Cout, Cout))],
        out_specs=[row_spec(Cout), stat_spec, stat_spec],
        out_shape=[slab16, stat_shape, stat_shape],
        compiler_params=cp,
    )(z1, s1, t1, w2)
    s2, t2 = _bn_scale_shift(s2p, m2p, params["g2"], params["be2"], R, TR)

    # ---- kernel C: BN2 + ReLU + sigmoid gate (conv4) + conv3 + BN3 partials ----
    z3, s3p, m3p = pl.pallas_call(
        functools.partial(_gate_conv3_kernel, R=R, TR=TR),
        grid=(nR,),
        in_specs=[row_spec(Cout), row_spec(Cout),
                  full_spec((1, Cout)), full_spec((1, Cout)),
                  full_spec((1, Cout)), full_spec((1, 1)),
                  full_spec((Cout, Cout)), full_spec((Cout, Cout))],
        out_specs=[row_spec(Cout), stat_spec, stat_spec],
        out_shape=[slab16, stat_shape, stat_shape],
        compiler_params=cp,
    )(z2, cd, s2, t2, w4, b4, w3a, w3b)
    s3, t3 = _bn_scale_shift(s3p, m3p, params["g3"], params["be3"], R, TR)

    # ---- kernel D: BN3, written directly at (R, Cout) width in f32 ----
    out_rows = pl.pallas_call(
        _bn3_kernel,
        grid=(nR,),
        in_specs=[row_spec(Cout), full_spec((1, Cout)), full_spec((1, Cout))],
        out_specs=row_spec(Cout),
        out_shape=jax.ShapeDtypeStruct((Rp, Cout), jnp.float32),
        compiler_params=cp,
    )(z3, s3, t3)

    out = out_rows[:R].reshape(N, H, W, Cout)
    # TODO(synk): the NHWC->NCHW transpose stays in XLA; emitting an NCHW block
    # from kernel D would require an in-kernel lane<->sublane transpose.
    return jnp.transpose(out, (0, 3, 1, 2))


# --------------------------------------------------------------------------
# Pure-JAX f32 reference (exact module semantics, incl. b1/b2/b3 which cancel)
# --------------------------------------------------------------------------
def _bn_ref(x, g, b):
    mu = jnp.mean(x, axis=(0, 1, 2), keepdims=True)
    var = jnp.mean((x - mu) ** 2, axis=(0, 1, 2), keepdims=True)
    return g * (x - mu) * lax.rsqrt(var + BN_EPS) + b


def spatial_block_ref(data_nchw, channel_nchw, p):
    x = jnp.transpose(data_nchw, (0, 2, 3, 1)).astype(jnp.float32)
    cd = jnp.transpose(channel_nchw, (0, 2, 3, 1)).astype(jnp.float32)
    c1 = lax.conv_general_dilated(x, p["w1"], (1, 1), "SAME",
                                  dimension_numbers=("NHWC", "HWIO", "NHWC")) + p["b1"]
    r1 = jax.nn.relu(_bn_ref(c1, p["g1"], p["be1"]))
    c2 = jnp.einsum("nhwc,cd->nhwd", r1, p["w2"]) + p["b2"]
    fs1 = jax.nn.relu(_bn_ref(c2, p["g2"], p["be2"]))
    d3 = jax.nn.relu(cd + fs1)
    gate = jnp.einsum("nhwc,co->nhwo", d3, p["w4"]) + p["b4"]
    a = jax.nn.sigmoid(gate)
    y = a * cd
    y1 = (1.0 - a) * fs1
    cat = jnp.concatenate([y, y1], axis=-1)
    c3 = jnp.einsum("nhwc,cd->nhwd", cat, p["w3"]) + p["b3"]
    out = _bn_ref(c3, p["g3"], p["be3"])
    return jnp.transpose(out, (0, 3, 1, 2))


if __name__ == "__main__":
    N, Cin, Cout, H, W = 2, 4, 8, 16, 16

    key = jax.random.PRNGKey(0)
    k_data, k_cd, k_par = jax.random.split(key, 3)
    data = jax.random.normal(k_data, (N, Cin, H, W), jnp.float32)
    channel_data = jax.random.normal(k_cd, (N, Cout, H, W), jnp.float32)

    pk = jax.random.split(k_par, 14)
    params = {
        "w1": 0.2 * jax.random.normal(pk[0], (3, 3, Cin, Cout), jnp.float32),
        "b1": 0.1 * jax.random.normal(pk[1], (Cout,), jnp.float32),
        "g1": 1.0 + 0.1 * jax.random.normal(pk[2], (Cout,), jnp.float32),
        "be1": 0.1 * jax.random.normal(pk[3], (Cout,), jnp.float32),
        "w2": 0.2 * jax.random.normal(pk[4], (Cout, Cout), jnp.float32),
        "b2": 0.1 * jax.random.normal(pk[5], (Cout,), jnp.float32),
        "g2": 1.0 + 0.1 * jax.random.normal(pk[6], (Cout,), jnp.float32),
        "be2": 0.1 * jax.random.normal(pk[7], (Cout,), jnp.float32),
        "w4": 0.2 * jax.random.normal(pk[8], (Cout, 1), jnp.float32),
        "b4": 0.1 * jax.random.normal(pk[9], (1,), jnp.float32),
        "w3": 0.2 * jax.random.normal(pk[10], (2 * Cout, Cout), jnp.float32),
        "b3": 0.1 * jax.random.normal(pk[11], (Cout,), jnp.float32),
        "g3": 1.0 + 0.1 * jax.random.normal(pk[12], (Cout,), jnp.float32),
        "be3": 0.1 * jax.random.normal(pk[13], (Cout,), jnp.float32),
    }

    out = spatial_block(data, channel_data, params)
    jax.block_until_ready(out)

    ref = spatial_block_ref(data, channel_data, params)
    assert out.shape == (N, Cout, H, W)
    max_err = float(jnp.max(jnp.abs(out - ref)))
    # Kernel uses bf16 matmul operands / bf16 channel_data (f32 accumulation);
    # reference is pure f32.
    assert jnp.allclose(out, ref, atol=5e-2, rtol=5e-2), max_err

    print("KERNEL_OK")
</pallas_src>

<mosaic_0001>
module attributes {stable_mosaic.version = 11 : i64} {
  func.func @_conv1_kernel(%arg0: i32, %arg1: memref<512x36xbf16, #tpu.memory_space<vmem>>, %arg2: memref<36x8xbf16, #tpu.memory_space<vmem>>, %arg3: memref<512x8xbf16, #tpu.memory_space<vmem>>, %arg4: memref<1x1x8xf32, #tpu.memory_space<vmem>>, %arg5: memref<1x1x8xf32, #tpu.memory_space<vmem>>) attributes {dimension_semantics = [#tpu.dimension_semantics<parallel>], iteration_bounds = array<i64: 1>, scalar_prefetch = 0 : i64, scratch_operands = 0 : i64, tpu.core_type = #tpu.core_type<tc>, window_params = [{transform_indices = @transform_0, window_bounds = array<i64: 512, 36>}, {pipeline_mode = #tpu.pipeline_mode<synchronous>, transform_indices = @transform_1, window_bounds = array<i64: 36, 8>}, {transform_indices = @transform_2, window_bounds = array<i64: 512, 8>}, {transform_indices = @transform_3, window_bounds = array<i64: 1, 1, 8>}, {transform_indices = @transform_4, window_bounds = array<i64: 1, 1, 8>}]} {
    %c0 = arith.constant 0 : index
    %c0_0 = arith.constant 0 : index
    %0 = vector.load %arg1[%c0, %c0_0] : memref<512x36xbf16, #tpu.memory_space<vmem>>, vector<512x36xbf16>
    %c0_1 = arith.constant 0 : index
    %c0_2 = arith.constant 0 : index
    %1 = vector.load %arg2[%c0_1, %c0_2] : memref<36x8xbf16, #tpu.memory_space<vmem>>, vector<36x8xbf16>
    %cst = arith.constant dense<0.000000e+00> : vector<512x8xf32>
    %2 = tpu.matmul %0, %1, %cst {dimension_numbers = #tpu.dot_dimension_numbers<[1], [0], [0], [1], [0, 0, 1, 1], [], []>} : vector<512x36xbf16>, vector<36x8xbf16>, vector<512x8xf32> -> vector<512x8xf32>
    %3 = arith.truncf %2 : vector<512x8xf32> to vector<512x8xbf16>
    %c0_3 = arith.constant 0 : index
    %c0_4 = arith.constant 0 : index
    %4 = vector.load %arg3[%c0_3, %c0_4] : memref<512x8xbf16, #tpu.memory_space<vmem>>, vector<512x8xbf16>
    tpu.vector_store %arg3[%c0_3, %c0_4], %3 {strides = array<i32>} : memref<512x8xbf16, #tpu.memory_space<vmem>>, vector<512x8xbf16>,
    %5 = tpu.iota {dimensions = array<i32: 0>} : vector<512x1xi32>
    %c512_i32 = arith.constant 512 : i32
    %6 = arith.muli %arg0, %c512_i32 : i32
    %7 = vector.broadcast %6 : i32 to vector<512x1xi32>
    %8 = arith.addi %5, %7 : vector<512x1xi32>
    %c512_i32_5 = arith.constant 512 : i32
    %9 = vector.broadcast %c512_i32_5 : i32 to vector<512x1xi32>
    %10 = arith.cmpi slt, %8, %9 : vector<512x1xi32>
    %cst_6 = arith.constant 0.000000e+00 : f32
    %11 = vector.shape_cast %10 : vector<512x1xi1> to vector<512x1xi1>
    %12 = vector.broadcast %11 : vector<512x1xi1> to vector<512x8xi1>
    %13 = vector.broadcast %cst_6 : f32 to vector<512x8xf32>
    %14 = arith.select %12, %2, %13 : vector<512x8xi1>, vector<512x8xf32>
    %cst_7 = arith.constant dense<0.000000e+00> : vector<8xf32>
    %15 = vector.multi_reduction <add>, %14, %cst_7 [0] : vector<512x8xf32> to vector<8xf32>
    %16 = vector.shape_cast %15 : vector<8xf32> to vector<1x8xf32>
    %c512_i32_8 = arith.constant 512 : i32
    %17 = arith.muli %arg0, %c512_i32_8 : i32
    %c512_i32_9 = arith.constant 512 : i32
    %18 = arith.subi %c512_i32_9, %17 : i32
    %c512_i32_10 = arith.constant 512 : i32
    %19 = arith.minsi %c512_i32_10, %18 : i32
    %c1_i32 = arith.constant 1 : i32
    %20 = arith.maxsi %19, %c1_i32 : i32
    %21 = arith.sitofp %20 : i32 to f32
    %22 = vector.broadcast %21 : f32 to vector<1x8xf32>
    %23 = arith.divf %16, %22 : vector<1x8xf32>
    %24 = vector.broadcast %23 : vector<1x8xf32> to vector<512x8xf32>
    %25 = arith.subf %2, %24 : vector<512x8xf32>
    %cst_11 = arith.constant 0.000000e+00 : f32
    %26 = vector.shape_cast %10 : vector<512x1xi1> to vector<512x1xi1>
    %27 = vector.broadcast %26 : vector<512x1xi1> to vector<512x8xi1>
    %28 = vector.broadcast %cst_11 : f32 to vector<512x8xf32>
    %29 = arith.select %27, %25, %28 : vector<512x8xi1>, vector<512x8xf32>
    %30 = arith.mulf %29, %29 : vector<512x8xf32>
    %cst_12 = arith.constant dense<0.000000e+00> : vector<8xf32>
    %31 = vector.multi_reduction <add>, %30, %cst_12 [0] : vector<512x8xf32> to vector<8xf32>
    %32 = vector.shape_cast %31 : vector<8xf32> to vector<1x8xf32>
    %33 = vector.shape_cast %16 : vector<1x8xf32> to vector<1x1x8xf32>
    %c0_13 = arith.constant 0 : index
    %c0_14 = arith.constant 0 : index
    %c0_15 = arith.constant 0 : index
    %34 = vector.load %arg4[%c0_13, %c0_14, %c0_15] : memref<1x1x8xf32, #tpu.memory_space<vmem>>, vector<1x1x8xf32>
    tpu.vector_store %arg4[%c0_13, %c0_14, %c0_15], %33 {strides = array<i32>} : memref<1x1x8xf32, #tpu.memory_space<vmem>>, vector<1x1x8xf32>,
    %35 = vector.shape_cast %32 : vector<1x8xf32> to vector<1x1x8xf32>
    %c0_16 = arith.constant 0 : index
    %c0_17 = arith.constant 0 : index
    %c0_18 = arith.constant 0 : index
    %36 = vector.load %arg5[%c0_16, %c0_17, %c0_18] : memref<1x1x8xf32, #tpu.memory_space<vmem>>, vector<1x1x8xf32>
    tpu.vector_store %arg5[%c0_16, %c0_17, %c0_18], %35 {strides = array<i32>} : memref<1x1x8xf32, #tpu.memory_space<vmem>>, vector<1x1x8xf32>,
    return
  }
  func.func @transform_0(%arg0: i32) -> (i32, i32) {
    %c0_i32 = arith.constant 0 : i32
    %c0_i32_0 = arith.constant 0 : i32
    return %arg0, %c0_i32 : i32, i32
  }
  func.func @transform_1(%arg0: i32) -> (i32, i32) {
    %c0_i32 = arith.constant 0 : i32
    %c0_i32_0 = arith.constant 0 : i32
    %c0_i32_1 = arith.constant 0 : i32
    return %c0_i32, %c0_i32_0 : i32, i32
  }
  func.func @transform_2(%arg0: i32) -> (i32, i32) {
    %c0_i32 = arith.constant 0 : i32
    %c0_i32_0 = arith.constant 0 : i32
    return %arg0, %c0_i32 : i32, i32
  }
  func.func @transform_3(%arg0: i32) -> (i32, i32, i32) {
    %c0_i32 = arith.constant 0 : i32
    %c0_i32_0 = arith.constant 0 : i32
    %c0_i32_1 = arith.constant 0 : i32
    return %arg0, %c0_i32, %c0_i32_0 : i32, i32, i32
  }
  func.func @transform_4(%arg0: i32) -> (i32, i32, i32) {
    %c0_i32 = arith.constant 0 : i32
    %c0_i32_0 = arith.constant 0 : i32
    %c0_i32_1 = arith.constant 0 : i32
    return %arg0, %c0_i32, %c0_i32_0 : i32, i32, i32
  }
}

module attributes {stable_mosaic.version = 11 : i64} {
  func.func @_conv2_kernel(%arg0: i32, %arg1: memref<512x8xbf16, #tpu.memory_space<vmem>>, %arg2: memref<1x8xf32, #tpu.memory_space<vmem>>, %arg3: memref<1x8xf32, #tpu.memory_space<vmem>>, %arg4: memref<8x8xbf16, #tpu.memory_space<vmem>>, %arg5: memref<512x8xbf16, #tpu.memory_space<vmem>>, %arg6: memref<1x1x8xf32, #tpu.memory_space<vmem>>, %arg7: memref<1x1x8xf32, #tpu.memory_space<vmem>>) attributes {dimension_semantics = [#tpu.dimension_semantics<parallel>], iteration_bounds = array<i64: 1>, scalar_prefetch = 0 : i64, scratch_operands = 0 : i64, tpu.core_type = #tpu.core_type<tc>, window_params = [{transform_indices = @transform_0, window_bounds = array<i64: 512, 8>}, {pipeline_mode = #tpu.pipeline_mode<synchronous>, transform_indices = @transform_1, window_bounds = array<i64: 1, 8>}, {pipeline_mode = #tpu.pipeline_mode<synchronous>, transform_indices = @transform_2, window_bounds = array<i64: 1, 8>}, {pipeline_mode = #tpu.pipeline_mode<synchronous>, transform_indices = @transform_3, window_bounds = array<i64: 8, 8>}, {transform_indices = @transform_4, window_bounds = array<i64: 512, 8>}, {transform_indices = @transform_5, window_bounds = array<i64: 1, 1, 8>}, {transform_indices = @transform_6, window_bounds = array<i64: 1, 1, 8>}]} {
    %c0 = arith.constant 0 : index
    %c0_0 = arith.constant 0 : index
    %0 = vector.load %arg1[%c0, %c0_0] : memref<512x8xbf16, #tpu.memory_space<vmem>>, vector<512x8xbf16>
    %1 = arith.extf %0 : vector<512x8xbf16> to vector<512x8xf32>
    %c0_1 = arith.constant 0 : index
    %c0_2 = arith.constant 0 : index
    %2 = vector.load %arg2[%c0_1, %c0_2] : memref<1x8xf32, #tpu.memory_space<vmem>>, vector<1x8xf32>
    %3 = vector.broadcast %2 : vector<1x8xf32> to vector<512x8xf32>
    %4 = arith.mulf %1, %3 : vector<512x8xf32>
    %c0_3 = arith.constant 0 : index
    %c0_4 = arith.constant 0 : index
    %5 = vector.load %arg3[%c0_3, %c0_4] : memref<1x8xf32, #tpu.memory_space<vmem>>, vector<1x8xf32>
    %6 = vector.broadcast %5 : vector<1x8xf32> to vector<512x8xf32>
    %7 = arith.addf %4, %6 : vector<512x8xf32>
    %cst = arith.constant 0.000000e+00 : f32
    %8 = vector.broadcast %cst : f32 to vector<512x8xf32>
    %9 = arith.maximumf %7, %8 : vector<512x8xf32>
    %10 = arith.truncf %9 : vector<512x8xf32> to vector<512x8xbf16>
    %c0_5 = arith.constant 0 : index
    %c0_6 = arith.constant 0 : index
    %11 = vector.load %arg4[%c0_5, %c0_6] : memref<8x8xbf16, #tpu.memory_space<vmem>>, vector<8x8xbf16>
    %cst_7 = arith.constant dense<0.000000e+00> : vector<512x8xf32>
    %12 = tpu.matmul %10, %11, %cst_7 {dimension_numbers = #tpu.dot_dimension_numbers<[1], [0], [0], [1], [0, 0, 1, 1], [], []>} : vector<512x8xbf16>, vector<8x8xbf16>, vector<512x8xf32> -> vector<512x8xf32>
    %13 = arith.truncf %12 : vector<512x8xf32> to vector<512x8xbf16>
    %c0_8 = arith.constant 0 : index
    %c0_9 = arith.constant 0 : index
    %14 = vector.load %arg5[%c0_8, %c0_9] : memref<512x8xbf16, #tpu.memory_space<vmem>>, vector<512x8xbf16>
    tpu.vector_store %arg5[%c0_8, %c0_9], %13 {strides = array<i32>} : memref<512x8xbf16, #tpu.memory_space<vmem>>, vector<512x8xbf16>,
    %15 = tpu.iota {dimensions = array<i32: 0>} : vector<512x1xi32>
    %c512_i32 = arith.constant 512 : i32
    %16 = arith.muli %arg0, %c512_i32 : i32
    %17 = vector.broadcast %16 : i32 to vector<512x1xi32>
    %18 = arith.addi %15, %17 : vector<512x1xi32>
    %c512_i32_10 = arith.constant 512 : i32
    %19 = vector.broadcast %c512_i32_10 : i32 to vector<512x1xi32>
    %20 = arith.cmpi slt, %18, %19 : vector<512x1xi32>
    %cst_11 = arith.constant 0.000000e+00 : f32
    %21 = vector.shape_cast %20 : vector<512x1xi1> to vector<512x1xi1>
    %22 = vector.broadcast %21 : vector<512x1xi1> to vector<512x8xi1>
    %23 = vector.broadcast %cst_11 : f32 to vector<512x8xf32>
    %24 = arith.select %22, %12, %23 : vector<512x8xi1>, vector<512x8xf32>
    %cst_12 = arith.constant dense<0.000000e+00> : vector<8xf32>
    %25 = vector.multi_reduction <add>, %24, %cst_12 [0] : vector<512x8xf32> to vector<8xf32>
    %26 = vector.shape_cast %25 : vector<8xf32> to vector<1x8xf32>
    %c512_i32_13 = arith.constant 512 : i32
    %27 = arith.muli %arg0, %c512_i32_13 : i32
    %c512_i32_14 = arith.constant 512 : i32
    %28 = arith.subi %c512_i32_14, %27 : i32
    %c512_i32_15 = arith.constant 512 : i32
    %29 = arith.minsi %c512_i32_15, %28 : i32
    %c1_i32 = arith.constant 1 : i32
    %30 = arith.maxsi %29, %c1_i32 : i32
    %31 = arith.sitofp %30 : i32 to f32
    %32 = vector.broadcast %31 : f32 to vector<1x8xf32>
    %33 = arith.divf %26, %32 : vector<1x8xf32>
    %34 = vector.broadcast %33 : vector<1x8xf32> to vector<512x8xf32>
    %35 = arith.subf %12, %34 : vector<512x8xf32>
    %cst_16 = arith.constant 0.000000e+00 : f32
    %36 = vector.shape_cast %20 : vector<512x1xi1> to vector<512x1xi1>
    %37 = vector.broadcast %36 : vector<512x1xi1> to vector<512x8xi1>
    %38 = vector.broadcast %cst_16 : f32 to vector<512x8xf32>
    %39 = arith.select %37, %35, %38 : vector<512x8xi1>, vector<512x8xf32>
    %40 = arith.mulf %39, %39 : vector<512x8xf32>
    %cst_17 = arith.constant dense<0.000000e+00> : vector<8xf32>
    %41 = vector.multi_reduction <add>, %40, %cst_17 [0] : vector<512x8xf32> to vector<8xf32>
    %42 = vector.shape_cast %41 : vector<8xf32> to vector<1x8xf32>
    %43 = vector.shape_cast %26 : vector<1x8xf32> to vector<1x1x8xf32>
    %c0_18 = arith.constant 0 : index
    %c0_19 = arith.constant 0 : index
    %c0_20 = arith.constant 0 : index
    %44 = vector.load %arg6[%c0_18, %c0_19, %c0_20] : memref<1x1x8xf32, #tpu.memory_space<vmem>>, vector<1x1x8xf32>
    tpu.vector_store %arg6[%c0_18, %c0_19, %c0_20], %43 {strides = array<i32>} : memref<1x1x8xf32, #tpu.memory_space<vmem>>, vector<1x1x8xf32>,
    %45 = vector.shape_cast %42 : vector<1x8xf32> to vector<1x1x8xf32>
    %c0_21 = arith.constant 0 : index
    %c0_22 = arith.constant 0 : index
    %c0_23 = arith.constant 0 : index
    %46 = vector.load %arg7[%c0_21, %c0_22, %c0_23] : memref<1x1x8xf32, #tpu.memory_space<vmem>>, vector<1x1x8xf32>
    tpu.vector_store %arg7[%c0_21, %c0_22, %c0_23], %45 {strides = array<i32>} : memref<1x1x8xf32, #tpu.memory_space<vmem>>, vector<1x1x8xf32>,
    return
  }
  func.func @transform_0(%arg0: i32) -> (i32, i32) {
    %c0_i32 = arith.constant 0 : i32
    %c0_i32_0 = arith.constant 0 : i32
    return %arg0, %c0_i32 : i32, i32
  }
  func.func @transform_1(%arg0: i32) -> (i32, i32) {
    %c0_i32 = arith.constant 0 : i32
    %c0_i32_0 = arith.constant 0 : i32
    %c0_i32_1 = arith.constant 0 : i32
    return %c0_i32, %c0_i32_0 : i32, i32
  }
  func.func @transform_2(%arg0: i32) -> (i32, i32) {
    %c0_i32 = arith.constant 0 : i32
    %c0_i32_0 = arith.constant 0 : i32
    %c0_i32_1 = arith.constant 0 : i32
    return %c0_i32, %c0_i32_0 : i32, i32
  }
  func.func @transform_3(%arg0: i32) -> (i32, i32) {
    %c0_i32 = arith.constant 0 : i32
    %c0_i32_0 = arith.constant 0 : i32
    %c0_i32_1 = arith.constant 0 : i32
    return %c0_i32, %c0_i32_0 : i32, i32
  }
  func.func @transform_4(%arg0: i32) -> (i32, i32) {
    %c0_i32 = arith.constant 0 : i32
    %c0_i32_0 = arith.constant 0 : i32
    return %arg0, %c0_i32 : i32, i32
  }
  func.func @transform_5(%arg0: i32) -> (i32, i32, i32) {
    %c0_i32 = arith.constant 0 : i32
    %c0_i32_0 = arith.constant 0 : i32
    %c0_i32_1 = arith.constant 0 : i32
    return %arg0, %c0_i32, %c0_i32_0 : i32, i32, i32
  }
  func.func @transform_6(%arg0: i32) -> (i32, i32, i32) {
    %c0_i32 = arith.constant 0 : i32
    %c0_i32_0 = arith.constant 0 : i32
    %c0_i32_1 = arith.constant 0 : i32
    return %arg0, %c0_i32, %c0_i32_0 : i32, i32, i32
  }
}

module attributes {stable_mosaic.version = 11 : i64} {
  func.func @_gate_conv3_kernel(%arg0: i32, %arg1: memref<512x8xbf16, #tpu.memory_space<vmem>>, %arg2: memref<512x8xbf16, #tpu.memory_space<vmem>>, %arg3: memref<1x8xf32, #tpu.memory_space<vmem>>, %arg4: memref<1x8xf32, #tpu.memory_space<vmem>>, %arg5: memref<1x8xf32, #tpu.memory_space<vmem>>, %arg6: memref<1x1xf32, #tpu.memory_space<vmem>>, %arg7: memref<8x8xbf16, #tpu.memory_space<vmem>>, %arg8: memref<8x8xbf16, #tpu.memory_space<vmem>>, %arg9: memref<512x8xbf16, #tpu.memory_space<vmem>>, %arg10: memref<1x1x8xf32, #tpu.memory_space<vmem>>, %arg11: memref<1x1x8xf32, #tpu.memory_space<vmem>>) attributes {dimension_semantics = [#tpu.dimension_semantics<parallel>], iteration_bounds = array<i64: 1>, scalar_prefetch = 0 : i64, scratch_operands = 0 : i64, tpu.core_type = #tpu.core_type<tc>, window_params = [{transform_indices = @transform_0, window_bounds = array<i64: 512, 8>}, {transform_indices = @transform_1, window_bounds = array<i64: 512, 8>}, {pipeline_mode = #tpu.pipeline_mode<synchronous>, transform_indices = @transform_2, window_bounds = array<i64: 1, 8>}, {pipeline_mode = #tpu.pipeline_mode<synchronous>, transform_indices = @transform_3, window_bounds = array<i64: 1, 8>}, {pipeline_mode = #tpu.pipeline_mode<synchronous>, transform_indices = @transform_4, window_bounds = array<i64: 1, 8>}, {pipeline_mode = #tpu.pipeline_mode<synchronous>, transform_indices = @transform_5, window_bounds = array<i64: 1, 1>}, {pipeline_mode = #tpu.pipeline_mode<synchronous>, transform_indices = @transform_6, window_bounds = array<i64: 8, 8>}, {pipeline_mode = #tpu.pipeline_mode<synchronous>, transform_indices = @transform_7, window_bounds = array<i64: 8, 8>}, {transform_indices = @transform_8, window_bounds = array<i64: 512, 8>}, {transform_indices = @transform_9, window_bounds = array<i64: 1, 1, 8>}, {transform_indices = @transform_10, window_bounds = array<i64: 1, 1, 8>}]} {
    %c0 = arith.constant 0 : index
    %c0_0 = arith.constant 0 : index
    %0 = vector.load %arg1[%c0, %c0_0] : memref<512x8xbf16, #tpu.memory_space<vmem>>, vector<512x8xbf16>
    %1 = arith.extf %0 : vector<512x8xbf16> to vector<512x8xf32>
    %c0_1 = arith.constant 0 : index
    %c0_2 = arith.constant 0 : index
    %2 = vector.load %arg3[%c0_1, %c0_2] : memref<1x8xf32, #tpu.memory_space<vmem>>, vector<1x8xf32>
    %3 = vector.broadcast %2 : vector<1x8xf32> to vector<512x8xf32>
    %4 = arith.mulf %1, %3 : vector<512x8xf32>
    %c0_3 = arith.constant 0 : index
    %c0_4 = arith.constant 0 : index
    %5 = vector.load %arg4[%c0_3, %c0_4] : memref<1x8xf32, #tpu.memory_space<vmem>>, vector<1x8xf32>
    %6 = vector.broadcast %5 : vector<1x8xf32> to vector<512x8xf32>
    %7 = arith.addf %4, %6 : vector<512x8xf32>
    %cst = arith.constant 0.000000e+00 : f32
    %8 = vector.broadcast %cst : f32 to vector<512x8xf32>
    %9 = arith.maximumf %7, %8 : vector<512x8xf32>
    %c0_5 = arith.constant 0 : index
    %c0_6 = arith.constant 0 : index
    %10 = vector.load %arg2[%c0_5, %c0_6] : memref<512x8xbf16, #tpu.memory_space<vmem>>, vector<512x8xbf16>
    %11 = arith.extf %10 : vector<512x8xbf16> to vector<512x8xf32>
    %12 = arith.addf %11, %9 : vector<512x8xf32>
    %cst_7 = arith.constant 0.000000e+00 : f32
    %13 = vector.broadcast %cst_7 : f32 to vector<512x8xf32>
    %14 = arith.maximumf %12, %13 : vector<512x8xf32>
    %c0_8 = arith.constant 0 : index
    %c0_9 = arith.constant 0 : index
    %15 = vector.load %arg5[%c0_8, %c0_9] : memref<1x8xf32, #tpu.memory_space<vmem>>, vector<1x8xf32>
    %16 = vector.broadcast %15 : vector<1x8xf32> to vector<512x8xf32>
    %17 = arith.mulf %14, %16 : vector<512x8xf32>
    %cst_10 = arith.constant dense<0.000000e+00> : vector<512xf32>
    %18 = vector.multi_reduction <add>, %17, %cst_10 [1] : vector<512x8xf32> to vector<512xf32>
    %19 = vector.shape_cast %18 : vector<512xf32> to vector<512x1xf32>
    %c0_11 = arith.constant 0 : index
    %c0_12 = arith.constant 0 : index
    %20 = vector.load %arg6[%c0_11, %c0_12] : memref<1x1xf32, #tpu.memory_space<vmem>>, vector<1x1xf32>
    %21 = vector.broadcast %20 : vector<1x1xf32> to vector<512x1xf32>
    %22 = arith.addf %19, %21 : vector<512x1xf32>
    %cst_13 = arith.constant 0.000000e+00 : f32
    %23 = vector.broadcast %cst_13 : f32 to vector<512x1xf32>
    %24 = arith.subf %23, %22 : vector<512x1xf32>
    %25 = math.exp %24 : vector<512x1xf32>
    %cst_14 = arith.constant 1.000000e+00 : f32
    %26 = vector.broadcast %cst_14 : f32 to vector<512x1xf32>
    %27 = arith.addf %26, %25 : vector<512x1xf32>
    %28 = tpu.reciprocal %27 {approx = true} : vector<512x1xf32> -> vector<512x1xf32>
    %29 = vector.broadcast %28 : vector<512x1xf32> to vector<512x8xf32>
    %30 = arith.mulf %29, %11 : vector<512x8xf32>
    %31 = arith.truncf %30 : vector<512x8xf32> to vector<512x8xbf16>
    %cst_15 = arith.constant 1.000000e+00 : f32
    %32 = vector.broadcast %cst_15 : f32 to vector<512x1xf32>
    %33 = arith.subf %32, %28 : vector<512x1xf32>
    %34 = vector.broadcast %33 : vector<512x1xf32> to vector<512x8xf32>
    %35 = arith.mulf %34, %9 : vector<512x8xf32>
    %36 = arith.truncf %35 : vector<512x8xf32> to vector<512x8xbf16>
    %c0_16 = arith.constant 0 : index
    %c0_17 = arith.constant 0 : index
    %37 = vector.load %arg7[%c0_16, %c0_17] : memref<8x8xbf16, #tpu.memory_space<vmem>>, vector<8x8xbf16>
    %cst_18 = arith.constant dense<0.000000e+00> : vector<512x8xf32>
    %38 = tpu.matmul %31, %37, %cst_18 {dimension_numbers = #tpu.dot_dimension_numbers<[1], [0], [0], [1], [0, 0, 1, 1], [], []>} : vector<512x8xbf16>, vector<8x8xbf16>, vector<512x8xf32> -> vector<512x8xf32>
    %c0_19 = arith.constant 0 : index
    %c0_20 = arith.constant 0 : index
    %39 = vector.load %arg8[%c0_19, %c0_20] : memref<8x8xbf16, #tpu.memory_space<vmem>>, vector<8x8xbf16>
    %cst_21 = arith.constant dense<0.000000e+00> : vector<512x8xf32>
    %40 = tpu.matmul %36, %39, %cst_21 {dimension_numbers = #tpu.dot_dimension_numbers<[1], [0], [0], [1], [0, 0, 1, 1], [], []>} : vector<512x8xbf16>, vector<8x8xbf16>, vector<512x8xf32> -> vector<512x8xf32>
    %41 = arith.addf %38, %40 : vector<512x8xf32>
    %42 = arith.truncf %41 : vector<512x8xf32> to vector<512x8xbf16>
    %c0_22 = arith.constant 0 : index
    %c0_23 = arith.constant 0 : index
    %43 = vector.load %arg9[%c0_22, %c0_23] : memref<512x8xbf16, #tpu.memory_space<vmem>>, vector<512x8xbf16>
    tpu.vector_store %arg9[%c0_22, %c0_23], %42 {strides = array<i32>} : memref<512x8xbf16, #tpu.memory_space<vmem>>, vector<512x8xbf16>,
    %44 = tpu.iota {dimensions = array<i32: 0>} : vector<512x1xi32>
    %c512_i32 = arith.constant 512 : i32
    %45 = arith.muli %arg0, %c512_i32 : i32
    %46 = vector.broadcast %45 : i32 to vector<512x1xi32>
    %47 = arith.addi %44, %46 : vector<512x1xi32>
    %c512_i32_24 = arith.constant 512 : i32
    %48 = vector.broadcast %c512_i32_24 : i32 to vector<512x1xi32>
    %49 = arith.cmpi slt, %47, %48 : vector<512x1xi32>
    %cst_25 = arith.constant 0.000000e+00 : f32
    %50 = vector.shape_cast %49 : vector<512x1xi1> to vector<512x1xi1>
    %51 = vector.broadcast %50 : vector<512x1xi1> to vector<512x8xi1>
    %52 = vector.broadcast %cst_25 : f32 to vector<512x8xf32>
    %53 = arith.select %51, %41, %52 : vector<512x8xi1>, vector<512x8xf32>
    %cst_26 = arith.constant dense<0.000000e+00> : vector<8xf32>
    %54 = vector.multi_reduction <add>, %53, %cst_26 [0] : vector<512x8xf32> to vector<8xf32>
    %55 = vector.shape_cast %54 : vector<8xf32> to vector<1x8xf32>
    %c512_i32_27 = arith.constant 512 : i32
    %56 = arith.muli %arg0, %c512_i32_27 : i32
    %c512_i32_28 = arith.constant 512 : i32
    %57 = arith.subi %c512_i32_28, %56 : i32
    %c512_i32_29 = arith.constant 512 : i32
    %58 = arith.minsi %c512_i32_29, %57 : i32
    %c1_i32 = arith.constant 1 : i32
    %59 = arith.maxsi %58, %c1_i32 : i32
    %60 = arith.sitofp %59 : i32 to f32
    %61 = vector.broadcast %60 : f32 to vector<1x8xf32>
    %62 = arith.divf %55, %61 : vector<1x8xf32>
    %63 = vector.broadcast %62 : vector<1x8xf32> to vector<512x8xf32>
    %64 = arith.subf %41, %63 : vector<512x8xf32>
    %cst_30 = arith.constant 0.000000e+00 : f32
    %65 = vector.shape_cast %49 : vector<512x1xi1> to vector<512x1xi1>
    %66 = vector.broadcast %65 : vector<512x1xi1> to vector<512x8xi1>
    %67 = vector.broadcast %cst_30 : f32 to vector<512x8xf32>
    %68 = arith.select %66, %64, %67 : vector<512x8xi1>, vector<512x8xf32>
    %69 = arith.mulf %68, %68 : vector<512x8xf32>
    %cst_31 = arith.constant dense<0.000000e+00> : vector<8xf32>
    %70 = vector.multi_reduction <add>, %69, %cst_31 [0] : vector<512x8xf32> to vector<8xf32>
    %71 = vector.shape_cast %70 : vector<8xf32> to vector<1x8xf32>
    %72 = vector.shape_cast %55 : vector<1x8xf32> to vector<1x1x8xf32>
    %c0_32 = arith.constant 0 : index
    %c0_33 = arith.constant 0 : index
    %c0_34 = arith.constant 0 : index
    %73 = vector.load %arg10[%c0_32, %c0_33, %c0_34] : memref<1x1x8xf32, #tpu.memory_space<vmem>>, vector<1x1x8xf32>
    tpu.vector_store %arg10[%c0_32, %c0_33, %c0_34], %72 {strides = array<i32>} : memref<1x1x8xf32, #tpu.memory_space<vmem>>, vector<1x1x8xf32>,
    %74 = vector.shape_cast %71 : vector<1x8xf32> to vector<1x1x8xf32>
    %c0_35 = arith.constant 0 : index
    %c0_36 = arith.constant 0 : index
    %c0_37 = arith.constant 0 : index
    %75 = vector.load %arg11[%c0_35, %c0_36, %c0_37] : memref<1x1x8xf32, #tpu.memory_space<vmem>>, vector<1x1x8xf32>
    tpu.vector_store %arg11[%c0_35, %c0_36, %c0_37], %74 {strides = array<i32>} : memref<1x1x8xf32, #tpu.memory_space<vmem>>, vector<1x1x8xf32>,
    return
  }
  func.func @transform_0(%arg0: i32) -> (i32, i32) {
    %c0_i32 = arith.constant 0 : i32
    %c0_i32_0 = arith.constant 0 : i32
    return %arg0, %c0_i32 : i32, i32
  }
  func.func @transform_1(%arg0: i32) -> (i32, i32) {
    %c0_i32 = arith.constant 0 : i32
    %c0_i32_0 = arith.constant 0 : i32
    return %arg0, %c0_i32 : i32, i32
  }
  func.func @transform_2(%arg0: i32) -> (i32, i32) {
    %c0_i32 = arith.constant 0 : i32
    %c0_i32_0 = arith.constant 0 : i32
    %c0_i32_1 = arith.constant 0 : i32
    return %c0_i32, %c0_i32_0 : i32, i32
  }
  func.func @transform_3(%arg0: i32) -> (i32, i32) {
    %c0_i32 = arith.constant 0 : i32
    %c0_i32_0 = arith.constant 0 : i32
    %c0_i32_1 = arith.constant 0 : i32
    return %c0_i32, %c0_i32_0 : i32, i32
  }
  func.func @transform_4(%arg0: i32) -> (i32, i32) {
    %c0_i32 = arith.constant 0 : i32
    %c0_i32_0 = arith.constant 0 : i32
    %c0_i32_1 = arith.constant 0 : i32
    return %c0_i32, %c0_i32_0 : i32, i32
  }
  func.func @transform_5(%arg0: i32) -> (i32, i32) {
    %c0_i32 = arith.constant 0 : i32
    %c0_i32_0 = arith.constant 0 : i32
    %c0_i32_1 = arith.constant 0 : i32
    return %c0_i32, %c0_i32_0 : i32, i32
  }
  func.func @transform_6(%arg0: i32) -> (i32, i32) {
    %c0_i32 = arith.constant 0 : i32
    %c0_i32_0 = arith.constant 0 : i32
    %c0_i32_1 = arith.constant 0 : i32
    return %c0_i32, %c0_i32_0 : i32, i32
  }
  func.func @transform_7(%arg0: i32) -> (i32, i32) {
    %c0_i32 = arith.constant 0 : i32
    %c0_i32_0 = arith.constant 0 : i32
    %c0_i32_1 = arith.constant 0 : i32
    return %c0_i32, %c0_i32_0 : i32, i32
  }
  func.func @transform_8(%arg0: i32) -> (i32, i32) {
    %c0_i32 = arith.constant 0 : i32
    %c0_i32_0 = arith.constant 0 : i32
    return %arg0, %c0_i32 : i32, i32
  }
  func.func @transform_9(%arg0: i32) -> (i32, i32, i32) {
    %c0_i32 = arith.constant 0 : i32
    %c0_i32_0 = arith.constant 0 : i32
    %c0_i32_1 = arith.constant 0 : i32
    return %arg0, %c0_i32, %c0_i32_0 : i32, i32, i32
  }
  func.func @transform_10(%arg0: i32) -> (i32, i32, i32) {
    %c0_i32 = arith.constant 0 : i32
    %c0_i32_0 = arith.constant 0 : i32
    %c0_i32_1 = arith.constant 0 : i32
    return %arg0, %c0_i32, %c0_i32_0 : i32, i32, i32
  }
}

module attributes {stable_mosaic.version = 11 : i64} {
  func.func @_bn3_kernel(%arg0: i32, %arg1: memref<512x8xbf16, #tpu.memory_space<vmem>>, %arg2: memref<1x8xf32, #tpu.memory_space<vmem>>, %arg3: memref<1x8xf32, #tpu.memory_space<vmem>>, %arg4: memref<512x8xf32, #tpu.memory_space<vmem>>) attributes {dimension_semantics = [#tpu.dimension_semantics<parallel>], iteration_bounds = array<i64: 1>, scalar_prefetch = 0 : i64, scratch_operands = 0 : i64, tpu.core_type = #tpu.core_type<tc>, window_params = [{transform_indices = @transform_0, window_bounds = array<i64: 512, 8>}, {pipeline_mode = #tpu.pipeline_mode<synchronous>, transform_indices = @transform_1, window_bounds = array<i64: 1, 8>}, {pipeline_mode = #tpu.pipeline_mode<synchronous>, transform_indices = @transform_2, window_bounds = array<i64: 1, 8>}, {transform_indices = @transform_3, window_bounds = array<i64: 512, 8>}]} {
    %c0 = arith.constant 0 : index
    %c0_0 = arith.constant 0 : index
    %0 = vector.load %arg1[%c0, %c0_0] : memref<512x8xbf16, #tpu.memory_space<vmem>>, vector<512x8xbf16>
    %1 = arith.extf %0 : vector<512x8xbf16> to vector<512x8xf32>
    %c0_1 = arith.constant 0 : index
    %c0_2 = arith.constant 0 : index
    %2 = vector.load %arg2[%c0_1, %c0_2] : memref<1x8xf32, #tpu.memory_space<vmem>>, vector<1x8xf32>
    %3 = vector.broadcast %2 : vector<1x8xf32> to vector<512x8xf32>
    %4 = arith.mulf %1, %3 : vector<512x8xf32>
    %c0_3 = arith.constant 0 : index
    %c0_4 = arith.constant 0 : index
    %5 = vector.load %arg3[%c0_3, %c0_4] : memref<1x8xf32, #tpu.memory_space<vmem>>, vector<1x8xf32>
    %6 = vector.broadcast %5 : vector<1x8xf32> to vector<512x8xf32>
    %7 = arith.addf %4, %6 : vector<512x8xf32>
    %c0_5 = arith.constant 0 : index
    %c0_6 = arith.constant 0 : index
    %8 = vector.load %arg4[%c0_5, %c0_6] : memref<512x8xf32, #tpu.memory_space<vmem>>, vector<512x8xf32>
    tpu.vector_store %arg4[%c0_5, %c0_6], %7 {strides = array<i32>} : memref<512x8xf32, #tpu.memory_space<vmem>>, vector<512x8xf32>,
    return
  }
  func.func @transform_0(%arg0: i32) -> (i32, i32) {
    %c0_i32 = arith.constant 0 : i32
    %c0_i32_0 = arith.constant 0 : i32
    return %arg0, %c0_i32 : i32, i32
  }
  func.func @transform_1(%arg0: i32) -> (i32, i32) {
    %c0_i32 = arith.constant 0 : i32
    %c0_i32_0 = arith.constant 0 : i32
    %c0_i32_1 = arith.constant 0 : i32
    return %c0_i32, %c0_i32_0 : i32, i32
  }
  func.func @transform_2(%arg0: i32) -> (i32, i32) {
    %c0_i32 = arith.constant 0 : i32
    %c0_i32_0 = arith.constant 0 : i32
    %c0_i32_1 = arith.constant 0 : i32
    return %c0_i32, %c0_i32_0 : i32, i32
  }
  func.func @transform_3(%arg0: i32) -> (i32, i32) {
    %c0_i32 = arith.constant 0 : i32
    %c0_i32_0 = arith.constant 0 : i32
    return %arg0, %c0_i32 : i32, i32
  }
}

</mosaic_0001>

<bundles_post_ra>
// kernel: spatial_block.4
= control target key start
LH: loop header
LB: loop body
LE: loop exit
PB: predicated region body
PF: predicated region fallthrough
CT: control target
= control target key end

     0   :  { %vm356_vm0 = vcmask 1041408   ;;  %vm259_vm1 = vcmask 293888   ;;  %vm905_vm2 = vcmask 60416   ;;  %vm1357_vm3 = vcmask 64512   ;;  %s3187_s1 = inlined_call_operand.vmem [shape: bf16[36,8], index: 1, kind: input, shape index: {}]   ;;  %s3188_s0 = inlined_call_operand.vmem [shape: bf16[512,36], index: 0, kind: input, shape index: {}]   ;;  %s3189_s2 = inlined_call_operand.vmem [shape: bf16[512,8], index: 2, kind: output, shape index: {0}]   ;;  %s3190_s3 = inlined_call_operand.vmem [shape: f32[1,1,8], index: 3, kind: output, shape index: {1}]   ;;  %s3191_s4 = inlined_call_operand.vmem [shape: f32[1,1,8], index: 4, kind: output, shape index: {2}]  }
   0x1   :  { %v2148_v0 = vld [vmem:[%s3187_s1 + $0x10] ss:$0 sps:$4 sm:$0x33]   ;;  %v2149_v1 = vld [vmem:[%s3187_s1 + $0x8] sm:$0xff]   ;;  %v2151_v3 = vld [vmem:[%s3188_s0] sm:$0xff]   ;;  %vm1825_vm4 = vcmask 57344  }
   0x2   :  { %2146 = vmatprep.subr.msk.bf16.mxu0 %vm356_vm0, %v2148_v0  ;;  %v358_v2 = vsel %vm356_vm0, %v2148_v0, 0  ;;  %2147 = vmatprep.subr.msk.bf16.mxu1 %vm356_vm0, %v2148_v0  ;;  %v2150_v4 = vld [vmem:[%s3187_s1] sm:$0xff]   ;;  %v2152_v5 = vld [vmem:[%s3188_s0 + $0x8] sm:$0xff]   ;;  %v2153_v6 = vld [vmem:[%s3188_s0 + $0x10] sm:$0xff]  }
   0x3   :  { %2071 = vmatpush3.bf16.msra.mxu0 %v358_v2  ;;  %2143 = vmatpush3.bf16.msra.mxu1 %v358_v2  ;;  %v2154_v7 = vld [vmem:[%s3188_s0 + $0x18] sm:$0xff]   ;;  %v2155_v8 = vld [vmem:[%s3188_s0 + $0x20] sm:$0xff]   ;;  %v2168_v10 = vld [vmem:[%s3188_s0 + $0x88] sm:$0xff]  }
   0x4   :  { %2072 = vmatprep.subr.bf16.mxu0 %v2149_v1  ;;  %2141 = vmatprep.subr.bf16.mxu1 %v2149_v1  ;;  %v2167_v9 = vld [vmem:[%s3188_s0 + $0x80] sm:$0xff]   ;;  %v2169_v11 = vld [vmem:[%s3188_s0 + $0x90] sm:$0xff]   ;;  %v2156_v12 = vld [vmem:[%s3188_s0 + $0x28] sm:$0xff]  }
   0x5   :  { %2076 = vmatprep.mubr.msk.bf16.mxu0 %vm259_vm1, %v2151_v3  ;;  %2108 = vmatprep.mubr.msk.bf16.mxu1 %vm259_vm1, %v2167_v9  ;;  %v2157_v13 = vld [vmem:[%s3188_s0 + $0x30] sm:$0xff]   ;;  %v2170_v14 = vld [vmem:[%s3188_s0 + $0x98] sm:$0xff]   ;;  %v2171_v15 = vld [vmem:[%s3188_s0 + $0xa0] sm:$0xff]  }
   0x6   :  { %v2158_v16 = vld [vmem:[%s3188_s0 + $0x38] sm:$0xff]   ;;  %v2172_v17 = vld [vmem:[%s3188_s0 + $0xa8] sm:$0xff]   ;;  %v2159_v18 = vld [vmem:[%s3188_s0 + $0x40] sm:$0xff]  }
   0x7   :  { %2073 = vmatpush3.bf16.msra.mxu0 %v2149_v1  ;;  %2144 = vmatpush3.bf16.msra.mxu1 %v2149_v1  ;;  %v2173_v19 = vld [vmem:[%s3188_s0 + $0xb0] sm:$0xff]   ;;  %v2160_v20 = vld [vmem:[%s3188_s0 + $0x48] sm:$0xff]   ;;  %v2174_v21 = vld [vmem:[%s3188_s0 + $0xb8] sm:$0xff]  }
   0x8   :  { %2074 = vmatprep.subr.bf16.mxu0 %v2150_v4  ;;  %2142 = vmatprep.subr.bf16.mxu1 %v2150_v4  ;;  %v2161_v22 = vld [vmem:[%s3188_s0 + $0x50] sm:$0xff]   ;;  %v2175_v23 = vld [vmem:[%s3188_s0 + $0xc0] sm:$0xff]   ;;  %v2162_v24 = vld [vmem:[%s3188_s0 + $0x58] sm:$0xff]  }
   0x9   :  { %v2176_v25 = vld [vmem:[%s3188_s0 + $0xc8] sm:$0xff]   ;;  %v2163_v26 = vld [vmem:[%s3188_s0 + $0x60] sm:$0xff]   ;;  %v2177_v27 = vld [vmem:[%s3188_s0 + $0xd0] sm:$0xff]  }
   0xa   :  { %v2164_v28 = vld [vmem:[%s3188_s0 + $0x68] sm:$0xff]   ;;  %v2178_v29 = vld [vmem:[%s3188_s0 + $0xd8] sm:$0xff]   ;;  %v2165_v30 = vld [vmem:[%s3188_s0 + $0x70] sm:$0xff]  }
   0xb   :  { %2075 = vmatpush3.bf16.msra.mxu0 %v2150_v4  ;;  %2145 = vmatpush3.bf16.msra.mxu1 %v2150_v4  ;;  %v2179_v31 = vld [vmem:[%s3188_s0 + $0xe0] sm:$0xff]   ;;  %v2166_v32 = vld [vmem:[%s3188_s0 + $0x78] sm:$0xff]   ;;  %v2180_v33 = vld [vmem:[%s3188_s0 + $0xe8] sm:$0xff]  }
   0xc   :  { %v2181_v34 = vld [vmem:[%s3188_s0 + $0xf0] sm:$0xff]   ;;  %v2182_v35 = vld [vmem:[%s3188_s0 + $0xf8] sm:$0xff]  }
   0xe   :  { %2077 = vmatmul.mubr.msk.bf16.vlgmr.msra.gmra.mxu0 %vm259_vm1, %v2152_v5  ;;  %2109 = vmatmul.mubr.msk.bf16.vlgmr.msra.gmra.mxu1 %vm259_vm1, %v2168_v10 }
   0xf   :  { %2080 = vmatprep.mubr.msk.bf16.mxu0 %vm259_vm1, %v2153_v6  ;;  %2112 = vmatprep.mubr.msk.bf16.mxu1 %vm259_vm1, %v2169_v11 }
  0x16   :  { %2081 = vmatmul.mubr.msk.bf16.gmra.mxu0 %vm259_vm1, %v2154_v7  ;;  %2113 = vmatmul.mubr.msk.bf16.gmra.mxu1 %vm259_vm1, %v2170_v14 }
  0x17   :  { %2084 = vmatprep.mubr.msk.bf16.mxu0 %vm259_vm1, %v2155_v8  ;;  %2116 = vmatprep.mubr.msk.bf16.mxu1 %vm259_vm1, %v2171_v15 }
  0x1e   :  { %2085 = vmatmul.mubr.msk.bf16.gmra.mxu0 %vm259_vm1, %v2156_v12  ;;  %2117 = vmatmul.mubr.msk.bf16.gmra.mxu1 %vm259_vm1, %v2172_v17 }
  0x1f   :  { %2088 = vmatprep.mubr.msk.bf16.mxu0 %vm259_vm1, %v2157_v13  ;;  %2120 = vmatprep.mubr.msk.bf16.mxu1 %vm259_vm1, %v2173_v19 }
  0x26   :  { %2089 = vmatmul.mubr.msk.bf16.gmra.mxu0 %vm259_vm1, %v2158_v16  ;;  %2121 = vmatmul.mubr.msk.bf16.gmra.mxu1 %vm259_vm1, %v2174_v21 }
  0x27   :  { %2092 = vmatprep.mubr.msk.bf16.mxu0 %vm259_vm1, %v2159_v18  ;;  %2124 = vmatprep.mubr.msk.bf16.mxu1 %vm259_vm1, %v2175_v23 }
  0x2e   :  { %2093 = vmatmul.mubr.msk.bf16.gmra.mxu0 %vm259_vm1, %v2160_v20  ;;  %2125 = vmatmul.mubr.msk.bf16.gmra.mxu1 %vm259_vm1, %v2176_v25 }
  0x2f   :  { %2096 = vmatprep.mubr.msk.bf16.mxu0 %vm259_vm1, %v2161_v22  ;;  %2128 = vmatprep.mubr.msk.bf16.mxu1 %vm259_vm1, %v2177_v27 }
  0x36   :  { %2097 = vmatmul.mubr.msk.bf16.gmra.mxu0 %vm259_vm1, %v2162_v24  ;;  %2129 = vmatmul.mubr.msk.bf16.gmra.mxu1 %vm259_vm1, %v2178_v29 }
  0x37   :  { %2100 = vmatprep.mubr.msk.bf16.mxu0 %vm259_vm1, %v2163_v26  ;;  %2132 = vmatprep.mubr.msk.bf16.mxu1 %vm259_vm1, %v2179_v31 }
  0x3e   :  { %2101 = vmatmul.mubr.msk.bf16.gmra.mxu0 %vm259_vm1, %v2164_v28  ;;  %2133 = vmatmul.mubr.msk.bf16.gmra.mxu1 %vm259_vm1, %v2180_v33 }
  0x3f   :  { %2104 = vmatprep.mubr.msk.bf16.mxu0 %vm259_vm1, %v2165_v30  ;;  %2136 = vmatprep.mubr.msk.bf16.mxu1 %vm259_vm1, %v2181_v34 }
  0x46   :  { %2105 = vmatmul.mubr.msk.bf16.gmra.mxu0 %vm259_vm1, %v2166_v32  ;;  %2137 = vmatmul.mubr.msk.bf16.gmra.mxu1 %vm259_vm1, %v2182_v35 }
  0xce   :  { %v2345_v36 = vpop.f32.mrf.mxu0  ;;  %v2379_v48 = vpop.f32.mrf.mxu1 }
  0xcf   :  { %v1973_v37 = vpack.c.bf16 %v2345_v36, %v2345_v36  ;;  %3207 = vst [vmem:[#allocation2_spill] sm:$0xff] %v2379_v48  ;;  %v1361_v49 = vsel %vm1357_vm3, %v2345_v36, 0.0  ;;  %v2005_v51 = vpack.c.bf16 %v2379_v48, %v2379_v48 }
  0xd0   :  { %v2349_v38 = vpop.f32.mrf.mxu0  ;;  %v2393_v54 = vpop.f32.mrf.mxu1 }
  0xd1   :  { %908 = vst.msk [vmem:[%s3189_s2 + $0x8] sm:$0xf] %vm905_vm2, %v1973_v37  ;;  %v1971_v39 = vpack.c.bf16 %v2349_v38, %v2349_v38  ;;  %v1358_v43 = vsel %vm1357_vm3, %v2349_v38, 0.0  ;;  %3208 = vst [vmem:[#allocation3_spill] sm:$0xff] %v2393_v54  ;;  %v2003_v57 = vpack.c.bf16 %v2393_v54, %v2393_v54 }
  0xd2   :  { %v2357_v40 = vpop.f32.mrf.mxu0  ;;  %940 = vst.msk [vmem:[%s3189_s2 + $0x88] sm:$0xf] %vm905_vm2, %v2005_v51  ;;  %v2411_v60 = vpop.f32.mrf.mxu1 }
  0xd3   :  { %906 = vst.msk [vmem:[%s3189_s2] sm:$0xf] %vm905_vm2, %v1971_v39  ;;  %v1974_v41 = vpack.c.bf16 %v2357_v40, %v2357_v40  ;;  %v1363_v55 = vsel %vm1357_vm3, %v2357_v40, 0.0  ;;  %938 = vst.msk [vmem:[%s3189_s2 + $0x80] sm:$0xf] %vm905_vm2, %v2003_v57  ;;  %v2006_v63 = vpack.c.bf16 %v2411_v60, %v2411_v60 }
  0xd4   :  { %v2365_v42 = vpop.f32.mrf.mxu0  ;;  %v2429_v2 = vpop.f32.mrf.mxu1 }
  0xd5   :  { %909 = vst.msk [vmem:[%s3189_s2 + $0xc] sm:$0xf] %vm905_vm2, %v1974_v41  ;;  %v1972_v44 = vpack.c.bf16 %v2365_v42, %v2365_v42  ;;  %v1359_v45 = vsel %vm1357_vm3, %v2365_v42, 0.0  ;;  %3209 = vst [vmem:[#allocation4_spill] sm:$0xff] %v2429_v2  ;;  %v2004_v5 = vpack.c.bf16 %v2429_v2, %v2429_v2 }
  0xd6   :  { %v1360_v46 = vadd.f32 %v1359_v45, %v1358_v43  ;;  %v2377_v47 = vpop.f32.mrf.mxu0  ;;  %941 = vst.msk [vmem:[%s3189_s2 + $0x8c] sm:$0xf] %vm905_vm2, %v2006_v63  ;;  %v2447_v8 = vpop.f32.mrf.mxu1 }
  0xd7   :  { %907 = vst.msk [vmem:[%s3189_s2 + $0x4] sm:$0xf] %vm905_vm2, %v1972_v44  ;;  %v1977_v50 = vpack.c.bf16 %v2377_v47, %v2377_v47  ;;  %v1369_v9 = vsel %vm1357_vm3, %v2377_v47, 0.0  ;;  %939 = vst.msk [vmem:[%s3189_s2 + $0x84] sm:$0xf] %vm905_vm2, %v2004_v5  ;;  %v2009_v11 = vpack.c.bf16 %v2447_v8, %v2447_v8 }
  0xd8   :  { %v1362_v52 = vadd.f32 %v1361_v49, %v1360_v46  ;;  %v2391_v53 = vpop.f32.mrf.mxu0  ;;  %v2465_v14 = vpop.f32.mrf.mxu1 }
  0xd9   :  { %912 = vst.msk [vmem:[%s3189_s2 + $0x18] sm:$0xf] %vm905_vm2, %v1977_v50  ;;  %v1975_v56 = vpack.c.bf16 %v2391_v53, %v2391_v53  ;;  %v1365_v61 = vsel %vm1357_vm3, %v2391_v53, 0.0  ;;  %944 = vst.msk [vmem:[%s3189_s2 + $0x98] sm:$0xf] %vm905_vm2, %v2009_v11  ;;  %v2007_v17 = vpack.c.bf16 %v2465_v14, %v2465_v14 }
  0xda   :  { %v1364_v58 = vadd.f32 %v1363_v55, %v1362_v52  ;;  %v2409_v59 = vpop.f32.mrf.mxu0  ;;  %v2483_v20 = vpop.f32.mrf.mxu1 }
  0xdb   :  { %910 = vst.msk [vmem:[%s3189_s2 + $0x10] sm:$0xf] %vm905_vm2, %v1975_v56  ;;  %v1978_v62 = vpack.c.bf16 %v2409_v59, %v2409_v59  ;;  %v1371_v15 = vsel %vm1357_vm3, %v2409_v59, 0.0  ;;  %942 = vst.msk [vmem:[%s3189_s2 + $0x90] sm:$0xf] %vm905_vm2, %v2007_v17  ;;  %v2010_v23 = vpack.c.bf16 %v2483_v20, %v2483_v20 }
  0xdc   :  { %v1366_v0 = vadd.f32 %v1365_v61, %v1364_v58  ;;  %v2427_v1 = vpop.f32.mrf.mxu0  ;;  %v2501_v26 = vpop.f32.mrf.mxu1 }
  0xdd   :  { %913 = vst.msk [vmem:[%s3189_s2 + $0x1c] sm:$0xf] %vm905_vm2, %v1978_v62  ;;  %v1976_v3 = vpack.c.bf16 %v2427_v1, %v2427_v1  ;;  %v1367_v4 = vsel %vm1357_vm3, %v2427_v1, 0.0  ;;  %945 = vst.msk [vmem:[%s3189_s2 + $0x9c] sm:$0xf] %vm905_vm2, %v2010_v23  ;;  %v2008_v29 = vpack.c.bf16 %v2501_v26, %v2501_v26 }
  0xde   :  { %v1368_v6 = vadd.f32 %v1367_v4, %v1366_v0  ;;  %v2445_v7 = vpop.f32.mrf.mxu0  ;;  %v2519_v32 = vpop.f32.mrf.mxu1 }
  0xdf   :  { %911 = vst.msk [vmem:[%s3189_s2 + $0x14] sm:$0xf] %vm905_vm2, %v1976_v3  ;;  %v1981_v10 = vpack.c.bf16 %v2445_v7, %v2445_v7  ;;  %v1377_v33 = vsel %vm1357_vm3, %v2445_v7, 0.0  ;;  %943 = vst.msk [vmem:[%s3189_s2 + $0x94] sm:$0xf] %vm905_vm2, %v2008_v29  ;;  %v2013_v35 = vpack.c.bf16 %v2519_v32, %v2519_v32 }
  0xe0   :  { %v1370_v12 = vadd.f32 %v1369_v9, %v1368_v6  ;;  %v2463_v13 = vpop.f32.mrf.mxu0  ;;  %v2537_v41 = vpop.f32.mrf.mxu1 }
  0xe1   :  { %916 = vst.msk [vmem:[%s3189_s2 + $0x28] sm:$0xf] %vm905_vm2, %v1981_v10  ;;  %v1979_v16 = vpack.c.bf16 %v2463_v13, %v2463_v13  ;;  %v1373_v21 = vsel %vm1357_vm3, %v2463_v13, 0.0  ;;  %948 = vst.msk [vmem:[%s3189_s2 + $0xa8] sm:$0xf] %vm905_vm2, %v2013_v35  ;;  %v2011_v45 = vpack.c.bf16 %v2537_v41, %v2537_v41 }
  0xe2   :  { %v1372_v18 = vadd.f32 %v1371_v15, %v1370_v12  ;;  %v2481_v19 = vpop.f32.mrf.mxu0  ;;  %v2555_v50 = vpop.f32.mrf.mxu1 }
  0xe3   :  { %914 = vst.msk [vmem:[%s3189_s2 + $0x20] sm:$0xf] %vm905_vm2, %v1979_v16  ;;  %v1982_v22 = vpack.c.bf16 %v2481_v19, %v2481_v19  ;;  %v1379_v43 = vsel %vm1357_vm3, %v2481_v19, 0.0  ;;  %946 = vst.msk [vmem:[%s3189_s2 + $0xa0] sm:$0xf] %vm905_vm2, %v2011_v45  ;;  %v2014_v55 = vpack.c.bf16 %v2555_v50, %v2555_v50 }
  0xe4   :  { %v1374_v24 = vadd.f32 %v1373_v21, %v1372_v18  ;;  %v2499_v25 = vpop.f32.mrf.mxu0  ;;  %v2573_v58 = vpop.f32.mrf.mxu1 }
  0xe5   :  { %917 = vst.msk [vmem:[%s3189_s2 + $0x2c] sm:$0xf] %vm905_vm2, %v1982_v22  ;;  %v1980_v27 = vpack.c.bf16 %v2499_v25, %v2499_v25  ;;  %v1375_v28 = vsel %vm1357_vm3, %v2499_v25, 0.0  ;;  %949 = vst.msk [vmem:[%s3189_s2 + $0xac] sm:$0xf] %vm905_vm2, %v2014_v55  ;;  %v2012_v63 = vpack.c.bf16 %v2573_v58, %v2573_v58 }
  0xe6   :  { %v1376_v30 = vadd.f32 %v1375_v28, %v1374_v24  ;;  %v2517_v31 = vpop.f32.mrf.mxu0  ;;  %v2591_v4 = vpop.f32.mrf.mxu1 }
  0xe7   :  { %915 = vst.msk [vmem:[%s3189_s2 + $0x24] sm:$0xf] %vm905_vm2, %v1980_v27  ;;  %v1985_v34 = vpack.c.bf16 %v2517_v31, %v2517_v31  ;;  %v1385_v5 = vsel %vm1357_vm3, %v2517_v31, 0.0  ;;  %947 = vst.msk [vmem:[%s3189_s2 + $0xa4] sm:$0xf] %vm905_vm2, %v2012_v63  ;;  %v2017_v9 = vpack.c.bf16 %v2591_v4, %v2591_v4 }
  0xe8   :  { %v1378_v37 = vadd.f32 %v1377_v33, %v1376_v30  ;;  %v2535_v39 = vpop.f32.mrf.mxu0  ;;  %v2609_v12 = vpop.f32.mrf.mxu1 }
  0xe9   :  { %920 = vst.msk [vmem:[%s3189_s2 + $0x38] sm:$0xf] %vm905_vm2, %v1985_v34  ;;  %v1983_v44 = vpack.c.bf16 %v2535_v39, %v2535_v39  ;;  %v1381_v51 = vsel %vm1357_vm3, %v2535_v39, 0.0  ;;  %952 = vst.msk [vmem:[%s3189_s2 + $0xb8] sm:$0xf] %vm905_vm2, %v2017_v9  ;;  %v2015_v17 = vpack.c.bf16 %v2609_v12, %v2609_v12 }
  0xea   :  { %v1380_v46 = vadd.f32 %v1379_v43, %v1378_v37  ;;  %v2553_v49 = vpop.f32.mrf.mxu0  ;;  %v2627_v22 = vpop.f32.mrf.mxu1 }
  0xeb   :  { %918 = vst.msk [vmem:[%s3189_s2 + $0x30] sm:$0xf] %vm905_vm2, %v1983_v44  ;;  %v1986_v52 = vpack.c.bf16 %v2553_v49, %v2553_v49  ;;  %v1387_v15 = vsel %vm1357_vm3, %v2553_v49, 0.0  ;;  %950 = vst.msk [vmem:[%s3189_s2 + $0xb0] sm:$0xf] %vm905_vm2, %v2015_v17  ;;  %v2018_v27 = vpack.c.bf16 %v2627_v22, %v2627_v22 }
  0xec   :  { %v1382_v56 = vadd.f32 %v1381_v51, %v1380_v46  ;;  %v2571_v57 = vpop.f32.mrf.mxu0  ;;  %v2645_v30 = vpop.f32.mrf.mxu1 }
  0xed   :  { %921 = vst.msk [vmem:[%s3189_s2 + $0x3c] sm:$0xf] %vm905_vm2, %v1986_v52  ;;  %v1984_v61 = vpack.c.bf16 %v2571_v57, %v2571_v57  ;;  %v1383_v62 = vsel %vm1357_vm3, %v2571_v57, 0.0  ;;  %953 = vst.msk [vmem:[%s3189_s2 + $0xbc] sm:$0xf] %vm905_vm2, %v2018_v27  ;;  %v2016_v35 = vpack.c.bf16 %v2645_v30, %v2645_v30 }
  0xee   :  { %v1384_v0 = vadd.f32 %v1383_v62, %v1382_v56  ;;  %v2589_v3 = vpop.f32.mrf.mxu0  ;;  %v2663_v44 = vpop.f32.mrf.mxu1 }
  0xef   :  { %919 = vst.msk [vmem:[%s3189_s2 + $0x34] sm:$0xf] %vm905_vm2, %v1984_v61  ;;  %v1989_v6 = vpack.c.bf16 %v2589_v3, %v2589_v3  ;;  %v1393_v45 = vsel %vm1357_vm3, %v2589_v3, 0.0  ;;  %951 = vst.msk [vmem:[%s3189_s2 + $0xb4] sm:$0xf] %vm905_vm2, %v2016_v35  ;;  %v2021_v51 = vpack.c.bf16 %v2663_v44, %v2663_v44 }
  0xf0   :  { %v1386_v10 = vadd.f32 %v1385_v5, %v1384_v0  ;;  %v2607_v11 = vpop.f32.mrf.mxu0  ;;  %v2681_v56 = vpop.f32.mrf.mxu1 }
  0xf1   :  { %924 = vst.msk [vmem:[%s3189_s2 + $0x48] sm:$0xf] %vm905_vm2, %v1989_v6  ;;  %v1987_v16 = vpack.c.bf16 %v2607_v11, %v2607_v11  ;;  %v1389_v23 = vsel %vm1357_vm3, %v2607_v11, 0.0  ;;  %956 = vst.msk [vmem:[%s3189_s2 + $0xc8] sm:$0xf] %vm905_vm2, %v2021_v51  ;;  %v2019_v63 = vpack.c.bf16 %v2681_v56, %v2681_v56 }
  0xf2   :  { %v1388_v18 = vadd.f32 %v1387_v15, %v1386_v10  ;;  %v2625_v21 = vpop.f32.mrf.mxu0  ;;  %v2699_v6 = vpop.f32.mrf.mxu1 }
  0xf3   :  { %922 = vst.msk [vmem:[%s3189_s2 + $0x40] sm:$0xf] %vm905_vm2, %v1987_v16  ;;  %v1990_v24 = vpack.c.bf16 %v2625_v21, %v2625_v21  ;;  %v1395_v61 = vsel %vm1357_vm3, %v2625_v21, 0.0  ;;  %954 = vst.msk [vmem:[%s3189_s2 + $0xc0] sm:$0xf] %vm905_vm2, %v2019_v63  ;;  %v2022_v15 = vpack.c.bf16 %v2699_v6, %v2699_v6 }
  0xf4   :  { %v1390_v28 = vadd.f32 %v1389_v23, %v1388_v18  ;;  %v2643_v29 = vpop.f32.mrf.mxu0  ;;  %v2717_v18 = vpop.f32.mrf.mxu1 }
  0xf5   :  { %925 = vst.msk [vmem:[%s3189_s2 + $0x4c] sm:$0xf] %vm905_vm2, %v1990_v24  ;;  %v1988_v33 = vpack.c.bf16 %v2643_v29, %v2643_v29  ;;  %v1391_v34 = vsel %vm1357_vm3, %v2643_v29, 0.0  ;;  %957 = vst.msk [vmem:[%s3189_s2 + $0xcc] sm:$0xf] %vm905_vm2, %v2022_v15  ;;  %v2020_v27 = vpack.c.bf16 %v2717_v18, %v2717_v18 }
  0xf6   :  { %v1392_v37 = vadd.f32 %v1391_v34, %v1390_v28  ;;  %v2661_v43 = vpop.f32.mrf.mxu0  ;;  %v2735_v34 = vpop.f32.mrf.mxu1 }
  0xf7   :  { %923 = vst.msk [vmem:[%s3189_s2 + $0x44] sm:$0xf] %vm905_vm2, %v1988_v33  ;;  %v1993_v46 = vpack.c.bf16 %v2661_v43, %v2661_v43  ;;  %v1401_v35 = vsel %vm1357_vm3, %v2661_v43, 0.0  ;;  %955 = vst.msk [vmem:[%s3189_s2 + $0xc4] sm:$0xf] %vm905_vm2, %v2020_v27 }
  0xf8   :  { %v1394_v52 = vadd.f32 %v1393_v45, %v1392_v37  ;;  %v2679_v55 = vpop.f32.mrf.mxu0  ;;  %v2025_v45 = vpack.c.bf16 %v2735_v34, %v2735_v34 }
  0xf9   :  { %928 = vst.msk [vmem:[%s3189_s2 + $0x58] sm:$0xf] %vm905_vm2, %v1993_v46  ;;  %v1991_v62 = vpack.c.bf16 %v2679_v55, %v2679_v55  ;;  %v1397_v9 = vsel %vm1357_vm3, %v2679_v55, 0.0 }
  0xfa   :  { %v1396_v0 = vadd.f32 %v1395_v61, %v1394_v52  ;;  %v2697_v5 = vpop.f32.mrf.mxu0  ;;  %v2753_v52 = vpop.f32.mrf.mxu1  ;;  %960 = vst.msk [vmem:[%s3189_s2 + $0xd8] sm:$0xf] %vm905_vm2, %v2025_v45 }
  0xfb   :  { %3210 = vst [vmem:[#allocation5_spill] sm:$0xff] %v2697_v5  ;;  %926 = vst.msk [vmem:[%s3189_s2 + $0x50] sm:$0xf] %vm905_vm2, %v1991_v62  ;;  %v1994_v10 = vpack.c.bf16 %v2697_v5, %v2697_v5  ;;  %v1403_v61 = vsel %vm1357_vm3, %v2697_v5, 0.0  ;;  %v2023_v63 = vpack.c.bf16 %v2753_v52, %v2753_v52 }
  0xfc   :  { %v1398_v16 = vadd.f32 %v1397_v9, %v1396_v0  ;;  %v2715_v17 = vpop.f32.mrf.mxu0 }
  0xfd   :  { %929 = vst.msk [vmem:[%s3189_s2 + $0x5c] sm:$0xf] %vm905_vm2, %v1994_v10  ;;  %v1992_v23 = vpack.c.bf16 %v2715_v17, %v2715_v17  ;;  %v1399_v24 = vsel %vm1357_vm3, %v2715_v17, 0.0  ;;  %v2771_v10 = vpop.f32.mrf.mxu1  ;;  %958 = vst.msk [vmem:[%s3189_s2 + $0xd0] sm:$0xf] %vm905_vm2, %v2023_v63 }
  0xfe   :  { %v1400_v28 = vadd.f32 %v1399_v24, %v1398_v16  ;;  %v2733_v33 = vpop.f32.mrf.mxu0 }
  0xff   :  { %3211 = vst [vmem:[#allocation6_spill] sm:$0xff] %v2733_v33  ;;  %927 = vst.msk [vmem:[%s3189_s2 + $0x54] sm:$0xf] %vm905_vm2, %v1992_v23  ;;  %v1997_v37 = vpack.c.bf16 %v2733_v33, %v2733_v33  ;;  %v2026_v23 = vpack.c.bf16 %v2771_v10, %v2771_v10  ;;  %v1409_v63 = vsel %vm1357_vm3, %v2733_v33, 0.0 }
 0x100   :  { %v1402_v46 = vadd.f32 %v1401_v35, %v1400_v28  ;;  %v2751_v51 = vpop.f32.mrf.mxu0  ;;  %v2789_v28 = vpop.f32.mrf.mxu1 }
 0x101   :  { %3212 = vst [vmem:[#allocation7_spill] sm:$0xff] %v2751_v51  ;;  %932 = vst.msk [vmem:[%s3189_s2 + $0x68] sm:$0xf] %vm905_vm2, %v1997_v37  ;;  %v1995_v62 = vpack.c.bf16 %v2751_v51, %v2751_v51  ;;  %v1405_v15 = vsel %vm1357_vm3, %v2751_v51, 0.0  ;;  %v2024_v45 = vpack.c.bf16 %v2789_v28, %v2789_v28 }
 0x102   :  { %v1404_v0 = vadd.f32 %v1403_v61, %v1402_v46  ;;  %v2769_v9 = vpop.f32.mrf.mxu0  ;;  %961 = vst.msk [vmem:[%s3189_s2 + $0xdc] sm:$0xf] %vm905_vm2, %v2026_v23 }
 0x103   :  { %3213 = vst [vmem:[#allocation8_spill] sm:$0xff] %v2769_v9  ;;  %930 = vst.msk [vmem:[%s3189_s2 + $0x60] sm:$0xf] %vm905_vm2, %v1995_v62  ;;  %v1998_v16 = vpack.c.bf16 %v2769_v9, %v2769_v9  ;;  %v2807_v62 = vpop.f32.mrf.mxu1 }
 0x104   :  { %v1406_v24 = vadd.f32 %v1405_v15, %v1404_v0  ;;  %v2787_v27 = vpop.f32.mrf.mxu0  ;;  %3216 = vst [vmem:[#allocation11_spill] sm:$0xff] %v2807_v62  ;;  %959 = vst.msk [vmem:[%s3189_s2 + $0xd4] sm:$0xf] %vm905_vm2, %v2024_v45  ;;  %v2029_v15 = vpack.c.bf16 %v2807_v62, %v2807_v62 }
 0x105   :  { %3214 = vst [vmem:[#allocation9_spill] sm:$0xff] %v2787_v27  ;;  %933 = vst.msk [vmem:[%s3189_s2 + $0x6c] sm:$0xf] %vm905_vm2, %v1998_v16  ;;  %v1996_v35 = vpack.c.bf16 %v2787_v27, %v2787_v27  ;;  %v1407_v37 = vsel %vm1357_vm3, %v2787_v27, 0.0 }
 0x106   :  { %v1408_v46 = vadd.f32 %v1407_v37, %v1406_v24  ;;  %v2805_v61 = vpop.f32.mrf.mxu0  ;;  %v2825_v24 = vpop.f32.mrf.mxu1  ;;  %v1411_v37 = vsel %vm1357_vm3, %v2769_v9, 0.0  ;;  %964 = vst.msk [vmem:[%s3189_s2 + $0xe8] sm:$0xf] %vm905_vm2, %v2029_v15 }
 0x107   :  { %3215 = vst [vmem:[#allocation10_spill] sm:$0xff] %v2805_v61  ;;  %931 = vst.msk [vmem:[%s3189_s2 + $0x64] sm:$0xf] %vm905_vm2, %v1996_v35  ;;  %v2001_v0 = vpack.c.bf16 %v2805_v61, %v2805_v61  ;;  %v2027_v45 = vpack.c.bf16 %v2825_v24, %v2825_v24 }
 0x108   :  { %v1410_v16 = vadd.f32 %v1409_v63, %v1408_v46  ;;  %v2823_v23 = vpop.f32.mrf.mxu0  ;;  %v2843_v9 = vpop.f32.mrf.mxu1 }
 0x109   :  { %3217 = vst [vmem:[#allocation12_spill] sm:$0xff] %v2823_v23  ;;  %936 = vst.msk [vmem:[%s3189_s2 + $0x78] sm:$0xf] %vm905_vm2, %v2001_v0  ;;  %v1999_v35 = vpack.c.bf16 %v2823_v23, %v2823_v23  ;;  %v1413_v0 = vsel %vm1357_vm3, %v2823_v23, 0.0  ;;  %v2030_v15 = vpack.c.bf16 %v2843_v9, %v2843_v9 }
 0x10a   :  { %v1412_v46 = vadd.f32 %v1411_v37, %v1410_v16  ;;  %v2841_v63 = vpop.f32.mrf.mxu0  ;;  %3219 = vst [vmem:[#allocation14_spill] sm:$0xff] %v2843_v9  ;;  %962 = vst.msk [vmem:[%s3189_s2 + $0xe0] sm:$0xf] %vm905_vm2, %v2027_v45  ;;  %v2861_v27 = vpop.f32.mrf.mxu1 }
 0x10b   :  { %3218 = vst [vmem:[#allocation13_spill] sm:$0xff] %v2841_v63  ;;  %934 = vst.msk [vmem:[%s3189_s2 + $0x70] sm:$0xf] %vm905_vm2, %v1999_v35  ;;  %v2002_v33 = vpack.c.bf16 %v2841_v63, %v2841_v63  ;;  %v2028_v45 = vpack.c.bf16 %v2861_v27, %v2861_v27 }
 0x10c   :  { %v1414_v16 = vadd.f32 %v1413_v0, %v1412_v46  ;;  %v2859_v37 = vpop.f32.mrf.mxu0  ;;  %965 = vst.msk [vmem:[%s3189_s2 + $0xec] sm:$0xf] %vm905_vm2, %v2030_v15  ;;  %v2877_v0 = vpop.f32.mrf.mxu1 }
 0x10d   :  { %3220 = vst [vmem:[#allocation15_spill] sm:$0xff] %v2859_v37  ;;  %937 = vst.msk [vmem:[%s3189_s2 + $0x7c] sm:$0xf] %vm905_vm2, %v2002_v33  ;;  %v2000_v35 = vpack.c.bf16 %v2859_v37, %v2859_v37  ;;  %v1415_v23 = vsel %vm1357_vm3, %v2859_v37, 0.0  ;;  %v1417_v33 = vsel %vm1357_vm3, %v2805_v61, 0.0  ;;  %v2033_v15 = vpack.c.bf16 %v2877_v0, %v2877_v0 }
 0x10e   :  { %v1416_v46 = vadd.f32 %v1415_v23, %v1414_v16  ;;  %963 = vst.msk [vmem:[%s3189_s2 + $0xe4] sm:$0xf] %vm905_vm2, %v2028_v45  ;;  %v2891_v23 = vpop.f32.mrf.mxu1  ;;  %v1419_v16 = vsel %vm1357_vm3, %v2841_v63, 0.0  ;;  %v1421_v45 = vsel %vm1357_vm3, %v2393_v54, 0.0 }
 0x10f   :  { %935 = vst.msk [vmem:[%s3189_s2 + $0x74] sm:$0xf] %vm905_vm2, %v2000_v35  ;;  %3221 = vst [vmem:[#allocation16_spill] sm:$0xff] %v2891_v23  ;;  %v2031_v35 = vpack.c.bf16 %v2891_v23, %v2891_v23 }
 0x110   :  { %v1418_v37 = vadd.f32 %v1417_v33, %v1416_v46  ;;  %968 = vst.msk [vmem:[%s3189_s2 + $0xf8] sm:$0xf] %vm905_vm2, %v2033_v15  ;;  %v2901_v51 = vpop.f32.mrf.mxu1  ;;  %v1423_v15 = vsel %vm1357_vm3, %v2429_v2, 0.0 }
 0x111   :  { %966 = vst.msk [vmem:[%s3189_s2 + $0xf0] sm:$0xf] %vm905_vm2, %v2031_v35  ;;  %v2034_v46 = vpack.c.bf16 %v2901_v51, %v2901_v51  ;;  %v1425_v35 = vsel %vm1357_vm3, %v2379_v48, 0.0  ;;  %v1433_v48 = vsel %vm1357_vm3, %v2447_v8, 0.0 }
 0x112   :  { %v1420_v61 = vadd.f32 %v1419_v16, %v1418_v37  ;;  %v2911_v63 = vpop.f32.mrf.mxu1 }
 0x113   :  { %969 = vst.msk [vmem:[%s3189_s2 + $0xfc] sm:$0xf] %vm905_vm2, %v2034_v46  ;;  %v2032_v37 = vpack.c.bf16 %v2911_v63, %v2911_v63  ;;  %v1429_v46 = vsel %vm1357_vm3, %v2465_v14, 0.0 }
 0x114   :  { %v1422_v33 = vadd.f32 %v1421_v45, %v1420_v61  ;;  %v1427_v45 = vsel %vm1357_vm3, %v2411_v60, 0.0 }
 0x115   :  { %967 = vst.msk [vmem:[%s3189_s2 + $0xf4] sm:$0xf] %vm905_vm2, %v2032_v37  ;;  %v1435_v37 = vsel %vm1357_vm3, %v2483_v20, 0.0 }
 0x116   :  { %v1424_v16 = vadd.f32 %v1423_v15, %v1422_v33  ;;  %v1431_v33 = vsel %vm1357_vm3, %v2501_v26, 0.0 }
 0x118   :  { %v1426_v61 = vadd.f32 %v1425_v35, %v1424_v16  ;;  %v1437_v35 = vsel %vm1357_vm3, %v2537_v41, 0.0 }
 0x11a   :  { %v1428_v2 = vadd.f32 %v1427_v45, %v1426_v61  ;;  %v1439_v45 = vsel %vm1357_vm3, %v2573_v58, 0.0 }
 0x11c   :  { %v1430_v54 = vadd.f32 %v1429_v46, %v1428_v2  ;;  %v1441_v46 = vsel %vm1357_vm3, %v2519_v32, 0.0 }
 0x11e   :  { %v1432_v15 = vadd.f32 %v1431_v33, %v1430_v54  ;;  %v1443_v33 = vsel %vm1357_vm3, %v2555_v50, 0.0 }
 0x120   :  { %v1434_v5 = vadd.f32 %v1433_v48, %v1432_v15  ;;  %v1445_v15 = vsel %vm1357_vm3, %v2609_v12, 0.0 }
 0x122   :  { %v1436_v16 = vadd.f32 %v1435_v37, %v1434_v5  ;;  %v1447_v37 = vsel %vm1357_vm3, %v2645_v30, 0.0 }
 0x124   :  { %v1438_v61 = vadd.f32 %v1437_v35, %v1436_v16  ;;  %v1449_v35 = vsel %vm1357_vm3, %v2591_v4, 0.0 }
 0x126   :  { %v1440_v2 = vadd.f32 %v1439_v45, %v1438_v61  ;;  %v1451_v45 = vsel %vm1357_vm3, %v2627_v22, 0.0 }
 0x128   :  { %v1442_v54 = vadd.f32 %v1441_v46, %v1440_v2  ;;  %v1453_v46 = vsel %vm1357_vm3, %v2681_v56, 0.0 }
 0x12a   :  { %v1444_v48 = vadd.f32 %v1443_v33, %v1442_v54  ;;  %v1455_v33 = vsel %vm1357_vm3, %v2717_v18, 0.0 }
 0x12c   :  { %v1446_v5 = vadd.f32 %v1445_v15, %v1444_v48  ;;  %v1457_v15 = vsel %vm1357_vm3, %v2663_v44, 0.0 }
 0x12e   :  { %v1448_v16 = vadd.f32 %v1447_v37, %v1446_v5  ;;  %v1459_v37 = vsel %vm1357_vm3, %v2699_v6, 0.0 }
 0x130   :  { %v1450_v61 = vadd.f32 %v1449_v35, %v1448_v16  ;;  %v1461_v35 = vsel %vm1357_vm3, %v2753_v52, 0.0 }
 0x132   :  { %v1452_v2 = vadd.f32 %v1451_v45, %v1450_v61  ;;  %v1463_v45 = vsel %vm1357_vm3, %v2789_v28, 0.0 }
 0x134   :  { %v1454_v54 = vadd.f32 %v1453_v46, %v1452_v2  ;;  %v1465_v46 = vsel %vm1357_vm3, %v2735_v34, 0.0 }
 0x136   :  { %v1456_v48 = vadd.f32 %v1455_v33, %v1454_v54  ;;  %v1467_v33 = vsel %vm1357_vm3, %v2771_v10, 0.0 }
 0x138   :  { %v1458_v5 = vadd.f32 %v1457_v15, %v1456_v48  ;;  %v1469_v15 = vsel %vm1357_vm3, %v2825_v24, 0.0 }
 0x13a   :  { %v1460_v16 = vadd.f32 %v1459_v37, %v1458_v5  ;;  %v1471_v37 = vsel %vm1357_vm3, %v2861_v27, 0.0 }
 0x13c   :  { %v1462_v61 = vadd.f32 %v1461_v35, %v1460_v16  ;;  %v1473_v35 = vsel %vm1357_vm3, %v2807_v62, 0.0 }
 0x13e   :  { %v1464_v2 = vadd.f32 %v1463_v45, %v1462_v61  ;;  %v1475_v45 = vsel %vm1357_vm3, %v2843_v9, 0.0 }
 0x140   :  { %v1466_v54 = vadd.f32 %v1465_v46, %v1464_v2  ;;  %v1477_v46 = vsel %vm1357_vm3, %v2891_v23, 0.0 }
 0x142   :  { %v1468_v48 = vadd.f32 %v1467_v33, %v1466_v54  ;;  %v1479_v33 = vsel %vm1357_vm3, %v2911_v63, 0.0 }
 0x144   :  { %v1470_v5 = vadd.f32 %v1469_v15, %v1468_v48  ;;  %v1481_v15 = vsel %vm1357_vm3, %v2877_v0, 0.0 }
 0x146   :  { %v1472_v16 = vadd.f32 %v1471_v37, %v1470_v5  ;;  %v1483_v37 = vsel %vm1357_vm3, %v2901_v51, 0.0 }
 0x148   :  { %v1474_v61 = vadd.f32 %v1473_v35, %v1472_v16 }
 0x14a   :  { %v1476_v2 = vadd.f32 %v1475_v45, %v1474_v61 }
 0x14c   :  { %v1478_v54 = vadd.f32 %v1477_v46, %v1476_v2 }
 0x14e   :  { %v1480_v48 = vadd.f32 %v1479_v33, %v1478_v54 }
 0x150   :  { %v1482_v5 = vadd.f32 %v1481_v15, %v1480_v48 }
 0x152   :  { %v1484_v16 = vadd.f32 %v1483_v37, %v1482_v5 }
 0x154   :  { %v1485_v35 = vrot.slane %v1484_v16, 4 }
 0x156   :  { %v1486_v62 = vadd.f32 %v1485_v35, %v1484_v16 }
 0x158   :  { %v1487_v9 = vrot.slane %v1486_v62, 2 }
 0x15a   :  { %v1488_v61 = vadd.f32 %v1487_v9, %v1486_v62 }
 0x15c   :  { %v1489_v45 = vrot.slane %v1488_v61, 1 }
 0x15e   :  { %v1490_v23 = vadd.f32 %v1489_v45, %v1488_v61 }
 0x160   :  { %1826 = vst.msk [vmem:[%s3190_s3] sm:$0x1] %vm1825_vm4, %v1490_v23  ;;  %v2989_v2 = vmul.f32 0.001953125, %v1490_v23 }
 0x162   :  { %v1500_v46 = vsub.f32 %v2349_v38, %v2989_v2  ;;  %v1501_v54 = vsub.f32 %v2365_v42, %v2989_v2  ;;  %v1502_v33 = vsub.f32 %v2345_v36, %v2989_v2  ;;  %v1503_v9 = vsub.f32 %v2357_v40, %v2989_v2 }
 0x163   :  { %v1504_v15 = vsub.f32 %v2391_v53, %v2989_v2  ;;  %v1505_v23 = vsub.f32 %v2427_v1, %v2989_v2  ;;  %v1506_v36 = vsub.f32 %v2377_v47, %v2989_v2  ;;  %v1507_v53 = vsub.f32 %v2409_v59, %v2989_v2 }
 0x164   :  { %v1628_v62 = vmul.f32 %v1500_v46, %v1500_v46  ;;  %v1629_v48 = vmul.f32 %v1501_v54, %v1501_v54  ;;  %v1630_v5 = vmul.f32 %v1502_v33, %v1502_v33  ;;  %v1631_v37 = vmul.f32 %v1503_v9, %v1503_v9 }
 0x165   :  { %v1632_v35 = vmul.f32 %v1504_v15, %v1504_v15  ;;  %v1633_v45 = vmul.f32 %v1505_v23, %v1505_v23  ;;  %v1508_v54 = vsub.f32 %v2463_v13, %v2989_v2  ;;  %v1634_v33 = vmul.f32 %v1506_v36, %v1506_v36 }
 0x166   :  { %v1692_v38 = vsel %vm1357_vm3, %v1628_v62, 0.0  ;;  %v1693_v42 = vsel %vm1357_vm3, %v1629_v48, 0.0  ;;  %v1695_v40 = vsel %vm1357_vm3, %v1630_v5, 0.0  ;;  %v1697_v46 = vsel %vm1357_vm3, %v1631_v37, 0.0 }
 0x167   :  { %v1694_v16 = vadd.f32 %v1693_v42, %v1692_v38  ;;  %v1699_v9 = vsel %vm1357_vm3, %v1632_v35, 0.0  ;;  %v1509_v47 = vsub.f32 %v2499_v25, %v2989_v2  ;;  %v1635_v48 = vmul.f32 %v1507_v53, %v1507_v53 }
 0x168   :  { %v1701_v15 = vsel %vm1357_vm3, %v1633_v45, 0.0  ;;  %v1510_v59 = vsub.f32 %v2445_v7, %v2989_v2  ;;  %v1636_v23 = vmul.f32 %v1508_v54, %v1508_v54  ;;  %v1703_v37 = vsel %vm1357_vm3, %v1634_v33, 0.0 }
 0x169   :  { %v1696_v61 = vadd.f32 %v1695_v40, %v1694_v16  ;;  %v1511_v13 = vsub.f32 %v2481_v19, %v2989_v2  ;;  %v1637_v42 = vmul.f32 %v1509_v47, %v1509_v47  ;;  %v1705_v16 = vsel %vm1357_vm3, %v1635_v48, 0.0 }
 0x16a   :  { %v1512_v25 = vsub.f32 %v2535_v39, %v2989_v2  ;;  %v1638_v35 = vmul.f32 %v1510_v59, %v1510_v59  ;;  %v1707_v40 = vsel %vm1357_vm3, %v1636_v23, 0.0  ;;  %v1513_v7 = vsub.f32 %v2571_v57, %v2989_v2 }
 0x16b   :  { %v1698_v1 = vadd.f32 %v1697_v46, %v1696_v61  ;;  %v1639_v53 = vmul.f32 %v1511_v13, %v1511_v13  ;;  %v1709_v45 = vsel %vm1357_vm3, %v1637_v42, 0.0  ;;  %v1514_v19 = vsub.f32 %v2517_v31, %v2989_v2 }
 0x16c   :  { %v1711_v54 = vsel %vm1357_vm3, %v1638_v35, 0.0  ;;  %v1515_v39 = vsub.f32 %v2553_v49, %v2989_v2  ;;  %v1516_v57 = vsub.f32 %v2607_v11, %v2989_v2  ;;  %v1517_v31 = vsub.f32 %v2643_v29, %v2989_v2 }
 0x16d   :  { %v1700_v62 = vadd.f32 %v1699_v9, %v1698_v1  ;;  %v1640_v1 = vmul.f32 %v1512_v25, %v1512_v25  ;;  %v1641_v9 = vmul.f32 %v1513_v7, %v1513_v7  ;;  %v1642_v48 = vmul.f32 %v1514_v19, %v1514_v19 }
 0x16e   :  { %v1643_v59 = vmul.f32 %v1515_v39, %v1515_v39  ;;  %v1518_v49 = vsub.f32 %v2589_v3, %v2989_v2  ;;  %v1519_v11 = vsub.f32 %v2625_v21, %v2989_v2  ;;  %v1520_v29 = vsub.f32 %v2679_v55, %v2989_v2  ;;  %v3222_v55 = vld [vmem:[#allocation5_spill] sm:$0xff] }
 0x16f   :  { %v1702_v5 = vadd.f32 %v1701_v15, %v1700_v62  ;;  %v1713_v62 = vsel %vm1357_vm3, %v1639_v53, 0.0  ;;  %v1715_v15 = vsel %vm1357_vm3, %v1640_v1, 0.0  ;;  %v1717_v23 = vsel %vm1357_vm3, %v1641_v9, 0.0 }
 0x170   :  { %v1719_v13 = vsel %vm1357_vm3, %v1642_v48, 0.0  ;;  %v1646_v35 = vmul.f32 %v1518_v49, %v1518_v49  ;;  %v1521_v3 = vsub.f32 %v2715_v17, %v2989_v2  ;;  %v1647_v7 = vmul.f32 %v1519_v11, %v1519_v11  ;;  %v3223_v17 = vld [vmem:[#allocation7_spill] sm:$0xff] }
 0x171   :  { %v1704_v38 = vadd.f32 %v1703_v37, %v1702_v5  ;;  %v1522_v21 = vsub.f32 %v2661_v43, %v2989_v2  ;;  %v3224_v43 = vld [vmem:[#allocation9_spill] sm:$0xff] }
 0x172   :  { %v1727_v19 = vsel %vm1357_vm3, %v1646_v35, 0.0  ;;  %v1729_v39 = vsel %vm1357_vm3, %v1647_v7, 0.0  ;;  %v3228_v7 = vld [vmem:[#allocation15_spill] sm:$0xff] }
 0x173   :  { %v1706_v36 = vadd.f32 %v1705_v16, %v1704_v38  ;;  %v1644_v38 = vmul.f32 %v1516_v57, %v1516_v57  ;;  %v1645_v16 = vmul.f32 %v1517_v31, %v1517_v31 }
 0x175   :  { %v1708_v61 = vadd.f32 %v1707_v40, %v1706_v36  ;;  %v1721_v36 = vsel %vm1357_vm3, %v1643_v59, 0.0  ;;  %v1723_v40 = vsel %vm1357_vm3, %v1644_v38, 0.0  ;;  %v1725_v53 = vsel %vm1357_vm3, %v1645_v16, 0.0 }
 0x177   :  { %v1710_v46 = vadd.f32 %v1709_v45, %v1708_v61 }
 0x179   :  { %v1712_v33 = vadd.f32 %v1711_v54, %v1710_v46  ;;  %v1648_v46 = vmul.f32 %v1520_v29, %v1520_v29  ;;  %v1523_v54 = vsub.f32 %v3222_v55, %v2989_v2  ;;  %v3227_v29 = vld [vmem:[#allocation12_spill] sm:$0xff] }
 0x17a   :  { %v1528_v35 = vsub.f32 %v3227_v29, %v2989_v2 }
 0x17b   :  { %v1714_v47 = vadd.f32 %v1713_v62, %v1712_v33  ;;  %v1649_v33 = vmul.f32 %v1521_v3, %v1521_v3  ;;  %v1524_v62 = vsub.f32 %v3223_v17, %v2989_v2  ;;  %v1731_v57 = vsel %vm1357_vm3, %v1648_v46, 0.0 }
 0x17c   :  { %v1656_v55 = vmul.f32 %v1528_v35, %v1528_v35 }
 0x17d   :  { %v1716_v5 = vadd.f32 %v1715_v15, %v1714_v47  ;;  %v1650_v47 = vmul.f32 %v1522_v21, %v1522_v21  ;;  %v1525_v15 = vsub.f32 %v3224_v43, %v2989_v2  ;;  %v1733_v31 = vsel %vm1357_vm3, %v1649_v33, 0.0 }
 0x17e   :  { %v1652_v49 = vmul.f32 %v1524_v62, %v1524_v62 }
 0x17f   :  { %v1718_v37 = vadd.f32 %v1717_v23, %v1716_v5  ;;  %v1651_v5 = vmul.f32 %v1523_v54, %v1523_v54  ;;  %v3225_v23 = vld [vmem:[#allocation6_spill] sm:$0xff]  ;;  %v1735_v38 = vsel %vm1357_vm3, %v1650_v47, 0.0  ;;  %v1653_v16 = vmul.f32 %v1525_v15, %v1525_v15 }
 0x180   :  { %v1747_v15 = vsel %vm1357_vm3, %v1656_v55, 0.0 }
 0x181   :  { %v1720_v42 = vadd.f32 %v1719_v13, %v1718_v37  ;;  %v1526_v37 = vsub.f32 %v3225_v23, %v2989_v2  ;;  %v1741_v21 = vsel %vm1357_vm3, %v1653_v16, 0.0 }
 0x183   :  { %v1722_v25 = vadd.f32 %v1721_v36, %v1720_v42  ;;  %v3226_v42 = vld [vmem:[#allocation8_spill] sm:$0xff]  ;;  %v1737_v36 = vsel %vm1357_vm3, %v1651_v5, 0.0 }
 0x184   :  { %v1527_v11 = vsub.f32 %v3226_v42, %v2989_v2 }
 0x185   :  { %v1724_v61 = vadd.f32 %v1723_v40, %v1722_v25  ;;  %v1654_v40 = vmul.f32 %v1526_v37, %v1526_v37 }
 0x187   :  { %v1726_v45 = vadd.f32 %v1725_v53, %v1724_v61  ;;  %v1739_v61 = vsel %vm1357_vm3, %v1652_v49, 0.0  ;;  %v1529_v53 = vsub.f32 %v3228_v7, %v2989_v2  ;;  %v1743_v54 = vsel %vm1357_vm3, %v1654_v40, 0.0 }
 0x188   :  { %v1536_v40 = vsub.f32 %v2465_v14, %v2989_v2  ;;  %v1539_v14 = vsub.f32 %v2483_v20, %v2989_v2  ;;  %v1542_v20 = vsub.f32 %v2519_v32, %v2989_v2  ;;  %v1545_v32 = vsub.f32 %v2645_v30, %v2989_v2 }
 0x189   :  { %v1728_v1 = vadd.f32 %v1727_v19, %v1726_v45  ;;  %v1655_v45 = vmul.f32 %v1527_v11, %v1527_v11  ;;  %v3229_v19 = vld [vmem:[#allocation10_spill] sm:$0xff]  ;;  %v1657_v17 = vmul.f32 %v1529_v53, %v1529_v53  ;;  %v1537_v53 = vsub.f32 %v2501_v26, %v2989_v2 }
 0x18a   :  { %v1540_v26 = vsub.f32 %v2537_v41, %v2989_v2  ;;  %v1543_v41 = vsub.f32 %v2555_v50, %v2989_v2  ;;  %v1546_v50 = vsub.f32 %v2591_v4, %v2989_v2  ;;  %v1548_v30 = vsub.f32 %v2681_v56, %v2989_v2 }
 0x18b   :  { %v1730_v9 = vadd.f32 %v1729_v39, %v1728_v1  ;;  %v1530_v1 = vsub.f32 %v3229_v19, %v2989_v2  ;;  %v3230_v39 = vld [vmem:[#allocation13_spill] sm:$0xff]  ;;  %v1745_v62 = vsel %vm1357_vm3, %v1655_v45, 0.0  ;;  %v1749_v37 = vsel %vm1357_vm3, %v1657_v17, 0.0 }
 0x18c   :  { %v1664_v19 = vmul.f32 %v1536_v40, %v1536_v40  ;;  %v1549_v4 = vsub.f32 %v2717_v18, %v2989_v2  ;;  %v1551_v56 = vsub.f32 %v2699_v6, %v2989_v2  ;;  %v1552_v18 = vsub.f32 %v2753_v52, %v2989_v2 }
 0x18d   :  { %v1732_v48 = vadd.f32 %v1731_v57, %v1730_v9  ;;  %v1531_v9 = vsub.f32 %v3230_v39, %v2989_v2  ;;  %v3231_v57 = vld [vmem:[#allocation3_spill] sm:$0xff]  ;;  %v1658_v43 = vmul.f32 %v1530_v1, %v1530_v1  ;;  %v1554_v6 = vsub.f32 %v2735_v34, %v2989_v2 }
 0x18e   :  { %v1763_v17 = vsel %vm1357_vm3, %v1664_v19, 0.0  ;;  %v1555_v52 = vsub.f32 %v2771_v10, %v2989_v2  ;;  %v1557_v34 = vsub.f32 %v2861_v27, %v2989_v2  ;;  %v3234_v10 = vld [vmem:[#allocation11_spill] sm:$0xff]  ;;  %v3236_v27 = vld [vmem:[#allocation16_spill] sm:$0xff] }
 0x18f   :  { %v1734_v59 = vadd.f32 %v1733_v31, %v1732_v48  ;;  %v1532_v48 = vsub.f32 %v3231_v57, %v2989_v2  ;;  %v3232_v31 = vld [vmem:[#allocation4_spill] sm:$0xff]  ;;  %v1659_v23 = vmul.f32 %v1531_v9, %v1531_v9  ;;  %v1751_v11 = vsel %vm1357_vm3, %v1658_v43, 0.0 }
 0x190   :  { %v1668_v43 = vmul.f32 %v1540_v26, %v1540_v26  ;;  %v1679_v26 = vmul.f32 %v1551_v56, %v1551_v56 }
 0x191   :  { %v1736_v13 = vadd.f32 %v1735_v38, %v1734_v59  ;;  %v1533_v59 = vsub.f32 %v3232_v31, %v2989_v2  ;;  %v3233_v38 = vld [vmem:[#allocation2_spill] sm:$0xff]  ;;  %v1660_v42 = vmul.f32 %v1532_v48, %v1532_v48  ;;  %v1753_v29 = vsel %vm1357_vm3, %v1659_v23, 0.0 }
 0x193   :  { %v1738_v25 = vadd.f32 %v1737_v36, %v1736_v13  ;;  %v1534_v13 = vsub.f32 %v3233_v38, %v2989_v2  ;;  %v1535_v36 = vsub.f32 %v2411_v60, %v2989_v2  ;;  %v1538_v60 = vsub.f32 %v2447_v8, %v2989_v2 }
 0x194   :  { %v1541_v8 = vsub.f32 %v2573_v58, %v2989_v2  ;;  %v1544_v58 = vsub.f32 %v2609_v12, %v2989_v2  ;;  %v1547_v12 = vsub.f32 %v2627_v22, %v2989_v2  ;;  %v1550_v22 = vsub.f32 %v2663_v44, %v2989_v2 }
 0x195   :  { %v1740_v3 = vadd.f32 %v1739_v61, %v1738_v25  ;;  %v1661_v25 = vmul.f32 %v1533_v59, %v1533_v59  ;;  %v1662_v61 = vmul.f32 %v1534_v13, %v1534_v13  ;;  %v1663_v45 = vmul.f32 %v1535_v36, %v1535_v36 }
 0x196   :  { %v1666_v9 = vmul.f32 %v1538_v60, %v1538_v60  ;;  %v1669_v31 = vmul.f32 %v1541_v8, %v1541_v8  ;;  %v1671_v13 = vmul.f32 %v1543_v41, %v1543_v41  ;;  %v1553_v44 = vsub.f32 %v2789_v28, %v2989_v2 }
 0x197   :  { %v1742_v46 = vadd.f32 %v1741_v21, %v1740_v3  ;;  %v1755_v3 = vsel %vm1357_vm3, %v1660_v42, 0.0  ;;  %v1757_v21 = vsel %vm1357_vm3, %v1661_v25, 0.0  ;;  %v1759_v1 = vsel %vm1357_vm3, %v1662_v61, 0.0 }
 0x198   :  { %v1773_v42 = vsel %vm1357_vm3, %v1669_v31, 0.0  ;;  %v1674_v61 = vmul.f32 %v1546_v50, %v1546_v50  ;;  %v1556_v28 = vsub.f32 %v2825_v24, %v2989_v2  ;;  %v1683_v41 = vmul.f32 %v1555_v52, %v1555_v52  ;;  %v3235_v24 = vld [vmem:[#allocation14_spill] sm:$0xff] }
 0x199   :  { %v1744_v33 = vadd.f32 %v1743_v54, %v1742_v46  ;;  %v1665_v54 = vmul.f32 %v1537_v53, %v1537_v53  ;;  %v1675_v53 = vmul.f32 %v1547_v12, %v1547_v12 }
 0x19a   :  { %v1783_v60 = vsel %vm1357_vm3, %v1674_v61, 0.0 }
 0x19b   :  { %v1746_v47 = vadd.f32 %v1745_v62, %v1744_v33  ;;  %v1761_v33 = vsel %vm1357_vm3, %v1663_v45, 0.0  ;;  %v1765_v57 = vsel %vm1357_vm3, %v1665_v54, 0.0  ;;  %v1678_v54 = vmul.f32 %v1550_v22, %v1550_v22 }
 0x19d   :  { %v1748_v5 = vadd.f32 %v1747_v15, %v1746_v47  ;;  %v1667_v47 = vmul.f32 %v1539_v14, %v1539_v14  ;;  %v1767_v15 = vsel %vm1357_vm3, %v1666_v9, 0.0  ;;  %v1791_v8 = vsel %vm1357_vm3, %v1678_v54, 0.0 }
 0x19f   :  { %v1750_v49 = vadd.f32 %v1749_v37, %v1748_v5  ;;  %v1769_v59 = vsel %vm1357_vm3, %v1667_v47, 0.0  ;;  %v1670_v37 = vmul.f32 %v1542_v20, %v1542_v20 }
 0x1a1   :  { %v1752_v16 = vadd.f32 %v1751_v11, %v1750_v49  ;;  %v1771_v49 = vsel %vm1357_vm3, %v1668_v43, 0.0  ;;  %v1775_v36 = vsel %vm1357_vm3, %v1670_v37, 0.0  ;;  %v1682_v43 = vmul.f32 %v1554_v6, %v1554_v6 }
 0x1a3   :  { %v1754_v35 = vadd.f32 %v1753_v29, %v1752_v16  ;;  %v1672_v16 = vmul.f32 %v1544_v58, %v1544_v58  ;;  %v1673_v29 = vmul.f32 %v1545_v32, %v1545_v32  ;;  %v1684_v58 = vmul.f32 %v1556_v28, %v1556_v28 }
 0x1a4   :  { %v1799_v37 = vsel %vm1357_vm3, %v1682_v43, 0.0  ;;  %v1685_v32 = vmul.f32 %v1557_v34, %v1557_v34 }
 0x1a5   :  { %v1756_v7 = vadd.f32 %v1755_v3, %v1754_v35  ;;  %v1777_v35 = vsel %vm1357_vm3, %v1671_v13, 0.0  ;;  %v1779_v3 = vsel %vm1357_vm3, %v1672_v16, 0.0  ;;  %v1781_v45 = vsel %vm1357_vm3, %v1673_v29, 0.0 }
 0x1a6   :  { %v1801_v13 = vsel %vm1357_vm3, %v1683_v41, 0.0  ;;  %v1803_v16 = vsel %vm1357_vm3, %v1684_v58, 0.0  ;;  %v1805_v29 = vsel %vm1357_vm3, %v1685_v32, 0.0 }
 0x1a7   :  { %v1758_v46 = vadd.f32 %v1757_v21, %v1756_v7 }
 0x1a9   :  { %v1760_v55 = vadd.f32 %v1759_v1, %v1758_v46  ;;  %v1676_v46 = vmul.f32 %v1548_v30, %v1548_v30  ;;  %v1677_v1 = vmul.f32 %v1549_v4, %v1549_v4 }
 0x1ab   :  { %v1762_v39 = vadd.f32 %v1761_v33, %v1760_v55  ;;  %v1785_v55 = vsel %vm1357_vm3, %v1675_v53, 0.0  ;;  %v1787_v33 = vsel %vm1357_vm3, %v1676_v46, 0.0  ;;  %v1789_v9 = vsel %vm1357_vm3, %v1677_v1, 0.0 }
 0x1ad   :  { %v1764_v62 = vadd.f32 %v1763_v17, %v1762_v39 }
 0x1af   :  { %v1766_v48 = vadd.f32 %v1765_v57, %v1764_v62  ;;  %v1680_v62 = vmul.f32 %v1552_v18, %v1552_v18  ;;  %v1681_v57 = vmul.f32 %v1553_v44, %v1553_v44 }
 0x1b1   :  { %v1768_v5 = vadd.f32 %v1767_v15, %v1766_v48  ;;  %v1793_v48 = vsel %vm1357_vm3, %v1679_v26, 0.0  ;;  %v1795_v15 = vsel %vm1357_vm3, %v1680_v62, 0.0  ;;  %v1797_v31 = vsel %vm1357_vm3, %v1681_v57, 0.0 }
 0x1b3   :  { %v1770_v23 = vadd.f32 %v1769_v59, %v1768_v5 }
 0x1b5   :  { %v1772_v38 = vadd.f32 %v1771_v49, %v1770_v23  ;;  %v1558_v23 = vsub.f32 %v3234_v10, %v2989_v2 }
 0x1b7   :  { %v1774_v11 = vadd.f32 %v1773_v42, %v1772_v38  ;;  %v1559_v38 = vsub.f32 %v3235_v24, %v2989_v2  ;;  %v1686_v50 = vmul.f32 %v1558_v23, %v1558_v23 }
 0x1b9   :  { %v1776_v25 = vadd.f32 %v1775_v36, %v1774_v11  ;;  %v1560_v11 = vsub.f32 %v3236_v27, %v2989_v2  ;;  %v1687_v12 = vmul.f32 %v1559_v38, %v1559_v38  ;;  %v1807_v61 = vsel %vm1357_vm3, %v1686_v50, 0.0 }
 0x1bb   :  { %v1778_v40 = vadd.f32 %v1777_v35, %v1776_v25  ;;  %v1561_v25 = vsub.f32 %v2911_v63, %v2989_v2  ;;  %v1688_v30 = vmul.f32 %v1560_v11, %v1560_v11  ;;  %v1809_v53 = vsel %vm1357_vm3, %v1687_v12, 0.0 }
 0x1bd   :  { %v1780_v7 = vadd.f32 %v1779_v3, %v1778_v40  ;;  %v1562_v40 = vsub.f32 %v2877_v0, %v2989_v2  ;;  %v1689_v4 = vmul.f32 %v1561_v25, %v1561_v25  ;;  %v1811_v63 = vsel %vm1357_vm3, %v1688_v30, 0.0 }
 0x1bf   :  { %v1782_v21 = vadd.f32 %v1781_v45, %v1780_v7  ;;  %v1563_v7 = vsub.f32 %v2901_v51, %v2989_v2 }
 0x1c1   :  { %v1784_v19 = vadd.f32 %v1783_v60, %v1782_v21  ;;  %v1690_v21 = vmul.f32 %v1562_v40, %v1562_v40  ;;  %v1691_v46 = vmul.f32 %v1563_v7, %v1563_v7  ;;  %v1813_v60 = vsel %vm1357_vm3, %v1689_v4, 0.0 }
 0x1c3   :  { %v1786_v14 = vadd.f32 %v1785_v55, %v1784_v19  ;;  %v1815_v0 = vsel %vm1357_vm3, %v1690_v21, 0.0  ;;  %v1817_v1 = vsel %vm1357_vm3, %v1691_v46, 0.0 }
 0x1c5   :  { %v1788_v39 = vadd.f32 %v1787_v33, %v1786_v14 }
 0x1c7   :  { %v1790_v17 = vadd.f32 %v1789_v9, %v1788_v39 }
 0x1c9   :  { %v1792_v47 = vadd.f32 %v1791_v8, %v1790_v17 }
 0x1cb   :  { %v1794_v20 = vadd.f32 %v1793_v48, %v1792_v47 }
 0x1cd   :  { %v1796_v5 = vadd.f32 %v1795_v15, %v1794_v20 }
 0x1cf   :  { %v1798_v59 = vadd.f32 %v1797_v31, %v1796_v5 }
 0x1d1   :  { %v1800_v49 = vadd.f32 %v1799_v37, %v1798_v59 }
 0x1d3   :  { %v1802_v42 = vadd.f32 %v1801_v13, %v1800_v49 }
 0x1d5   :  { %v1804_v36 = vadd.f32 %v1803_v16, %v1802_v42 }
 0x1d7   :  { %v1806_v35 = vadd.f32 %v1805_v29, %v1804_v36 }
 0x1d9   :  { %v1808_v3 = vadd.f32 %v1807_v61, %v1806_v35 }
 0x1db   :  { %v1810_v45 = vadd.f32 %v1809_v53, %v1808_v3 }
 0x1dd   :  { %v1812_v22 = vadd.f32 %v1811_v63, %v1810_v45 }
 0x1df   :  { %v1814_v19 = vadd.f32 %v1813_v60, %v1812_v22 }
 0x1e1   :  { %v1816_v56 = vadd.f32 %v1815_v0, %v1814_v19 }
 0x1e3   :  { %v1818_v55 = vadd.f32 %v1817_v1, %v1816_v56 }
 0x1e5   :  { %v1819_v14 = vrot.slane %v1818_v55, 4 }
 0x1e7   :  { %v1820_v51 = vadd.f32 %v1819_v14, %v1818_v55 }
 0x1e9   :  { %v1821_v2 = vrot.slane %v1820_v51, 2 }
 0x1eb   :  { %v1822_v18 = vadd.f32 %v1821_v2, %v1820_v51 }
 0x1ed   :  { %v1823_v54 = vrot.slane %v1822_v18, 1 }
 0x1ef   :  { %v1824_v33 = vadd.f32 %v1823_v54, %v1822_v18 }
 0x1f1   :  { %1827 = vst.msk [vmem:[%s3191_s4] sm:$0x1] %vm1825_vm4, %v1824_v33 }

// kernel: spatial_block.7
= control target key start
LH: loop header
LB: loop body
LE: loop exit
PB: predicated region body
PF: predicated region fallthrough
CT: control target
= control target key end

     0   :  { %vm284_vm0 = vcmask 64512   ;;  %s1024_s0 = inlined_call_operand.vmem [shape: bf16[512,8], index: 0, kind: input, shape index: {}]   ;;  %s1025_s1 = inlined_call_operand.vmem [shape: f32[1,8], index: 1, kind: input, shape index: {}]   ;;  %s1026_s2 = inlined_call_operand.vmem [shape: f32[1,8], index: 2, kind: input, shape index: {}]   ;;  %s1027_s3 = inlined_call_operand.vmem [shape: f32[512,8], index: 3, kind: output, shape index: {}]  }
   0x1   :  { %v356_v0 = vld [vmem:[%s1024_s0] sm:$0xff]   ;;  %v483_v4 = vld [vmem:[%s1024_s0 + $0x8] sm:$0xff]   ;;  %v484_v5 = vld [vmem:[%s1024_s0 + $0x10] sm:$0xff]  }
   0x2   :  { %v540_v1 = vld [vmem:[%s1025_s1] ss:$0 sm:$0xff]  ;;  %v357_v2 = vunpack.c.l.bf16 %v356_v0  ;;  %v358_v3 = vunpack.c.h.bf16 %v356_v0  ;;  %v485_v6 = vld [vmem:[%s1024_s0 + $0x18] sm:$0xff]   ;;  %v361_v8 = vunpack.c.l.bf16 %v483_v4  ;;  %v362_v9 = vunpack.c.h.bf16 %v483_v4  ;;  %v487_v25 = vld [vmem:[%s1024_s0 + $0x28] sm:$0xff]  }
   0x3   :  { %v554_v7 = vld [vmem:[%s1026_s2] ss:$0 sm:$0xff]  ;;  %v365_v10 = vunpack.c.l.bf16 %v484_v5  ;;  %v366_v11 = vunpack.c.h.bf16 %v484_v5  ;;  %v369_v14 = vunpack.c.l.bf16 %v485_v6  ;;  %v370_v15 = vunpack.c.h.bf16 %v485_v6  ;;  %v488_v26 = vld [vmem:[%s1024_s0 + $0x30] sm:$0xff]   ;;  %v489_v31 = vld [vmem:[%s1024_s0 + $0x38] sm:$0xff]  }
   0x4   :  { %v149_v12 = vmul.f32 %v357_v2, %v540_v1  ;;  %v150_v13 = vmul.f32 %v358_v3, %v540_v1  ;;  %v151_v16 = vmul.f32 %v361_v8, %v540_v1  ;;  %v152_v17 = vmul.f32 %v362_v9, %v540_v1  ;;  %v486_v20 = vld [vmem:[%s1024_s0 + $0x20] sm:$0xff]   ;;  %v491_v53 = vld [vmem:[%s1024_s0 + $0x48] sm:$0xff]   ;;  %v492_v54 = vld [vmem:[%s1024_s0 + $0x50] sm:$0xff]  }
   0x5   :  { %v153_v18 = vmul.f32 %v365_v10, %v540_v1  ;;  %v154_v19 = vmul.f32 %v366_v11, %v540_v1  ;;  %v155_v23 = vmul.f32 %v369_v14, %v540_v1  ;;  %v156_v24 = vmul.f32 %v370_v15, %v540_v1  ;;  %v490_v48 = vld [vmem:[%s1024_s0 + $0x40] sm:$0xff]   ;;  %v493_v59 = vld [vmem:[%s1024_s0 + $0x58] sm:$0xff]  }
   0x6   :  { %v220_v21 = vadd.f32 %v554_v7, %v149_v12  ;;  %v221_v22 = vadd.f32 %v554_v7, %v150_v13  ;;  %v222_v27 = vadd.f32 %v554_v7, %v151_v16  ;;  %v223_v28 = vadd.f32 %v554_v7, %v152_v17  ;;  %v494_v14 = vld [vmem:[%s1024_s0 + $0x60] sm:$0xff]  }
   0x7   :  { %v224_v29 = vadd.f32 %v554_v7, %v153_v18  ;;  %v225_v30 = vadd.f32 %v554_v7, %v154_v19  ;;  %v226_v32 = vadd.f32 %v554_v7, %v155_v23  ;;  %v227_v33 = vadd.f32 %v554_v7, %v156_v24  ;;  %v495_v19 = vld [vmem:[%s1024_s0 + $0x68] sm:$0xff]  }
   0x8   :  { %285 = vst.msk [vmem:[%s1027_s3] sm:$0xff] %vm284_vm0, %v220_v21  ;;  %286 = vst.msk [vmem:[%s1027_s3 + $0x8] sm:$0xff] %vm284_vm0, %v221_v22  ;;  %v373_v34 = vunpack.c.l.bf16 %v486_v20  ;;  %v374_v35 = vunpack.c.h.bf16 %v486_v20  ;;  %v377_v36 = vunpack.c.l.bf16 %v487_v25  ;;  %v378_v37 = vunpack.c.h.bf16 %v487_v25  ;;  %v496_v20 = vld [vmem:[%s1024_s0 + $0x70] sm:$0xff]   ;;  %v497_v25 = vld [vmem:[%s1024_s0 + $0x78] sm:$0xff]  }
   0x9   :  { %287 = vst.msk [vmem:[%s1027_s3 + $0x10] sm:$0xff] %vm284_vm0, %v222_v27  ;;  %288 = vst.msk [vmem:[%s1027_s3 + $0x18] sm:$0xff] %vm284_vm0, %v223_v28  ;;  %v381_v38 = vunpack.c.l.bf16 %v488_v26  ;;  %v382_v39 = vunpack.c.h.bf16 %v488_v26  ;;  %v385_v42 = vunpack.c.l.bf16 %v489_v31  ;;  %v386_v43 = vunpack.c.h.bf16 %v489_v31 }
   0xa   :  { %289 = vst.msk [vmem:[%s1027_s3 + $0x20] sm:$0xff] %vm284_vm0, %v224_v29  ;;  %290 = vst.msk [vmem:[%s1027_s3 + $0x28] sm:$0xff] %vm284_vm0, %v225_v30  ;;  %v157_v40 = vmul.f32 %v373_v34, %v540_v1  ;;  %v158_v41 = vmul.f32 %v374_v35, %v540_v1  ;;  %v159_v44 = vmul.f32 %v377_v36, %v540_v1  ;;  %v389_v62 = vunpack.c.l.bf16 %v490_v48 }
   0xb   :  { %291 = vst.msk [vmem:[%s1027_s3 + $0x30] sm:$0xff] %vm284_vm0, %v226_v32  ;;  %292 = vst.msk [vmem:[%s1027_s3 + $0x38] sm:$0xff] %vm284_vm0, %v227_v33  ;;  %v160_v45 = vmul.f32 %v378_v37, %v540_v1  ;;  %v161_v46 = vmul.f32 %v381_v38, %v540_v1  ;;  %v162_v47 = vmul.f32 %v382_v39, %v540_v1  ;;  %v390_v63 = vunpack.c.h.bf16 %v490_v48  ;;  %v500_v48 = vld [vmem:[%s1024_s0 + $0x90] sm:$0xff]  }
   0xc   :  { %v228_v49 = vadd.f32 %v554_v7, %v157_v40  ;;  %v229_v50 = vadd.f32 %v554_v7, %v158_v41  ;;  %v163_v51 = vmul.f32 %v385_v42, %v540_v1  ;;  %v164_v52 = vmul.f32 %v386_v43, %v540_v1  ;;  %v498_v42 = vld [vmem:[%s1024_s0 + $0x80] sm:$0xff]  }
   0xd   :  { %v230_v55 = vadd.f32 %v554_v7, %v159_v44  ;;  %v231_v56 = vadd.f32 %v554_v7, %v160_v45  ;;  %v232_v57 = vadd.f32 %v554_v7, %v161_v46  ;;  %v233_v58 = vadd.f32 %v554_v7, %v162_v47  ;;  %v499_v47 = vld [vmem:[%s1024_s0 + $0x88] sm:$0xff]  }
   0xe   :  { %293 = vst.msk [vmem:[%s1027_s3 + $0x40] sm:$0xff] %vm284_vm0, %v228_v49  ;;  %294 = vst.msk [vmem:[%s1027_s3 + $0x48] sm:$0xff] %vm284_vm0, %v229_v50  ;;  %v234_v60 = vadd.f32 %v554_v7, %v163_v51  ;;  %v235_v61 = vadd.f32 %v554_v7, %v164_v52  ;;  %v393_v0 = vunpack.c.l.bf16 %v491_v53  ;;  %v394_v2 = vunpack.c.h.bf16 %v491_v53  ;;  %v501_v53 = vld [vmem:[%s1024_s0 + $0x98] sm:$0xff]  }
   0xf   :  { %295 = vst.msk [vmem:[%s1027_s3 + $0x50] sm:$0xff] %vm284_vm0, %v230_v55  ;;  %296 = vst.msk [vmem:[%s1027_s3 + $0x58] sm:$0xff] %vm284_vm0, %v231_v56  ;;  %v397_v3 = vunpack.c.l.bf16 %v492_v54  ;;  %v398_v4 = vunpack.c.h.bf16 %v492_v54  ;;  %v165_v5 = vmul.f32 %v389_v62, %v540_v1  ;;  %v166_v6 = vmul.f32 %v390_v63, %v540_v1 }
  0x10   :  { %297 = vst.msk [vmem:[%s1027_s3 + $0x60] sm:$0xff] %vm284_vm0, %v232_v57  ;;  %298 = vst.msk [vmem:[%s1027_s3 + $0x68] sm:$0xff] %vm284_vm0, %v233_v58  ;;  %v401_v8 = vunpack.c.l.bf16 %v493_v59  ;;  %v402_v9 = vunpack.c.h.bf16 %v493_v59  ;;  %v167_v10 = vmul.f32 %v393_v0, %v540_v1  ;;  %v168_v11 = vmul.f32 %v394_v2, %v540_v1 }
  0x11   :  { %299 = vst.msk [vmem:[%s1027_s3 + $0x70] sm:$0xff] %vm284_vm0, %v234_v60  ;;  %300 = vst.msk [vmem:[%s1027_s3 + $0x78] sm:$0xff] %vm284_vm0, %v235_v61  ;;  %v169_v12 = vmul.f32 %v397_v3, %v540_v1  ;;  %v170_v13 = vmul.f32 %v398_v4, %v540_v1  ;;  %v236_v15 = vadd.f32 %v554_v7, %v165_v5  ;;  %v405_v28 = vunpack.c.l.bf16 %v494_v14 }
  0x12   :  { %v237_v16 = vadd.f32 %v554_v7, %v166_v6  ;;  %v171_v17 = vmul.f32 %v401_v8, %v540_v1  ;;  %v172_v18 = vmul.f32 %v402_v9, %v540_v1  ;;  %v238_v21 = vadd.f32 %v554_v7, %v167_v10  ;;  %v502_v8 = vld [vmem:[%s1024_s0 + $0xa0] sm:$0xff]  }
  0x13   :  { %v239_v22 = vadd.f32 %v554_v7, %v168_v11  ;;  %v240_v23 = vadd.f32 %v554_v7, %v169_v12  ;;  %v241_v24 = vadd.f32 %v554_v7, %v170_v13  ;;  %301 = vst.msk [vmem:[%s1027_s3 + $0x80] sm:$0xff] %vm284_vm0, %v236_v15  ;;  %v406_v29 = vunpack.c.h.bf16 %v494_v14  ;;  %v503_v13 = vld [vmem:[%s1024_s0 + $0xa8] sm:$0xff]   ;;  %v504_v14 = vld [vmem:[%s1024_s0 + $0xb0] sm:$0xff]  }
  0x14   :  { %302 = vst.msk [vmem:[%s1027_s3 + $0x88] sm:$0xff] %vm284_vm0, %v237_v16  ;;  %v242_v26 = vadd.f32 %v554_v7, %v171_v17  ;;  %v243_v27 = vadd.f32 %v554_v7, %v172_v18  ;;  %303 = vst.msk [vmem:[%s1027_s3 + $0x90] sm:$0xff] %vm284_vm0, %v238_v21  ;;  %v409_v30 = vunpack.c.l.bf16 %v495_v19  ;;  %v410_v31 = vunpack.c.h.bf16 %v495_v19  ;;  %v505_v19 = vld [vmem:[%s1024_s0 + $0xb8] sm:$0xff]  }
  0x15   :  { %304 = vst.msk [vmem:[%s1027_s3 + $0x98] sm:$0xff] %vm284_vm0, %v239_v22  ;;  %305 = vst.msk [vmem:[%s1027_s3 + $0xa0] sm:$0xff] %vm284_vm0, %v240_v23  ;;  %v413_v32 = vunpack.c.l.bf16 %v496_v20  ;;  %v414_v33 = vunpack.c.h.bf16 %v496_v20  ;;  %v173_v34 = vmul.f32 %v405_v28, %v540_v1  ;;  %v174_v35 = vmul.f32 %v406_v29, %v540_v1 }
  0x16   :  { %306 = vst.msk [vmem:[%s1027_s3 + $0xa8] sm:$0xff] %vm284_vm0, %v241_v24  ;;  %307 = vst.msk [vmem:[%s1027_s3 + $0xb0] sm:$0xff] %vm284_vm0, %v242_v26  ;;  %v417_v36 = vunpack.c.l.bf16 %v497_v25  ;;  %v418_v37 = vunpack.c.h.bf16 %v497_v25  ;;  %v175_v38 = vmul.f32 %v409_v30, %v540_v1  ;;  %v176_v39 = vmul.f32 %v410_v31, %v540_v1 }
  0x17   :  { %308 = vst.msk [vmem:[%s1027_s3 + $0xb8] sm:$0xff] %vm284_vm0, %v243_v27  ;;  %v177_v40 = vmul.f32 %v413_v32, %v540_v1  ;;  %v178_v41 = vmul.f32 %v414_v33, %v540_v1  ;;  %v244_v43 = vadd.f32 %v554_v7, %v173_v34  ;;  %v245_v44 = vadd.f32 %v554_v7, %v174_v35 }
  0x18   :  { %v179_v45 = vmul.f32 %v417_v36, %v540_v1  ;;  %v180_v46 = vmul.f32 %v418_v37, %v540_v1  ;;  %v246_v49 = vadd.f32 %v554_v7, %v175_v38  ;;  %v247_v50 = vadd.f32 %v554_v7, %v176_v39  ;;  %v506_v36 = vld [vmem:[%s1024_s0 + $0xc0] sm:$0xff]  }
  0x19   :  { %v248_v51 = vadd.f32 %v554_v7, %v177_v40  ;;  %v249_v52 = vadd.f32 %v554_v7, %v178_v41  ;;  %309 = vst.msk [vmem:[%s1027_s3 + $0xc0] sm:$0xff] %vm284_vm0, %v244_v43  ;;  %310 = vst.msk [vmem:[%s1027_s3 + $0xc8] sm:$0xff] %vm284_vm0, %v245_v44  ;;  %v421_v56 = vunpack.c.l.bf16 %v498_v42  ;;  %v422_v57 = vunpack.c.h.bf16 %v498_v42  ;;  %v507_v41 = vld [vmem:[%s1024_s0 + $0xc8] sm:$0xff]   ;;  %v508_v42 = vld [vmem:[%s1024_s0 + $0xd0] sm:$0xff]  }
  0x1a   :  { %v250_v54 = vadd.f32 %v554_v7, %v179_v45  ;;  %v251_v55 = vadd.f32 %v554_v7, %v180_v46  ;;  %311 = vst.msk [vmem:[%s1027_s3 + $0xd0] sm:$0xff] %vm284_vm0, %v246_v49  ;;  %312 = vst.msk [vmem:[%s1027_s3 + $0xd8] sm:$0xff] %vm284_vm0, %v247_v50  ;;  %v425_v58 = vunpack.c.l.bf16 %v499_v47  ;;  %v426_v59 = vunpack.c.h.bf16 %v499_v47  ;;  %v509_v47 = vld [vmem:[%s1024_s0 + $0xd8] sm:$0xff]  }
  0x1b   :  { %313 = vst.msk [vmem:[%s1027_s3 + $0xe0] sm:$0xff] %vm284_vm0, %v248_v51  ;;  %314 = vst.msk [vmem:[%s1027_s3 + $0xe8] sm:$0xff] %vm284_vm0, %v249_v52  ;;  %v429_v60 = vunpack.c.l.bf16 %v500_v48  ;;  %v430_v61 = vunpack.c.h.bf16 %v500_v48  ;;  %v181_v62 = vmul.f32 %v421_v56, %v540_v1  ;;  %v182_v63 = vmul.f32 %v422_v57, %v540_v1 }
  0x1c   :  { %315 = vst.msk [vmem:[%s1027_s3 + $0xf0] sm:$0xff] %vm284_vm0, %v250_v54  ;;  %316 = vst.msk [vmem:[%s1027_s3 + $0xf8] sm:$0xff] %vm284_vm0, %v251_v55  ;;  %v433_v0 = vunpack.c.l.bf16 %v501_v53  ;;  %v434_v2 = vunpack.c.h.bf16 %v501_v53  ;;  %v183_v3 = vmul.f32 %v425_v58, %v540_v1  ;;  %v184_v4 = vmul.f32 %v426_v59, %v540_v1 }
  0x1d   :  { %v185_v5 = vmul.f32 %v429_v60, %v540_v1  ;;  %v186_v6 = vmul.f32 %v430_v61, %v540_v1  ;;  %v252_v9 = vadd.f32 %v554_v7, %v181_v62  ;;  %v253_v10 = vadd.f32 %v554_v7, %v182_v63 }
  0x1e   :  { %v187_v11 = vmul.f32 %v433_v0, %v540_v1  ;;  %v188_v12 = vmul.f32 %v434_v2, %v540_v1  ;;  %v254_v15 = vadd.f32 %v554_v7, %v183_v3  ;;  %v255_v16 = vadd.f32 %v554_v7, %v184_v4  ;;  %v510_v0 = vld [vmem:[%s1024_s0 + $0xe0] sm:$0xff]  }
  0x1f   :  { %v256_v17 = vadd.f32 %v554_v7, %v185_v5  ;;  %v257_v18 = vadd.f32 %v554_v7, %v186_v6  ;;  %317 = vst.msk [vmem:[%s1027_s3 + $0x100] sm:$0xff] %vm284_vm0, %v252_v9  ;;  %318 = vst.msk [vmem:[%s1027_s3 + $0x108] sm:$0xff] %vm284_vm0, %v253_v10  ;;  %v437_v22 = vunpack.c.l.bf16 %v502_v8  ;;  %v438_v23 = vunpack.c.h.bf16 %v502_v8  ;;  %v511_v6 = vld [vmem:[%s1024_s0 + $0xe8] sm:$0xff]   ;;  %v512_v8 = vld [vmem:[%s1024_s0 + $0xf0] sm:$0xff]  }
  0x20   :  { %v258_v20 = vadd.f32 %v554_v7, %v187_v11  ;;  %v259_v21 = vadd.f32 %v554_v7, %v188_v12  ;;  %319 = vst.msk [vmem:[%s1027_s3 + $0x110] sm:$0xff] %vm284_vm0, %v254_v15  ;;  %320 = vst.msk [vmem:[%s1027_s3 + $0x118] sm:$0xff] %vm284_vm0, %v255_v16  ;;  %v441_v24 = vunpack.c.l.bf16 %v503_v13  ;;  %v442_v25 = vunpack.c.h.bf16 %v503_v13  ;;  %v513_v13 = vld [vmem:[%s1024_s0 + $0xf8] sm:$0xff]  }
  0x21   :  { %321 = vst.msk [vmem:[%s1027_s3 + $0x120] sm:$0xff] %vm284_vm0, %v256_v17  ;;  %322 = vst.msk [vmem:[%s1027_s3 + $0x128] sm:$0xff] %vm284_vm0, %v257_v18  ;;  %v445_v26 = vunpack.c.l.bf16 %v504_v14  ;;  %v446_v27 = vunpack.c.h.bf16 %v504_v14  ;;  %v189_v28 = vmul.f32 %v437_v22, %v540_v1  ;;  %v190_v29 = vmul.f32 %v438_v23, %v540_v1 }
  0x22   :  { %323 = vst.msk [vmem:[%s1027_s3 + $0x130] sm:$0xff] %vm284_vm0, %v258_v20  ;;  %324 = vst.msk [vmem:[%s1027_s3 + $0x138] sm:$0xff] %vm284_vm0, %v259_v21  ;;  %v449_v30 = vunpack.c.l.bf16 %v505_v19  ;;  %v450_v31 = vunpack.c.h.bf16 %v505_v19  ;;  %v191_v32 = vmul.f32 %v441_v24, %v540_v1  ;;  %v192_v33 = vmul.f32 %v442_v25, %v540_v1 }
  0x23   :  { %v193_v34 = vmul.f32 %v445_v26, %v540_v1  ;;  %v194_v35 = vmul.f32 %v446_v27, %v540_v1  ;;  %v260_v37 = vadd.f32 %v554_v7, %v189_v28  ;;  %v261_v38 = vadd.f32 %v554_v7, %v190_v29 }
  0x24   :  { %v195_v39 = vmul.f32 %v449_v30, %v540_v1  ;;  %v196_v40 = vmul.f32 %v450_v31, %v540_v1  ;;  %v262_v43 = vadd.f32 %v554_v7, %v191_v32  ;;  %v263_v44 = vadd.f32 %v554_v7, %v192_v33 }
  0x25   :  { %v264_v45 = vadd.f32 %v554_v7, %v193_v34  ;;  %v265_v46 = vadd.f32 %v554_v7, %v194_v35  ;;  %325 = vst.msk [vmem:[%s1027_s3 + $0x140] sm:$0xff] %vm284_vm0, %v260_v37  ;;  %326 = vst.msk [vmem:[%s1027_s3 + $0x148] sm:$0xff] %vm284_vm0, %v261_v38  ;;  %v453_v50 = vunpack.c.l.bf16 %v506_v36  ;;  %v454_v51 = vunpack.c.h.bf16 %v506_v36 }
  0x26   :  { %v266_v48 = vadd.f32 %v554_v7, %v195_v39  ;;  %v267_v49 = vadd.f32 %v554_v7, %v196_v40  ;;  %327 = vst.msk [vmem:[%s1027_s3 + $0x150] sm:$0xff] %vm284_vm0, %v262_v43  ;;  %328 = vst.msk [vmem:[%s1027_s3 + $0x158] sm:$0xff] %vm284_vm0, %v263_v44  ;;  %v457_v52 = vunpack.c.l.bf16 %v507_v41  ;;  %v458_v53 = vunpack.c.h.bf16 %v507_v41 }
  0x27   :  { %329 = vst.msk [vmem:[%s1027_s3 + $0x160] sm:$0xff] %vm284_vm0, %v264_v45  ;;  %330 = vst.msk [vmem:[%s1027_s3 + $0x168] sm:$0xff] %vm284_vm0, %v265_v46  ;;  %v461_v54 = vunpack.c.l.bf16 %v508_v42  ;;  %v462_v55 = vunpack.c.h.bf16 %v508_v42  ;;  %v197_v56 = vmul.f32 %v453_v50, %v540_v1  ;;  %v198_v57 = vmul.f32 %v454_v51, %v540_v1 }
  0x28   :  { %331 = vst.msk [vmem:[%s1027_s3 + $0x170] sm:$0xff] %vm284_vm0, %v266_v48  ;;  %332 = vst.msk [vmem:[%s1027_s3 + $0x178] sm:$0xff] %vm284_vm0, %v267_v49  ;;  %v465_v58 = vunpack.c.l.bf16 %v509_v47  ;;  %v466_v59 = vunpack.c.h.bf16 %v509_v47  ;;  %v199_v60 = vmul.f32 %v457_v52, %v540_v1  ;;  %v200_v61 = vmul.f32 %v458_v53, %v540_v1 }
  0x29   :  { %v201_v62 = vmul.f32 %v461_v54, %v540_v1  ;;  %v202_v63 = vmul.f32 %v462_v55, %v540_v1  ;;  %v268_v2 = vadd.f32 %v554_v7, %v197_v56  ;;  %v269_v3 = vadd.f32 %v554_v7, %v198_v57 }
  0x2a   :  { %v203_v4 = vmul.f32 %v465_v58, %v540_v1  ;;  %v204_v5 = vmul.f32 %v466_v59, %v540_v1  ;;  %v270_v9 = vadd.f32 %v554_v7, %v199_v60  ;;  %v271_v10 = vadd.f32 %v554_v7, %v200_v61 }
  0x2b   :  { %v272_v11 = vadd.f32 %v554_v7, %v201_v62  ;;  %v273_v12 = vadd.f32 %v554_v7, %v202_v63  ;;  %333 = vst.msk [vmem:[%s1027_s3 + $0x180] sm:$0xff] %vm284_vm0, %v268_v2  ;;  %334 = vst.msk [vmem:[%s1027_s3 + $0x188] sm:$0xff] %vm284_vm0, %v269_v3  ;;  %v469_v16 = vunpack.c.l.bf16 %v510_v0  ;;  %v470_v17 = vunpack.c.h.bf16 %v510_v0 }
  0x2c   :  { %v274_v14 = vadd.f32 %v554_v7, %v203_v4  ;;  %v275_v15 = vadd.f32 %v554_v7, %v204_v5  ;;  %335 = vst.msk [vmem:[%s1027_s3 + $0x190] sm:$0xff] %vm284_vm0, %v270_v9  ;;  %336 = vst.msk [vmem:[%s1027_s3 + $0x198] sm:$0xff] %vm284_vm0, %v271_v10  ;;  %v473_v18 = vunpack.c.l.bf16 %v511_v6  ;;  %v474_v19 = vunpack.c.h.bf16 %v511_v6 }
  0x2d   :  { %337 = vst.msk [vmem:[%s1027_s3 + $0x1a0] sm:$0xff] %vm284_vm0, %v272_v11  ;;  %338 = vst.msk [vmem:[%s1027_s3 + $0x1a8] sm:$0xff] %vm284_vm0, %v273_v12  ;;  %v477_v20 = vunpack.c.l.bf16 %v512_v8  ;;  %v478_v21 = vunpack.c.h.bf16 %v512_v8  ;;  %v205_v22 = vmul.f32 %v469_v16, %v540_v1  ;;  %v206_v23 = vmul.f32 %v470_v17, %v540_v1 }
  0x2e   :  { %339 = vst.msk [vmem:[%s1027_s3 + $0x1b0] sm:$0xff] %vm284_vm0, %v274_v14  ;;  %340 = vst.msk [vmem:[%s1027_s3 + $0x1b8] sm:$0xff] %vm284_vm0, %v275_v15  ;;  %v481_v24 = vunpack.c.l.bf16 %v513_v13  ;;  %v482_v25 = vunpack.c.h.bf16 %v513_v13  ;;  %v207_v26 = vmul.f32 %v473_v18, %v540_v1  ;;  %v208_v27 = vmul.f32 %v474_v19, %v540_v1 }
  0x2f   :  { %v209_v28 = vmul.f32 %v477_v20, %v540_v1  ;;  %v210_v29 = vmul.f32 %v478_v21, %v540_v1  ;;  %v276_v30 = vadd.f32 %v554_v7, %v205_v22  ;;  %v277_v31 = vadd.f32 %v554_v7, %v206_v23 }
  0x30   :  { %v211_v32 = vmul.f32 %v481_v24, %v540_v1  ;;  %v212_v33 = vmul.f32 %v482_v25, %v540_v1  ;;  %v278_v34 = vadd.f32 %v554_v7, %v207_v26  ;;  %v279_v35 = vadd.f32 %v554_v7, %v208_v27 }
  0x31   :  { %v280_v36 = vadd.f32 %v554_v7, %v209_v28  ;;  %v281_v37 = vadd.f32 %v554_v7, %v210_v29  ;;  %341 = vst.msk [vmem:[%s1027_s3 + $0x1c0] sm:$0xff] %vm284_vm0, %v276_v30  ;;  %342 = vst.msk [vmem:[%s1027_s3 + $0x1c8] sm:$0xff] %vm284_vm0, %v277_v31 }
  0x32   :  { %v282_v1 = vadd.f32 %v554_v7, %v211_v32  ;;  %v283_v38 = vadd.f32 %v554_v7, %v212_v33  ;;  %343 = vst.msk [vmem:[%s1027_s3 + $0x1d0] sm:$0xff] %vm284_vm0, %v278_v34  ;;  %344 = vst.msk [vmem:[%s1027_s3 + $0x1d8] sm:$0xff] %vm284_vm0, %v279_v35 }
  0x33   :  { %345 = vst.msk [vmem:[%s1027_s3 + $0x1e0] sm:$0xff] %vm284_vm0, %v280_v36  ;;  %346 = vst.msk [vmem:[%s1027_s3 + $0x1e8] sm:$0xff] %vm284_vm0, %v281_v37 }
  0x34   :  { %347 = vst.msk [vmem:[%s1027_s3 + $0x1f0] sm:$0xff] %vm284_vm0, %v282_v1  ;;  %348 = vst.msk [vmem:[%s1027_s3 + $0x1f8] sm:$0xff] %vm284_vm0, %v283_v38 }

// kernel: spatial_block.5
= control target key start
LH: loop header
LB: loop body
LE: loop exit
PB: predicated region body
PF: predicated region fallthrough
CT: control target
= control target key end

     0   :  { %vm485_vm0 = vcmask 1043456   ;;  %vm388_vm1 = vcmask 64512   ;;  %vm1034_vm2 = vcmask 60416   ;;  %vm1953_vm3 = vcmask 57344   ;;  %s3570_s3 = inlined_call_operand.vmem [shape: bf16[8,8], index: 3, kind: input, shape index: {}]   ;;  %s3571_s0 = inlined_call_operand.vmem [shape: bf16[512,8], index: 0, kind: input, shape index: {}]   ;;  %s3572_s1 = inlined_call_operand.vmem [shape: f32[1,8], index: 1, kind: input, shape index: {}]   ;;  %s3573_s2 = inlined_call_operand.vmem [shape: f32[1,8], index: 2, kind: input, shape index: {}]   ;;  %s3574_s4 = inlined_call_operand.vmem [shape: bf16[512,8], index: 4, kind: output, shape index: {0}]   ;;  %s3575_s5 = inlined_call_operand.vmem [shape: f32[1,1,8], index: 5, kind: output, shape index: {1}]   ;;  %s3576_s6 = inlined_call_operand.vmem [shape: f32[1,1,8], index: 6, kind: output, shape index: {2}]  }
   0x1   :  { %v387_v0 = vld [vmem:[%s3570_s3] sm:$0xf]  ;;  %v2258_v6 = vld [vmem:[%s3571_s0 + $0x8] sm:$0xff]   ;;  %v2259_v7 = vld [vmem:[%s3571_s0 + $0x10] sm:$0xff]  }
   0x2   :  { %v2131_v1 = vld [vmem:[%s3571_s0] sm:$0xff]   ;;  %2390 = vmatprep.subr.msk.bf16.mxu0 %vm485_vm0, %v387_v0  ;;  %v487_v3 = vsel %vm485_vm0, %v387_v0, 0  ;;  %2391 = vmatprep.subr.msk.bf16.mxu1 %vm485_vm0, %v387_v0  ;;  %v2136_v9 = vunpack.c.l.bf16 %v2258_v6  ;;  %v2137_v10 = vunpack.c.h.bf16 %v2258_v6  ;;  %v2140_v11 = vunpack.c.l.bf16 %v2259_v7  ;;  %v2260_v13 = vld [vmem:[%s3571_s0 + $0x18] sm:$0xff]   ;;  %v2262_v35 = vld [vmem:[%s3571_s0 + $0x28] sm:$0xff]  }
   0x3   :  { %v2436_v2 = vld [vmem:[%s3572_s1] ss:$0 sm:$0xff]  ;;  %v2132_v4 = vunpack.c.l.bf16 %v2131_v1  ;;  %v2133_v5 = vunpack.c.h.bf16 %v2131_v1  ;;  %2323 = vmatpush3.bf16.msra.mxu0 %v487_v3  ;;  %v2141_v12 = vunpack.c.h.bf16 %v2259_v7  ;;  %2389 = vmatpush3.bf16.msra.mxu1 %v487_v3  ;;  %v2144_v16 = vunpack.c.l.bf16 %v2260_v13  ;;  %v2263_v40 = vld [vmem:[%s3571_s0 + $0x30] sm:$0xff]   ;;  %v2264_v51 = vld [vmem:[%s3571_s0 + $0x38] sm:$0xff]  }
   0x4   :  { %v2447_v8 = vld [vmem:[%s3573_s2] ss:$0 sm:$0xff]  ;;  %v2145_v17 = vunpack.c.h.bf16 %v2260_v13  ;;  %v158_v18 = vmul.f32 %v2136_v9, %v2436_v2  ;;  %v159_v19 = vmul.f32 %v2137_v10, %v2436_v2  ;;  %v160_v20 = vmul.f32 %v2140_v11, %v2436_v2  ;;  %v2266_v9 = vld [vmem:[%s3571_s0 + $0x48] sm:$0xff]   ;;  %v2267_v11 = vld [vmem:[%s3571_s0 + $0x50] sm:$0xff]  }
   0x5   :  { %v156_v14 = vmul.f32 %v2132_v4, %v2436_v2  ;;  %v157_v15 = vmul.f32 %v2133_v5, %v2436_v2  ;;  %v161_v21 = vmul.f32 %v2141_v12, %v2436_v2  ;;  %v162_v24 = vmul.f32 %v2144_v16, %v2436_v2  ;;  %v2261_v30 = vld [vmem:[%s3571_s0 + $0x20] sm:$0xff]  }
   0x6   :  { %v163_v25 = vmul.f32 %v2145_v17, %v2436_v2  ;;  %v229_v26 = vadd.f32 %v2447_v8, %v158_v18  ;;  %v230_v27 = vadd.f32 %v2447_v8, %v159_v19  ;;  %v231_v28 = vadd.f32 %v2447_v8, %v160_v20  ;;  %v2265_v63 = vld [vmem:[%s3571_s0 + $0x40] sm:$0xff]   ;;  %v2268_v20 = vld [vmem:[%s3571_s0 + $0x58] sm:$0xff]  }
   0x7   :  { %v227_v22 = vadd.f32 %v2447_v8, %v156_v14  ;;  %v228_v23 = vadd.f32 %v2447_v8, %v157_v15  ;;  %v232_v29 = vadd.f32 %v2447_v8, %v161_v21  ;;  %v233_v33 = vadd.f32 %v2447_v8, %v162_v24 }
   0x8   :  { %v234_v34 = vadd.f32 %v2447_v8, %v163_v25  ;;  %v293_v36 = vmax.f32 %v229_v26, 0.0  ;;  %v294_v37 = vmax.f32 %v230_v27, 0.0  ;;  %v295_v38 = vmax.f32 %v231_v28, 0.0 }
   0x9   :  { %v291_v31 = vmax.f32 %v227_v22, 0.0  ;;  %v292_v32 = vmax.f32 %v228_v23, 0.0  ;;  %v296_v39 = vmax.f32 %v232_v29, 0.0  ;;  %v2148_v42 = vunpack.c.l.bf16 %v2261_v30 }
   0xa   :  { %v356_v43 = vpack.c.bf16 %v294_v37, %v293_v36  ;;  %v2149_v45 = vunpack.c.h.bf16 %v2261_v30  ;;  %v2152_v46 = vunpack.c.l.bf16 %v2262_v35  ;;  %v297_v47 = vmax.f32 %v233_v33, 0.0 }
   0xb   :  { %v355_v41 = vpack.c.bf16 %v292_v32, %v291_v31  ;;  %v357_v44 = vpack.c.bf16 %v296_v39, %v295_v38  ;;  %v164_v48 = vmul.f32 %v2148_v42, %v2436_v2  ;;  %v2153_v49 = vunpack.c.h.bf16 %v2262_v35  ;;  %v2269_v31 = vld [vmem:[%s3571_s0 + $0x60] sm:$0xff]  }
   0xc   :  { %v2156_v50 = vunpack.c.l.bf16 %v2263_v40  ;;  %v298_v52 = vmax.f32 %v234_v34, 0.0  ;;  %v165_v53 = vmul.f32 %v2149_v45, %v2436_v2  ;;  %v166_v54 = vmul.f32 %v2152_v46, %v2436_v2 }
   0xd   :  { %2324 = vmatprep.mubr.msk.bf16.mxu0 %vm388_vm1, %v355_v41  ;;  %v2157_v55 = vunpack.c.h.bf16 %v2263_v40  ;;  %v235_v56 = vadd.f32 %v2447_v8, %v164_v48  ;;  %v167_v57 = vmul.f32 %v2153_v49, %v2436_v2  ;;  %v2160_v61 = vunpack.c.l.bf16 %v2264_v51 }
   0xe   :  { %2325 = vmatmul.mubr.msk.bf16.vlgmr.msra.gmra.mxu0 %vm388_vm1, %v356_v43  ;;  %v168_v58 = vmul.f32 %v2156_v50, %v2436_v2  ;;  %v236_v59 = vadd.f32 %v2447_v8, %v165_v53  ;;  %v2161_v62 = vunpack.c.h.bf16 %v2264_v51  ;;  %v237_v1 = vadd.f32 %v2447_v8, %v166_v54 }
   0xf   :  { %2328 = vmatprep.mubr.msk.bf16.mxu0 %vm388_vm1, %v357_v44  ;;  %v169_v60 = vmul.f32 %v2157_v55, %v2436_v2  ;;  %v299_v0 = vmax.f32 %v235_v56, 0.0  ;;  %v238_v3 = vadd.f32 %v2447_v8, %v167_v57  ;;  %v358_v5 = vpack.c.bf16 %v298_v52, %v297_v47  ;;  %v2270_v44 = vld [vmem:[%s3571_s0 + $0x68] sm:$0xff]   ;;  %v2271_v56 = vld [vmem:[%s3571_s0 + $0x70] sm:$0xff]  }
  0x10   :  { %v239_v4 = vadd.f32 %v2447_v8, %v168_v58  ;;  %v300_v6 = vmax.f32 %v236_v59, 0.0  ;;  %v2164_v10 = vunpack.c.l.bf16 %v2265_v63  ;;  %v170_v13 = vmul.f32 %v2160_v61, %v2436_v2 }
  0x11   :  { %v240_v7 = vadd.f32 %v2447_v8, %v169_v60  ;;  %v171_v14 = vmul.f32 %v2161_v62, %v2436_v2  ;;  %v2165_v15 = vunpack.c.h.bf16 %v2265_v63  ;;  %v301_v16 = vmax.f32 %v237_v1, 0.0  ;;  %v2546_v1 = vld [vmem:[%s3571_s0 + $0x78] sm:$0xff]  }
  0x12   :  { %v359_v12 = vpack.c.bf16 %v300_v6, %v299_v0  ;;  %v302_v17 = vmax.f32 %v238_v3, 0.0  ;;  %v303_v18 = vmax.f32 %v239_v4, 0.0  ;;  %v2168_v19 = vunpack.c.l.bf16 %v2266_v9  ;;  %v2273_v3 = vld [vmem:[%s3571_s0 + $0x80] sm:$0xff]  }
  0x13   :  { %v304_v21 = vmax.f32 %v240_v7, 0.0  ;;  %v172_v22 = vmul.f32 %v2164_v10, %v2436_v2  ;;  %v2169_v23 = vunpack.c.h.bf16 %v2266_v9  ;;  %v2172_v24 = vunpack.c.l.bf16 %v2267_v11 }
  0x14   :  { %v173_v25 = vmul.f32 %v2165_v15, %v2436_v2  ;;  %v174_v26 = vmul.f32 %v2168_v19, %v2436_v2  ;;  %v2173_v27 = vunpack.c.h.bf16 %v2267_v11  ;;  %v2176_v30 = vunpack.c.l.bf16 %v2268_v20  ;;  %v2274_v19 = vld [vmem:[%s3571_s0 + $0x88] sm:$0xff]  }
  0x15   :  { %v175_v28 = vmul.f32 %v2169_v23, %v2436_v2  ;;  %v176_v29 = vmul.f32 %v2172_v24, %v2436_v2  ;;  %v241_v32 = vadd.f32 %v2447_v8, %v170_v13  ;;  %v242_v33 = vadd.f32 %v2447_v8, %v171_v14  ;;  %v2275_v24 = vld [vmem:[%s3571_s0 + $0x90] sm:$0xff]  }
  0x16   :  { %2329 = vmatmul.mubr.msk.bf16.gmra.mxu0 %vm388_vm1, %v358_v5  ;;  %v177_v34 = vmul.f32 %v2173_v27, %v2436_v2  ;;  %v2177_v35 = vunpack.c.h.bf16 %v2268_v20  ;;  %v360_v36 = vpack.c.bf16 %v302_v17, %v301_v16  ;;  %v361_v37 = vpack.c.bf16 %v304_v21, %v303_v18 }
  0x17   :  { %2332 = vmatprep.mubr.msk.bf16.mxu0 %vm388_vm1, %v359_v12  ;;  %v243_v38 = vadd.f32 %v2447_v8, %v172_v22  ;;  %v178_v39 = vmul.f32 %v2176_v30, %v2436_v2  ;;  %v244_v40 = vadd.f32 %v2447_v8, %v173_v25  ;;  %v245_v41 = vadd.f32 %v2447_v8, %v174_v26 }
  0x18   :  { %v179_v42 = vmul.f32 %v2177_v35, %v2436_v2  ;;  %v2180_v43 = vunpack.c.l.bf16 %v2269_v31  ;;  %v246_v45 = vadd.f32 %v2447_v8, %v175_v28  ;;  %v247_v46 = vadd.f32 %v2447_v8, %v176_v29 }
  0x19   :  { %v248_v47 = vadd.f32 %v2447_v8, %v177_v34  ;;  %v249_v48 = vadd.f32 %v2447_v8, %v178_v39  ;;  %v2181_v50 = vunpack.c.h.bf16 %v2269_v31  ;;  %v305_v52 = vmax.f32 %v241_v32, 0.0 }
  0x1a   :  { %v250_v49 = vadd.f32 %v2447_v8, %v179_v42  ;;  %v180_v51 = vmul.f32 %v2180_v43, %v2436_v2  ;;  %v306_v53 = vmax.f32 %v242_v33, 0.0  ;;  %v2184_v54 = vunpack.c.l.bf16 %v2270_v44  ;;  %v2276_v33 = vld [vmem:[%s3571_s0 + $0x98] sm:$0xff]  }
  0x1b   :  { %v2185_v55 = vunpack.c.h.bf16 %v2270_v44  ;;  %v307_v57 = vmax.f32 %v243_v38, 0.0  ;;  %v308_v58 = vmax.f32 %v244_v40, 0.0  ;;  %v309_v59 = vmax.f32 %v245_v41, 0.0 }
  0x1c   :  { %v181_v60 = vmul.f32 %v2181_v50, %v2436_v2  ;;  %v310_v61 = vmax.f32 %v246_v45, 0.0  ;;  %v311_v62 = vmax.f32 %v247_v46, 0.0  ;;  %v312_v63 = vmax.f32 %v248_v47, 0.0  ;;  %v2277_v46 = vld [vmem:[%s3571_s0 + $0xa0] sm:$0xff]  }
  0x1d   :  { %v182_v0 = vmul.f32 %v2184_v54, %v2436_v2  ;;  %v313_v4 = vmax.f32 %v249_v48, 0.0  ;;  %v314_v5 = vmax.f32 %v250_v49, 0.0  ;;  %v2552_v6 = vadd.f32 %v2447_v8, %v180_v51 }
  0x1e   :  { %2333 = vmatmul.mubr.msk.bf16.gmra.mxu0 %vm388_vm1, %v360_v36  ;;  %v2188_v7 = vunpack.c.l.bf16 %v2271_v56  ;;  %v362_v9 = vpack.c.bf16 %v306_v53, %v305_v52  ;;  %v2555_v10 = vadd.f32 %v2447_v8, %v181_v60  ;;  %v183_v11 = vmul.f32 %v2185_v55, %v2436_v2  ;;  %v2278_v55 = vld [vmem:[%s3571_s0 + $0xa8] sm:$0xff]  }
  0x1f   :  { %2336 = vmatprep.mubr.msk.bf16.mxu0 %vm388_vm1, %v361_v37  ;;  %v2189_v12 = vunpack.c.h.bf16 %v2271_v56  ;;  %v363_v13 = vpack.c.bf16 %v308_v58, %v307_v57  ;;  %v2192_v14 = vunpack.c.l.bf16 %v2546_v1  ;;  %v2196_v15 = vunpack.c.l.bf16 %v2273_v3 }
  0x20   :  { %v364_v16 = vpack.c.bf16 %v310_v61, %v309_v59  ;;  %v365_v17 = vpack.c.bf16 %v312_v63, %v311_v62  ;;  %v2560_v18 = vadd.f32 %v2447_v8, %v182_v0  ;;  %v2565_v20 = vpack.c.bf16 %v314_v5, %v313_v4 }
  0x21   :  { %v315_v21 = vmax.f32 %v2552_v6, 0.0  ;;  %v184_v22 = vmul.f32 %v2188_v7, %v2436_v2  ;;  %v2197_v23 = vunpack.c.h.bf16 %v2273_v3  ;;  %v316_v25 = vmax.f32 %v2555_v10, 0.0  ;;  %v2279_v7 = vld [vmem:[%s3571_s0 + $0xb0] sm:$0xff]   ;;  %v2281_v6 = vld [vmem:[%s3571_s0 + $0xc0] sm:$0xff]  }
  0x22   :  { %v2575_v26 = vadd.f32 %v2447_v8, %v183_v11  ;;  %v185_v27 = vmul.f32 %v2189_v12, %v2436_v2  ;;  %v188_v28 = vmul.f32 %v2196_v15, %v2436_v2  ;;  %v2193_v29 = vunpack.c.h.bf16 %v2546_v1 }
  0x23   :  { %v2582_v30 = vmul.f32 %v2192_v14, %v2436_v2  ;;  %v189_v31 = vmul.f32 %v2197_v23, %v2436_v2  ;;  %v2200_v32 = vunpack.c.l.bf16 %v2274_v19  ;;  %v317_v34 = vmax.f32 %v2560_v18, 0.0  ;;  %v2283_v18 = vld [vmem:[%s3571_s0 + $0xd0] sm:$0xff]  }
  0x24   :  { %v259_v35 = vadd.f32 %v2447_v8, %v188_v28  ;;  %v2201_v36 = vunpack.c.h.bf16 %v2274_v19  ;;  %v2204_v37 = vunpack.c.l.bf16 %v2275_v24  ;;  %v2591_v38 = vadd.f32 %v2447_v8, %v184_v22 }
  0x25   :  { %v260_v39 = vadd.f32 %v2447_v8, %v189_v31  ;;  %v190_v40 = vmul.f32 %v2200_v32, %v2436_v2  ;;  %v2205_v41 = vunpack.c.h.bf16 %v2275_v24  ;;  %v2208_v45 = vunpack.c.l.bf16 %v2276_v33  ;;  %v2280_v24 = vld [vmem:[%s3571_s0 + $0xb8] sm:$0xff]  }
  0x26   :  { %2337 = vmatmul.mubr.msk.bf16.gmra.mxu0 %vm388_vm1, %v362_v9  ;;  %v323_v42 = vmax.f32 %v259_v35, 0.0  ;;  %v191_v43 = vmul.f32 %v2201_v36, %v2436_v2  ;;  %v192_v44 = vmul.f32 %v2204_v37, %v2436_v2  ;;  %v2601_v47 = vadd.f32 %v2447_v8, %v185_v27 }
  0x27   :  { %2340 = vmatprep.mubr.msk.bf16.mxu0 %vm388_vm1, %v363_v13  ;;  %v324_v48 = vmax.f32 %v260_v39, 0.0  ;;  %v261_v49 = vadd.f32 %v2447_v8, %v190_v40  ;;  %v193_v50 = vmul.f32 %v2205_v41, %v2436_v2  ;;  %v2209_v53 = vunpack.c.h.bf16 %v2276_v33 }
  0x28   :  { %v262_v51 = vadd.f32 %v2447_v8, %v191_v43  ;;  %v263_v52 = vadd.f32 %v2447_v8, %v192_v44  ;;  %v194_v54 = vmul.f32 %v2208_v45, %v2436_v2  ;;  %v2212_v59 = vunpack.c.l.bf16 %v2277_v46 }
  0x29   :  { %v371_v56 = vpack.c.bf16 %v324_v48, %v323_v42  ;;  %v325_v57 = vmax.f32 %v261_v49, 0.0  ;;  %v264_v58 = vadd.f32 %v2447_v8, %v193_v50  ;;  %v195_v62 = vmul.f32 %v2209_v53, %v2436_v2 }
  0x2a   :  { %v326_v60 = vmax.f32 %v262_v51, 0.0  ;;  %v327_v61 = vmax.f32 %v263_v52, 0.0  ;;  %v265_v63 = vadd.f32 %v2447_v8, %v194_v54  ;;  %v2213_v3 = vunpack.c.h.bf16 %v2277_v46  ;;  %v2282_v52 = vld [vmem:[%s3571_s0 + $0xc8] sm:$0xff]  }
  0x2b   :  { %2356 = vmatprep.mubr.msk.bf16.mxu1 %vm388_vm1, %v371_v56  ;;  %v328_v0 = vmax.f32 %v264_v58, 0.0  ;;  %v196_v4 = vmul.f32 %v2212_v59, %v2436_v2  ;;  %v2216_v5 = vunpack.c.l.bf16 %v2278_v55  ;;  %v266_v10 = vadd.f32 %v2447_v8, %v195_v62 }
  0x2c   :  { %v372_v9 = vpack.c.bf16 %v326_v60, %v325_v57  ;;  %v329_v11 = vmax.f32 %v265_v63, 0.0  ;;  %v2217_v12 = vunpack.c.h.bf16 %v2278_v55  ;;  %v197_v14 = vmul.f32 %v2213_v3, %v2436_v2 }
  0x2d   :  { %v373_v13 = vpack.c.bf16 %v328_v0, %v327_v61  ;;  %v267_v15 = vadd.f32 %v2447_v8, %v196_v4  ;;  %v2220_v22 = vunpack.c.l.bf16 %v2279_v7  ;;  %v2221_v23 = vunpack.c.h.bf16 %v2279_v7 }
  0x2e   :  { %2341 = vmatmul.mubr.msk.bf16.gmra.mxu0 %vm388_vm1, %v364_v16  ;;  %v198_v16 = vmul.f32 %v2216_v5, %v2436_v2  ;;  %2357 = vmatmul.mubr.msk.bf16.vlgmr.msra.gmra.mxu1 %vm388_vm1, %v372_v9  ;;  %v199_v19 = vmul.f32 %v2217_v12, %v2436_v2  ;;  %v367_v27 = vpack.c.bf16 %v316_v25, %v315_v21  ;;  %v318_v28 = vmax.f32 %v2575_v26, 0.0 }
  0x2f   :  { %2344 = vmatprep.mubr.msk.bf16.mxu0 %vm388_vm1, %v365_v17  ;;  %v330_v17 = vmax.f32 %v266_v10, 0.0  ;;  %2360 = vmatprep.mubr.msk.bf16.mxu1 %vm388_vm1, %v373_v13  ;;  %v268_v31 = vadd.f32 %v2447_v8, %v197_v14  ;;  %v331_v32 = vmax.f32 %v267_v15, 0.0  ;;  %v319_v33 = vmax.f32 %v2591_v38, 0.0  ;;  %v2284_v14 = vld [vmem:[%s3571_s0 + $0xd8] sm:$0xff]  }
  0x30   :  { %v187_v35 = vmul.f32 %v2193_v29, %v2436_v2  ;;  %v200_v36 = vmul.f32 %v2220_v22, %v2436_v2  ;;  %v201_v37 = vmul.f32 %v2221_v23, %v2436_v2  ;;  %v320_v21 = vmax.f32 %v2601_v47, 0.0 }
  0x31   :  { %v332_v25 = vmax.f32 %v268_v31, 0.0  ;;  %v2224_v26 = vunpack.c.l.bf16 %v2280_v24  ;;  %v2225_v39 = vunpack.c.h.bf16 %v2280_v24  ;;  %v374_v38 = vpack.c.bf16 %v330_v17, %v329_v11  ;;  %v2285_v17 = vld [vmem:[%s3571_s0 + $0xe0] sm:$0xff]  }
  0x32   :  { %v269_v1 = vadd.f32 %v2447_v8, %v198_v16  ;;  %v270_v29 = vadd.f32 %v2447_v8, %v199_v19  ;;  %v271_v40 = vadd.f32 %v2447_v8, %v200_v36  ;;  %v272_v42 = vadd.f32 %v2447_v8, %v201_v37 }
  0x33   :  { %v375_v41 = vpack.c.bf16 %v332_v25, %v331_v32  ;;  %v2228_v43 = vunpack.c.l.bf16 %v2281_v6  ;;  %v2229_v44 = vunpack.c.h.bf16 %v2281_v6  ;;  %v257_v45 = vadd.f32 %v2447_v8, %v2582_v30 }
  0x34   :  { %v258_v46 = vadd.f32 %v2447_v8, %v187_v35  ;;  %v203_v47 = vmul.f32 %v2225_v39, %v2436_v2  ;;  %v368_v48 = vpack.c.bf16 %v318_v28, %v317_v34  ;;  %v369_v49 = vpack.c.bf16 %v320_v21, %v319_v33  ;;  %v2286_v39 = vld [vmem:[%s3571_s0 + $0xe8] sm:$0xff]  }
  0x35   :  { %v333_v50 = vmax.f32 %v269_v1, 0.0  ;;  %v334_v51 = vmax.f32 %v270_v29, 0.0  ;;  %v335_v30 = vmax.f32 %v271_v40, 0.0  ;;  %v336_v53 = vmax.f32 %v272_v42, 0.0  ;;  %v2287_v29 = vld [vmem:[%s3571_s0 + $0xf0] sm:$0xff]  }
  0x36   :  { %2345 = vmatmul.mubr.msk.bf16.gmra.mxu0 %vm388_vm1, %v2565_v20  ;;  %v202_v20 = vmul.f32 %v2224_v26, %v2436_v2  ;;  %2361 = vmatmul.mubr.msk.bf16.gmra.mxu1 %vm388_vm1, %v374_v38  ;;  %v204_v54 = vmul.f32 %v2228_v43, %v2436_v2  ;;  %v205_v55 = vmul.f32 %v2229_v44, %v2436_v2  ;;  %v321_v34 = vmax.f32 %v257_v45, 0.0 }
  0x37   :  { %2348 = vmatprep.mubr.msk.bf16.mxu0 %vm388_vm1, %v367_v27  ;;  %2364 = vmatprep.mubr.msk.bf16.mxu1 %vm388_vm1, %v375_v41  ;;  %v322_v56 = vmax.f32 %v258_v46, 0.0  ;;  %v274_v58 = vadd.f32 %v2447_v8, %v203_v47  ;;  %v2232_v59 = vunpack.c.l.bf16 %v2282_v52  ;;  %v376_v60 = vpack.c.bf16 %v334_v51, %v333_v50 }
  0x38   :  { %v273_v57 = vadd.f32 %v2447_v8, %v202_v20  ;;  %v2233_v61 = vunpack.c.h.bf16 %v2282_v52  ;;  %v2236_v62 = vunpack.c.l.bf16 %v2283_v18  ;;  %v2237_v63 = vunpack.c.h.bf16 %v2283_v18  ;;  %v2288_v18 = vld [vmem:[%s3571_s0 + $0xf8] sm:$0xff]  }
  0x39   :  { %v377_v0 = vpack.c.bf16 %v336_v53, %v335_v30  ;;  %v275_v3 = vadd.f32 %v2447_v8, %v204_v54  ;;  %v276_v4 = vadd.f32 %v2447_v8, %v205_v55  ;;  %v338_v7 = vmax.f32 %v274_v58, 0.0 }
  0x3a   :  { %v337_v5 = vmax.f32 %v273_v57, 0.0  ;;  %v206_v9 = vmul.f32 %v2232_v59, %v2436_v2  ;;  %v370_v10 = vpack.c.bf16 %v322_v56, %v321_v34  ;;  %v207_v11 = vmul.f32 %v2233_v61, %v2436_v2 }
  0x3b   :  { %v208_v12 = vmul.f32 %v2236_v62, %v2436_v2  ;;  %v209_v13 = vmul.f32 %v2237_v63, %v2436_v2  ;;  %v339_v15 = vmax.f32 %v275_v3, 0.0  ;;  %v340_v16 = vmax.f32 %v276_v4, 0.0 }
  0x3c   :  { %v378_v19 = vpack.c.bf16 %v338_v7, %v337_v5  ;;  %v277_v22 = vadd.f32 %v2447_v8, %v206_v9  ;;  %v2240_v23 = vunpack.c.l.bf16 %v2284_v14  ;;  %v278_v24 = vadd.f32 %v2447_v8, %v207_v11 }
  0x3d   :  { %v279_v27 = vadd.f32 %v2447_v8, %v208_v12  ;;  %v280_v28 = vadd.f32 %v2447_v8, %v209_v13  ;;  %v2241_v31 = vunpack.c.h.bf16 %v2284_v14  ;;  %v379_v32 = vpack.c.bf16 %v340_v16, %v339_v15 }
  0x3e   :  { %2349 = vmatmul.mubr.msk.bf16.gmra.mxu0 %vm388_vm1, %v368_v48  ;;  %2365 = vmatmul.mubr.msk.bf16.gmra.mxu1 %vm388_vm1, %v376_v60  ;;  %v2244_v33 = vunpack.c.l.bf16 %v2285_v17  ;;  %v2245_v35 = vunpack.c.h.bf16 %v2285_v17  ;;  %v341_v36 = vmax.f32 %v277_v22, 0.0  ;;  %v210_v37 = vmul.f32 %v2240_v23, %v2436_v2 }
  0x3f   :  { %2352 = vmatprep.mubr.msk.bf16.mxu0 %vm388_vm1, %v369_v49  ;;  %2368 = vmatprep.mubr.msk.bf16.mxu1 %vm388_vm1, %v377_v0  ;;  %v342_v6 = vmax.f32 %v278_v24, 0.0  ;;  %v343_v21 = vmax.f32 %v279_v27, 0.0  ;;  %v344_v25 = vmax.f32 %v280_v28, 0.0  ;;  %v211_v26 = vmul.f32 %v2241_v31, %v2436_v2 }
  0x40   :  { %v212_v38 = vmul.f32 %v2244_v33, %v2436_v2  ;;  %v213_v1 = vmul.f32 %v2245_v35, %v2436_v2  ;;  %v281_v40 = vadd.f32 %v2447_v8, %v210_v37  ;;  %v2248_v41 = vunpack.c.l.bf16 %v2286_v39 }
  0x41   :  { %v380_v42 = vpack.c.bf16 %v342_v6, %v341_v36  ;;  %v381_v43 = vpack.c.bf16 %v344_v25, %v343_v21  ;;  %v282_v44 = vadd.f32 %v2447_v8, %v211_v26  ;;  %v2249_v45 = vunpack.c.h.bf16 %v2286_v39 }
  0x42   :  { %v283_v46 = vadd.f32 %v2447_v8, %v212_v38  ;;  %v284_v20 = vadd.f32 %v2447_v8, %v213_v1  ;;  %v2252_v47 = vunpack.c.l.bf16 %v2287_v29  ;;  %v2253_v48 = vunpack.c.h.bf16 %v2287_v29 }
  0x43   :  { %v214_v49 = vmul.f32 %v2248_v41, %v2436_v2  ;;  %v345_v50 = vmax.f32 %v281_v40, 0.0  ;;  %v346_v51 = vmax.f32 %v282_v44, 0.0  ;;  %v215_v52 = vmul.f32 %v2249_v45, %v2436_v2 }
  0x44   :  { %v347_v30 = vmax.f32 %v283_v46, 0.0  ;;  %v348_v53 = vmax.f32 %v284_v20, 0.0  ;;  %v216_v54 = vmul.f32 %v2252_v47, %v2436_v2  ;;  %v217_v55 = vmul.f32 %v2253_v48, %v2436_v2 }
  0x45   :  { %v285_v34 = vadd.f32 %v2447_v8, %v214_v49  ;;  %v382_v56 = vpack.c.bf16 %v346_v51, %v345_v50  ;;  %v286_v57 = vadd.f32 %v2447_v8, %v215_v52  ;;  %v2256_v58 = vunpack.c.l.bf16 %v2288_v18 }
  0x46   :  { %2353 = vmatmul.mubr.msk.bf16.gmra.mxu0 %vm388_vm1, %v370_v10  ;;  %2369 = vmatmul.mubr.msk.bf16.gmra.mxu1 %vm388_vm1, %v378_v19  ;;  %v2257_v59 = vunpack.c.h.bf16 %v2288_v18  ;;  %v383_v60 = vpack.c.bf16 %v348_v53, %v347_v30  ;;  %v287_v61 = vadd.f32 %v2447_v8, %v216_v54  ;;  %v288_v62 = vadd.f32 %v2447_v8, %v217_v55 }
  0x47   :  { %2372 = vmatprep.mubr.msk.bf16.mxu1 %vm388_vm1, %v379_v32  ;;  %v349_v63 = vmax.f32 %v285_v34, 0.0  ;;  %v350_v0 = vmax.f32 %v286_v57, 0.0  ;;  %v218_v3 = vmul.f32 %v2256_v58, %v2436_v2 }
  0x48   :  { %v219_v4 = vmul.f32 %v2257_v59, %v2436_v2  ;;  %v351_v5 = vmax.f32 %v287_v61, 0.0  ;;  %v352_v7 = vmax.f32 %v288_v62, 0.0 }
  0x49   :  { %v384_v9 = vpack.c.bf16 %v350_v0, %v349_v63  ;;  %v289_v10 = vadd.f32 %v2447_v8, %v218_v3 }
  0x4a   :  { %v290_v11 = vadd.f32 %v2447_v8, %v219_v4  ;;  %v385_v12 = vpack.c.bf16 %v352_v7, %v351_v5 }
  0x4b   :  { %v353_v13 = vmax.f32 %v289_v10, 0.0 }
  0x4c   :  { %v354_v14 = vmax.f32 %v290_v11, 0.0 }
  0x4e   :  { %2373 = vmatmul.mubr.msk.bf16.gmra.mxu1 %vm388_vm1, %v380_v42  ;;  %v386_v15 = vpack.c.bf16 %v354_v14, %v353_v13 }
  0x4f   :  { %2376 = vmatprep.mubr.msk.bf16.mxu1 %vm388_vm1, %v381_v43 }
  0x56   :  { %2377 = vmatmul.mubr.msk.bf16.gmra.mxu1 %vm388_vm1, %v382_v56 }
  0x57   :  { %2380 = vmatprep.mubr.msk.bf16.mxu1 %vm388_vm1, %v383_v60 }
  0x5e   :  { %2381 = vmatmul.mubr.msk.bf16.gmra.mxu1 %vm388_vm1, %v384_v9 }
  0x5f   :  { %2384 = vmatprep.mubr.msk.bf16.mxu1 %vm388_vm1, %v385_v12 }
  0x66   :  { %2385 = vmatmul.mubr.msk.bf16.gmra.mxu1 %vm388_vm1, %v386_v15 }
  0xce   :  { %v2730_v2 = vpop.f32.mrf.mxu0 }
  0xcf   :  { %v2068_v16 = vpack.c.bf16 %v2730_v2, %v2730_v2  ;;  %v1489_v33 = vsel %vm388_vm1, %v2730_v2, 0.0 }
  0xd0   :  { %v2734_v17 = vpop.f32.mrf.mxu0 }
  0xd1   :  { %1037 = vst.msk [vmem:[%s3574_s4 + $0x8] sm:$0xf] %vm1034_vm2, %v2068_v16  ;;  %v2066_v8 = vpack.c.bf16 %v2734_v17, %v2734_v17  ;;  %v1486_v24 = vsel %vm388_vm1, %v2734_v17, 0.0 }
  0xd2   :  { %v2742_v19 = vpop.f32.mrf.mxu0 }
  0xd3   :  { %1035 = vst.msk [vmem:[%s3574_s4] sm:$0xf] %vm1034_vm2, %v2066_v8  ;;  %v2069_v22 = vpack.c.bf16 %v2742_v19, %v2742_v19  ;;  %v1491_v6 = vsel %vm388_vm1, %v2742_v19, 0.0 }
  0xd4   :  { %v2750_v23 = vpop.f32.mrf.mxu0 }
  0xd5   :  { %1038 = vst.msk [vmem:[%s3574_s4 + $0xc] sm:$0xf] %vm1034_vm2, %v2069_v22  ;;  %v2067_v27 = vpack.c.bf16 %v2750_v23, %v2750_v23  ;;  %v1487_v28 = vsel %vm388_vm1, %v2750_v23, 0.0 }
  0xd6   :  { %v1488_v31 = vadd.f32 %v1487_v28, %v1486_v24  ;;  %v2762_v32 = vpop.f32.mrf.mxu0 }
  0xd7   :  { %1036 = vst.msk [vmem:[%s3574_s4 + $0x4] sm:$0xf] %vm1034_vm2, %v2067_v27  ;;  %v2072_v35 = vpack.c.bf16 %v2762_v32, %v2762_v32  ;;  %v1497_v44 = vsel %vm388_vm1, %v2762_v32, 0.0 }
  0xd8   :  { %v1490_v36 = vadd.f32 %v1489_v33, %v1488_v31  ;;  %v2772_v37 = vpop.f32.mrf.mxu0 }
  0xd9   :  { %1041 = vst.msk [vmem:[%s3574_s4 + $0x18] sm:$0xf] %vm1034_vm2, %v2072_v35  ;;  %v2070_v21 = vpack.c.bf16 %v2772_v37, %v2772_v37  ;;  %v1493_v39 = vsel %vm388_vm1, %v2772_v37, 0.0 }
  0xda   :  { %v1492_v25 = vadd.f32 %v1491_v6, %v1490_v36  ;;  %v2782_v26 = vpop.f32.mrf.mxu0 }
  0xdb   :  { %1039 = vst.msk [vmem:[%s3574_s4 + $0x10] sm:$0xf] %vm1034_vm2, %v2070_v21  ;;  %v2073_v38 = vpack.c.bf16 %v2782_v26, %v2782_v26  ;;  %v1499_v47 = vsel %vm388_vm1, %v2782_v26, 0.0 }
  0xdc   :  { %v1494_v1 = vadd.f32 %v1493_v39, %v1492_v25  ;;  %v2792_v29 = vpop.f32.mrf.mxu0 }
  0xdd   :  { %1042 = vst.msk [vmem:[%s3574_s4 + $0x1c] sm:$0xf] %vm1034_vm2, %v2073_v38  ;;  %v2071_v40 = vpack.c.bf16 %v2792_v29, %v2792_v29  ;;  %v1495_v41 = vsel %vm388_vm1, %v2792_v29, 0.0 }
  0xde   :  { %v1496_v42 = vadd.f32 %v1495_v41, %v1494_v1  ;;  %v2802_v43 = vpop.f32.mrf.mxu0 }
  0xdf   :  { %1040 = vst.msk [vmem:[%s3574_s4 + $0x14] sm:$0xf] %vm1034_vm2, %v2071_v40  ;;  %v2076_v45 = vpack.c.bf16 %v2802_v43, %v2802_v43  ;;  %v1505_v56 = vsel %vm388_vm1, %v2802_v43, 0.0 }
  0xe0   :  { %v1498_v46 = vadd.f32 %v1497_v44, %v1496_v42  ;;  %v2812_v20 = vpop.f32.mrf.mxu0 }
  0xe1   :  { %1045 = vst.msk [vmem:[%s3574_s4 + $0x28] sm:$0xf] %vm1034_vm2, %v2076_v45  ;;  %v2074_v48 = vpack.c.bf16 %v2812_v20, %v2812_v20  ;;  %v1501_v51 = vsel %vm388_vm1, %v2812_v20, 0.0 }
  0xe2   :  { %v1500_v49 = vadd.f32 %v1499_v47, %v1498_v46  ;;  %v2822_v50 = vpop.f32.mrf.mxu0 }
  0xe3   :  { %1043 = vst.msk [vmem:[%s3574_s4 + $0x20] sm:$0xf] %vm1034_vm2, %v2074_v48  ;;  %v2077_v52 = vpack.c.bf16 %v2822_v50, %v2822_v50  ;;  %v1507_v60 = vsel %vm388_vm1, %v2822_v50, 0.0 }
  0xe4   :  { %v1502_v30 = vadd.f32 %v1501_v51, %v1500_v49  ;;  %v2832_v53 = vpop.f32.mrf.mxu0 }
  0xe5   :  { %1046 = vst.msk [vmem:[%s3574_s4 + $0x2c] sm:$0xf] %vm1034_vm2, %v2077_v52  ;;  %v2075_v54 = vpack.c.bf16 %v2832_v53, %v2832_v53  ;;  %v1503_v55 = vsel %vm388_vm1, %v2832_v53, 0.0 }
  0xe6   :  { %v1504_v18 = vadd.f32 %v1503_v55, %v1502_v30  ;;  %v2842_v34 = vpop.f32.mrf.mxu0 }
  0xe7   :  { %1044 = vst.msk [vmem:[%s3574_s4 + $0x24] sm:$0xf] %vm1034_vm2, %v2075_v54  ;;  %v2080_v57 = vpack.c.bf16 %v2842_v34, %v2842_v34  ;;  %v1513_v12 = vsel %vm388_vm1, %v2842_v34, 0.0 }
  0xe8   :  { %v1506_v58 = vadd.f32 %v1505_v56, %v1504_v18  ;;  %v2852_v59 = vpop.f32.mrf.mxu0 }
  0xe9   :  { %1049 = vst.msk [vmem:[%s3574_s4 + $0x38] sm:$0xf] %vm1034_vm2, %v2080_v57  ;;  %v2078_v61 = vpack.c.bf16 %v2852_v59, %v2852_v59  ;;  %v1509_v0 = vsel %vm388_vm1, %v2852_v59, 0.0 }
  0xea   :  { %v1508_v62 = vadd.f32 %v1507_v60, %v1506_v58  ;;  %v2862_v63 = vpop.f32.mrf.mxu0 }
  0xeb   :  { %1047 = vst.msk [vmem:[%s3574_s4 + $0x30] sm:$0xf] %vm1034_vm2, %v2078_v61  ;;  %v2081_v3 = vpack.c.bf16 %v2862_v63, %v2862_v63  ;;  %v1515_v16 = vsel %vm388_vm1, %v2862_v63, 0.0 }
  0xec   :  { %v1510_v4 = vadd.f32 %v1509_v0, %v1508_v62  ;;  %v2872_v5 = vpop.f32.mrf.mxu0 }
  0xed   :  { %1050 = vst.msk [vmem:[%s3574_s4 + $0x3c] sm:$0xf] %vm1034_vm2, %v2081_v3  ;;  %v2079_v7 = vpack.c.bf16 %v2872_v5, %v2872_v5  ;;  %v1511_v9 = vsel %vm388_vm1, %v2872_v5, 0.0 }
  0xee   :  { %v1512_v10 = vadd.f32 %v1511_v9, %v1510_v4  ;;  %v2882_v11 = vpop.f32.mrf.mxu0  ;;  %v2904_v27 = vpop.f32.mrf.mxu1 }
  0xef   :  { %1048 = vst.msk [vmem:[%s3574_s4 + $0x34] sm:$0xf] %vm1034_vm2, %v2079_v7  ;;  %v2084_v13 = vpack.c.bf16 %v2882_v11, %v2882_v11  ;;  %v2100_v33 = vpack.c.bf16 %v2904_v27, %v2904_v27  ;;  %v1521_v41 = vsel %vm388_vm1, %v2882_v11, 0.0 }
  0xf0   :  { %v1514_v14 = vadd.f32 %v1513_v12, %v1512_v10  ;;  %v2892_v15 = vpop.f32.mrf.mxu0  ;;  %v2918_v6 = vpop.f32.mrf.mxu1 }
  0xf1   :  { %1053 = vst.msk [vmem:[%s3574_s4 + $0x48] sm:$0xf] %vm1034_vm2, %v2084_v13  ;;  %v2082_v8 = vpack.c.bf16 %v2892_v15, %v2892_v15  ;;  %v1517_v28 = vsel %vm388_vm1, %v2892_v15, 0.0  ;;  %1069 = vst.msk [vmem:[%s3574_s4 + $0x88] sm:$0xf] %vm1034_vm2, %v2100_v33  ;;  %v2098_v39 = vpack.c.bf16 %v2918_v6, %v2918_v6 }
  0xf2   :  { %v1516_v22 = vadd.f32 %v1515_v16, %v1514_v14  ;;  %v2902_v24 = vpop.f32.mrf.mxu0  ;;  %v2936_v40 = vpop.f32.mrf.mxu1 }
  0xf3   :  { %1051 = vst.msk [vmem:[%s3574_s4 + $0x40] sm:$0xf] %vm1034_vm2, %v2082_v8  ;;  %v2085_v31 = vpack.c.bf16 %v2902_v24, %v2902_v24  ;;  %1067 = vst.msk [vmem:[%s3574_s4 + $0x80] sm:$0xf] %vm1034_vm2, %v2098_v39  ;;  %v2101_v44 = vpack.c.bf16 %v2936_v40, %v2936_v40  ;;  %v1523_v48 = vsel %vm388_vm1, %v2902_v24, 0.0 }
  0xf4   :  { %v1518_v35 = vadd.f32 %v1517_v28, %v1516_v22  ;;  %v2916_v36 = vpop.f32.mrf.mxu0  ;;  %v2954_v47 = vpop.f32.mrf.mxu1 }
  0xf5   :  { %1054 = vst.msk [vmem:[%s3574_s4 + $0x4c] sm:$0xf] %vm1034_vm2, %v2085_v31  ;;  %v2083_v21 = vpack.c.bf16 %v2916_v36, %v2916_v36  ;;  %v1519_v25 = vsel %vm388_vm1, %v2916_v36, 0.0  ;;  %1070 = vst.msk [vmem:[%s3574_s4 + $0x8c] sm:$0xf] %vm1034_vm2, %v2101_v44  ;;  %v2099_v51 = vpack.c.bf16 %v2954_v47, %v2954_v47 }
  0xf6   :  { %v1520_v38 = vadd.f32 %v1519_v25, %v1518_v35  ;;  %v2934_v1 = vpop.f32.mrf.mxu0  ;;  %v2972_v54 = vpop.f32.mrf.mxu1 }
  0xf7   :  { %1052 = vst.msk [vmem:[%s3574_s4 + $0x44] sm:$0xf] %vm1034_vm2, %v2083_v21  ;;  %v2088_v42 = vpack.c.bf16 %v2934_v1, %v2934_v1  ;;  %3592 = vst [vmem:[#allocation2_spill] sm:$0xff] %v2972_v54  ;;  %v2104_v56 = vpack.c.bf16 %v2972_v54, %v2972_v54  ;;  %v1529_v9 = vsel %vm388_vm1, %v2934_v1, 0.0 }
  0xf8   :  { %v1522_v45 = vadd.f32 %v1521_v41, %v1520_v38  ;;  %v2952_v46 = vpop.f32.mrf.mxu0  ;;  %1068 = vst.msk [vmem:[%s3574_s4 + $0x84] sm:$0xf] %vm1034_vm2, %v2099_v51  ;;  %v2990_v60 = vpop.f32.mrf.mxu1 }
  0xf9   :  { %1057 = vst.msk [vmem:[%s3574_s4 + $0x58] sm:$0xf] %vm1034_vm2, %v2088_v42  ;;  %v2086_v49 = vpack.c.bf16 %v2952_v46, %v2952_v46  ;;  %v1525_v55 = vsel %vm388_vm1, %v2952_v46, 0.0  ;;  %1073 = vst.msk [vmem:[%s3574_s4 + $0x98] sm:$0xf] %vm1034_vm2, %v2104_v56  ;;  %v2102_v0 = vpack.c.bf16 %v2990_v60, %v2990_v60 }
  0xfa   :  { %v1524_v52 = vadd.f32 %v1523_v48, %v1522_v45  ;;  %v2970_v30 = vpop.f32.mrf.mxu0  ;;  %v3008_v7 = vpop.f32.mrf.mxu1 }
  0xfb   :  { %1055 = vst.msk [vmem:[%s3574_s4 + $0x50] sm:$0xf] %vm1034_vm2, %v2086_v49  ;;  %v2089_v18 = vpack.c.bf16 %v2970_v30, %v2970_v30  ;;  %3593 = vst [vmem:[#allocation3_spill] sm:$0xff] %v3008_v7  ;;  %v2105_v12 = vpack.c.bf16 %v3008_v7, %v3008_v7  ;;  %v1531_v8 = vsel %vm388_vm1, %v2970_v30, 0.0 }
  0xfc   :  { %v1526_v57 = vadd.f32 %v1525_v55, %v1524_v52  ;;  %v2988_v58 = vpop.f32.mrf.mxu0  ;;  %1071 = vst.msk [vmem:[%s3574_s4 + $0x90] sm:$0xf] %vm1034_vm2, %v2102_v0  ;;  %v3026_v16 = vpop.f32.mrf.mxu1 }
  0xfd   :  { %1058 = vst.msk [vmem:[%s3574_s4 + $0x5c] sm:$0xf] %vm1034_vm2, %v2089_v18  ;;  %v2087_v61 = vpack.c.bf16 %v2988_v58, %v2988_v58  ;;  %v1527_v62 = vsel %vm388_vm1, %v2988_v58, 0.0  ;;  %3594 = vst [vmem:[#allocation4_spill] sm:$0xff] %v3026_v16  ;;  %v2103_v28 = vpack.c.bf16 %v3026_v16, %v3026_v16 }
  0xfe   :  { %v1528_v3 = vadd.f32 %v1527_v62, %v1526_v57  ;;  %v3006_v4 = vpop.f32.mrf.mxu0  ;;  %1074 = vst.msk [vmem:[%s3574_s4 + $0x9c] sm:$0xf] %vm1034_vm2, %v2105_v12  ;;  %v3044_v35 = vpop.f32.mrf.mxu1 }
  0xff   :  { %1056 = vst.msk [vmem:[%s3574_s4 + $0x54] sm:$0xf] %vm1034_vm2, %v2087_v61  ;;  %v2092_v10 = vpack.c.bf16 %v3006_v4, %v3006_v4  ;;  %3595 = vst [vmem:[#allocation5_spill] sm:$0xff] %v3044_v35  ;;  %v2108_v39 = vpack.c.bf16 %v3044_v35, %v3044_v35  ;;  %v1537_v55 = vsel %vm388_vm1, %v3006_v4, 0.0 }
 0x100   :  { %v1530_v13 = vadd.f32 %v1529_v9, %v1528_v3  ;;  %v3024_v14 = vpop.f32.mrf.mxu0  ;;  %1072 = vst.msk [vmem:[%s3574_s4 + $0x94] sm:$0xf] %vm1034_vm2, %v2103_v28  ;;  %v3062_v42 = vpop.f32.mrf.mxu1 }
 0x101   :  { %1061 = vst.msk [vmem:[%s3574_s4 + $0x68] sm:$0xf] %vm1034_vm2, %v2092_v10  ;;  %v2090_v22 = vpack.c.bf16 %v3024_v14, %v3024_v14  ;;  %v1533_v21 = vsel %vm388_vm1, %v3024_v14, 0.0  ;;  %3596 = vst [vmem:[#allocation6_spill] sm:$0xff] %v3062_v42  ;;  %v2106_v48 = vpack.c.bf16 %v3062_v42, %v3062_v42 }
 0x102   :  { %v1532_v31 = vadd.f32 %v1531_v8, %v1530_v13  ;;  %v3042_v33 = vpop.f32.mrf.mxu0  ;;  %1077 = vst.msk [vmem:[%s3574_s4 + $0xa8] sm:$0xf] %vm1034_vm2, %v2108_v39  ;;  %v3080_v52 = vpop.f32.mrf.mxu1 }
 0x103   :  { %1059 = vst.msk [vmem:[%s3574_s4 + $0x60] sm:$0xf] %vm1034_vm2, %v2090_v22  ;;  %v2093_v25 = vpack.c.bf16 %v3042_v33, %v3042_v33  ;;  %3597 = vst [vmem:[#allocation7_spill] sm:$0xff] %v3080_v52  ;;  %v2109_v56 = vpack.c.bf16 %v3080_v52, %v3080_v52  ;;  %v1539_v0 = vsel %vm388_vm1, %v3042_v33, 0.0 }
 0x104   :  { %v1534_v38 = vadd.f32 %v1533_v21, %v1532_v31  ;;  %v3060_v41 = vpop.f32.mrf.mxu0  ;;  %1075 = vst.msk [vmem:[%s3574_s4 + $0xa0] sm:$0xf] %vm1034_vm2, %v2106_v48  ;;  %v3098_v62 = vpop.f32.mrf.mxu1 }
 0x105   :  { %1062 = vst.msk [vmem:[%s3574_s4 + $0x6c] sm:$0xf] %vm1034_vm2, %v2093_v25  ;;  %v2091_v44 = vpack.c.bf16 %v3060_v41, %v3060_v41  ;;  %v1535_v45 = vsel %vm388_vm1, %v3060_v41, 0.0  ;;  %3598 = vst [vmem:[#allocation8_spill] sm:$0xff] %v3098_v62  ;;  %v2107_v9 = vpack.c.bf16 %v3098_v62, %v3098_v62 }
 0x106   :  { %v1536_v49 = vadd.f32 %v1535_v45, %v1534_v38  ;;  %v3078_v51 = vpop.f32.mrf.mxu0  ;;  %1078 = vst.msk [vmem:[%s3574_s4 + $0xac] sm:$0xf] %vm1034_vm2, %v2109_v56  ;;  %v3116_v13 = vpop.f32.mrf.mxu1 }
 0x107   :  { %1060 = vst.msk [vmem:[%s3574_s4 + $0x64] sm:$0xf] %vm1034_vm2, %v2091_v44  ;;  %v2096_v18 = vpack.c.bf16 %v3078_v51, %v3078_v51  ;;  %3599 = vst [vmem:[#allocation9_spill] sm:$0xff] %v3116_v13  ;;  %v2112_v28 = vpack.c.bf16 %v3116_v13, %v3116_v13 }
 0x108   :  { %v1538_v57 = vadd.f32 %v1537_v55, %v1536_v49  ;;  %v3096_v61 = vpop.f32.mrf.mxu0  ;;  %1076 = vst.msk [vmem:[%s3574_s4 + $0xa4] sm:$0xf] %vm1034_vm2, %v2107_v9  ;;  %v3134_v25 = vpop.f32.mrf.mxu1  ;;  %v1545_v49 = vsel %vm388_vm1, %v3078_v51, 0.0 }
 0x109   :  { %1065 = vst.msk [vmem:[%s3574_s4 + $0x78] sm:$0xf] %vm1034_vm2, %v2096_v18  ;;  %v2094_v3 = vpack.c.bf16 %v3096_v61, %v3096_v61  ;;  %v1541_v8 = vsel %vm388_vm1, %v3096_v61, 0.0  ;;  %3600 = vst [vmem:[#allocation10_spill] sm:$0xff] %v3134_v25  ;;  %v2110_v44 = vpack.c.bf16 %v3134_v25, %v3134_v25 }
 0x10a   :  { %v1540_v10 = vadd.f32 %v1539_v0, %v1538_v57  ;;  %v3114_v12 = vpop.f32.mrf.mxu0  ;;  %1081 = vst.msk [vmem:[%s3574_s4 + $0xb8] sm:$0xf] %vm1034_vm2, %v2112_v28  ;;  %v3150_v48 = vpop.f32.mrf.mxu1 }
 0x10b   :  { %1063 = vst.msk [vmem:[%s3574_s4 + $0x70] sm:$0xf] %vm1034_vm2, %v2094_v3  ;;  %v2097_v22 = vpack.c.bf16 %v3114_v12, %v3114_v12  ;;  %3601 = vst [vmem:[#allocation11_spill] sm:$0xff] %v3150_v48  ;;  %v2113_v55 = vpack.c.bf16 %v3150_v48, %v3150_v48  ;;  %v1547_v57 = vsel %vm388_vm1, %v3114_v12, 0.0 }
 0x10c   :  { %v1542_v31 = vadd.f32 %v1541_v8, %v1540_v10  ;;  %v3132_v21 = vpop.f32.mrf.mxu0  ;;  %1079 = vst.msk [vmem:[%s3574_s4 + $0xb0] sm:$0xf] %vm1034_vm2, %v2110_v44  ;;  %v3164_v56 = vpop.f32.mrf.mxu1  ;;  %v1549_v10 = vsel %vm388_vm1, %v2918_v6, 0.0 }
 0x10d   :  { %1066 = vst.msk [vmem:[%s3574_s4 + $0x7c] sm:$0xf] %vm1034_vm2, %v2097_v22  ;;  %v2095_v39 = vpack.c.bf16 %v3132_v21, %v3132_v21  ;;  %v1543_v38 = vsel %vm388_vm1, %v3132_v21, 0.0  ;;  %3602 = vst [vmem:[#allocation12_spill] sm:$0xff] %v3164_v56  ;;  %v2111_v0 = vpack.c.bf16 %v3164_v56, %v3164_v56 }
 0x10e   :  { %v1544_v45 = vadd.f32 %v1543_v38, %v1542_v31  ;;  %1082 = vst.msk [vmem:[%s3574_s4 + $0xbc] sm:$0xf] %vm1034_vm2, %v2113_v55  ;;  %v3174_v9 = vpop.f32.mrf.mxu1  ;;  %v1551_v31 = vsel %vm388_vm1, %v2954_v47, 0.0 }
 0x10f   :  { %1064 = vst.msk [vmem:[%s3574_s4 + $0x74] sm:$0xf] %vm1034_vm2, %v2095_v39  ;;  %1080 = vst.msk [vmem:[%s3574_s4 + $0xb4] sm:$0xf] %vm1034_vm2, %v2111_v0  ;;  %v2116_v8 = vpack.c.bf16 %v3174_v9, %v3174_v9 }
 0x110   :  { %v1546_v18 = vadd.f32 %v1545_v49, %v1544_v45  ;;  %v3184_v28 = vpop.f32.mrf.mxu1  ;;  %v1553_v45 = vsel %vm388_vm1, %v2904_v27, 0.0 }
 0x111   :  { %3603 = vst [vmem:[#allocation13_spill] sm:$0xff] %v3184_v28  ;;  %1085 = vst.msk [vmem:[%s3574_s4 + $0xc8] sm:$0xf] %vm1034_vm2, %v2116_v8  ;;  %v2114_v39 = vpack.c.bf16 %v3184_v28, %v3184_v28  ;;  %v1557_v8 = vsel %vm388_vm1, %v2990_v60, 0.0 }
 0x112   :  { %v1548_v3 = vadd.f32 %v1547_v57, %v1546_v18  ;;  %v3194_v44 = vpop.f32.mrf.mxu1  ;;  %v1555_v57 = vsel %vm388_vm1, %v2936_v40, 0.0 }
 0x113   :  { %1083 = vst.msk [vmem:[%s3574_s4 + $0xc0] sm:$0xf] %vm1034_vm2, %v2114_v39  ;;  %v2117_v49 = vpack.c.bf16 %v3194_v44, %v3194_v44 }
 0x114   :  { %v1550_v22 = vadd.f32 %v1549_v10, %v1548_v3  ;;  %v3204_v18 = vpop.f32.mrf.mxu1 }
 0x115   :  { %1086 = vst.msk [vmem:[%s3574_s4 + $0xcc] sm:$0xf] %vm1034_vm2, %v2117_v49  ;;  %v2115_v0 = vpack.c.bf16 %v3204_v18, %v3204_v18 }
 0x116   :  { %v1552_v38 = vadd.f32 %v1551_v31, %v1550_v22  ;;  %v3214_v10 = vpop.f32.mrf.mxu1 }
 0x117   :  { %1084 = vst.msk [vmem:[%s3574_s4 + $0xc4] sm:$0xf] %vm1034_vm2, %v2115_v0  ;;  %v2120_v22 = vpack.c.bf16 %v3214_v10, %v3214_v10 }
 0x118   :  { %v1554_v55 = vadd.f32 %v1553_v45, %v1552_v38  ;;  %v3224_v39 = vpop.f32.mrf.mxu1  ;;  %v1559_v38 = vsel %vm388_vm1, %v3026_v16, 0.0 }
 0x119   :  { %1089 = vst.msk [vmem:[%s3574_s4 + $0xd8] sm:$0xf] %vm1034_vm2, %v2120_v22  ;;  %v2118_v45 = vpack.c.bf16 %v3224_v39, %v3224_v39  ;;  %v1563_v22 = vsel %vm388_vm1, %v3008_v7, 0.0 }
 0x11a   :  { %v1556_v3 = vadd.f32 %v1555_v57, %v1554_v55  ;;  %v3234_v55 = vpop.f32.mrf.mxu1  ;;  %v1561_v57 = vsel %vm388_vm1, %v2972_v54, 0.0 }
 0x11b   :  { %1087 = vst.msk [vmem:[%s3574_s4 + $0xd0] sm:$0xf] %vm1034_vm2, %v2118_v45  ;;  %v2121_v0 = vpack.c.bf16 %v3234_v55, %v3234_v55  ;;  %v1565_v45 = vsel %vm388_vm1, %v3062_v42, 0.0 }
 0x11c   :  { %v1558_v31 = vadd.f32 %v1557_v8, %v1556_v3  ;;  %v3244_v8 = vpop.f32.mrf.mxu1 }
 0x11d   :  { %1090 = vst.msk [vmem:[%s3574_s4 + $0xdc] sm:$0xf] %vm1034_vm2, %v2121_v0  ;;  %v1567_v0 = vsel %vm388_vm1, %v3098_v62, 0.0 }
 0x11e   :  { %v1560_v49 = vadd.f32 %v1559_v38, %v1558_v31  ;;  %v2119_v31 = vpack.c.bf16 %v3244_v8, %v3244_v8  ;;  %v3254_v54 = vpop.f32.mrf.mxu1 }
 0x11f   :  { %3604 = vst [vmem:[#allocation14_spill] sm:$0xff] %v3254_v54 }
 0x120   :  { %v1562_v3 = vadd.f32 %v1561_v57, %v1560_v49  ;;  %1088 = vst.msk [vmem:[%s3574_s4 + $0xd4] sm:$0xf] %vm1034_vm2, %v2119_v31  ;;  %v2124_v49 = vpack.c.bf16 %v3254_v54, %v3254_v54  ;;  %v3264_v7 = vpop.f32.mrf.mxu1  ;;  %v1569_v31 = vsel %vm388_vm1, %v3044_v35, 0.0 }
 0x121   :  { %3605 = vst [vmem:[#allocation15_spill] sm:$0xff] %v3264_v7 }
 0x122   :  { %v1564_v38 = vadd.f32 %v1563_v22, %v1562_v3  ;;  %1093 = vst.msk [vmem:[%s3574_s4 + $0xe8] sm:$0xf] %vm1034_vm2, %v2124_v49  ;;  %v2122_v3 = vpack.c.bf16 %v3264_v7, %v3264_v7  ;;  %v3274_v42 = vpop.f32.mrf.mxu1  ;;  %v1571_v49 = vsel %vm388_vm1, %v3080_v52, 0.0 }
 0x123   :  { %3606 = vst [vmem:[#allocation16_spill] sm:$0xff] %v3274_v42 }
 0x124   :  { %v1566_v57 = vadd.f32 %v1565_v45, %v1564_v38  ;;  %1091 = vst.msk [vmem:[%s3574_s4 + $0xe0] sm:$0xf] %vm1034_vm2, %v2122_v3  ;;  %v2125_v38 = vpack.c.bf16 %v3274_v42, %v3274_v42  ;;  %v3284_v62 = vpop.f32.mrf.mxu1  ;;  %v1573_v3 = vsel %vm388_vm1, %v3134_v25, 0.0 }
 0x126   :  { %v1568_v22 = vadd.f32 %v1567_v0, %v1566_v57  ;;  %1094 = vst.msk [vmem:[%s3574_s4 + $0xec] sm:$0xf] %vm1034_vm2, %v2125_v38  ;;  %v2123_v57 = vpack.c.bf16 %v3284_v62, %v3284_v62  ;;  %v3294_v35 = vpop.f32.mrf.mxu1  ;;  %v1575_v38 = vsel %vm388_vm1, %v3164_v56, 0.0 }
 0x128   :  { %v1570_v45 = vadd.f32 %v1569_v31, %v1568_v22  ;;  %1092 = vst.msk [vmem:[%s3574_s4 + $0xe4] sm:$0xf] %vm1034_vm2, %v2123_v57  ;;  %v2128_v22 = vpack.c.bf16 %v3294_v35, %v3294_v35  ;;  %v3304_v52 = vpop.f32.mrf.mxu1  ;;  %v1577_v57 = vsel %vm388_vm1, %v3116_v13, 0.0  ;;  %v1581_v13 = vsel %vm388_vm1, %v3184_v28, 0.0 }
 0x12a   :  { %v1572_v0 = vadd.f32 %v1571_v49, %v1570_v45  ;;  %1097 = vst.msk [vmem:[%s3574_s4 + $0xf8] sm:$0xf] %vm1034_vm2, %v2128_v22  ;;  %v2126_v45 = vpack.c.bf16 %v3304_v52, %v3304_v52  ;;  %v3314_v25 = vpop.f32.mrf.mxu1  ;;  %v1579_v22 = vsel %vm388_vm1, %v3150_v48, 0.0  ;;  %v1585_v48 = vsel %vm388_vm1, %v3174_v9, 0.0 }
 0x12c   :  { %v1574_v31 = vadd.f32 %v1573_v3, %v1572_v0  ;;  %1095 = vst.msk [vmem:[%s3574_s4 + $0xf0] sm:$0xf] %vm1034_vm2, %v2126_v45  ;;  %v2129_v0 = vpack.c.bf16 %v3314_v25, %v3314_v25  ;;  %v766_v56 = vpop.f32.mrf.mxu1 }
 0x12e   :  { %v1576_v49 = vadd.f32 %v1575_v38, %v1574_v31  ;;  %1098 = vst.msk [vmem:[%s3574_s4 + $0xfc] sm:$0xf] %vm1034_vm2, %v2129_v0  ;;  %v2127_v31 = vpack.c.bf16 %v766_v56, %v766_v56  ;;  %v1587_v0 = vsel %vm388_vm1, %v3194_v44, 0.0 }
 0x130   :  { %v1578_v3 = vadd.f32 %v1577_v57, %v1576_v49  ;;  %1096 = vst.msk [vmem:[%s3574_s4 + $0xf4] sm:$0xf] %vm1034_vm2, %v2127_v31  ;;  %v1583_v49 = vsel %vm388_vm1, %v3204_v18, 0.0  ;;  %v1591_v31 = vsel %vm388_vm1, %v3244_v8, 0.0 }
 0x132   :  { %v1580_v38 = vadd.f32 %v1579_v22, %v1578_v3  ;;  %v1589_v22 = vsel %vm388_vm1, %v3224_v39, 0.0 }
 0x134   :  { %v1582_v45 = vadd.f32 %v1581_v13, %v1580_v38  ;;  %v1593_v38 = vsel %vm388_vm1, %v3214_v10, 0.0 }
 0x136   :  { %v1584_v57 = vadd.f32 %v1583_v49, %v1582_v45  ;;  %v1595_v49 = vsel %vm388_vm1, %v3234_v55, 0.0 }
 0x138   :  { %v1586_v16 = vadd.f32 %v1585_v48, %v1584_v57  ;;  %v1597_v57 = vsel %vm388_vm1, %v3264_v7, 0.0 }
 0x13a   :  { %v1588_v3 = vadd.f32 %v1587_v0, %v1586_v16  ;;  %v1599_v0 = vsel %vm388_vm1, %v3284_v62, 0.0 }
 0x13c   :  { %v1590_v28 = vadd.f32 %v1589_v22, %v1588_v3  ;;  %v1601_v22 = vsel %vm388_vm1, %v3254_v54, 0.0 }
 0x13e   :  { %v1592_v13 = vadd.f32 %v1591_v31, %v1590_v28  ;;  %v1603_v31 = vsel %vm388_vm1, %v3274_v42, 0.0 }
 0x140   :  { %v1594_v45 = vadd.f32 %v1593_v38, %v1592_v13  ;;  %v1605_v38 = vsel %vm388_vm1, %v3304_v52, 0.0 }
 0x142   :  { %v1596_v48 = vadd.f32 %v1595_v49, %v1594_v45  ;;  %v1607_v49 = vsel %vm388_vm1, %v766_v56, 0.0 }
 0x144   :  { %v1598_v16 = vadd.f32 %v1597_v57, %v1596_v48  ;;  %v1609_v48 = vsel %vm388_vm1, %v3294_v35, 0.0 }
 0x146   :  { %v1600_v3 = vadd.f32 %v1599_v0, %v1598_v16  ;;  %v1611_v16 = vsel %vm388_vm1, %v3314_v25, 0.0 }
 0x148   :  { %v1602_v28 = vadd.f32 %v1601_v22, %v1600_v3 }
 0x14a   :  { %v1604_v13 = vadd.f32 %v1603_v31, %v1602_v28 }
 0x14c   :  { %v1606_v45 = vadd.f32 %v1605_v38, %v1604_v13 }
 0x14e   :  { %v1608_v7 = vadd.f32 %v1607_v49, %v1606_v45 }
 0x150   :  { %v1610_v57 = vadd.f32 %v1609_v48, %v1608_v7 }
 0x152   :  { %v1612_v0 = vadd.f32 %v1611_v16, %v1610_v57 }
 0x154   :  { %v1613_v3 = vrot.slane %v1612_v0, 4 }
 0x156   :  { %v1614_v22 = vadd.f32 %v1613_v3, %v1612_v0 }
 0x158   :  { %v1615_v54 = vrot.slane %v1614_v22, 2 }
 0x15a   :  { %v1616_v42 = vadd.f32 %v1615_v54, %v1614_v22 }
 0x15c   :  { %v1617_v28 = vrot.slane %v1616_v42, 1 }
 0x15e   :  { %v1618_v31 = vadd.f32 %v1617_v28, %v1616_v42 }
 0x160   :  { %1954 = vst.msk [vmem:[%s3575_s5] sm:$0x1] %vm1953_vm3, %v1618_v31  ;;  %v3369_v13 = vmul.f32 0.001953125, %v1618_v31 }
 0x162   :  { %v3372_v7 = vsub.f32 %v766_v56, %v3369_v13  ;;  %v1628_v38 = vsub.f32 %v2734_v17, %v3369_v13  ;;  %v1629_v45 = vsub.f32 %v2750_v23, %v3369_v13  ;;  %v1630_v54 = vsub.f32 %v2730_v2, %v3369_v13 }
 0x163   :  { %v1631_v42 = vsub.f32 %v2742_v19, %v3369_v13  ;;  %v1632_v57 = vsub.f32 %v2772_v37, %v3369_v13  ;;  %v1633_v56 = vsub.f32 %v2792_v29, %v3369_v13  ;;  %v1634_v2 = vsub.f32 %v2762_v32, %v3369_v13 }
 0x164   :  { %v1756_v49 = vmul.f32 %v1628_v38, %v1628_v38  ;;  %v1757_v48 = vmul.f32 %v1629_v45, %v1629_v45  ;;  %v1758_v16 = vmul.f32 %v1630_v54, %v1630_v54  ;;  %v1635_v37 = vsub.f32 %v2782_v26, %v3369_v13 }
 0x165   :  { %v1759_v0 = vmul.f32 %v1631_v42, %v1631_v42  ;;  %v1760_v22 = vmul.f32 %v1632_v57, %v1632_v57  ;;  %v1761_v31 = vmul.f32 %v1633_v56, %v1633_v56  ;;  %v1636_v45 = vsub.f32 %v2812_v20, %v3369_v13 }
 0x166   :  { %v1820_v17 = vsel %vm388_vm1, %v1756_v49, 0.0  ;;  %v1821_v23 = vsel %vm388_vm1, %v1757_v48, 0.0  ;;  %v1823_v19 = vsel %vm388_vm1, %v1758_v16, 0.0  ;;  %v1762_v54 = vmul.f32 %v1634_v2, %v1634_v2 }
 0x167   :  { %v1822_v3 = vadd.f32 %v1821_v23, %v1820_v17  ;;  %v1825_v38 = vsel %vm388_vm1, %v1759_v0, 0.0  ;;  %v1827_v42 = vsel %vm388_vm1, %v1760_v22, 0.0  ;;  %v1637_v32 = vsub.f32 %v2832_v53, %v3369_v13 }
 0x168   :  { %v1763_v48 = vmul.f32 %v1635_v37, %v1635_v37  ;;  %v1829_v57 = vsel %vm388_vm1, %v1761_v31, 0.0  ;;  %v1638_v26 = vsub.f32 %v2802_v43, %v3369_v13  ;;  %v1764_v56 = vmul.f32 %v1636_v45, %v1636_v45 }
 0x169   :  { %v1824_v28 = vadd.f32 %v1823_v19, %v1822_v3  ;;  %v1831_v0 = vsel %vm388_vm1, %v1762_v54, 0.0  ;;  %v1639_v20 = vsub.f32 %v2822_v50, %v3369_v13  ;;  %v1765_v23 = vmul.f32 %v1637_v32, %v1637_v32 }
 0x16a   :  { %v1833_v3 = vsel %vm388_vm1, %v1763_v48, 0.0  ;;  %v1640_v53 = vsub.f32 %v2852_v59, %v3369_v13  ;;  %v1766_v22 = vmul.f32 %v1638_v26, %v1638_v26  ;;  %v1835_v19 = vsel %vm388_vm1, %v1764_v56, 0.0 }
 0x16b   :  { %v1826_v29 = vadd.f32 %v1825_v38, %v1824_v28  ;;  %v1641_v43 = vsub.f32 %v2872_v5, %v3369_v13  ;;  %v1767_v37 = vmul.f32 %v1639_v20, %v1639_v20  ;;  %v1837_v31 = vsel %vm388_vm1, %v1765_v23, 0.0 }
 0x16c   :  { %v1642_v50 = vsub.f32 %v2842_v34, %v3369_v13  ;;  %v1839_v45 = vsel %vm388_vm1, %v1766_v22, 0.0  ;;  %v1643_v59 = vsub.f32 %v2862_v63, %v3369_v13  ;;  %v1644_v5 = vsub.f32 %v2892_v15, %v3369_v13 }
 0x16d   :  { %v1828_v49 = vadd.f32 %v1827_v42, %v1826_v29  ;;  %v1768_v29 = vmul.f32 %v1640_v53, %v1640_v53  ;;  %v1769_v42 = vmul.f32 %v1641_v43, %v1641_v43  ;;  %v1645_v34 = vsub.f32 %v2916_v36, %v3369_v13 }
 0x16e   :  { %v1770_v48 = vmul.f32 %v1642_v50, %v1642_v50  ;;  %v1771_v26 = vmul.f32 %v1643_v59, %v1643_v59  ;;  %v1646_v63 = vsub.f32 %v2882_v11, %v3369_v13  ;;  %v1647_v15 = vsub.f32 %v2902_v24, %v3369_v13 }
 0x16f   :  { %v1830_v16 = vadd.f32 %v1829_v57, %v1828_v49  ;;  %v1841_v49 = vsel %vm388_vm1, %v1767_v37, 0.0  ;;  %v1843_v57 = vsel %vm388_vm1, %v1768_v29, 0.0  ;;  %v1845_v56 = vsel %vm388_vm1, %v1769_v42, 0.0 }
 0x170   :  { %v1847_v20 = vsel %vm388_vm1, %v1770_v48, 0.0  ;;  %v1648_v36 = vsub.f32 %v2952_v46, %v3369_v13  ;;  %v1774_v22 = vmul.f32 %v1646_v63, %v1646_v63  ;;  %v1649_v11 = vsub.f32 %v2988_v58, %v3369_v13 }
 0x171   :  { %v1832_v17 = vadd.f32 %v1831_v0, %v1830_v16  ;;  %v1775_v43 = vmul.f32 %v1647_v15, %v1647_v15  ;;  %v1650_v24 = vsub.f32 %v2934_v1, %v3369_v13  ;;  %v1651_v46 = vsub.f32 %v2970_v30, %v3369_v13 }
 0x172   :  { %v1855_v50 = vsel %vm388_vm1, %v1774_v22, 0.0  ;;  %v1652_v58 = vsub.f32 %v3024_v14, %v3369_v13  ;;  %v1653_v1 = vsub.f32 %v3060_v41, %v3369_v13  ;;  %v1654_v30 = vsub.f32 %v3006_v4, %v3369_v13 }
 0x173   :  { %v1834_v2 = vadd.f32 %v1833_v3, %v1832_v17  ;;  %v1772_v17 = vmul.f32 %v1644_v5, %v1644_v5  ;;  %v1773_v3 = vmul.f32 %v1645_v34, %v1645_v34  ;;  %v1778_v42 = vmul.f32 %v1650_v24, %v1650_v24 }
 0x174   :  { %v1779_v5 = vmul.f32 %v1651_v46, %v1651_v46  ;;  %v1655_v14 = vsub.f32 %v3042_v33, %v3369_v13  ;;  %v1656_v41 = vsub.f32 %v3096_v61, %v3369_v13  ;;  %v1657_v4 = vsub.f32 %v3132_v21, %v3369_v13 }
 0x175   :  { %v1836_v28 = vadd.f32 %v1835_v19, %v1834_v2  ;;  %v1849_v2 = vsel %vm388_vm1, %v1771_v26, 0.0  ;;  %v1851_v19 = vsel %vm388_vm1, %v1772_v17, 0.0  ;;  %v1853_v37 = vsel %vm388_vm1, %v1773_v3, 0.0 }
 0x176   :  { %v1863_v34 = vsel %vm388_vm1, %v1778_v42, 0.0  ;;  %v1782_v17 = vmul.f32 %v1654_v30, %v1654_v30  ;;  %v1783_v15 = vmul.f32 %v1655_v14, %v1655_v14  ;;  %v1658_v33 = vsub.f32 %v3078_v51, %v3369_v13 }
 0x177   :  { %v1838_v38 = vadd.f32 %v1837_v31, %v1836_v28  ;;  %v1659_v61 = vsub.f32 %v3114_v12, %v3369_v13  ;;  %v1660_v21 = vsub.f32 %v2918_v6, %v3369_v13  ;;  %v1661_v51 = vsub.f32 %v2954_v47, %v3369_v13 }
 0x178   :  { %v1662_v12 = vsub.f32 %v2904_v27, %v3369_v13  ;;  %v1663_v6 = vsub.f32 %v2936_v40, %v3369_v13  ;;  %v1664_v47 = vsub.f32 %v2990_v60, %v3369_v13  ;;  %v3607_v27 = vld [vmem:[#allocation4_spill] sm:$0xff]  ;;  %v3608_v40 = vld [vmem:[#allocation2_spill] sm:$0xff]  ;;  %v3609_v60 = vld [vmem:[#allocation3_spill] sm:$0xff] }
 0x179   :  { %v1840_v54 = vadd.f32 %v1839_v45, %v1838_v38  ;;  %v1776_v38 = vmul.f32 %v1648_v36, %v1648_v36  ;;  %v1777_v45 = vmul.f32 %v1649_v11, %v1649_v11  ;;  %v1871_v36 = vsel %vm388_vm1, %v1782_v17, 0.0 }
 0x17a   :  { %v1787_v24 = vmul.f32 %v1659_v61, %v1659_v61  ;;  %v1790_v42 = vmul.f32 %v1662_v12, %v1662_v12  ;;  %v1666_v30 = vsub.f32 %v3608_v40, %v3369_v13  ;;  %v1667_v14 = vsub.f32 %v3609_v60, %v3369_v13 }
 0x17b   :  { %v1842_v32 = vadd.f32 %v1841_v49, %v1840_v54  ;;  %v1857_v54 = vsel %vm388_vm1, %v1775_v43, 0.0  ;;  %v1859_v49 = vsel %vm388_vm1, %v1776_v38, 0.0  ;;  %v1861_v48 = vsel %vm388_vm1, %v1777_v45, 0.0 }
 0x17c   :  { %v1786_v43 = vmul.f32 %v1658_v33, %v1658_v33 }
 0x17d   :  { %v1844_v16 = vadd.f32 %v1843_v57, %v1842_v32 }
 0x17e   :  { %v1879_v46 = vsel %vm388_vm1, %v1786_v43, 0.0 }
 0x17f   :  { %v1846_v0 = vadd.f32 %v1845_v56, %v1844_v16  ;;  %v1780_v16 = vmul.f32 %v1652_v58, %v1652_v58  ;;  %v1781_v56 = vmul.f32 %v1653_v1, %v1653_v1  ;;  %v1665_v1 = vsub.f32 %v3607_v27, %v3369_v13 }
 0x181   :  { %v1848_v23 = vadd.f32 %v1847_v20, %v1846_v0  ;;  %v1865_v0 = vsel %vm388_vm1, %v1779_v5, 0.0  ;;  %v1867_v20 = vsel %vm388_vm1, %v1780_v16, 0.0  ;;  %v1869_v3 = vsel %vm388_vm1, %v1781_v56, 0.0 }
 0x182   :  { %v1791_v5 = vmul.f32 %v1663_v6, %v1663_v6  ;;  %v1792_v16 = vmul.f32 %v1664_v47, %v1664_v47  ;;  %v1793_v56 = vmul.f32 %v1665_v1, %v1665_v1 }
 0x183   :  { %v1850_v53 = vadd.f32 %v1849_v2, %v1848_v23 }
 0x184   :  { %v1893_v33 = vsel %vm388_vm1, %v1793_v56, 0.0 }
 0x185   :  { %v1852_v28 = vadd.f32 %v1851_v19, %v1850_v53  ;;  %v1784_v53 = vmul.f32 %v1656_v41, %v1656_v41  ;;  %v1785_v19 = vmul.f32 %v1657_v4, %v1657_v4  ;;  %v3610_v41 = vld [vmem:[#allocation6_spill] sm:$0xff] }
 0x186   :  { %v1668_v17 = vsub.f32 %v3610_v41, %v3369_v13 }
 0x187   :  { %v1854_v31 = vadd.f32 %v1853_v37, %v1852_v28  ;;  %v1873_v28 = vsel %vm388_vm1, %v1783_v15, 0.0  ;;  %v1875_v37 = vsel %vm388_vm1, %v1784_v53, 0.0  ;;  %v1877_v38 = vsel %vm388_vm1, %v1785_v19, 0.0  ;;  %v3611_v15 = vld [vmem:[#allocation8_spill] sm:$0xff] }
 0x188   :  { %v1796_v61 = vmul.f32 %v1668_v17, %v1668_v17 }
 0x189   :  { %v1856_v29 = vadd.f32 %v1855_v50, %v1854_v31 }
 0x18b   :  { %v1858_v59 = vadd.f32 %v1857_v54, %v1856_v29  ;;  %v1788_v29 = vmul.f32 %v1660_v21, %v1660_v21  ;;  %v1789_v54 = vmul.f32 %v1661_v51, %v1661_v51  ;;  %v3614_v51 = vld [vmem:[#allocation10_spill] sm:$0xff] }
 0x18d   :  { %v1860_v32 = vadd.f32 %v1859_v49, %v1858_v59  ;;  %v1881_v59 = vsel %vm388_vm1, %v1787_v24, 0.0  ;;  %v1883_v49 = vsel %vm388_vm1, %v1788_v29, 0.0  ;;  %v1672_v24 = vsub.f32 %v3614_v51, %v3369_v13  ;;  %v3615_v29 = vld [vmem:[#allocation12_spill] sm:$0xff] }
 0x18f   :  { %v1862_v57 = vadd.f32 %v1861_v48, %v1860_v32  ;;  %v1885_v48 = vsel %vm388_vm1, %v1789_v54, 0.0  ;;  %v1800_v47 = vmul.f32 %v1672_v24, %v1672_v24 }
 0x191   :  { %v1864_v26 = vadd.f32 %v1863_v34, %v1862_v57  ;;  %v1887_v34 = vsel %vm388_vm1, %v1790_v42, 0.0 }
 0x193   :  { %v1866_v63 = vadd.f32 %v1865_v0, %v1864_v26  ;;  %v1889_v0 = vsel %vm388_vm1, %v1791_v5, 0.0 }
 0x195   :  { %v1868_v23 = vadd.f32 %v1867_v20, %v1866_v63  ;;  %v1794_v20 = vmul.f32 %v1666_v30, %v1666_v30 }
 0x197   :  { %v1870_v2 = vadd.f32 %v1869_v3, %v1868_v23  ;;  %v1891_v23 = vsel %vm388_vm1, %v1792_v16, 0.0  ;;  %v1669_v3 = vsub.f32 %v3611_v15, %v3369_v13  ;;  %v1895_v19 = vsel %vm388_vm1, %v1794_v20, 0.0 }
 0x198   :  { %v1907_v16 = vsel %vm388_vm1, %v1800_v47, 0.0  ;;  %v1679_v20 = vsub.f32 %v3194_v44, %v3369_v13  ;;  %v1682_v44 = vsub.f32 %v3214_v10, %v3369_v13  ;;  %v1685_v10 = vsub.f32 %v3284_v62, %v3369_v13 }
 0x199   :  { %v1872_v22 = vadd.f32 %v1871_v36, %v1870_v2  ;;  %v1795_v2 = vmul.f32 %v1667_v14, %v1667_v14  ;;  %v3612_v36 = vld [vmem:[#allocation5_spill] sm:$0xff]  ;;  %v1797_v43 = vmul.f32 %v1669_v3, %v1669_v3  ;;  %v1688_v62 = vsub.f32 %v3304_v52, %v3369_v13 }
 0x19a   :  { %v1817_v52 = vmul.f32 %v3372_v7, %v3372_v7 }
 0x19b   :  { %v1874_v11 = vadd.f32 %v1873_v28, %v1872_v22  ;;  %v1670_v22 = vsub.f32 %v3612_v36, %v3369_v13  ;;  %v1901_v6 = vsel %vm388_vm1, %v1797_v43, 0.0 }
 0x19d   :  { %v1876_v31 = vadd.f32 %v1875_v37, %v1874_v11  ;;  %v3613_v11 = vld [vmem:[#allocation7_spill] sm:$0xff]  ;;  %v1897_v37 = vsel %vm388_vm1, %v1795_v2, 0.0 }
 0x19e   :  { %v1671_v21 = vsub.f32 %v3613_v11, %v3369_v13 }
 0x19f   :  { %v1878_v50 = vadd.f32 %v1877_v38, %v1876_v31  ;;  %v1798_v38 = vmul.f32 %v1670_v22, %v1670_v22 }
 0x1a1   :  { %v1880_v45 = vadd.f32 %v1879_v46, %v1878_v50  ;;  %v1899_v50 = vsel %vm388_vm1, %v1796_v61, 0.0  ;;  %v1673_v46 = vsub.f32 %v3615_v29, %v3369_v13  ;;  %v1903_v42 = vsel %vm388_vm1, %v1798_v38, 0.0 }
 0x1a3   :  { %v1882_v58 = vadd.f32 %v1881_v59, %v1880_v45  ;;  %v1799_v45 = vmul.f32 %v1671_v21, %v1671_v21  ;;  %v3616_v59 = vld [vmem:[#allocation9_spill] sm:$0xff]  ;;  %v1801_v1 = vmul.f32 %v1673_v46, %v1673_v46 }
 0x1a5   :  { %v1884_v32 = vadd.f32 %v1883_v49, %v1882_v58  ;;  %v1674_v58 = vsub.f32 %v3616_v59, %v3369_v13  ;;  %v1905_v5 = vsel %vm388_vm1, %v1799_v45, 0.0  ;;  %v1909_v14 = vsel %vm388_vm1, %v1801_v1, 0.0 }
 0x1a7   :  { %v1886_v57 = vadd.f32 %v1885_v48, %v1884_v32  ;;  %v3617_v32 = vld [vmem:[#allocation11_spill] sm:$0xff]  ;;  %v1802_v30 = vmul.f32 %v1674_v58, %v1674_v58  ;;  %v1813_v58 = vmul.f32 %v1685_v10, %v1685_v10 }
 0x1a8   :  { %v1675_v27 = vsub.f32 %v3617_v32, %v3369_v13 }
 0x1a9   :  { %v1888_v26 = vadd.f32 %v1887_v34, %v1886_v57  ;;  %v3618_v57 = vld [vmem:[#allocation13_spill] sm:$0xff]  ;;  %v1911_v41 = vsel %vm388_vm1, %v1802_v30, 0.0 }
 0x1aa   :  { %v1676_v40 = vsub.f32 %v3618_v57, %v3369_v13  ;;  %v1803_v60 = vmul.f32 %v1675_v27, %v1675_v27  ;;  %v1690_v57 = vsub.f32 %v3294_v35, %v3369_v13  ;;  %v1941_v35 = vsel %vm388_vm1, %v1817_v52, 0.0 }
 0x1ab   :  { %v1890_v63 = vadd.f32 %v1889_v0, %v1888_v26  ;;  %v1677_v26 = vsub.f32 %v3204_v18, %v3369_v13  ;;  %v1678_v0 = vsub.f32 %v3174_v9, %v3369_v13  ;;  %v1680_v18 = vsub.f32 %v3224_v39, %v3369_v13 }
 0x1ac   :  { %v1681_v9 = vsub.f32 %v3244_v8, %v3369_v13  ;;  %v1683_v39 = vsub.f32 %v3234_v55, %v3369_v13  ;;  %v3619_v8 = vld [vmem:[#allocation15_spill] sm:$0xff]  ;;  %v3620_v55 = vld [vmem:[#allocation14_spill] sm:$0xff] }
 0x1ad   :  { %v1892_v4 = vadd.f32 %v1891_v23, %v1890_v63  ;;  %v1804_v63 = vmul.f32 %v1676_v40, %v1676_v40  ;;  %v1805_v23 = vmul.f32 %v1677_v26, %v1677_v26  ;;  %v1806_v3 = vmul.f32 %v1678_v0, %v1678_v0 }
 0x1ae   :  { %v1808_v61 = vmul.f32 %v1680_v18, %v1680_v18  ;;  %v1809_v11 = vmul.f32 %v1681_v9, %v1681_v9  ;;  %v1811_v38 = vmul.f32 %v1683_v39, %v1683_v39  ;;  %v1686_v29 = vsub.f32 %v3620_v55, %v3369_v13 }
 0x1af   :  { %v1894_v53 = vadd.f32 %v1893_v33, %v1892_v4  ;;  %v1913_v4 = vsel %vm388_vm1, %v1803_v60, 0.0  ;;  %v1915_v2 = vsel %vm388_vm1, %v1804_v63, 0.0  ;;  %v1917_v36 = vsel %vm388_vm1, %v1805_v23, 0.0 }
 0x1b0   :  { %v1923_v51 = vsel %vm388_vm1, %v1808_v61, 0.0  ;;  %v1929_v47 = vsel %vm388_vm1, %v1811_v38, 0.0  ;;  %v1816_v40 = vmul.f32 %v1688_v62, %v1688_v62 }
 0x1b1   :  { %v1896_v28 = vadd.f32 %v1895_v19, %v1894_v53  ;;  %v1807_v53 = vmul.f32 %v1679_v20, %v1679_v20  ;;  %v1919_v19 = vsel %vm388_vm1, %v1806_v3, 0.0 }
 0x1b3   :  { %v1898_v31 = vadd.f32 %v1897_v37, %v1896_v28  ;;  %v1921_v21 = vsel %vm388_vm1, %v1807_v53, 0.0  ;;  %v1684_v37 = vsub.f32 %v3619_v8, %v3369_v13 }
 0x1b5   :  { %v1900_v12 = vadd.f32 %v1899_v50, %v1898_v31  ;;  %v1810_v31 = vmul.f32 %v1682_v44, %v1682_v44  ;;  %v1925_v50 = vsel %vm388_vm1, %v1809_v11, 0.0  ;;  %v1812_v46 = vmul.f32 %v1684_v37, %v1684_v37 }
 0x1b7   :  { %v1902_v54 = vadd.f32 %v1901_v6, %v1900_v12  ;;  %v1927_v45 = vsel %vm388_vm1, %v1810_v31, 0.0  ;;  %v1931_v32 = vsel %vm388_vm1, %v1812_v46, 0.0 }
 0x1b9   :  { %v1904_v49 = vadd.f32 %v1903_v42, %v1902_v54  ;;  %v3621_v54 = vld [vmem:[#allocation16_spill] sm:$0xff] }
 0x1ba   :  { %v1687_v59 = vsub.f32 %v3621_v54, %v3369_v13 }
 0x1bb   :  { %v1906_v48 = vadd.f32 %v1905_v5, %v1904_v49  ;;  %v1814_v49 = vmul.f32 %v1686_v29, %v1686_v29  ;;  %v1933_v5 = vsel %vm388_vm1, %v1813_v58, 0.0 }
 0x1bc   :  { %v1815_v1 = vmul.f32 %v1687_v59, %v1687_v59 }
 0x1bd   :  { %v1908_v34 = vadd.f32 %v1907_v16, %v1906_v48  ;;  %v1935_v30 = vsel %vm388_vm1, %v1814_v49, 0.0 }
 0x1be   :  { %v1937_v26 = vsel %vm388_vm1, %v1815_v1, 0.0 }
 0x1bf   :  { %v1910_v56 = vadd.f32 %v1909_v14, %v1908_v34  ;;  %v1691_v34 = vsub.f32 %v3314_v25, %v3369_v13  ;;  %v1818_v14 = vmul.f32 %v1690_v57, %v1690_v57 }
 0x1c1   :  { %v1912_v17 = vadd.f32 %v1911_v41, %v1910_v56  ;;  %v1939_v56 = vsel %vm388_vm1, %v1816_v40, 0.0  ;;  %v1819_v63 = vmul.f32 %v1691_v34, %v1691_v34 }
 0x1c3   :  { %v1914_v15 = vadd.f32 %v1913_v4, %v1912_v17  ;;  %v1943_v17 = vsel %vm388_vm1, %v1818_v14, 0.0  ;;  %v1945_v23 = vsel %vm388_vm1, %v1819_v63, 0.0 }
 0x1c5   :  { %v1916_v33 = vadd.f32 %v1915_v2, %v1914_v15 }
 0x1c7   :  { %v1918_v22 = vadd.f32 %v1917_v36, %v1916_v33 }
 0x1c9   :  { %v1920_v28 = vadd.f32 %v1919_v19, %v1918_v22 }
 0x1cb   :  { %v1922_v43 = vadd.f32 %v1921_v21, %v1920_v28 }
 0x1cd   :  { %v1924_v24 = vadd.f32 %v1923_v51, %v1922_v43 }
 0x1cf   :  { %v1926_v12 = vadd.f32 %v1925_v50, %v1924_v24 }
 0x1d1   :  { %v1928_v6 = vadd.f32 %v1927_v45, %v1926_v12 }
 0x1d3   :  { %v1930_v42 = vadd.f32 %v1929_v47, %v1928_v6 }
 0x1d5   :  { %v1932_v27 = vadd.f32 %v1931_v32, %v1930_v42 }
 0x1d7   :  { %v1934_v48 = vadd.f32 %v1933_v5, %v1932_v27 }
 0x1d9   :  { %v1936_v16 = vadd.f32 %v1935_v30, %v1934_v48 }
 0x1db   :  { %v1938_v60 = vadd.f32 %v1937_v26, %v1936_v16 }
 0x1dd   :  { %v1940_v0 = vadd.f32 %v1939_v56, %v1938_v60 }
 0x1df   :  { %v1942_v41 = vadd.f32 %v1941_v35, %v1940_v0 }
 0x1e1   :  { %v1944_v20 = vadd.f32 %v1943_v17, %v1942_v41 }
 0x1e3   :  { %v1946_v25 = vadd.f32 %v1945_v23, %v1944_v20 }
 0x1e5   :  { %v1947_v13 = vrot.slane %v1946_v25, 4 }
 0x1e7   :  { %v1948_v4 = vadd.f32 %v1947_v13, %v1946_v25 }
 0x1e9   :  { %v1949_v7 = vrot.slane %v1948_v4, 2 }
 0x1eb   :  { %v1950_v15 = vadd.f32 %v1949_v7, %v1948_v4 }
 0x1ed   :  { %v1951_v18 = vrot.slane %v1950_v15, 1 }
 0x1ef   :  { %v1952_v3 = vadd.f32 %v1951_v18, %v1950_v15 }
 0x1f1   :  { %1955 = vst.msk [vmem:[%s3576_s6] sm:$0x1] %vm1953_vm3, %v1952_v3 }

// kernel: spatial_block.6
= control target key start
LH: loop header
LB: loop body
LE: loop exit
PB: predicated region body
PF: predicated region fallthrough
CT: control target
= control target key end

     0   :  { %vm696_vm0 = vcmask 64512   ;;  %vm2274_vm1 = vcmask 1043456   ;;  %vm3211_vm2 = vcmask 60416   ;;  %vm4130_vm3 = vcmask 57344   ;;  %s7714_s0 = inlined_call_operand.vmem [shape: bf16[512,8], index: 0, kind: input, shape index: {}]   ;;  %s7715_s1 = inlined_call_operand.vmem [shape: bf16[512,8], index: 1, kind: input, shape index: {}]   ;;  %s7716_s2 = inlined_call_operand.vmem [shape: f32[1,8], index: 2, kind: input, shape index: {}]   ;;  %s7717_s3 = inlined_call_operand.vmem [shape: f32[1,8], index: 3, kind: input, shape index: {}]   ;;  %s7718_s4 = inlined_call_operand.vmem [shape: f32[1,8], index: 4, kind: input, shape index: {}]   ;;  %s7719_s5 = inlined_call_operand.<no memory space> [shape: f32[1,1], index: 5, kind: input, shape index: {}]   ;;  %s7720_s6 = inlined_call_operand.vmem [shape: bf16[8,8], index: 6, kind: input, shape index: {}]   ;;  %s7721_s7 = inlined_call_operand.vmem [shape: bf16[8,8], index: 7, kind: input, shape index: {}]   ;;  %s7722_s8 = inlined_call_operand.vmem [shape: bf16[512,8], index: 8, kind: output, shape index: {0}]   ;;  %s7723_s9 = inlined_call_operand.vmem [shape: f32[1,1,8], index: 9, kind: output, shape index: {1}]   ;;  %s7724_s10 = inlined_call_operand.vmem [shape: f32[1,1,8], index: 10, kind: output, shape index: {2}]  }
   0x1   :  { %v4342_v0 = vld [vmem:[%s7714_s0] sm:$0xff]   ;;  %v4597_v5 = vld [vmem:[%s7714_s0 + $0x8] sm:$0xff]   ;;  %v4598_v12 = vld [vmem:[%s7714_s0 + $0x10] sm:$0xff]  }
   0x2   :  { %v5184_v1 = vld [vmem:[%s7716_s2] ss:$0 sm:$0xff]  ;;  %v4343_v2 = vunpack.c.l.bf16 %v4342_v0  ;;  %v4344_v6 = vunpack.c.h.bf16 %v4342_v0  ;;  %v4347_v8 = vunpack.c.l.bf16 %v4597_v5  ;;  %v5203_v9 = vld [vmem:[%s7715_s1 + $0x8] sm:$0xff]   ;;  %v4348_v11 = vunpack.c.h.bf16 %v4597_v5  ;;  %v5212_v13 = vld [vmem:[%s7715_s1 + $0x10] sm:$0xff]  }
   0x3   :  { %v5189_v3 = vld [vmem:[%s7717_s3] ss:$0 sm:$0xff]  ;;  %v7764_v15 = vunpack.c.l.bf16 %v5203_v9  ;;  %v7757_v17 = vunpack.c.h.bf16 %v5203_v9  ;;  %v4599_v18 = vld [vmem:[%s7714_s0 + $0x18] sm:$0xff]   ;;  %v4351_v21 = vunpack.c.l.bf16 %v4598_v12  ;;  %v7752_v22 = vunpack.c.l.bf16 %v5212_v13 }
   0x4   :  { %v5194_v4 = vld [vmem:[%s7715_s1] sm:$0xff]   ;;  %v170_v14 = vmul.f32 %v4343_v2, %v5184_v1  ;;  %v171_v16 = vmul.f32 %v4344_v6, %v5184_v1  ;;  %v172_v19 = vmul.f32 %v4347_v8, %v5184_v1  ;;  %v173_v20 = vmul.f32 %v4348_v11, %v5184_v1  ;;  %v5227_v23 = vld [vmem:[%s7715_s1 + $0x18] sm:$0xff]  }
   0x5   :  { %v7772_v7 = vunpack.c.l.bf16 %v5194_v4  ;;  %v7771_v10 = vunpack.c.h.bf16 %v5194_v4  ;;  %v4352_v26 = vunpack.c.h.bf16 %v4598_v12  ;;  %v7749_v27 = vunpack.c.h.bf16 %v5212_v13  ;;  %v5267_v44 = vld [vmem:[%s7718_s4] ss:$0 sm:$0xff] }
   0x6   :  { %v5230_v24 = vadd.f32 %v5189_v3, %v170_v14  ;;  %v5233_v25 = vadd.f32 %v5189_v3, %v171_v16  ;;  %v5237_v28 = vadd.f32 %v5189_v3, %v172_v19  ;;  %v5240_v29 = vadd.f32 %v5189_v3, %v173_v20  ;;  %v4600_v2 = vld [vmem:[%s7714_s0 + $0x20] sm:$0xff]   ;;  %v4601_v20 = vld [vmem:[%s7714_s0 + $0x28] sm:$0xff]  }
   0x7   :  { %v174_v30 = vmul.f32 %v4351_v21, %v5184_v1  ;;  %v4356_v31 = vunpack.c.h.bf16 %v4599_v18  ;;  %v175_v34 = vmul.f32 %v4352_v26, %v5184_v1  ;;  %v7744_v35 = vunpack.c.h.bf16 %v5227_v23  ;;  %v5309_v5 = vld [vmem:[%s7715_s1 + $0x20] sm:$0xff]  }
   0x8   :  { %v7768_v32 = vmax.f32 %v5230_v24, 0.0  ;;  %v7767_v33 = vmax.f32 %v5233_v25, 0.0  ;;  %v7756_v36 = vmax.f32 %v5237_v28, 0.0  ;;  %v7753_v37 = vmax.f32 %v5240_v29, 0.0 }
   0x9   :  { %v5250_v38 = vadd.f32 %v5189_v3, %v174_v30  ;;  %v177_v39 = vmul.f32 %v4356_v31, %v5184_v1  ;;  %v5262_v42 = vadd.f32 %v5189_v3, %v175_v34  ;;  %v4355_v43 = vunpack.c.l.bf16 %v4599_v18  ;;  %v5326_v34 = vld [vmem:[%s7715_s1 + $0x28] sm:$0xff]  }
   0xa   :  { %v497_v40 = vadd.f32 %v7772_v7, %v7768_v32  ;;  %v498_v41 = vadd.f32 %v7771_v10, %v7767_v33  ;;  %v499_v45 = vadd.f32 %v7764_v15, %v7756_v36  ;;  %v500_v46 = vadd.f32 %v7757_v17, %v7753_v37 }
   0xb   :  { %v7747_v47 = vmax.f32 %v5250_v38, 0.0  ;;  %v5279_v48 = vadd.f32 %v5189_v3, %v177_v39  ;;  %v7748_v51 = vmax.f32 %v5262_v42, 0.0  ;;  %v176_v52 = vmul.f32 %v4355_v43, %v5184_v1  ;;  %v4602_v39 = vld [vmem:[%s7714_s0 + $0x30] sm:$0xff]  }
   0xc   :  { %v561_v49 = vmax.f32 %v497_v40, 0.0  ;;  %v562_v50 = vmax.f32 %v498_v41, 0.0  ;;  %v563_v53 = vmax.f32 %v499_v45, 0.0  ;;  %v564_v54 = vmax.f32 %v500_v46, 0.0  ;;  %v5337_v46 = vld [vmem:[%s7715_s1 + $0x30] sm:$0xff]  }
   0xd   :  { %v501_v55 = vadd.f32 %v7752_v22, %v7747_v47  ;;  %v7742_v56 = vmax.f32 %v5279_v48, 0.0  ;;  %v502_v59 = vadd.f32 %v7749_v27, %v7748_v51  ;;  %v5295_v60 = vadd.f32 %v5189_v3, %v176_v52 }
   0xe   :  { %v632_v57 = vmul.f32 %v5267_v44, %v561_v49  ;;  %v633_v58 = vmul.f32 %v5267_v44, %v562_v50  ;;  %v634_v61 = vmul.f32 %v5267_v44, %v563_v53  ;;  %v635_v62 = vmul.f32 %v5267_v44, %v564_v54  ;;  %v5348_v54 = vld [vmem:[%s7714_s0 + $0x38] sm:$0xff]  }
   0xf   :  { %v565_v63 = vmax.f32 %v501_v55, 0.0  ;;  %v504_v0 = vadd.f32 %v7744_v35, %v7742_v56  ;;  %v566_v11 = vmax.f32 %v502_v59, 0.0  ;;  %v7741_v12 = vmax.f32 %v5295_v60, 0.0  ;;  %v5353_v55 = vld [vmem:[%s7715_s1 + $0x38] sm:$0xff]  }
  0x10   :  { %v697_v6 = vsel %vm696_vm0, %v632_v57, 0.0  ;;  %v700_v8 = vsel %vm696_vm0, %v633_v58, 0.0  ;;  %v703_v14 = vsel %vm696_vm0, %v634_v61, 0.0  ;;  %v706_v16 = vsel %vm696_vm0, %v635_v62, 0.0 }
  0x11   :  { %698 = vadd.xlane.f32.xlu0 %v697_v6  ;;  %v636_v18 = vmul.f32 %v5267_v44, %v565_v63  ;;  %v568_v19 = vmax.f32 %v504_v0, 0.0  ;;  %704 = vadd.xlane.f32.xlu1 %v703_v14  ;;  %v637_v21 = vmul.f32 %v5267_v44, %v566_v11  ;;  %v7743_v26 = vunpack.c.l.bf16 %v5227_v23 }
  0x12   :  { %v4359_v30 = vunpack.c.l.bf16 %v4600_v2  ;;  %v7734_v31 = vunpack.c.l.bf16 %v5309_v5  ;;  %v4360_v43 = vunpack.c.h.bf16 %v4600_v2  ;;  %v7729_v45 = vunpack.c.h.bf16 %v5309_v5 }
  0x13   :  { %v709_v40 = vsel %vm696_vm0, %v636_v18, 0.0  ;;  %v639_v41 = vmul.f32 %v5267_v44, %v568_v19  ;;  %v712_v49 = vsel %vm696_vm0, %v637_v21, 0.0  ;;  %v503_v50 = vadd.f32 %v7743_v26, %v7741_v12 }
  0x14   :  { %v178_v52 = vmul.f32 %v4359_v30, %v5184_v1  ;;  %v4364_v53 = vunpack.c.h.bf16 %v4601_v20  ;;  %v179_v58 = vmul.f32 %v4360_v43, %v5184_v1  ;;  %v7728_v59 = vunpack.c.h.bf16 %v5326_v34 }
  0x15   :  { %701 = vadd.xlane.f32.xlu0 %v700_v8  ;;  %v718_v57 = vsel %vm696_vm0, %v639_v41, 0.0  ;;  %v4368_v61 = vunpack.c.h.bf16 %v4602_v39  ;;  %707 = vadd.xlane.f32.xlu1 %v706_v16  ;;  %v567_v62 = vmax.f32 %v503_v50, 0.0  ;;  %v7733_v2 = vunpack.c.h.bf16 %v5337_v46 }
  0x16   :  { %v5359_v63 = vadd.f32 %v5189_v3, %v178_v52  ;;  %v181_v0 = vmul.f32 %v4364_v53, %v5184_v1  ;;  %v5364_v6 = vadd.f32 %v5189_v3, %v179_v58  ;;  %v4372_v11 = vunpack.c.h.bf16 %v5348_v54 }
  0x17   :  { %v183_v8 = vmul.f32 %v4368_v61, %v5184_v1  ;;  %v7732_v14 = vunpack.c.h.bf16 %v5353_v55  ;;  %v638_v18 = vmul.f32 %v5267_v44, %v567_v62  ;;  %v4363_v21 = vunpack.c.l.bf16 %v4601_v20 }
  0x18   :  { %v7725_v16 = vmax.f32 %v5359_v63, 0.0  ;;  %v5372_v19 = vadd.f32 %v5189_v3, %v181_v0  ;;  %v7726_v30 = vmax.f32 %v5364_v6, 0.0  ;;  %v185_v43 = vmul.f32 %v4372_v11, %v5184_v1  ;;  %v4604_v0 = vld [vmem:[%s7714_s0 + $0x40] sm:$0xff]  }
  0x19   :  { %710 = vadd.xlane.f32.xlu0 %v709_v40  ;;  %v5376_v41 = vadd.f32 %v5189_v3, %v183_v8  ;;  %v7738_v50 = vunpack.c.l.bf16 %v5326_v34  ;;  %713 = vadd.xlane.f32.xlu1 %v712_v49  ;;  %v715_v52 = vsel %vm696_vm0, %v638_v18, 0.0  ;;  %v180_v40 = vmul.f32 %v4363_v21, %v5184_v1 }
  0x1a   :  { %v505_v53 = vadd.f32 %v7734_v31, %v7725_v16  ;;  %v7727_v20 = vmax.f32 %v5372_v19, 0.0  ;;  %v506_v58 = vadd.f32 %v7729_v45, %v7726_v30  ;;  %v5393_v49 = vadd.f32 %v5189_v3, %v185_v43 }
  0x1b   :  { %v7730_v61 = vmax.f32 %v5376_v41, 0.0  ;;  %v4367_v62 = vunpack.c.l.bf16 %v4602_v39  ;;  %v5403_v18 = vadd.f32 %v5189_v3, %v180_v40  ;;  %v7737_v21 = vunpack.c.l.bf16 %v5337_v46 }
  0x1c   :  { %v569_v8 = vmax.f32 %v505_v53, 0.0  ;;  %v508_v11 = vadd.f32 %v7728_v59, %v7727_v20  ;;  %v570_v16 = vmax.f32 %v506_v58, 0.0  ;;  %v7731_v43 = vmax.f32 %v5393_v49, 0.0 }
  0x1d   :  { %716 = vadd.xlane.f32.xlu0 %v715_v52  ;;  %v510_v39 = vadd.f32 %v7733_v2, %v7730_v61  ;;  %v182_v53 = vmul.f32 %v4367_v62, %v5184_v1  ;;  %719 = vadd.xlane.f32.xlu1 %v718_v57  ;;  %v7735_v40 = vmax.f32 %v5403_v18, 0.0  ;;  %v4376_v59 = vunpack.c.h.bf16 %v4604_v0  ;;  %v5425_v57 = vld [vmem:[%s7715_s1 + $0x40] sm:$0xff]  }
  0x1e   :  { %v640_v30 = vmul.f32 %v5267_v44, %v569_v8  ;;  %v572_v20 = vmax.f32 %v508_v11, 0.0  ;;  %v641_v45 = vmul.f32 %v5267_v44, %v570_v16  ;;  %v512_v58 = vadd.f32 %v7732_v14, %v7731_v43  ;;  %7927 = vst [vmem:[#allocation3_spill] sm:$0xff] %v5425_v57 }
  0x1f   :  { %v574_v52 = vmax.f32 %v510_v39, 0.0  ;;  %v5420_v61 = vadd.f32 %v5189_v3, %v182_v53  ;;  %v507_v16 = vadd.f32 %v7738_v50, %v7735_v40  ;;  %v187_v11 = vmul.f32 %v4376_v59, %v5184_v1 }
  0x20   :  { %v721_v62 = vsel %vm696_vm0, %v640_v30, 0.0  ;;  %v643_v8 = vmul.f32 %v5267_v44, %v572_v20  ;;  %v724_v39 = vsel %vm696_vm0, %v641_v45, 0.0  ;;  %v576_v43 = vmax.f32 %v512_v58, 0.0  ;;  %v4605_v58 = vld [vmem:[%s7714_s0 + $0x48] sm:$0xff]  }
  0x21   :  { %722 = vadd.xlane.f32.xlu0 %v721_v62  ;;  %v645_v53 = vmul.f32 %v5267_v44, %v574_v52  ;;  %v7736_v14 = vmax.f32 %v5420_v61, 0.0  ;;  %725 = vadd.xlane.f32.xlu1 %v724_v39  ;;  %v571_v2 = vmax.f32 %v507_v16, 0.0  ;;  %v5439_v20 = vadd.f32 %v5189_v3, %v187_v11 }
  0x22   :  { %v730_v30 = vsel %vm696_vm0, %v643_v8, 0.0  ;;  %v7740_v31 = vunpack.c.h.bf16 %v5425_v57  ;;  %v647_v59 = vmul.f32 %v5267_v44, %v576_v43  ;;  %v4371_v52 = vunpack.c.l.bf16 %v5348_v54  ;;  %v5458_v43 = vld [vmem:[%s7715_s1 + $0x48] sm:$0xff]  }
  0x23   :  { %7928 = vst [vmem:[#allocation4_spill] sm:$0xff] %v5439_v20  ;;  %v736_v40 = vsel %vm696_vm0, %v645_v53, 0.0  ;;  %v509_v45 = vadd.f32 %v7737_v21, %v7736_v14  ;;  %v642_v62 = vmul.f32 %v5267_v44, %v571_v2  ;;  %v7739_v8 = vmax.f32 %v5439_v20, 0.0  ;;  %7929 = vst [vmem:[#allocation5_spill] sm:$0xff] %v5458_v43 }
  0x24   :  { %v7746_v16 = vunpack.c.l.bf16 %v5353_v55  ;;  %v4375_v11 = vunpack.c.l.bf16 %v4604_v0  ;;  %v742_v39 = vsel %vm696_vm0, %v647_v59, 0.0  ;;  %v184_v54 = vmul.f32 %v4371_v52, %v5184_v1  ;;  %v4606_v59 = vld [vmem:[%s7714_s0 + $0x50] sm:$0xff]  }
  0x25   :  { %v573_v53 = vmax.f32 %v509_v45, 0.0  ;;  %v7751_v14 = vunpack.c.l.bf16 %v5425_v57  ;;  %731 = vadd.xlane.f32.xlu1 %v730_v30  ;;  %v727_v2 = vsel %vm696_vm0, %v642_v62, 0.0  ;;  %v514_v0 = vadd.f32 %v7740_v31, %v7739_v8  ;;  %v5480_v8 = vld [vmem:[%s7715_s1 + $0x50] sm:$0xff]  }
  0x26   :  { %v186_v21 = vmul.f32 %v4375_v11, %v5184_v1  ;;  %v4380_v50 = vunpack.c.h.bf16 %v4605_v58  ;;  %728 = vadd.xlane.f32.xlu0 %v727_v2  ;;  %v5474_v52 = vadd.f32 %v5189_v3, %v184_v54  ;;  %v7755_v30 = vunpack.c.h.bf16 %v5458_v43  ;;  %7930 = vst [vmem:[#allocation6_spill] sm:$0xff] %v5480_v8 }
  0x27   :  { %v644_v45 = vmul.f32 %v5267_v44, %v573_v53  ;;  %v4379_v62 = vunpack.c.l.bf16 %v4605_v58  ;;  %v578_v11 = vmax.f32 %v514_v0, 0.0  ;;  %v7759_v2 = vunpack.c.l.bf16 %v5458_v43 }
  0x28   :  { %v5483_v31 = vadd.f32 %v5189_v3, %v186_v21  ;;  %v189_v12 = vmul.f32 %v4380_v50, %v5184_v1  ;;  %v7745_v54 = vmax.f32 %v5474_v52, 0.0  ;;  %v4383_v58 = vunpack.c.l.bf16 %v4606_v59 }
  0x29   :  { %v733_v53 = vsel %vm696_vm0, %v644_v45, 0.0  ;;  %v188_v56 = vmul.f32 %v4379_v62, %v5184_v1  ;;  %737 = vadd.xlane.f32.xlu1 %v736_v40  ;;  %v649_v26 = vmul.f32 %v5267_v44, %v578_v11  ;;  %v7761_v21 = vunpack.c.l.bf16 %v5480_v8  ;;  %v4607_v11 = vld [vmem:[%s7714_s0 + $0x58] sm:$0xff]  }
  0x2a   :  { %7931 = vst [vmem:[#allocation7_spill] sm:$0xff] %v5483_v31  ;;  %v7750_v35 = vmax.f32 %v5483_v31, 0.0  ;;  %v5493_v0 = vadd.f32 %v5189_v3, %v189_v12  ;;  %734 = vadd.xlane.f32.xlu0 %v733_v53  ;;  %v511_v50 = vadd.f32 %v7746_v16, %v7745_v54  ;;  %v190_v40 = vmul.f32 %v4383_v58, %v5184_v1  ;;  %v5510_v12 = vld [vmem:[%s7715_s1 + $0x58] sm:$0xff]  }
  0x2b   :  { %v5501_v45 = vadd.f32 %v5189_v3, %v188_v56  ;;  %v4384_v62 = vunpack.c.h.bf16 %v4606_v59  ;;  %7934 = vst [vmem:[#allocation10_spill] sm:$0xff] %v5510_v12  ;;  %v748_v53 = vsel %vm696_vm0, %v649_v26, 0.0  ;;  %v7763_v59 = vunpack.c.h.bf16 %v5480_v8  ;;  %v4608_v26 = vld [vmem:[%s7714_s0 + $0x60] sm:$0xff]  }
  0x2c   :  { %7932 = vst [vmem:[#allocation8_spill] sm:$0xff] %v5493_v0  ;;  %v513_v56 = vadd.f32 %v7751_v14, %v7750_v35  ;;  %v7754_v54 = vmax.f32 %v5493_v0, 0.0  ;;  %v575_v58 = vmax.f32 %v511_v50, 0.0  ;;  %v5521_v47 = vadd.f32 %v5189_v3, %v190_v40 }
  0x2d   :  { %7933 = vst [vmem:[#allocation9_spill] sm:$0xff] %v5501_v45  ;;  %v7758_v16 = vmax.f32 %v5501_v45, 0.0  ;;  %v191_v51 = vmul.f32 %v4384_v62, %v5184_v1  ;;  %743 = vadd.xlane.f32.xlu1 %v742_v39  ;;  %v4387_v14 = vunpack.c.l.bf16 %v4607_v11  ;;  %v7766_v50 = vunpack.c.l.bf16 %v5510_v12 }
  0x2e   :  { %7935 = vst [vmem:[#allocation11_spill] sm:$0xff] %v5521_v47  ;;  %v577_v27 = vmax.f32 %v513_v56, 0.0  ;;  %v516_v35 = vadd.f32 %v7755_v30, %v7754_v54  ;;  %v646_v22 = vmul.f32 %v5267_v44, %v575_v58  ;;  %v7760_v62 = vmax.f32 %v5521_v47, 0.0  ;;  %v5546_v58 = vld [vmem:[%s7715_s1 + $0x60] sm:$0xff]  }
  0x2f   :  { %v515_v40 = vadd.f32 %v7759_v2, %v7758_v16  ;;  %v5539_v39 = vadd.f32 %v5189_v3, %v191_v51  ;;  %v192_v54 = vmul.f32 %v4387_v14, %v5184_v1  ;;  %v4391_v30 = vunpack.c.l.bf16 %v4608_v26  ;;  %7937 = vst [vmem:[#allocation13_spill] sm:$0xff] %v5546_v58 }
  0x30   :  { %v648_v56 = vmul.f32 %v5267_v44, %v577_v27  ;;  %v580_v37 = vmax.f32 %v516_v35, 0.0  ;;  %v739_v36 = vsel %vm696_vm0, %v646_v22, 0.0  ;;  %v517_v51 = vadd.f32 %v7761_v21, %v7760_v62 }
  0x31   :  { %7936 = vst [vmem:[#allocation12_spill] sm:$0xff] %v5539_v39  ;;  %v579_v17 = vmax.f32 %v515_v40, 0.0  ;;  %v7762_v16 = vmax.f32 %v5539_v39, 0.0  ;;  %749 = vadd.xlane.f32.xlu1 %v748_v53  ;;  %740 = vadd.xlane.f32.xlu0 %v739_v36  ;;  %v5557_v14 = vadd.f32 %v5189_v3, %v192_v54  ;;  %v194_v2 = vmul.f32 %v4391_v30, %v5184_v1  ;;  %v4609_v36 = vld [vmem:[%s7714_s0 + $0x68] sm:$0xff]  }
  0x32   :  { %v745_v27 = vsel %vm696_vm0, %v648_v56, 0.0  ;;  %v651_v35 = vmul.f32 %v5267_v44, %v580_v37  ;;  %v581_v40 = vmax.f32 %v517_v51, 0.0  ;;  %v7770_v53 = vunpack.c.l.bf16 %v5546_v58 }
  0x33   :  { %7938 = vst [vmem:[#allocation14_spill] sm:$0xff] %v5557_v14  ;;  %v650_v22 = vmul.f32 %v5267_v44, %v579_v17  ;;  %v518_v62 = vadd.f32 %v7763_v59, %v7762_v16  ;;  %v7765_v54 = vmax.f32 %v5557_v14, 0.0  ;;  %v5572_v30 = vadd.f32 %v5189_v3, %v194_v2  ;;  %v5585_v2 = vld [vmem:[%s7715_s1 + $0x68] sm:$0xff]  }
  0x34   :  { %v754_v37 = vsel %vm696_vm0, %v651_v35, 0.0  ;;  %v4388_v17 = vunpack.c.h.bf16 %v4607_v11  ;;  %v652_v51 = vmul.f32 %v5267_v44, %v581_v40  ;;  %v4395_v15 = vunpack.c.l.bf16 %v4609_v36  ;;  %7940 = vst [vmem:[#allocation16_spill] sm:$0xff] %v5585_v2  ;;  %v4610_v11 = vld [vmem:[%s7714_s0 + $0x70] sm:$0xff]  }
  0x35   :  { %7939 = vst [vmem:[#allocation15_spill] sm:$0xff] %v5572_v30  ;;  %v751_v56 = vsel %vm696_vm0, %v650_v22, 0.0  ;;  %v582_v21 = vmax.f32 %v518_v62, 0.0  ;;  %746 = vadd.xlane.f32.xlu0 %v745_v27  ;;  %755 = vadd.xlane.f32.xlu1 %v754_v37  ;;  %v519_v16 = vadd.f32 %v7766_v50, %v7765_v54  ;;  %v7769_v35 = vmax.f32 %v5572_v30, 0.0 }
  0x36   :  { %v193_v59 = vmul.f32 %v4388_v17, %v5184_v1  ;;  %v757_v62 = vsel %vm696_vm0, %v652_v51, 0.0  ;;  %v7774_v22 = vunpack.c.h.bf16 %v5510_v12  ;;  %v4392_v40 = vunpack.c.h.bf16 %v4608_v26 }
  0x37   :  { %v653_v27 = vmul.f32 %v5267_v44, %v582_v21  ;;  %v583_v37 = vmax.f32 %v519_v16, 0.0  ;;  %v521_v17 = vadd.f32 %v7770_v53, %v7769_v35  ;;  %v196_v50 = vmul.f32 %v4395_v15, %v5184_v1  ;;  %v5607_v16 = vld [vmem:[%s7715_s1 + $0x70] sm:$0xff]  }
  0x38   :  { %v5598_v54 = vadd.f32 %v5189_v3, %v193_v59  ;;  %v7776_v51 = vunpack.c.l.bf16 %v5585_v2  ;;  %v195_v21 = vmul.f32 %v4392_v40, %v5184_v1  ;;  %v4399_v32 = vunpack.c.l.bf16 %v4610_v11  ;;  %7942 = vst [vmem:[#allocation18_spill] sm:$0xff] %v5607_v16 }
  0x39   :  { %v760_v33 = vsel %vm696_vm0, %v653_v27, 0.0  ;;  %752 = vadd.xlane.f32.xlu0 %v751_v56  ;;  %v654_v26 = vmul.f32 %v5267_v44, %v583_v37  ;;  %v585_v59 = vmax.f32 %v521_v17, 0.0  ;;  %v5612_v15 = vadd.f32 %v5189_v3, %v196_v50 }
  0x3a   :  { %7941 = vst [vmem:[#allocation17_spill] sm:$0xff] %v5598_v54  ;;  %761 = vadd.xlane.f32.xlu1 %v760_v33  ;;  %v7773_v35 = vmax.f32 %v5598_v54, 0.0  ;;  %v5615_v27 = vadd.f32 %v5189_v3, %v195_v21  ;;  %v7780_v40 = vunpack.c.h.bf16 %v5546_v58  ;;  %v198_v53 = vmul.f32 %v4399_v32, %v5184_v1  ;;  %v5622_v33 = vld [vmem:[%s7714_s0 + $0x78] sm:$0xff]  }
  0x3b   :  { %7943 = vst [vmem:[#allocation19_spill] sm:$0xff] %v5612_v15  ;;  %v4396_v10 = vunpack.c.h.bf16 %v4609_v36  ;;  %v656_v56 = vmul.f32 %v5267_v44, %v585_v59  ;;  %v7775_v37 = vmax.f32 %v5612_v15, 0.0  ;;  %v763_v21 = vsel %vm696_vm0, %v654_v26, 0.0  ;;  %v5646_v26 = vld [vmem:[%s7715_s1 + $0x78] sm:$0xff]  }
  0x3c   :  { %7944 = vst [vmem:[#allocation20_spill] sm:$0xff] %v5615_v27  ;;  %v520_v50 = vadd.f32 %v7774_v22, %v7773_v35  ;;  %v7779_v32 = vmax.f32 %v5615_v27, 0.0  ;;  %v5634_v36 = vadd.f32 %v5189_v3, %v198_v53  ;;  %v4403_v17 = vunpack.c.l.bf16 %v5622_v33  ;;  %7946 = vst [vmem:[#allocation22_spill] sm:$0xff] %v5646_v26 }
  0x3d   :  { %v197_v7 = vmul.f32 %v4396_v10, %v5184_v1  ;;  %758 = vadd.xlane.f32.xlu0 %v757_v62  ;;  %v523_v35 = vadd.f32 %v7776_v51, %v7775_v37  ;;  %v769_v53 = vsel %vm696_vm0, %v656_v56, 0.0  ;;  %v4400_v15 = vunpack.c.h.bf16 %v4610_v11  ;;  %v4612_v56 = vld [vmem:[%s7714_s0 + $0x80] sm:$0xff]  }
  0x3e   :  { %7945 = vst [vmem:[#allocation21_spill] sm:$0xff] %v5634_v36  ;;  %v584_v59 = vmax.f32 %v520_v50, 0.0  ;;  %v522_v10 = vadd.f32 %v7780_v40, %v7779_v32  ;;  %v7783_v62 = vmax.f32 %v5634_v36, 0.0  ;;  %v200_v22 = vmul.f32 %v4403_v17, %v5184_v1 }
  0x3f   :  { %v5655_v50 = vadd.f32 %v5189_v3, %v197_v7  ;;  %v587_v51 = vmax.f32 %v523_v35, 0.0  ;;  %v7948_v32 = vunpack.c.l.bf16 %v5607_v16  ;;  %v4407_v7 = vunpack.c.l.bf16 %v4612_v56 }
  0x40   :  { %v655_v37 = vmul.f32 %v5267_v44, %v584_v59  ;;  %v586_v30 = vmax.f32 %v522_v10, 0.0  ;;  %v5671_v11 = vadd.f32 %v5189_v3, %v200_v22  ;;  %v199_v59 = vmul.f32 %v4400_v15, %v5184_v1 }
  0x41   :  { %7947 = vst [vmem:[#allocation23_spill] sm:$0xff] %v5655_v50  ;;  %v525_v40 = vadd.f32 %v7948_v32, %v7783_v62  ;;  %v7784_v27 = vmax.f32 %v5655_v50, 0.0  ;;  %764 = vadd.xlane.f32.xlu0 %v763_v21  ;;  %v658_v17 = vmul.f32 %v5267_v44, %v587_v51  ;;  %v7950_v32 = vunpack.c.h.bf16 %v5585_v2 }
  0x42   :  { %v766_v35 = vsel %vm696_vm0, %v655_v37, 0.0  ;;  %7949 = vst [vmem:[#allocation24_spill] sm:$0xff] %v5671_v11  ;;  %v657_v10 = vmul.f32 %v5267_v44, %v586_v30  ;;  %v5682_v37 = vld [vmem:[%s7715_s1 + $0x80] sm:$0xff]   ;;  %v7788_v51 = vmax.f32 %v5671_v11, 0.0  ;;  %v5687_v15 = vadd.f32 %v5189_v3, %v199_v59 }
  0x43   :  { %767 = vadd.xlane.f32.xlu1 %v766_v35  ;;  %v589_v36 = vmax.f32 %v525_v40, 0.0  ;;  %v524_v62 = vadd.f32 %v7950_v32, %v7784_v27  ;;  %7951 = vst [vmem:[#allocation25_spill] sm:$0xff] %v5682_v37  ;;  %v775_v22 = vsel %vm696_vm0, %v658_v17, 0.0  ;;  %v4613_v40 = vld [vmem:[%s7714_s0 + $0x88] sm:$0xff]   ;;  %v202_v27 = vmul.f32 %v4407_v7, %v5184_v1 }
  0x44   :  { %7952 = vst [vmem:[#allocation26_spill] sm:$0xff] %v5687_v15  ;;  %v772_v21 = vsel %vm696_vm0, %v657_v10, 0.0  ;;  %v7953_v17 = vunpack.c.l.bf16 %v5646_v26  ;;  %v7793_v50 = vmax.f32 %v5687_v15, 0.0  ;;  %v4404_v2 = vunpack.c.h.bf16 %v5622_v33  ;;  %v5711_v7 = vld [vmem:[%s7715_s1 + $0x88] sm:$0xff]  }
  0x45   :  { %v660_v35 = vmul.f32 %v5267_v44, %v589_v36  ;;  %v588_v32 = vmax.f32 %v524_v62, 0.0  ;;  %770 = vadd.xlane.f32.xlu0 %v769_v53  ;;  %v5705_v36 = vadd.f32 %v5189_v3, %v202_v27  ;;  %v4411_v53 = vunpack.c.l.bf16 %v4613_v40  ;;  %7955 = vst [vmem:[#allocation28_spill] sm:$0xff] %v5711_v7  ;;  %v4614_v27 = vld [vmem:[%s7714_s0 + $0x90] sm:$0xff]  }
  0x46   :  { %v527_v59 = vadd.f32 %v7953_v17, %v7788_v51  ;;  %v7956_v33 = vunpack.c.h.bf16 %v5607_v16  ;;  %v4408_v58 = vunpack.c.h.bf16 %v4612_v56 }
  0x47   :  { %773 = vadd.xlane.f32.xlu1 %v772_v21  ;;  %v659_v10 = vmul.f32 %v5267_v44, %v588_v32  ;;  %7954 = vst [vmem:[#allocation27_spill] sm:$0xff] %v5705_v36  ;;  %v781_v17 = vsel %vm696_vm0, %v660_v35, 0.0  ;;  %v201_v32 = vmul.f32 %v4404_v2, %v5184_v1  ;;  %v7794_v30 = vmax.f32 %v5705_v36, 0.0  ;;  %v4615_v2 = vld [vmem:[%s7714_s0 + $0x98] sm:$0xff]  }
  0x48   :  { %v591_v51 = vmax.f32 %v527_v59, 0.0  ;;  %v526_v21 = vadd.f32 %v7956_v33, %v7793_v50  ;;  %v204_v11 = vmul.f32 %v4411_v53, %v5184_v1  ;;  %v7958_v33 = vunpack.c.l.bf16 %v5682_v37 }
  0x49   :  { %v778_v62 = vsel %vm696_vm0, %v659_v10, 0.0  ;;  %776 = vadd.xlane.f32.xlu0 %v775_v22  ;;  %v5727_v15 = vadd.f32 %v5189_v3, %v201_v32  ;;  %v203_v56 = vmul.f32 %v4408_v58, %v5184_v1  ;;  %v4415_v22 = vunpack.c.l.bf16 %v4614_v27 }
  0x4a   :  { %v662_v35 = vmul.f32 %v5267_v44, %v591_v51  ;;  %v590_v59 = vmax.f32 %v526_v21, 0.0  ;;  %v529_v10 = vadd.f32 %v7958_v33, %v7794_v30  ;;  %v5735_v50 = vadd.f32 %v5189_v3, %v204_v11  ;;  %v5741_v51 = vld [vmem:[%s7715_s1 + $0x90] sm:$0xff]  }
  0x4b   :  { %7957 = vst [vmem:[#allocation29_spill] sm:$0xff] %v5727_v15  ;;  %779 = vadd.xlane.f32.xlu1 %v778_v62  ;;  %7960 = vst [vmem:[#allocation31_spill] sm:$0xff] %v5741_v51  ;;  %v7797_v21 = vmax.f32 %v5727_v15, 0.0  ;;  %v5749_v30 = vadd.f32 %v5189_v3, %v203_v56  ;;  %v206_v58 = vmul.f32 %v4415_v22, %v5184_v1  ;;  %v4412_v11 = vunpack.c.h.bf16 %v4613_v40  ;;  %v5764_v56 = vld [vmem:[%s7715_s1 + $0x98] sm:$0xff]  }
  0x4c   :  { %7959 = vst [vmem:[#allocation30_spill] sm:$0xff] %v5735_v50  ;;  %v787_v53 = vsel %vm696_vm0, %v662_v35, 0.0  ;;  %v661_v62 = vmul.f32 %v5267_v44, %v590_v59  ;;  %v593_v33 = vmax.f32 %v529_v10, 0.0  ;;  %v7962_v59 = vunpack.c.h.bf16 %v5646_v26  ;;  %7963 = vst [vmem:[#allocation33_spill] sm:$0xff] %v5764_v56 }
  0x4d   :  { %7961 = vst [vmem:[#allocation32_spill] sm:$0xff] %v5749_v30  ;;  %782 = vadd.xlane.f32.xlu0 %v781_v17  ;;  %v7964_v17 = vmax.f32 %v5735_v50, 0.0  ;;  %v7803_v15 = vmax.f32 %v5749_v30, 0.0  ;;  %v205_v40 = vmul.f32 %v4412_v11, %v5184_v1  ;;  %v4419_v26 = vunpack.c.l.bf16 %v4615_v2 }
  0x4e   :  { %v784_v35 = vsel %vm696_vm0, %v661_v62, 0.0  ;;  %v528_v32 = vadd.f32 %v7962_v59, %v7797_v21  ;;  %v664_v22 = vmul.f32 %v5267_v44, %v593_v33  ;;  %v7965_v62 = vunpack.c.l.bf16 %v5711_v7 }
  0x4f   :  { %785 = vadd.xlane.f32.xlu1 %v784_v35  ;;  %v5773_v59 = vadd.f32 %v5189_v3, %v206_v58  ;;  %v7967_v33 = vunpack.c.h.bf16 %v5682_v37  ;;  %v208_v11 = vmul.f32 %v4419_v26, %v5184_v1 }
  0x50   :  { %v531_v36 = vadd.f32 %v7965_v62, %v7964_v17  ;;  %v592_v21 = vmax.f32 %v528_v32, 0.0  ;;  %v5785_v32 = vadd.f32 %v5189_v3, %v205_v40  ;;  %v4416_v62 = vunpack.c.h.bf16 %v4614_v27 }
  0x51   :  { %7966 = vst [vmem:[#allocation34_spill] sm:$0xff] %v5773_v59  ;;  %v530_v35 = vadd.f32 %v7967_v33, %v7803_v15  ;;  %v7805_v50 = vmax.f32 %v5773_v59, 0.0  ;;  %788 = vadd.xlane.f32.xlu0 %v787_v53  ;;  %v793_v10 = vsel %vm696_vm0, %v664_v22, 0.0  ;;  %v7969_v53 = vunpack.c.l.bf16 %v5741_v51 }
  0x52   :  { %v595_v16 = vmax.f32 %v531_v36, 0.0  ;;  %v663_v58 = vmul.f32 %v5267_v44, %v592_v21  ;;  %7968 = vst [vmem:[#allocation35_spill] sm:$0xff] %v5785_v32  ;;  %v4616_v36 = vld [vmem:[%s7714_s0 + $0xa0] sm:$0xff]   ;;  %v7807_v17 = vmax.f32 %v5785_v32, 0.0  ;;  %v5800_v26 = vadd.f32 %v5189_v3, %v208_v11 }
  0x53   :  { %v594_v15 = vmax.f32 %v530_v35, 0.0  ;;  %v533_v21 = vadd.f32 %v7969_v53, %v7805_v50  ;;  %v207_v27 = vmul.f32 %v4416_v62, %v5184_v1  ;;  %v4423_v35 = vunpack.c.l.bf16 %v4616_v36  ;;  %v5808_v53 = vld [vmem:[%s7715_s1 + $0xa0] sm:$0xff]  }
  0x54   :  { %v666_v33 = vmul.f32 %v5267_v44, %v595_v16  ;;  %v790_v40 = vsel %vm696_vm0, %v663_v58, 0.0  ;;  %7970 = vst [vmem:[#allocation36_spill] sm:$0xff] %v5800_v26  ;;  %7971 = vst [vmem:[#allocation37_spill] sm:$0xff] %v5808_v53  ;;  %v7972_v11 = vunpack.c.h.bf16 %v5711_v7  ;;  %v4420_v16 = vunpack.c.h.bf16 %v4615_v2  ;;  %v5839_v2 = vld [vmem:[%s7715_s1 + $0xa8] sm:$0xff]  }
  0x55   :  { %791 = vadd.xlane.f32.xlu1 %v790_v40  ;;  %v665_v22 = vmul.f32 %v5267_v44, %v594_v15  ;;  %v597_v30 = vmax.f32 %v533_v21, 0.0  ;;  %794 = vadd.xlane.f32.xlu0 %v793_v10  ;;  %v7811_v40 = vmax.f32 %v5800_v26, 0.0  ;;  %v5817_v15 = vadd.f32 %v5189_v3, %v207_v27  ;;  %v4617_v21 = vld [vmem:[%s7714_s0 + $0xa8] sm:$0xff]   ;;  %7976 = vst [vmem:[#allocation40_spill] sm:$0xff] %v5839_v2 }
  0x56   :  { %v799_v58 = vsel %vm696_vm0, %v666_v33, 0.0  ;;  %v532_v62 = vadd.f32 %v7972_v11, %v7807_v17  ;;  %v210_v33 = vmul.f32 %v4423_v35, %v5184_v1  ;;  %v7974_v11 = vunpack.c.l.bf16 %v5764_v56 }
  0x57   :  { %7973 = vst [vmem:[#allocation38_spill] sm:$0xff] %v5817_v15  ;;  %v796_v50 = vsel %vm696_vm0, %v665_v22, 0.0  ;;  %v668_v10 = vmul.f32 %v5267_v44, %v597_v30  ;;  %v7814_v27 = vmax.f32 %v5817_v15, 0.0  ;;  %v209_v22 = vmul.f32 %v4420_v16, %v5184_v1 }
  0x58   :  { %v596_v59 = vmax.f32 %v532_v62, 0.0  ;;  %v535_v17 = vadd.f32 %v7974_v11, %v7811_v40  ;;  %v5832_v7 = vadd.f32 %v5189_v3, %v210_v33  ;;  %v4427_v35 = vunpack.c.l.bf16 %v4617_v21 }
  0x59   :  { %797 = vadd.xlane.f32.xlu1 %v796_v50  ;;  %800 = vadd.xlane.f32.xlu0 %v799_v58  ;;  %v805_v62 = vsel %vm696_vm0, %v668_v10, 0.0  ;;  %v7977_v50 = vunpack.c.h.bf16 %v5741_v51  ;;  %v5849_v30 = vadd.f32 %v5189_v3, %v209_v22  ;;  %v4424_v26 = vunpack.c.h.bf16 %v4616_v36  ;;  %v4618_v58 = vld [vmem:[%s7714_s0 + $0xb0] sm:$0xff]  }
  0x5a   :  { %7975 = vst [vmem:[#allocation39_spill] sm:$0xff] %v5832_v7  ;;  %v667_v11 = vmul.f32 %v5267_v44, %v596_v59  ;;  %v599_v40 = vmax.f32 %v535_v17, 0.0  ;;  %v7815_v16 = vmax.f32 %v5832_v7, 0.0  ;;  %v212_v32 = vmul.f32 %v4427_v35, %v5184_v1 }
  0x5b   :  { %v534_v33 = vadd.f32 %v7977_v50, %v7814_v27  ;;  %7978 = vst [vmem:[#allocation41_spill] sm:$0xff] %v5849_v30  ;;  %v7979_v22 = vunpack.c.l.bf16 %v5808_v53  ;;  %v7818_v35 = vmax.f32 %v5849_v30, 0.0  ;;  %v211_v27 = vmul.f32 %v4424_v26, %v5184_v1 }
  0x5c   :  { %v802_v59 = vsel %vm696_vm0, %v667_v11, 0.0  ;;  %v670_v17 = vmul.f32 %v5267_v44, %v599_v40  ;;  %v5864_v36 = vadd.f32 %v5189_v3, %v212_v32  ;;  %v5870_v40 = vld [vmem:[%s7715_s1 + $0xb0] sm:$0xff]   ;;  %v7982_v32 = vunpack.c.h.bf16 %v5764_v56 }
  0x5d   :  { %v598_v10 = vmax.f32 %v534_v33, 0.0  ;;  %803 = vadd.xlane.f32.xlu1 %v802_v59  ;;  %v537_v50 = vadd.f32 %v7979_v22, %v7815_v16  ;;  %7981 = vst [vmem:[#allocation43_spill] sm:$0xff] %v5870_v40  ;;  %806 = vadd.xlane.f32.xlu0 %v805_v62  ;;  %v4431_v22 = vunpack.c.l.bf16 %v4618_v58  ;;  %v5881_v7 = vadd.f32 %v5189_v3, %v211_v27  ;;  %v4619_v62 = vld [vmem:[%s7714_s0 + $0xb8] sm:$0xff]  }
  0x5e   :  { %7980 = vst [vmem:[#allocation42_spill] sm:$0xff] %v5864_v36  ;;  %v811_v11 = vsel %vm696_vm0, %v670_v17, 0.0  ;;  %v536_v15 = vadd.f32 %v7982_v32, %v7818_v35  ;;  %v7823_v26 = vmax.f32 %v5864_v36, 0.0  ;;  %v4428_v59 = vunpack.c.h.bf16 %v4617_v21 }
  0x5f   :  { %v669_v33 = vmul.f32 %v5267_v44, %v598_v10  ;;  %v601_v16 = vmax.f32 %v537_v50, 0.0  ;;  %7983 = vst [vmem:[#allocation44_spill] sm:$0xff] %v5881_v7  ;;  %v214_v10 = vmul.f32 %v4431_v22, %v5184_v1  ;;  %v7984_v27 = vunpack.c.l.bf16 %v5839_v2 }
  0x60   :  { %v600_v32 = vmax.f32 %v536_v15, 0.0  ;;  %v7826_v56 = vmax.f32 %v5881_v7, 0.0  ;;  %v4435_v21 = vunpack.c.l.bf16 %v4619_v62  ;;  %v5903_v15 = vld [vmem:[%s7715_s1 + $0xb8] sm:$0xff]   ;;  %v4432_v50 = vunpack.c.h.bf16 %v4618_v58 }
  0x61   :  { %v808_v17 = vsel %vm696_vm0, %v669_v33, 0.0  ;;  %v672_v30 = vmul.f32 %v5267_v44, %v601_v16  ;;  %v539_v35 = vadd.f32 %v7984_v27, %v7823_v26  ;;  %812 = vadd.xlane.f32.xlu0 %v811_v11  ;;  %v5896_v51 = vadd.f32 %v5189_v3, %v214_v10  ;;  %7986 = vst [vmem:[#allocation46_spill] sm:$0xff] %v5903_v15 }
  0x62   :  { %809 = vadd.xlane.f32.xlu1 %v808_v17  ;;  %v213_v33 = vmul.f32 %v4428_v59, %v5184_v1  ;;  %v671_v17 = vmul.f32 %v5267_v44, %v600_v32  ;;  %v7987_v11 = vunpack.c.h.bf16 %v5808_v53  ;;  %v216_v22 = vmul.f32 %v4435_v21, %v5184_v1 }
  0x63   :  { %7985 = vst [vmem:[#allocation45_spill] sm:$0xff] %v5896_v51  ;;  %v817_v16 = vsel %vm696_vm0, %v672_v30, 0.0  ;;  %v603_v27 = vmax.f32 %v539_v35, 0.0  ;;  %v7827_v59 = vmax.f32 %v5896_v51, 0.0  ;;  %v4620_v30 = vld [vmem:[%s7714_s0 + $0xc0] sm:$0xff]   ;;  %v4436_v51 = vunpack.c.h.bf16 %v4619_v62 }
  0x64   :  { %v538_v10 = vadd.f32 %v7987_v11, %v7826_v56  ;;  %v5913_v26 = vadd.f32 %v5189_v3, %v213_v33  ;;  %v814_v32 = vsel %vm696_vm0, %v671_v17, 0.0  ;;  %v7989_v33 = vunpack.c.l.bf16 %v5870_v40  ;;  %v5934_v17 = vld [vmem:[%s7715_s1 + $0xc0] sm:$0xff]  }
  0x65   :  { %v674_v35 = vmul.f32 %v5267_v44, %v603_v27  ;;  %818 = vadd.xlane.f32.xlu0 %v817_v16  ;;  %v5928_v21 = vadd.f32 %v5189_v3, %v216_v22  ;;  %v215_v56 = vmul.f32 %v4432_v50, %v5184_v1  ;;  %7991 = vst [vmem:[#allocation49_spill] sm:$0xff] %v5934_v17  ;;  %v7992_v22 = vunpack.c.h.bf16 %v5839_v2  ;;  %v5970_v62 = vld [vmem:[%s7716_s2] ss:$0 sm:$0xff] }
  0x66   :  { %7988 = vst [vmem:[#allocation47_spill] sm:$0xff] %v5913_v26  ;;  %v602_v36 = vmax.f32 %v538_v10, 0.0  ;;  %815 = vadd.xlane.f32.xlu1 %v814_v32  ;;  %v541_v11 = vadd.f32 %v7989_v33, %v7827_v59  ;;  %v7829_v58 = vmax.f32 %v5913_v26, 0.0  ;;  %v4439_v32 = vunpack.c.l.bf16 %v4620_v30 }
  0x67   :  { %7990 = vst [vmem:[#allocation48_spill] sm:$0xff] %v5928_v21  ;;  %v823_v16 = vsel %vm696_vm0, %v674_v35, 0.0  ;;  %v7831_v50 = vmax.f32 %v5928_v21, 0.0  ;;  %v5945_v7 = vadd.f32 %v5189_v3, %v215_v56  ;;  %v4621_v35 = vld [vmem:[%s7714_s0 + $0xc8] sm:$0xff]   ;;  %v7994_v3 = vunpack.c.l.bf16 %v5903_v15 }
  0x68   :  { %v673_v27 = vmul.f32 %v5267_v44, %v602_v36  ;;  %v605_v33 = vmax.f32 %v541_v11, 0.0  ;;  %v540_v59 = vadd.f32 %v7992_v22, %v7829_v58  ;;  %v218_v10 = vmul.f32 %v4439_v32, %v5184_v1 }
  0x69   :  { %7993 = vst [vmem:[#allocation50_spill] sm:$0xff] %v5945_v7  ;;  %824 = vadd.xlane.f32.xlu0 %v823_v16  ;;  %v543_v56 = vadd.f32 %v7994_v3, %v7831_v50  ;;  %v7836_v26 = vmax.f32 %v5945_v7, 0.0  ;;  %v4443_v32 = vunpack.c.l.bf16 %v4621_v35  ;;  %v7997_v50 = vunpack.c.h.bf16 %v5870_v40 }
  0x6a   :  { %v820_v36 = vsel %vm696_vm0, %v673_v27, 0.0  ;;  %v676_v22 = vmul.f32 %v5267_v44, %v605_v33  ;;  %v604_v58 = vmax.f32 %v540_v59, 0.0  ;;  %v5962_v27 = vld [vmem:[%s7717_s3] ss:$0 sm:$0xff]  ;;  %v217_v59 = vmul.f32 %v5970_v62, %v4436_v51  ;;  %v5977_v33 = vld [vmem:[%s7715_s1 + $0xc8] sm:$0xff]  }
  0x6b   :  { %821 = vadd.xlane.f32.xlu1 %v820_v36  ;;  %v5965_v1 = vadd.f32 %v5962_v27, %v218_v10  ;;  %7996 = vst [vmem:[#allocation52_spill] sm:$0xff] %v5977_v33  ;;  %v607_v3 = vmax.f32 %v543_v56, 0.0  ;;  %v542_v11 = vadd.f32 %v7997_v50, %v7836_v26  ;;  %v220_v21 = vmul.f32 %v5970_v62, %v4443_v32 }
  0x6c   :  { %v829_v36 = vsel %vm696_vm0, %v676_v22, 0.0  ;;  %v675_v10 = vmul.f32 %v5267_v44, %v604_v58  ;;  %v5987_v16 = vadd.f32 %v5962_v27, %v217_v59  ;;  %v4440_v2 = vunpack.c.h.bf16 %v4620_v30  ;;  %v4622_v22 = vld [vmem:[%s7714_s0 + $0xd0] sm:$0xff]  }
  0x6d   :  { %7995 = vst [vmem:[#allocation51_spill] sm:$0xff] %v5965_v1  ;;  %v7837_v51 = vmax.f32 %v5965_v1, 0.0  ;;  %830 = vadd.xlane.f32.xlu0 %v829_v36  ;;  %v678_v56 = vmul.f32 %v5267_v44, %v607_v3  ;;  %v606_v7 = vmax.f32 %v542_v11, 0.0  ;;  %v7999_v59 = vunpack.c.l.bf16 %v5934_v17 }
  0x6e   :  { %7998 = vst [vmem:[#allocation53_spill] sm:$0xff] %v5987_v16  ;;  %v826_v58 = vsel %vm696_vm0, %v675_v10, 0.0  ;;  %v7840_v30 = vmax.f32 %v5987_v16, 0.0  ;;  %v6002_v32 = vadd.f32 %v5962_v27, %v220_v21  ;;  %v219_v36 = vmul.f32 %v5970_v62, %v4440_v2  ;;  %v6008_v10 = vld [vmem:[%s7715_s1 + $0xd0] sm:$0xff]  }
  0x6f   :  { %827 = vadd.xlane.f32.xlu1 %v826_v58  ;;  %v545_v26 = vadd.f32 %v7999_v59, %v7837_v51  ;;  %8001 = vst [vmem:[#allocation55_spill] sm:$0xff] %v6008_v10  ;;  %v835_v11 = vsel %vm696_vm0, %v678_v56, 0.0  ;;  %v677_v3 = vmul.f32 %v5267_v44, %v606_v7  ;;  %v4447_v50 = vunpack.c.l.bf16 %v4622_v22  ;;  %v4623_v56 = vld [vmem:[%s7714_s0 + $0xd8] sm:$0xff]  }
  0x70   :  { %8000 = vst [vmem:[#allocation54_spill] sm:$0xff] %v6002_v32  ;;  %v8002_v21 = vunpack.c.h.bf16 %v5903_v15  ;;  %v7845_v2 = vmax.f32 %v6002_v32, 0.0  ;;  %v6019_v1 = vadd.f32 %v5962_v27, %v219_v36  ;;  %v4444_v16 = vunpack.c.h.bf16 %v4621_v35 }
  0x71   :  { %v609_v59 = vmax.f32 %v545_v26, 0.0  ;;  %836 = vadd.xlane.f32.xlu0 %v835_v11  ;;  %v832_v7 = vsel %vm696_vm0, %v677_v3, 0.0  ;;  %v222_v58 = vmul.f32 %v5970_v62, %v4447_v50  ;;  %v8004_v36 = vunpack.c.l.bf16 %v5977_v33 }
  0x72   :  { %v544_v51 = vadd.f32 %v8002_v21, %v7840_v30  ;;  %8003 = vst [vmem:[#allocation56_spill] sm:$0xff] %v6019_v1  ;;  %v7846_v40 = vmax.f32 %v6019_v1, 0.0  ;;  %v221_v3 = vmul.f32 %v5970_v62, %v4444_v16  ;;  %v4451_v26 = vunpack.c.l.bf16 %v4623_v56  ;;  %v6052_v16 = vld [vmem:[%s7715_s1 + $0xd8] sm:$0xff]  }
  0x73   :  { %833 = vadd.xlane.f32.xlu1 %v832_v7  ;;  %v680_v21 = vmul.f32 %v5267_v44, %v609_v59  ;;  %v547_v15 = vadd.f32 %v8004_v36, %v7845_v2  ;;  %v6034_v11 = vadd.f32 %v5962_v27, %v222_v58  ;;  %v6042_v44 = vld [vmem:[%s7718_s4] ss:$0 sm:$0xff]  ;;  %v8006_v58 = vunpack.c.h.bf16 %v5934_v17  ;;  %8007 = vst [vmem:[#allocation58_spill] sm:$0xff] %v6052_v16 }
  0x74   :  { %v608_v30 = vmax.f32 %v544_v51, 0.0  ;;  %v6056_v36 = vadd.f32 %v5962_v27, %v221_v3  ;;  %v224_v2 = vmul.f32 %v5970_v62, %v4451_v26  ;;  %v4448_v50 = vunpack.c.h.bf16 %v4622_v22 }
  0x75   :  { %8005 = vst [vmem:[#allocation57_spill] sm:$0xff] %v6034_v11  ;;  %v841_v35 = vsel %vm696_vm0, %v680_v21, 0.0  ;;  %v611_v59 = vmax.f32 %v547_v15, 0.0  ;;  %v546_v7 = vadd.f32 %v8006_v58, %v7846_v40  ;;  %v7851_v21 = vmax.f32 %v6034_v11, 0.0 }
  0x76   :  { %v679_v51 = vmul.f32 %v6042_v44, %v608_v30  ;;  %842 = vadd.xlane.f32.xlu0 %v841_v35  ;;  %8008 = vst [vmem:[#allocation59_spill] sm:$0xff] %v6056_v36  ;;  %v16_v15 = vstv %s7719_s5  ;;  %v4624_v30 = vld [vmem:[%s7714_s0 + $0xe0] sm:$0xff]   ;;  %v8009_v26 = vunpack.c.l.bf16 %v6008_v10  ;;  %v7853_v32 = vmax.f32 %v6056_v36, 0.0 }
  0x77   :  { %v682_v40 = vmul.f32 %v6042_v44, %v611_v59  ;;  %v610_v35 = vmax.f32 %v546_v7, 0.0  ;;  %17 = vst [vmem:[#allocation2] sm:$0x1] %v16_v15  ;;  %v6073_v1 = vadd.f32 %v5962_v27, %v224_v2  ;;  %v223_v7 = vmul.f32 %v5970_v62, %v4448_v50  ;;  %v6082_v15 = vld [vmem:[%s7715_s1 + $0xe0] sm:$0xff]   ;;  %v4625_v50 = vld [vmem:[%s7714_s0 + $0xe8] sm:$0xff]  }
  0x78   :  { %v838_v58 = vsel %vm696_vm0, %v679_v51, 0.0  ;;  %v549_v3 = vadd.f32 %v8009_v26, %v7851_v21  ;;  %v4456_v22 = vunpack.c.h.bf16 %v4624_v30  ;;  %8011 = vst [vmem:[#allocation61_spill] sm:$0xff] %v6082_v15  ;;  %v8012_v2 = vunpack.c.h.bf16 %v5977_v33 }
  0x79   :  { %839 = vadd.xlane.f32.xlu1 %v838_v58  ;;  %8010 = vst [vmem:[#allocation60_spill] sm:$0xff] %v6073_v1  ;;  %v847_v51 = vsel %vm696_vm0, %v682_v40, 0.0  ;;  %v681_v59 = vmul.f32 %v6042_v44, %v610_v35  ;;  %v7857_v21 = vmax.f32 %v6073_v1, 0.0  ;;  %v6095_v17 = vadd.f32 %v5962_v27, %v223_v7 }
  0x7a   :  { %848 = vadd.xlane.f32.xlu0 %v847_v51  ;;  %v613_v58 = vmax.f32 %v549_v3, 0.0  ;;  %v548_v26 = vadd.f32 %v8012_v2, %v7853_v32  ;;  %v227_v3 = vmul.f32 %v5970_v62, %v4456_v22  ;;  %v4452_v51 = vunpack.c.h.bf16 %v4623_v56  ;;  %v6112_v56 = vld [vmem:[%s7715_s1 + $0xe8] sm:$0xff]  }
  0x7b   :  { %v844_v35 = vsel %vm696_vm0, %v681_v59, 0.0  ;;  %8013 = vst [vmem:[#allocation62_spill] sm:$0xff] %v6095_v17  ;;  %v8014_v32 = vunpack.c.l.bf16 %v6052_v16  ;;  %v7859_v33 = vmax.f32 %v6095_v17, 0.0  ;;  %v4459_v22 = vunpack.c.l.bf16 %v4625_v50  ;;  %8016 = vst [vmem:[#allocation64_spill] sm:$0xff] %v6112_v56 }
  0x7c   :  { %v684_v11 = vmul.f32 %v6042_v44, %v613_v58  ;;  %v612_v2 = vmax.f32 %v548_v26, 0.0  ;;  %v6106_v59 = vadd.f32 %v5962_v27, %v227_v3  ;;  %v225_v7 = vmul.f32 %v5970_v62, %v4452_v51 }
  0x7d   :  { %845 = vadd.xlane.f32.xlu1 %v844_v35  ;;  %v551_v40 = vadd.f32 %v8014_v32, %v7857_v21  ;;  %v8017_v3 = vunpack.c.h.bf16 %v6008_v10  ;;  %v228_v1 = vmul.f32 %v5970_v62, %v4459_v22  ;;  %v4455_v35 = vunpack.c.l.bf16 %v4624_v30 }
  0x7e   :  { %8015 = vst [vmem:[#allocation63_spill] sm:$0xff] %v6106_v59  ;;  %v853_v58 = vsel %vm696_vm0, %v684_v11, 0.0  ;;  %v683_v26 = vmul.f32 %v6042_v44, %v612_v2  ;;  %v7861_v51 = vmax.f32 %v6106_v59, 0.0  ;;  %v6123_v36 = vadd.f32 %v5962_v27, %v225_v7  ;;  %v4626_v11 = vld [vmem:[%s7714_s0 + $0xf0] sm:$0xff]  }
  0x7f   :  { %v615_v32 = vmax.f32 %v551_v40, 0.0  ;;  %854 = vadd.xlane.f32.xlu0 %v853_v58  ;;  %v550_v21 = vadd.f32 %v8017_v3, %v7859_v33  ;;  %v8019_v7 = vunpack.c.h.bf16 %v6082_v15  ;;  %v6138_v17 = vadd.f32 %v5962_v27, %v228_v1 }
  0x80   :  { %8018 = vst [vmem:[#allocation65_spill] sm:$0xff] %v6123_v36  ;;  %v850_v40 = vsel %vm696_vm0, %v683_v26, 0.0  ;;  %v7866_v22 = vmax.f32 %v6123_v36, 0.0  ;;  %v6143_v26 = vld [vmem:[%s7715_s1 + $0xf0] sm:$0xff]   ;;  %v226_v30 = vmul.f32 %v5970_v62, %v4455_v35  ;;  %v8022_v1 = vunpack.c.h.bf16 %v6052_v16 }
  0x81   :  { %v686_v2 = vmul.f32 %v6042_v44, %v615_v32  ;;  %851 = vadd.xlane.f32.xlu1 %v850_v40  ;;  %v614_v3 = vmax.f32 %v550_v21, 0.0  ;;  %v554_v33 = vadd.f32 %v8019_v7, %v7861_v51  ;;  %8020 = vst [vmem:[#allocation66_spill] sm:$0xff] %v6138_v17  ;;  %8021 = vst [vmem:[#allocation67_spill] sm:$0xff] %v6143_v26  ;;  %v4464_v40 = vunpack.c.h.bf16 %v4626_v11 }
  0x82   :  { %v552_v58 = vadd.f32 %v8022_v1, %v7866_v22  ;;  %v7869_v59 = vmax.f32 %v6138_v17, 0.0  ;;  %v6158_v35 = vadd.f32 %v5962_v27, %v226_v30  ;;  %v8024_v1 = vunpack.c.l.bf16 %v6112_v56 }
  0x83   :  { %v859_v32 = vsel %vm696_vm0, %v686_v2, 0.0  ;;  %v685_v7 = vmul.f32 %v6042_v44, %v614_v3  ;;  %v618_v51 = vmax.f32 %v554_v33, 0.0  ;;  %v4627_v2 = vld [vmem:[%s7714_s0 + $0xf8] sm:$0xff]   ;;  %v231_v21 = vmul.f32 %v5970_v62, %v4464_v40 }
  0x84   :  { %860 = vadd.xlane.f32.xlu0 %v859_v32  ;;  %8023 = vst [vmem:[#allocation68_spill] sm:$0xff] %v6158_v35  ;;  %v4460_v3 = vunpack.c.h.bf16 %v4625_v50  ;;  %v616_v16 = vmax.f32 %v552_v58, 0.0  ;;  %v555_v22 = vadd.f32 %v8024_v1, %v7869_v59  ;;  %v7871_v10 = vmax.f32 %v6158_v35, 0.0  ;;  %v6176_v50 = vld [vmem:[%s7715_s1 + $0xf8] sm:$0xff]  }
  0x85   :  { %v856_v33 = vsel %vm696_vm0, %v685_v7, 0.0  ;;  %v689_v36 = vmul.f32 %v6042_v44, %v618_v51  ;;  %v6170_v30 = vadd.f32 %v5962_v27, %v231_v21  ;;  %v4467_v32 = vunpack.c.l.bf16 %v4627_v2  ;;  %8026 = vst [vmem:[#allocation70_spill] sm:$0xff] %v6176_v50 }
  0x86   :  { %857 = vadd.xlane.f32.xlu1 %v856_v33  ;;  %v229_v40 = vmul.f32 %v5970_v62, %v4460_v3  ;;  %v687_v58 = vmul.f32 %v6042_v44, %v616_v16  ;;  %v619_v7 = vmax.f32 %v555_v22, 0.0  ;;  %v8027_v21 = vunpack.c.l.bf16 %v6082_v15 }
  0x87   :  { %8025 = vst [vmem:[#allocation69_spill] sm:$0xff] %v6170_v30  ;;  %v868_v51 = vsel %vm696_vm0, %v689_v36, 0.0  ;;  %v7873_v3 = vmax.f32 %v6170_v30, 0.0  ;;  %v232_v17 = vmul.f32 %v5970_v62, %v4467_v32  ;;  %v4463_v33 = vunpack.c.l.bf16 %v4626_v11 }
  0x88   :  { %869 = vadd.xlane.f32.xlu0 %v868_v51  ;;  %v553_v1 = vadd.f32 %v8027_v21, %v7871_v10  ;;  %v6187_v59 = vadd.f32 %v5962_v27, %v229_v40  ;;  %v862_v36 = vsel %vm696_vm0, %v687_v58, 0.0  ;;  %v690_v16 = vmul.f32 %v6042_v44, %v619_v7 }
  0x89   :  { %v8029_v21 = vunpack.c.h.bf16 %v6143_v26  ;;  %v6199_v40 = vadd.f32 %v5962_v27, %v232_v17  ;;  %v230_v58 = vmul.f32 %v5970_v62, %v4463_v33  ;;  %v4468_v7 = vunpack.c.h.bf16 %v4627_v2 }
  0x8a   :  { %8028 = vst [vmem:[#allocation71_spill] sm:$0xff] %v6187_v59  ;;  %863 = vadd.xlane.f32.xlu1 %v862_v36  ;;  %v617_v51 = vmax.f32 %v553_v1, 0.0  ;;  %v7874_v35 = vmax.f32 %v6187_v59, 0.0  ;;  %v871_v32 = vsel %vm696_vm0, %v690_v16, 0.0  ;;  %v8031_v1 = vunpack.c.h.bf16 %v6112_v56 }
  0x8b   :  { %v558_v10 = vadd.f32 %v8029_v21, %v7873_v3  ;;  %8030 = vst [vmem:[#allocation72_spill] sm:$0xff] %v6199_v40  ;;  %v7875_v21 = vmax.f32 %v6199_v40, 0.0  ;;  %v6210_v3 = vadd.f32 %v5962_v27, %v230_v58  ;;  %v7879_v17 = vunpack.c.l.bf16 %v6143_v26 }
  0x8c   :  { %872 = vadd.xlane.f32.xlu0 %v871_v32  ;;  %v688_v11 = vmul.f32 %v6042_v44, %v617_v51  ;;  %v556_v22 = vadd.f32 %v8031_v1, %v7874_v35  ;;  %v233_v16 = vmul.f32 %v5970_v62, %v4468_v7  ;;  %v5122_v1 = vmov 0  }
  0x8d   :  { %v622_v36 = vmax.f32 %v558_v10, 0.0  ;;  %8032 = vst [vmem:[#allocation73_spill] sm:$0xff] %v6210_v3  ;;  %v8033_v10 = vunpack.c.l.bf16 %v6176_v50  ;;  %4860 = vset.pattern.permute.xlu0 %v5122_v1  ;;  %4861 = vset.pattern.permute.xlu1 %v5122_v1  ;;  %v7876_v58 = vmax.f32 %v6210_v3, 0.0  ;;  %v7878_v62 = vunpack.c.h.bf16 %v6176_v50 }
  0x8e   :  { %v865_v2 = vsel %vm696_vm0, %v688_v11, 0.0  ;;  %v620_v51 = vmax.f32 %v556_v22, 0.0  ;;  %v6222_v35 = vadd.f32 %v5962_v27, %v233_v16 }
  0x8f   :  { %v693_v33 = vmul.f32 %v6042_v44, %v622_v36  ;;  %v559_v32 = vadd.f32 %v8033_v10, %v7875_v21  ;;  %866 = vadd.xlane.f32.xlu1 %v865_v2  ;;  %v557_v36 = vadd.f32 %v7879_v17, %v7876_v58 }
  0x90   :  { %8034 = vst [vmem:[#allocation74_spill] sm:$0xff] %v6222_v35  ;;  %v691_v22 = vmul.f32 %v6042_v44, %v620_v51  ;;  %v7877_v2 = vmax.f32 %v6222_v35, 0.0 }
  0x91   :  { %v880_v7 = vsel %vm696_vm0, %v693_v33, 0.0  ;;  %v623_v11 = vmax.f32 %v559_v32, 0.0  ;;  %v621_v16 = vmax.f32 %v557_v36, 0.0 }
  0x92   :  { %881 = vadd.xlane.f32.xlu0 %v880_v7  ;;  %v874_v10 = vsel %vm696_vm0, %v691_v22, 0.0  ;;  %v560_v33 = vadd.f32 %v7878_v62, %v7877_v2  ;;  %v6242_v22 = vld [vmem:[#allocation2] ss:$0 sm:$0xff] }
  0x93   :  { %v694_v27 = vmul.f32 %v6042_v44, %v623_v11  ;;  %875 = vadd.xlane.f32.xlu1 %v874_v10  ;;  %v692_v32 = vmul.f32 %v6042_v44, %v621_v16 }
  0x94   :  { %v624_v1 = vmax.f32 %v560_v33, 0.0 }
  0x95   :  { %v883_v51 = vsel %vm696_vm0, %v694_v27, 0.0  ;;  %v877_v7 = vsel %vm696_vm0, %v692_v32, 0.0 }
  0x96   :  { %884 = vadd.xlane.f32.xlu0 %v883_v51  ;;  %v695_v21 = vmul.f32 %v6042_v44, %v624_v1 }
  0x97   :  { %878 = vadd.xlane.f32.xlu1 %v877_v7 }
  0x98   :  { %v886_v11 = vsel %vm696_vm0, %v695_v21, 0.0 }
  0x9a   :  { %v699_v36 = vpop.xlane.xlu0 %698  ;;  %v705_v58 = vpop.xlane.xlu1 %704 }
  0x9b   :  { %v896_v10 = vadd.f32 %v6242_v22, %v699_v36  ;;  %v898_v2 = vadd.f32 %v6242_v22, %v705_v58  ;;  %887 = vadd.xlane.f32.xlu1 %v886_v11 }
  0x9d   :  { %v960_v27 = vsub.f32 0.0, %v896_v10  ;;  %v962_v62 = vsub.f32 0.0, %v898_v2 }
  0x9e   :  { %v702_v51 = vpop.xlane.xlu0 %701  ;;  %v708_v32 = vpop.xlane.xlu1 %707 }
  0x9f   :  { %v1024_v16 = vmul.f32 1.442695, %v960_v27  ;;  %v897_v33 = vadd.f32 %v6242_v22, %v702_v51  ;;  %v899_v1 = vadd.f32 %v6242_v22, %v708_v32  ;;  %v1028_v40 = vmul.f32 1.442695, %v962_v62 }
  0xa1   :  { %4862 = vpow2.f32 %v1024_v16  ;;  %v961_v44 = vsub.f32 0.0, %v897_v33  ;;  %v963_v11 = vsub.f32 0.0, %v899_v1 }
  0xa2   :  { %v711_v7 = vpop.xlane.xlu0 %710  ;;  %v714_v36 = vpop.xlane.xlu1 %713 }
  0xa3   :  { %v1026_v21 = vmul.f32 1.442695, %v961_v44  ;;  %v900_v17 = vadd.f32 %v6242_v22, %v711_v7  ;;  %v901_v58 = vadd.f32 %v6242_v22, %v714_v36  ;;  %v1030_v33 = vmul.f32 1.442695, %v963_v11 }
  0xa5   :  { %4864 = vpow2.f32 %v1026_v21  ;;  %v964_v10 = vsub.f32 0.0, %v900_v17  ;;  %v965_v27 = vsub.f32 0.0, %v901_v58 }
  0xa6   :  { %v717_v35 = vpop.xlane.xlu0 %716  ;;  %v720_v50 = vpop.xlane.xlu1 %719  ;;  %4866 = vpow2.f32 %v1028_v40 }
  0xa7   :  { %v1032_v51 = vmul.f32 1.442695, %v964_v10  ;;  %v1034_v2 = vmul.f32 1.442695, %v965_v27  ;;  %v903_v16 = vadd.f32 %v6242_v22, %v720_v50 }
  0xa9   :  { %4868 = vpow2.f32 %v1032_v51  ;;  %v967_v32 = vsub.f32 0.0, %v903_v16 }
  0xaa   :  { %4870 = vpow2.f32 %v1034_v2  ;;  %v723_v44 = vpop.xlane.xlu0 %722  ;;  %v726_v7 = vpop.xlane.xlu1 %725 }
  0xab   :  { %v904_v62 = vadd.f32 %v6242_v22, %v723_v44  ;;  %v1038_v36 = vmul.f32 1.442695, %v967_v32  ;;  %v905_v1 = vadd.f32 %v6242_v22, %v726_v7  ;;  %4872 = vpow2.f32 %v1030_v33 }
  0xac   :  { %v902_v33 = vadd.f32 %v6242_v22, %v717_v35 }
  0xad   :  { %v968_v17 = vsub.f32 0.0, %v904_v62  ;;  %4874 = vpow2.f32 %v1038_v36  ;;  %v969_v58 = vsub.f32 0.0, %v905_v1 }
  0xae   :  { %v4863_v21 = vpop.eup %4862  ;;  %v732_v27 = vpop.xlane.xlu1 %731 }
  0xaf   :  { %v1152_v40 = vadd.f32 1.0, %v4863_v21  ;;  %v1040_v10 = vmul.f32 1.442695, %v968_v17  ;;  %v1042_v50 = vmul.f32 1.442695, %v969_v58  ;;  %v907_v11 = vadd.f32 %v6242_v22, %v732_v27  ;;  %v729_v51 = vpop.xlane.xlu0 %728 }
  0xb1   :  { %4876 = vrcp.f32 %v1152_v40  ;;  %v971_v44 = vsub.f32 0.0, %v907_v11  ;;  %v966_v40 = vsub.f32 0.0, %v902_v33 }
  0xb2   :  { %v4865_v2 = vpop.eup %4864  ;;  %4878 = vpow2.f32 %v1040_v10  ;;  %v738_v32 = vpop.xlane.xlu1 %737 }
  0xb3   :  { %v1153_v16 = vadd.f32 1.0, %v4865_v2  ;;  %4880 = vpow2.f32 %v1042_v50  ;;  %v4867_v7 = vpop.eup %4866  ;;  %v6256_v62 = vpop.xlane.xlu0 %734  ;;  %v1046_v21 = vmul.f32 1.442695, %v971_v44  ;;  %v909_v58 = vadd.f32 %v6242_v22, %v738_v32 }
  0xb4   :  { %v1154_v10 = vadd.f32 1.0, %v4867_v7  ;;  %v1036_v30 = vmul.f32 1.442695, %v966_v40  ;;  %v908_v37 = vadd.f32 %v6242_v22, %v6256_v62 }
  0xb5   :  { %4882 = vrcp.f32 %v1153_v16  ;;  %v973_v11 = vsub.f32 0.0, %v909_v58 }
  0xb6   :  { %v4869_v36 = vpop.eup %4868  ;;  %v744_v3 = vpop.xlane.xlu1 %743 }
  0xb7   :  { %v4871_v1 = vpop.eup %4870  ;;  %v1156_v17 = vadd.f32 1.0, %v4869_v36  ;;  %v1050_v44 = vmul.f32 1.442695, %v973_v11  ;;  %v911_v32 = vadd.f32 %v6242_v22, %v744_v3  ;;  %v906_v3 = vadd.f32 %v6242_v22, %v729_v51 }
  0xb8   :  { %v1157_v27 = vadd.f32 1.0, %v4871_v1  ;;  %v4873_v2 = vpop.eup %4872 }
  0xb9   :  { %4884 = vrcp.f32 %v1156_v17  ;;  %v1155_v36 = vadd.f32 1.0, %v4873_v2  ;;  %v975_v40 = vsub.f32 0.0, %v911_v32 }
  0xba   :  { %4886 = vrcp.f32 %v1157_v27  ;;  %v4875_v50 = vpop.eup %4874  ;;  %v6259_v16 = vpop.xlane.xlu0 %740 }
  0xbb   :  { %4888 = vpow2.f32 %v1046_v21  ;;  %v1159_v35 = vadd.f32 1.0, %v4875_v50  ;;  %v750_v1 = vpop.xlane.xlu1 %749 }
  0xbc   :  { %4890 = vrcp.f32 %v1154_v10 }
  0xbd   :  { %4892 = vrcp.f32 %v1159_v35  ;;  %v913_v35 = vadd.f32 %v6242_v22, %v750_v1 }
  0xbe   :  { %v4877_v26 = vpop.eup %4876  ;;  %v6262_v33 = vpop.xlane.xlu0 %746  ;;  %4894 = vpow2.f32 %v1036_v30  ;;  %v1054_v30 = vmul.f32 1.442695, %v975_v40 }
  0xbf   :  { %1282 = vperm.xlu0 %4860, %v4877_v26   ;;  %v4879_v7 = vpop.eup %4878  ;;  %4896 = vrcp.f32 %v1155_v36  ;;  %v756_v2 = vpop.xlane.xlu1 %755  ;;  %v1696_v50 = vsub.f32 1.0, %v4877_v26  ;;  %v912_v39 = vadd.f32 %v6242_v22, %v6262_v33 }
  0xc0   :  { %v4881_v17 = vpop.eup %4880  ;;  %v1160_v58 = vadd.f32 1.0, %v4879_v7  ;;  %4898 = vpow2.f32 %v1050_v44 }
  0xc1   :  { %v1161_v27 = vadd.f32 1.0, %v4881_v17  ;;  %v970_v17 = vsub.f32 0.0, %v906_v3  ;;  %v915_v3 = vadd.f32 %v6242_v22, %v756_v2  ;;  %v976_v33 = vsub.f32 0.0, %v912_v39 }
  0xc2   :  { %v4883_v21 = vpop.eup %4882  ;;  %v6264_v10 = vpop.xlane.xlu0 %752  ;;  %4900 = vrcp.f32 %v1160_v58  ;;  %v977_v58 = vsub.f32 0.0, %v913_v35 }
  0xc3   :  { %1287 = vperm.xlu1 %4861, %v4883_v21   ;;  %4902 = vrcp.f32 %v1161_v27  ;;  %v762_v26 = vpop.xlane.xlu1 %761  ;;  %v1697_v7 = vsub.f32 1.0, %v4883_v21  ;;  %v1044_v15 = vmul.f32 1.442695, %v970_v17  ;;  %v972_v17 = vsub.f32 0.0, %v908_v37 }
  0xc4   :  { %4904 = vpow2.f32 %v1054_v30  ;;  %v1058_v53 = vmul.f32 1.442695, %v977_v58  ;;  %v2176_v30 = vld [vmem:[%s7720_s6] sm:$0xf]  ;;  %v910_v37 = vadd.f32 %v6242_v22, %v6259_v16 }
  0xc5   :  { %4858 = vmatprep.subr.msk.bf16.mxu1 %vm2274_vm1, %v2176_v30  ;;  %v2664_v62 = vsel %vm2274_vm1, %v2176_v30, 0  ;;  %v1048_v30 = vmul.f32 1.442695, %v972_v17 }
  0xc6   :  { %v6266_v11 = vpop.eup %4884  ;;  %v6273_v36 = vpop.xlane.xlu0 %758  ;;  %4792 = vmatpush3.bf16.msra.mxu1 %v2664_v62  ;;  %v974_v62 = vsub.f32 0.0, %v910_v37 }
  0xc7   :  { %v6270_v59 = vpop.eup %4886  ;;  %1762 = vperm.xlu1 %4861, %v1696_v50   ;;  %1302 = vperm.xlu0 %4860, %v6266_v11  }
  0xc8   :  { %v4889_v44 = vpop.eup %4888  ;;  %v1701_v32 = vsub.f32 1.0, %v6270_v59 }
  0xc9   :  { %v4891_v56 = vpop.eup %4890  ;;  %v1163_v51 = vadd.f32 1.0, %v4889_v44 }
  0xca   :  { %v6276_v1 = vpop.xlane.xlu0 %764  ;;  %v4893_v27 = vpop.eup %4892  ;;  %v1698_v47 = vsub.f32 1.0, %v4891_v56 }
  0xcb   :  { %1767 = vperm.xlu1 %4861, %v1697_v7   ;;  %1787 = vperm.xlu0 %4860, %v1701_v32   ;;  %v4895_v40 = vpop.eup %4894  ;;  %4906 = vrcp.f32 %v1163_v51  ;;  %v1703_v21 = vsub.f32 1.0, %v4893_v27  ;;  %v979_v51 = vsub.f32 0.0, %v915_v3 }
  0xcc   :  { %v6278_v50 = vpop.xlane.xlu1 %767  ;;  %v4897_v14 = vpop.eup %4896  ;;  %v1158_v7 = vadd.f32 1.0, %v4895_v40  ;;  %4908 = vpow2.f32 %v1044_v15  ;;  %v917_v40 = vadd.f32 %v6242_v22, %v762_v26 }
  0xcd   :  { %v4899_v44 = vpop.eup %4898  ;;  %4910 = vpow2.f32 %v1058_v53  ;;  %v1062_v53 = vmul.f32 1.442695, %v979_v51  ;;  %v1699_v16 = vsub.f32 1.0, %v4897_v14  ;;  %v1052_v51 = vmul.f32 1.442695, %v974_v62 }
  0xce   :  { %v6283_v35 = vpop.xlane.xlu0 %770  ;;  %v1165_v2 = vadd.f32 1.0, %v4899_v44  ;;  %4912 = vrcp.f32 %v1158_v7  ;;  %v981_v26 = vsub.f32 0.0, %v917_v40  ;;  %v919_v37 = vadd.f32 %v6242_v22, %v6278_v50 }
  0xcf   :  { %1292 = vperm.xlu1 %4861, %v4891_v56   ;;  %1317 = vperm.xlu0 %4860, %v4893_v27   ;;  %v6292_v58 = vpop.eup %4900  ;;  %v2177_v56 = vld [vmem:[%s7721_s7] sm:$0xf]  ;;  %v1700_v40 = vsub.f32 1.0, %v6266_v11  ;;  %v1056_v50 = vmul.f32 1.442695, %v976_v33 }
  0xd0   :  { %v6288_v32 = vpop.xlane.xlu1 %773  ;;  %v6296_v54 = vpop.eup %4902  ;;  %4914 = vrcp.f32 %v1165_v2  ;;  %4857 = vmatprep.subr.msk.bf16.mxu0 %vm2274_vm1, %v2177_v56 }
  0xd1   :  { %v1705_v15 = vsub.f32 1.0, %v6296_v54  ;;  %v4905_v3 = vpop.eup %4904  ;;  %4916 = vpow2.f32 %v1048_v30 }
  0xd2   :  { %v6294_v27 = vpop.xlane.xlu0 %776  ;;  %v1167_v7 = vadd.f32 1.0, %v4905_v3  ;;  %4918 = vpow2.f32 %v1062_v53 }
  0xd3   :  { %1297 = vperm.xlu1 %4861, %v4897_v14   ;;  %1797 = vperm.xlu0 %4860, %v1703_v21   ;;  %v1066_v14 = vmul.f32 1.442695, %v981_v26  ;;  %v922_v43 = vadd.f32 %v6242_v22, %v6294_v27 }
  0xd4   :  { %v6298_v12 = vpop.xlane.xlu1 %779  ;;  %4920 = vrcp.f32 %v1167_v7 }
  0xd5   :  { %4922 = vpow2.f32 %v1052_v51 }
  0xd6   :  { %v6305_v21 = vpop.xlane.xlu0 %782  ;;  %4924 = vpow2.f32 %v1066_v14 }
  0xd7   :  { %1772 = vperm.xlu1 %4861, %v1698_v47   ;;  %1322 = vperm.xlu0 %4860, %v6292_v58   ;;  %v2276_v47 = vsel %vm2274_vm1, %v2177_v56, 0 }
  0xd8   :  { %v6310_v44 = vpop.xlane.xlu1 %785  ;;  %4726 = vmatpush3.bf16.msra.mxu0 %v2276_v47  ;;  %v4907_v2 = vpop.eup %4906 }
  0xd9   :  { %v4909_v45 = vpop.eup %4908  ;;  %v1707_v30 = vsub.f32 1.0, %v4907_v2 }
  0xda   :  { %v6314_v17 = vpop.xlane.xlu0 %788  ;;  %v1162_v56 = vadd.f32 1.0, %v4909_v45  ;;  %v914_v45 = vadd.f32 %v6242_v22, %v6264_v10 }
  0xdb   :  { %1777 = vperm.xlu1 %4861, %v1699_v16   ;;  %1807 = vperm.xlu0 %4860, %v1705_v15   ;;  %v4911_v15 = vpop.eup %4910 }
  0xdc   :  { %v4913_v47 = vpop.eup %4912  ;;  %v1169_v16 = vadd.f32 1.0, %v4911_v15  ;;  %4926 = vrcp.f32 %v1162_v56  ;;  %v978_v33 = vsub.f32 0.0, %v914_v45 }
  0xdd   :  { %v4915_v7 = vpop.eup %4914 }
  0xde   :  { %v6318_v8 = vpop.xlane.xlu1 %791  ;;  %v6323_v53 = vpop.xlane.xlu0 %794  ;;  %4928 = vrcp.f32 %v1169_v16  ;;  %v1709_v11 = vsub.f32 1.0, %v4915_v7 }
  0xdf   :  { %1307 = vperm.xlu1 %4861, %v6270_v59   ;;  %1337 = vperm.xlu0 %4860, %v4907_v2   ;;  %v983_v59 = vsub.f32 0.0, %v919_v37  ;;  %v4917_v2 = vpop.eup %4916  ;;  %v921_v37 = vadd.f32 %v6242_v22, %v6288_v32  ;;  %4930 = vpow2.f32 %v1056_v50  ;;  %v916_v32 = vadd.f32 %v6242_v22, %v6273_v36 }
  0xe0   :  { %v4919_v51 = vpop.eup %4918  ;;  %v1164_v15 = vadd.f32 1.0, %v4917_v2 }
  0xe1   :  { %v1070_v39 = vmul.f32 1.442695, %v983_v59  ;;  %v1171_v56 = vadd.f32 1.0, %v4919_v51  ;;  %v4921_v10 = vpop.eup %4920  ;;  %v985_v16 = vsub.f32 0.0, %v921_v37  ;;  %v1704_v51 = vsub.f32 1.0, %v6292_v58 }
  0xe2   :  { %v6326_v3 = vpop.xlane.xlu1 %797  ;;  %v6328_v62 = vpop.xlane.xlu0 %800  ;;  %v1711_v50 = vsub.f32 1.0, %v4921_v10 }
  0xe3   :  { %1782 = vperm.xlu1 %4861, %v1700_v40   ;;  %1817 = vperm.xlu0 %4860, %v1707_v30   ;;  %v1702_v30 = vsub.f32 1.0, %v4913_v47  ;;  %4932 = vpow2.f32 %v1070_v39  ;;  %v1074_v39 = vmul.f32 1.442695, %v985_v16 }
  0xe4   :  { %4934 = vrcp.f32 %v1164_v15 }
  0xe5   :  { %4936 = vrcp.f32 %v1171_v56  ;;  %v980_v56 = vsub.f32 0.0, %v916_v32 }
  0xe6   :  { %v6330_v26 = vpop.xlane.xlu1 %803  ;;  %v6334_v14 = vpop.xlane.xlu0 %806 }
  0xe7   :  { %1312 = vperm.xlu1 %4861, %v4913_v47   ;;  %1347 = vperm.xlu0 %4860, %v4915_v7   ;;  %v4923_v7 = vpop.eup %4922  ;;  %v1060_v47 = vmul.f32 1.442695, %v978_v33 }
  0xe8   :  { %v4925_v2 = vpop.eup %4924 }
  0xe9   :  { %v4927_v37 = vpop.eup %4926  ;;  %4938 = vpow2.f32 %v1060_v47  ;;  %v1173_v15 = vadd.f32 1.0, %v4925_v2  ;;  %v918_v47 = vadd.f32 %v6242_v22, %v6276_v1 }
  0xea   :  { %v6340_v59 = vpop.xlane.xlu0 %812  ;;  %4940 = vpow2.f32 %v1074_v39  ;;  %v1706_v2 = vsub.f32 1.0, %v4927_v37 }
  0xeb   :  { %v6338_v40 = vpop.xlane.xlu1 %809  ;;  %1792 = vperm.xlu1 %4861, %v1702_v30   ;;  %1827 = vperm.xlu0 %4860, %v1709_v11   ;;  %v923_v11 = vadd.f32 %v6242_v22, %v6298_v12  ;;  %v1166_v30 = vadd.f32 1.0, %v4923_v7  ;;  %v4929_v36 = vpop.eup %4928  ;;  %v1064_v12 = vmul.f32 1.442695, %v980_v56  ;;  %v982_v56 = vsub.f32 0.0, %v918_v47 }
  0xec   :  { %v4931_v16 = vpop.eup %4930  ;;  %v1713_v58 = vsub.f32 1.0, %v4929_v36 }
  0xed   :  { %v987_v33 = vsub.f32 0.0, %v923_v11  ;;  %4942 = vrcp.f32 %v1166_v30  ;;  %v1168_v39 = vadd.f32 1.0, %v4931_v16 }
  0xee   :  { %4944 = vrcp.f32 %v1173_v15 }
  0xef   :  { %1327 = vperm.xlu1 %4861, %v6296_v54   ;;  %1357 = vperm.xlu0 %4860, %v4921_v10   ;;  %v6345_v45 = vpop.xlane.xlu1 %815  ;;  %v6350_v54 = vpop.xlane.xlu0 %818  ;;  %v1078_v32 = vmul.f32 1.442695, %v987_v33  ;;  %4946 = vpow2.f32 %v1064_v12  ;;  %v920_v33 = vadd.f32 %v6242_v22, %v6283_v35 }
  0xf0   :  { %v4933_v7 = vpop.eup %4932 }
  0xf1   :  { %v1175_v30 = vadd.f32 1.0, %v4933_v7  ;;  %4948 = vpow2.f32 %v1078_v32 }
  0xf2   :  { %4950 = vrcp.f32 %v1168_v39 }
  0xf3   :  { %1837 = vperm.xlu0 %4860, %v1711_v50   ;;  %1802 = vperm.xlu1 %4861, %v1704_v51   ;;  %v925_v50 = vadd.f32 %v6242_v22, %v6310_v44  ;;  %v6358_v11 = vpop.xlane.xlu0 %824  ;;  %v4935_v51 = vpop.eup %4934  ;;  %4952 = vrcp.f32 %v1175_v30  ;;  %v984_v30 = vsub.f32 0.0, %v920_v33 }
  0xf4   :  { %v6352_v10 = vpop.xlane.xlu1 %821  ;;  %v4937_v15 = vpop.eup %4936  ;;  %v1708_v7 = vsub.f32 1.0, %v4935_v51 }
  0xf5   :  { %v989_v0 = vsub.f32 0.0, %v925_v50  ;;  %v1715_v1 = vsub.f32 1.0, %v4937_v15 }
  0xf6   :  { %v4939_v44 = vpop.eup %4938 }
  0xf7   :  { %1367 = vperm.xlu0 %4860, %v4929_v36   ;;  %1332 = vperm.xlu1 %4861, %v4927_v37   ;;  %v1068_v37 = vmul.f32 1.442695, %v982_v56  ;;  %v6364_v16 = vpop.xlane.xlu0 %830  ;;  %v1082_v12 = vmul.f32 1.442695, %v989_v0  ;;  %v4941_v47 = vpop.eup %4940 }
  0xf8   :  { %v6360_v36 = vpop.xlane.xlu1 %827 }
  0xf9   :  { %4954 = vpow2.f32 %v1068_v37  ;;  %v929_v37 = vadd.f32 %v6242_v22, %v6326_v3 }
  0xfa   :  { %v4943_v50 = vpop.eup %4942  ;;  %4956 = vpow2.f32 %v1082_v12 }
  0xfb   :  { %1847 = vperm.xlu0 %4860, %v1713_v58   ;;  %1812 = vperm.xlu1 %4861, %v1706_v2   ;;  %v927_v58 = vadd.f32 %v6242_v22, %v6318_v8  ;;  %v1170_v2 = vadd.f32 1.0, %v4939_v44  ;;  %v4945_v39 = vpop.eup %4944  ;;  %v6370_v56 = vpop.xlane.xlu0 %836  ;;  %v1710_v33 = vsub.f32 1.0, %v4943_v50  ;;  %v993_v27 = vsub.f32 0.0, %v929_v37 }
  0xfc   :  { %v6368_v32 = vpop.xlane.xlu1 %833  ;;  %v1717_v8 = vsub.f32 1.0, %v4945_v39  ;;  %v4947_v0 = vpop.eup %4946 }
  0xfd   :  { %v991_v35 = vsub.f32 0.0, %v927_v58  ;;  %4958 = vrcp.f32 %v1170_v2  ;;  %v986_v2 = vsub.f32 0.0, %v922_v43  ;;  %v1090_v43 = vmul.f32 1.442695, %v993_v27 }
  0xfe   :  { %v4949_v12 = vpop.eup %4948 }
  0xff   :  { %1377 = vperm.xlu0 %4860, %v4937_v15   ;;  %1342 = vperm.xlu1 %4861, %v4935_v51   ;;  %v1177_v15 = vadd.f32 1.0, %v4941_v47  ;;  %v1072_v51 = vmul.f32 1.442695, %v984_v30  ;;  %v4951_v58 = vpop.eup %4950  ;;  %v1179_v30 = vadd.f32 1.0, %v4949_v12  ;;  %v1076_v3 = vmul.f32 1.442695, %v986_v2 }
 0x100   :  { %v4953_v47 = vpop.eup %4952 }
 0x101   :  { %4960 = vrcp.f32 %v1177_v15  ;;  %v931_v15 = vadd.f32 %v6242_v22, %v6330_v26 }
 0x102   :  { %v6374_v44 = vpop.xlane.xlu1 %839  ;;  %4962 = vpow2.f32 %v1072_v51 }
 0x103   :  { %1857 = vperm.xlu0 %4860, %v1715_v1   ;;  %1822 = vperm.xlu1 %4861, %v1708_v7   ;;  %v1086_v1 = vmul.f32 1.442695, %v991_v35  ;;  %v1172_v7 = vadd.f32 1.0, %v4947_v0  ;;  %v1712_v0 = vsub.f32 1.0, %v4951_v58 }
 0x105   :  { %4964 = vpow2.f32 %v1086_v1 }
 0x106   :  { %v6380_v31 = vpop.xlane.xlu1 %845  ;;  %4966 = vrcp.f32 %v1172_v7  ;;  %v4955_v35 = vpop.eup %4954  ;;  %v995_v7 = vsub.f32 0.0, %v931_v15 }
 0x107   :  { %1387 = vperm.xlu0 %4860, %v4945_v39   ;;  %1352 = vperm.xlu1 %4861, %v4943_v50   ;;  %v6378_v39 = vpop.xlane.xlu0 %842  ;;  %v924_v50 = vadd.f32 %v6242_v22, %v6305_v21  ;;  %4968 = vrcp.f32 %v1179_v30  ;;  %v4957_v51 = vpop.eup %4956 }
 0x108   :  { %4970 = vpow2.f32 %v1076_v3  ;;  %v1181_v21 = vadd.f32 1.0, %v4957_v51  ;;  %v1094_v30 = vmul.f32 1.442695, %v995_v7  ;;  %v933_v3 = vadd.f32 %v6242_v22, %v6338_v40 }
 0x109   :  { %v988_v12 = vsub.f32 0.0, %v924_v50  ;;  %4972 = vpow2.f32 %v1090_v43 }
 0x10a   :  { %v4959_v37 = vpop.eup %4958  ;;  %v6388_v2 = vpop.xlane.xlu1 %851 }
 0x10b   :  { %1867 = vperm.xlu0 %4860, %v1717_v8   ;;  %1832 = vperm.xlu1 %4861, %v1710_v33   ;;  %v1719_v8 = vsub.f32 1.0, %v4953_v47  ;;  %v6386_v1 = vpop.xlane.xlu0 %848  ;;  %v1174_v33 = vadd.f32 1.0, %v4955_v35  ;;  %v1714_v15 = vsub.f32 1.0, %v4959_v37 }
 0x10d   :  { %4974 = vrcp.f32 %v1174_v33 }
 0x10e   :  { %v4961_v26 = vpop.eup %4960  ;;  %4976 = vrcp.f32 %v1181_v21 }
 0x10f   :  { %1397 = vperm.xlu0 %4860, %v4953_v47   ;;  %1362 = vperm.xlu1 %4861, %v4951_v58   ;;  %v1080_v47 = vmul.f32 1.442695, %v988_v12  ;;  %v926_v58 = vadd.f32 %v6242_v22, %v6314_v17  ;;  %v6392_v27 = vpop.xlane.xlu0 %854  ;;  %v1721_v50 = vsub.f32 1.0, %v4961_v26  ;;  %v6396_v43 = vpop.xlane.xlu1 %857  ;;  %v997_v12 = vsub.f32 0.0, %v933_v3 }
 0x111   :  { %4978 = vpow2.f32 %v1080_v47  ;;  %v990_v33 = vsub.f32 0.0, %v926_v58 }
 0x112   :  { %4980 = vpow2.f32 %v1094_v30  ;;  %v935_v30 = vadd.f32 %v6242_v22, %v6345_v45  ;;  %v930_v45 = vadd.f32 %v6242_v22, %v6328_v62 }
 0x113   :  { %1877 = vperm.xlu0 %4860, %v1719_v8   ;;  %1842 = vperm.xlu1 %4861, %v1712_v0   ;;  %v4963_v8 = vpop.eup %4962  ;;  %v6398_v20 = vpop.xlane.xlu0 %860  ;;  %v1084_v40 = vmul.f32 1.442695, %v990_v33 }
 0x114   :  { %v4965_v35 = vpop.eup %4964  ;;  %v1176_v51 = vadd.f32 1.0, %v4963_v8  ;;  %v6402_v21 = vpop.xlane.xlu1 %863  ;;  %v1098_v8 = vmul.f32 1.442695, %v997_v12  ;;  %v999_v57 = vsub.f32 0.0, %v935_v30 }
 0x115   :  { %v4967_v0 = vpop.eup %4966  ;;  %v1183_v17 = vadd.f32 1.0, %v4965_v35 }
 0x116   :  { %v4969_v7 = vpop.eup %4968  ;;  %4982 = vrcp.f32 %v1176_v51  ;;  %v1716_v58 = vsub.f32 1.0, %v4967_v0 }
 0x117   :  { %1407 = vperm.xlu0 %4860, %v4961_v26   ;;  %1372 = vperm.xlu1 %4861, %v4959_v37   ;;  %v928_v37 = vadd.f32 %v6242_v22, %v6323_v53  ;;  %v4971_v26 = vpop.eup %4970  ;;  %4984 = vrcp.f32 %v1183_v17  ;;  %v1723_v47 = vsub.f32 1.0, %v4969_v7 }
 0x118   :  { %v1178_v3 = vadd.f32 1.0, %v4971_v26  ;;  %4986 = vpow2.f32 %v1084_v40  ;;  %v6408_v17 = vpop.xlane.xlu1 %866 }
 0x119   :  { %v992_v51 = vsub.f32 0.0, %v928_v37  ;;  %4988 = vpow2.f32 %v1098_v8  ;;  %v937_v37 = vadd.f32 %v6242_v22, %v6352_v10 }
 0x11a   :  { %4990 = vrcp.f32 %v1178_v3 }
 0x11b   :  { %1887 = vperm.xlu0 %4860, %v1721_v50   ;;  %1852 = vperm.xlu1 %4861, %v1714_v15   ;;  %v4973_v50 = vpop.eup %4972  ;;  %v6406_v15 = vpop.xlane.xlu0 %869  ;;  %v1088_v12 = vmul.f32 1.442695, %v992_v51 }
 0x11c   :  { %v4975_v35 = vpop.eup %4974  ;;  %v1185_v53 = vadd.f32 1.0, %v4973_v50  ;;  %v994_v50 = vsub.f32 0.0, %v930_v45  ;;  %v6416_v30 = vpop.xlane.xlu1 %875 }
 0x11d   :  { %v4977_v33 = vpop.eup %4976  ;;  %v1718_v40 = vsub.f32 1.0, %v4975_v35 }
 0x11e   :  { %4992 = vrcp.f32 %v1185_v53  ;;  %v1001_v53 = vsub.f32 0.0, %v937_v37 }
 0x11f   :  { %1417 = vperm.xlu0 %4860, %v4969_v7   ;;  %1382 = vperm.xlu1 %4861, %v4967_v0   ;;  %v4979_v0 = vpop.eup %4978  ;;  %v1725_v7 = vsub.f32 1.0, %v4977_v33  ;;  %v6414_v8 = vpop.xlane.xlu0 %872  ;;  %4994 = vpow2.f32 %v1088_v12  ;;  %v939_v12 = vadd.f32 %v6242_v22, %v6360_v36  ;;  %v934_v36 = vadd.f32 %v6242_v22, %v6340_v59 }
 0x120   :  { %v4981_v26 = vpop.eup %4980  ;;  %8035 = vst [vmem:[#allocation75_spill] sm:$0xff] %v6414_v8 }
 0x121   :  { %v1187_v62 = vadd.f32 1.0, %v4981_v26  ;;  %v6424_v26 = vpop.xlane.xlu1 %878  ;;  %v1003_v8 = vsub.f32 0.0, %v939_v12 }
 0x122   :  { %8036 = vst [vmem:[#allocation76_spill] sm:$0xff] %v6424_v26 }
 0x123   :  { %1897 = vperm.xlu0 %4860, %v1723_v47   ;;  %1862 = vperm.xlu1 %4861, %v1716_v58   ;;  %v1102_v47 = vmul.f32 1.442695, %v999_v57  ;;  %v1180_v58 = vadd.f32 1.0, %v4979_v0  ;;  %v4983_v3 = vpop.eup %4982  ;;  %v1092_v57 = vmul.f32 1.442695, %v994_v50 }
 0x124   :  { %v4985_v51 = vpop.eup %4984  ;;  %v1720_v0 = vsub.f32 1.0, %v4983_v3 }
 0x125   :  { %4996 = vpow2.f32 %v1102_v47  ;;  %v4987_v10 = vpop.eup %4986  ;;  %v1727_v45 = vsub.f32 1.0, %v4985_v51 }
 0x126   :  { %4998 = vrcp.f32 %v1180_v58  ;;  %v1182_v47 = vadd.f32 1.0, %v4987_v10 }
 0x127   :  { %1427 = vperm.xlu0 %4860, %v4977_v33   ;;  %1392 = vperm.xlu1 %4861, %v4975_v35   ;;  %v6418_v35 = vpop.xlane.xlu0 %881  ;;  %5000 = vrcp.f32 %v1187_v62  ;;  %v932_v33 = vadd.f32 %v6242_v22, %v6334_v14 }
 0x128   :  { %5002 = vpow2.f32 %v1092_v57 }
 0x129   :  { %v996_v58 = vsub.f32 0.0, %v932_v33  ;;  %v1110_v33 = vmul.f32 1.442695, %v1003_v8  ;;  %v8039_v8 = vunpack.c.h.bf16 %v5194_v4 }
 0x12b   :  { %1907 = vperm.xlu0 %4860, %v1725_v7   ;;  %1872 = vperm.xlu1 %4861, %v1718_v40   ;;  %v4989_v7 = vpop.eup %4988  ;;  %v1106_v40 = vmul.f32 1.442695, %v1001_v53  ;;  %v6426_v14 = vpop.xlane.xlu0 %884 }
 0x12c   :  { %v4991_v37 = vpop.eup %4990  ;;  %v1189_v50 = vadd.f32 1.0, %v4989_v7  ;;  %8037 = vst [vmem:[#allocation77_spill] sm:$0xff] %v6426_v14  ;;  %v998_v7 = vsub.f32 0.0, %v934_v36  ;;  %v936_v36 = vadd.f32 %v6242_v22, %v6350_v54 }
 0x12d   :  { %v4993_v62 = vpop.eup %4992  ;;  %5004 = vpow2.f32 %v1106_v40  ;;  %v1722_v53 = vsub.f32 1.0, %v4991_v37 }
 0x12e   :  { %5006 = vrcp.f32 %v1182_v47  ;;  %v1729_v10 = vsub.f32 1.0, %v4993_v62  ;;  %v4995_v57 = vpop.eup %4994 }
 0x12f   :  { %1437 = vperm.xlu0 %4860, %v4985_v51   ;;  %1402 = vperm.xlu1 %4861, %v4983_v3   ;;  %v6430_v3 = vpop.xlane.xlu1 %887  ;;  %v1096_v51 = vmul.f32 1.442695, %v996_v58  ;;  %5008 = vrcp.f32 %v1189_v50  ;;  %v1184_v47 = vadd.f32 1.0, %v4995_v57 }
 0x131   :  { %5010 = vpow2.f32 %v1096_v51 }
 0x132   :  { %5012 = vpow2.f32 %v1110_v33 }
 0x133   :  { %1917 = vperm.xlu0 %4860, %v1727_v45   ;;  %1882 = vperm.xlu1 %4861, %v1720_v0   ;;  %v941_v45 = vadd.f32 %v6242_v22, %v6368_v32  ;;  %v4997_v0 = vpop.eup %4996  ;;  %v1100_v32 = vmul.f32 1.442695, %v998_v7  ;;  %5014 = vrcp.f32 %v1184_v47  ;;  %v1000_v7 = vsub.f32 0.0, %v936_v36 }
 0x134   :  { %v4999_v12 = vpop.eup %4998  ;;  %v1191_v14 = vadd.f32 1.0, %v4997_v0 }
 0x135   :  { %v5001_v59 = vpop.eup %5000  ;;  %v1005_v58 = vsub.f32 0.0, %v941_v45  ;;  %v943_v45 = vadd.f32 %v6242_v22, %v6374_v44  ;;  %v8040_v22 = vmax.f32 %v5230_v24, 0.0 }
 0x136   :  { %v1731_v51 = vsub.f32 1.0, %v5001_v59  ;;  %v5003_v57 = vpop.eup %5002  ;;  %5016 = vrcp.f32 %v1191_v14 }
 0x137   :  { %1447 = vperm.xlu0 %4860, %v4993_v62   ;;  %1412 = vperm.xlu1 %4861, %v4991_v37   ;;  %v8038_v37 = vunpack.c.l.bf16 %v5194_v4  ;;  %v1114_v33 = vmul.f32 1.442695, %v1005_v58  ;;  %v1186_v47 = vadd.f32 1.0, %v5003_v57  ;;  %5018 = vpow2.f32 %v1100_v32 }
 0x138   :  { %v1007_v14 = vsub.f32 0.0, %v943_v45 }
 0x139   :  { %5020 = vpow2.f32 %v1114_v33 }
 0x13a   :  { %v1283_v40 = vpop.permute.xlu0 %1282  ;;  %v5005_v4 = vpop.eup %5004  ;;  %5022 = vrcp.f32 %v1186_v47 }
 0x13b   :  { %1892 = vperm.xlu1 %4861, %v1722_v53   ;;  %1927 = vperm.xlu0 %4860, %v1729_v10   ;;  %v1600_v62 = vmul.f32 %v8038_v37, %v1283_v40  ;;  %v1724_v53 = vsub.f32 1.0, %v4999_v12  ;;  %v5007_v54 = vpop.eup %5006 }
 0x13e   :  { %v1288_v50 = vpop.permute.xlu1 %1287 }
 0x13f   :  { %v1601_v26 = vmul.f32 %v8039_v8, %v1288_v50  ;;  %1422 = vperm.xlu1 %4861, %v4999_v12   ;;  %1457 = vperm.xlu0 %4860, %v5001_v59   ;;  %v5009_v12 = vpop.eup %5008  ;;  %v8041_v50 = vmax.f32 %v5233_v25, 0.0  ;;  %v6451_v8 = vld [vmem:[#allocation2] ss:$0 sm:$0xff] }
 0x140   :  { %v938_v32 = vadd.f32 %v6451_v8, %v6358_v11  ;;  %v945_v24 = vadd.f32 %v6451_v8, %v6380_v31  ;;  %v1733_v33 = vsub.f32 1.0, %v5009_v12 }
 0x141   :  { %v1664_v10 = vpack.c.bf16 %v1601_v26, %v1600_v62  ;;  %v1193_v26 = vadd.f32 1.0, %v5005_v4  ;;  %v1104_v62 = vmul.f32 1.442695, %v1000_v7 }
 0x142   :  { %v1763_v0 = vpop.permute.xlu1 %1762  ;;  %v6442_v40 = vpop.permute.xlu0 %1302  ;;  %v1002_v11 = vsub.f32 0.0, %v938_v32 }
 0x143   :  { %1902 = vperm.xlu1 %4861, %v1724_v53   ;;  %1937 = vperm.xlu0 %4860, %v1731_v51   ;;  %v2080_v44 = vmul.f32 %v1763_v0, %v8040_v22  ;;  %v1726_v53 = vsub.f32 1.0, %v5007_v54  ;;  %v5011_v51 = vpop.eup %5010  ;;  %5024 = vrcp.f32 %v1193_v26 }
 0x144   :  { %4793 = vmatprep.mubr.msk.bf16.mxu1 %vm696_vm0, %v1664_v10  ;;  %v1118_v10 = vmul.f32 1.442695, %v1007_v14  ;;  %v5013_v45 = vpop.eup %5012  ;;  %v1188_v0 = vadd.f32 1.0, %v5011_v51  ;;  %5026 = vpow2.f32 %v1104_v62  ;;  %v8042_v14 = vunpack.c.l.bf16 %v5203_v9 }
 0x145   :  { %v5015_v4 = vpop.eup %5014  ;;  %v1195_v7 = vadd.f32 1.0, %v5013_v45 }
 0x146   :  { %v1768_v59 = vpop.permute.xlu1 %1767  ;;  %v6445_v58 = vpop.permute.xlu0 %1787  ;;  %5028 = vpow2.f32 %v1118_v10  ;;  %v1728_v62 = vsub.f32 1.0, %v5015_v4 }
 0x147   :  { %v2081_v37 = vmul.f32 %v1768_v59, %v8041_v50  ;;  %1432 = vperm.xlu1 %4861, %v5007_v54   ;;  %1467 = vperm.xlu0 %4860, %v5009_v12   ;;  %v1009_v54 = vsub.f32 0.0, %v945_v24  ;;  %v5017_v31 = vpop.eup %5016  ;;  %v8043_v12 = vunpack.c.h.bf16 %v5203_v9  ;;  %5030 = vrcp.f32 %v1188_v0 }
 0x148   :  { %v1108_v50 = vmul.f32 1.442695, %v1002_v11  ;;  %v5019_v32 = vpop.eup %5018  ;;  %5032 = vrcp.f32 %v1195_v7  ;;  %v1735_v9 = vsub.f32 1.0, %v5017_v31  ;;  %v8044_v7 = vmax.f32 %v5237_v28, 0.0 }
 0x149   :  { %v2144_v36 = vpack.c.bf16 %v2081_v37, %v2080_v44  ;;  %v940_v44 = vadd.f32 %v6451_v8, %v6364_v16  ;;  %v5021_v24 = vpop.eup %5020  ;;  %v1190_v16 = vadd.f32 1.0, %v5019_v32 }
 0x14a   :  { %v1293_v57 = vpop.permute.xlu1 %1292  ;;  %v6457_v25 = vpop.permute.xlu0 %1317  ;;  %5034 = vpow2.f32 %v1108_v50  ;;  %v1197_v45 = vadd.f32 1.0, %v5021_v24 }
 0x14b   :  { %4727 = vmatprep.mubr.msk.bf16.mxu0 %vm696_vm0, %v2144_v36  ;;  %1912 = vperm.xlu1 %4861, %v1726_v53   ;;  %v1602_v59 = vmul.f32 %v8042_v14, %v1293_v57  ;;  %v1122_v36 = vmul.f32 1.442695, %v1009_v54  ;;  %v947_v53 = vadd.f32 %v6451_v8, %v6388_v2  ;;  %v1004_v57 = vsub.f32 0.0, %v940_v44 }
 0x14c   :  { %1947 = vperm.xlu0 %4860, %v1733_v33   ;;  %v5023_v33 = vpop.eup %5022  ;;  %v942_v14 = vadd.f32 %v6451_v8, %v6370_v56 }
 0x14d   :  { %5036 = vpow2.f32 %v1122_v36  ;;  %v1011_v0 = vsub.f32 0.0, %v947_v53  ;;  %v8046_v36 = vunpack.c.l.bf16 %v5212_v13  ;;  %v8047_v53 = vunpack.c.h.bf16 %v5212_v13 }
 0x14e   :  { %v1298_v47 = vpop.permute.xlu1 %1297  ;;  %v6460_v26 = vpop.permute.xlu0 %1797  ;;  %5038 = vrcp.f32 %v1190_v16 }
 0x14f   :  { %v1603_v22 = vmul.f32 %v8043_v12, %v1298_v47  ;;  %1442 = vperm.xlu1 %4861, %v5015_v4   ;;  %v8045_v47 = vmax.f32 %v5240_v29, 0.0  ;;  %5040 = vrcp.f32 %v1197_v45  ;;  %v1126_v50 = vmul.f32 1.442695, %v1011_v0 }
 0x150   :  { %1477 = vperm.xlu0 %4860, %v5017_v31   ;;  %v5025_v2 = vpop.eup %5024  ;;  %v1604_v56 = vmul.f32 %v8046_v36, %v6442_v40  ;;  %v8048_v40 = vmax.f32 %v5262_v42, 0.0  ;;  %v951_v42 = vadd.f32 %v6451_v8, %v6402_v21 }
 0x151   :  { %v1665_v37 = vpack.c.bf16 %v1603_v22, %v1602_v59  ;;  %v1112_v59 = vmul.f32 1.442695, %v1004_v57  ;;  %v1730_v22 = vsub.f32 1.0, %v5023_v33  ;;  %v5027_v44 = vpop.eup %5026  ;;  %v1737_v29 = vsub.f32 1.0, %v5025_v2 }
 0x152   :  { %v1773_v51 = vpop.permute.xlu1 %1772  ;;  %v6470_v10 = vpop.permute.xlu0 %1322  ;;  %v1192_v24 = vadd.f32 1.0, %v5027_v44  ;;  %v2085_v13 = vmul.f32 %v6445_v58, %v8048_v40 }
 0x153   :  { %1922 = vperm.xlu1 %4861, %v1728_v62   ;;  %4794 = vmatmul.mubr.msk.bf16.vlgmr.msra.gmra.mxu1 %vm696_vm0, %v1665_v37  ;;  %v2082_v54 = vmul.f32 %v1773_v51, %v8044_v7  ;;  %v949_v37 = vadd.f32 %v6451_v8, %v6396_v43  ;;  %v5029_v32 = vpop.eup %5028  ;;  %5042 = vpow2.f32 %v1112_v59 }
 0x154   :  { %1957 = vperm.xlu0 %4860, %v1735_v9   ;;  %v1006_v9 = vsub.f32 0.0, %v942_v14  ;;  %v5031_v16 = vpop.eup %5030  ;;  %v1199_v57 = vadd.f32 1.0, %v5029_v32  ;;  %5044 = vpow2.f32 %v1126_v50  ;;  %v8050_v50 = vunpack.c.h.bf16 %v5227_v23 }
 0x155   :  { %5046 = vrcp.f32 %v1192_v24  ;;  %v1732_v14 = vsub.f32 1.0, %v5031_v16 }
 0x156   :  { %v1778_v11 = vpop.permute.xlu1 %1777  ;;  %v6473_v4 = vpop.permute.xlu0 %1807  ;;  %5048 = vrcp.f32 %v1199_v57  ;;  %v946_v57 = vadd.f32 %v6451_v8, %v6386_v1 }
 0x157   :  { %v2083_v31 = vmul.f32 %v1778_v11, %v8045_v47  ;;  %1452 = vperm.xlu1 %4861, %v5023_v33   ;;  %v1013_v33 = vsub.f32 0.0, %v949_v37  ;;  %v5033_v11 = vpop.eup %5032  ;;  %v944_v47 = vadd.f32 %v6451_v8, %v6378_v39  ;;  %v1607_v37 = vmul.f32 %v8050_v50, %v6457_v25 }
 0x158   :  { %1487 = vperm.xlu0 %4860, %v5025_v2   ;;  %v8049_v2 = vmax.f32 %v5250_v38, 0.0  ;;  %v5035_v59 = vpop.eup %5034  ;;  %v8052_v25 = vmax.f32 %v5279_v48, 0.0  ;;  %v953_v48 = vadd.f32 %v6451_v8, %v6406_v15 }
 0x159   :  { %v2145_v12 = vpack.c.bf16 %v2083_v31, %v2082_v54  ;;  %v1116_v54 = vmul.f32 1.442695, %v1006_v9  ;;  %v1008_v32 = vsub.f32 0.0, %v944_v47  ;;  %v8055_v47 = vunpack.c.h.bf16 %v5309_v5 }
 0x15a   :  { %v1308_v28 = vpop.permute.xlu1 %1307  ;;  %v6483_v62 = vpop.permute.xlu0 %1337 }
 0x15b   :  { %v1605_v51 = vmul.f32 %v8047_v53, %v1308_v28  ;;  %4728 = vmatmul.mubr.msk.bf16.vlgmr.msra.gmra.mxu0 %vm696_vm0, %v2145_v12  ;;  %1932 = vperm.xlu1 %4861, %v1730_v22   ;;  %v1130_v12 = vmul.f32 1.442695, %v1013_v33  ;;  %v1739_v22 = vsub.f32 1.0, %v5033_v11  ;;  %v5037_v44 = vpop.eup %5036  ;;  %v8051_v28 = vunpack.c.l.bf16 %v5227_v23 }
 0x15c   :  { %1967 = vperm.xlu0 %4860, %v1737_v29   ;;  %v1194_v29 = vadd.f32 1.0, %v5035_v59  ;;  %5050 = vpow2.f32 %v1116_v54  ;;  %v5039_v36 = vpop.eup %5038  ;;  %v1015_v53 = vsub.f32 0.0, %v951_v42  ;;  %v2087_v23 = vmul.f32 %v6460_v26, %v8052_v25 }
 0x15d   :  { %v1666_v43 = vpack.c.bf16 %v1605_v51, %v1604_v56  ;;  %v1201_v56 = vadd.f32 1.0, %v5037_v44  ;;  %5052 = vpow2.f32 %v1130_v12  ;;  %v5041_v24 = vpop.eup %5040  ;;  %v1120_v33 = vmul.f32 1.442695, %v1008_v32 }
 0x15e   :  { %v1783_v45 = vpop.permute.xlu1 %1782  ;;  %v6491_v0 = vpop.permute.xlu0 %1817  ;;  %5054 = vrcp.f32 %v1194_v29  ;;  %v8054_v54 = vunpack.c.l.bf16 %v5309_v5  ;;  %v948_v29 = vadd.f32 %v6451_v8, %v6392_v27 }
 0x15f   :  { %v2084_v7 = vmul.f32 %v1783_v45, %v8049_v2  ;;  %1462 = vperm.xlu1 %4861, %v5031_v16   ;;  %4797 = vmatprep.mubr.msk.bf16.mxu1 %vm696_vm0, %v1666_v43  ;;  %v8053_v43 = vmax.f32 %v5295_v60, 0.0  ;;  %5056 = vrcp.f32 %v1201_v56  ;;  %v1741_v2 = vsub.f32 1.0, %v5041_v24 }
 0x160   :  { %1497 = vperm.xlu0 %4860, %v5033_v11   ;;  %v1734_v11 = vsub.f32 1.0, %v5039_v36  ;;  %v5043_v40 = vpop.eup %5042  ;;  %v1608_v1 = vmul.f32 %v8054_v54, %v6470_v10  ;;  %5058 = vpow2.f32 %v1120_v33  ;;  %v8056_v10 = vmax.f32 %v5364_v6, 0.0 }
 0x161   :  { %v2146_v31 = vpack.c.bf16 %v2085_v13, %v2084_v7  ;;  %v1134_v13 = vmul.f32 1.442695, %v1015_v53  ;;  %v5045_v7 = vpop.eup %5044  ;;  %v1196_v59 = vadd.f32 1.0, %v5043_v40  ;;  %v955_v6 = vadd.f32 %v6451_v8, %v6416_v30 }
 0x162   :  { %v1313_v58 = vpop.permute.xlu1 %1312  ;;  %v6503_v38 = vpop.permute.xlu0 %1347  ;;  %v1203_v42 = vadd.f32 1.0, %v5045_v7  ;;  %v2089_v5 = vmul.f32 %v6473_v4, %v8056_v10 }
 0x163   :  { %v1606_v39 = vmul.f32 %v8051_v28, %v1313_v58  ;;  %1942 = vperm.xlu1 %4861, %v1732_v14   ;;  %4731 = vmatprep.mubr.msk.bf16.mxu0 %vm696_vm0, %v2146_v31  ;;  %v1010_v14 = vsub.f32 0.0, %v946_v57  ;;  %v5047_v12 = vpop.eup %5046  ;;  %5060 = vpow2.f32 %v1134_v13  ;;  %v1017_v58 = vsub.f32 0.0, %v953_v48 }
 0x164   :  { %1977 = vperm.xlu0 %4860, %v1739_v22   ;;  %v5049_v50 = vpop.eup %5048  ;;  %5062 = vrcp.f32 %v1196_v59  ;;  %v8061_v48 = vmax.f32 %v5403_v18, 0.0 }
 0x165   :  { %v1667_v21 = vpack.c.bf16 %v1607_v37, %v1606_v39  ;;  %v8057_v37 = vmax.f32 %v5359_v63, 0.0  ;;  %v1124_v39 = vmul.f32 1.442695, %v1010_v14  ;;  %5064 = vrcp.f32 %v1203_v42 }
 0x166   :  { %v1793_v51 = vpop.permute.xlu1 %1792  ;;  %v6511_v9 = vpop.permute.xlu0 %1827  ;;  %v1138_v56 = vmul.f32 1.442695, %v1017_v58  ;;  %v1743_v53 = vsub.f32 1.0, %v5049_v50 }
 0x167   :  { %v2086_v16 = vmul.f32 %v1793_v51, %v8053_v43  ;;  %1472 = vperm.xlu1 %4861, %v5039_v36   ;;  %4798 = vmatmul.mubr.msk.bf16.gmra.mxu1 %vm696_vm0, %v1667_v21  ;;  %v1736_v21 = vsub.f32 1.0, %v5047_v12  ;;  %5066 = vpow2.f32 %v1124_v39 }
 0x168   :  { %1507 = vperm.xlu0 %4860, %v5041_v24   ;;  %v8058_v24 = vunpack.c.h.bf16 %v5326_v34  ;;  %5068 = vpow2.f32 %v1138_v56 }
 0x169   :  { %v2147_v45 = vpack.c.bf16 %v2087_v23, %v2086_v16  ;;  %v5051_v36 = vpop.eup %5050  ;;  %v8059_v23 = vunpack.c.l.bf16 %v5326_v34  ;;  %v1012_v16 = vsub.f32 0.0, %v948_v29  ;;  %v8065_v29 = vmax.f32 %v5420_v61, 0.0 }
 0x16a   :  { %v1328_v26 = vpop.permute.xlu1 %1327  ;;  %v6523_v60 = vpop.permute.xlu0 %1357  ;;  %v1611_v25 = vmul.f32 %v8058_v24, %v6483_v62  ;;  %v1198_v43 = vadd.f32 1.0, %v5051_v36  ;;  %v8060_v62 = vmax.f32 %v5372_v19, 0.0  ;;  %v957_v19 = vadd.f32 %v6451_v8, %v6418_v35 }
 0x16b   :  { %v1609_v31 = vmul.f32 %v8055_v47, %v1328_v26  ;;  %1952 = vperm.xlu1 %4861, %v1734_v11   ;;  %4732 = vmatmul.mubr.msk.bf16.gmra.mxu0 %vm696_vm0, %v2147_v45  ;;  %v5053_v51 = vpop.eup %5052  ;;  %v1019_v45 = vsub.f32 0.0, %v955_v6  ;;  %v1128_v7 = vmul.f32 1.442695, %v1012_v16  ;;  %v952_v36 = vadd.f32 %v6451_v8, %v6408_v17 }
 0x16c   :  { %1987 = vperm.xlu0 %4860, %v1741_v2   ;;  %v5055_v57 = vpop.eup %5054  ;;  %v1205_v33 = vadd.f32 1.0, %v5053_v51  ;;  %v2091_v34 = vmul.f32 %v6491_v0, %v8060_v62  ;;  %v950_v2 = vadd.f32 %v6451_v8, %v6398_v20  ;;  %5070 = vrcp.f32 %v1198_v43 }
 0x16d   :  { %v1668_v15 = vpack.c.bf16 %v1609_v31, %v1608_v1  ;;  %v5057_v13 = vpop.eup %5056  ;;  %v1738_v1 = vsub.f32 1.0, %v5055_v57  ;;  %v1142_v31 = vmul.f32 1.442695, %v1019_v45  ;;  %v1016_v16 = vsub.f32 0.0, %v952_v36 }
 0x16e   :  { %v1803_v22 = vpop.permute.xlu1 %1802  ;;  %v6531_v44 = vpop.permute.xlu0 %1837  ;;  %5072 = vrcp.f32 %v1205_v33  ;;  %v1745_v14 = vsub.f32 1.0, %v5057_v13  ;;  %v1014_v58 = vsub.f32 0.0, %v950_v2  ;;  %v8069_v62 = vmax.f32 %v5474_v52, 0.0 }
 0x16f   :  { %v2088_v28 = vmul.f32 %v1803_v22, %v8057_v37  ;;  %1482 = vperm.xlu1 %4861, %v5047_v12   ;;  %4801 = vmatprep.mubr.msk.bf16.mxu1 %vm696_vm0, %v1668_v15  ;;  %v5059_v47 = vpop.eup %5058  ;;  %v8062_v15 = vunpack.c.h.bf16 %v5337_v46  ;;  %v8063_v12 = vunpack.c.l.bf16 %v5337_v46  ;;  %5074 = vpow2.f32 %v1128_v7 }
 0x170   :  { %1517 = vperm.xlu0 %4860, %v5049_v50   ;;  %v5061_v59 = vpop.eup %5060  ;;  %v1200_v22 = vadd.f32 1.0, %v5059_v47  ;;  %5076 = vpow2.f32 %v1142_v31  ;;  %v1136_v2 = vmul.f32 1.442695, %v1016_v16 }
 0x171   :  { %v2148_v32 = vpack.c.bf16 %v2089_v5, %v2088_v28  ;;  %v1613_v20 = vmul.f32 %v8062_v15, %v6503_v38  ;;  %v5063_v50 = vpop.eup %5062  ;;  %v1207_v10 = vadd.f32 1.0, %v5061_v59  ;;  %v1021_v5 = vsub.f32 0.0, %v957_v19  ;;  %v8071_v19 = vld [vmem:[#allocation3_spill] sm:$0xff] }
 0x172   :  { %v1333_v4 = vpop.permute.xlu1 %1332  ;;  %v6543_v63 = vpop.permute.xlu0 %1367  ;;  %v8064_v38 = vmax.f32 %v5376_v41, 0.0  ;;  %5078 = vrcp.f32 %v1200_v22  ;;  %v1740_v6 = vsub.f32 1.0, %v5063_v50  ;;  %v959_v41 = vadd.f32 %v6451_v8, %v6430_v3 }
 0x173   :  { %v1610_v27 = vmul.f32 %v8059_v23, %v1333_v4  ;;  %1962 = vperm.xlu1 %4861, %v1736_v21   ;;  %4735 = vmatprep.mubr.msk.bf16.mxu0 %vm696_vm0, %v2148_v32  ;;  %v5065_v39 = vpop.eup %5064  ;;  %v1132_v21 = vmul.f32 1.442695, %v1014_v58  ;;  %5080 = vrcp.f32 %v1207_v10  ;;  %v8073_v59 = vunpack.c.l.bf16 %v8071_v19 }
 0x174   :  { %1997 = vperm.xlu0 %4860, %v1743_v53   ;;  %v2093_v46 = vmul.f32 %v6511_v9, %v8064_v38  ;;  %v5067_v4 = vpop.eup %5066  ;;  %v1146_v53 = vmul.f32 1.442695, %v1021_v5  ;;  %v1747_v51 = vsub.f32 1.0, %v5065_v39  ;;  %v1023_v33 = vsub.f32 0.0, %v959_v41  ;;  %v8074_v5 = vld [vmem:[#allocation4_spill] sm:$0xff] }
 0x175   :  { %v1669_v30 = vpack.c.bf16 %v1611_v25, %v1610_v27  ;;  %v5069_v24 = vpop.eup %5068  ;;  %v8066_v25 = vunpack.c.h.bf16 %v5353_v55  ;;  %v8067_v27 = vunpack.c.l.bf16 %v5353_v55  ;;  %v1202_v43 = vadd.f32 1.0, %v5067_v4 }
 0x176   :  { %v1813_v11 = vpop.permute.xlu1 %1812  ;;  %v6551_v40 = vpop.permute.xlu0 %1847  ;;  %5082 = vpow2.f32 %v1132_v21  ;;  %v1150_v47 = vmul.f32 1.442695, %v1023_v33 }
 0x177   :  { %v2090_v26 = vmul.f32 %v1813_v11, %v8061_v48  ;;  %1492 = vperm.xlu1 %4861, %v5055_v57   ;;  %4802 = vmatmul.mubr.msk.bf16.gmra.mxu1 %vm696_vm0, %v1669_v30  ;;  %v1615_v23 = vmul.f32 %v8066_v25, %v6523_v60  ;;  %v1209_v57 = vadd.f32 1.0, %v5069_v24  ;;  %5084 = vpow2.f32 %v1146_v53  ;;  %v8070_v48 = vld [vmem:[#allocation75_spill] sm:$0xff] }
 0x178   :  { %1527 = vperm.xlu0 %4860, %v5057_v13   ;;  %v8068_v60 = vmax.f32 %v5393_v49, 0.0  ;;  %5086 = vrcp.f32 %v1202_v43 }
 0x179   :  { %v2149_v54 = vpack.c.bf16 %v2091_v34, %v2090_v26  ;;  %v5071_v30 = vpop.eup %5070  ;;  %v954_v26 = vadd.f32 %v6451_v8, %v8070_v48  ;;  %5088 = vrcp.f32 %v1209_v57 }
 0x17a   :  { %v1343_v0 = vpop.permute.xlu1 %1342  ;;  %v6563_v18 = vpop.permute.xlu0 %1377  ;;  %v2095_v55 = vmul.f32 %v6531_v44, %v8068_v60  ;;  %5090 = vpow2.f32 %v1136_v2  ;;  %v8084_v60 = vld [vmem:[#allocation9_spill] sm:$0xff] }
 0x17b   :  { %v1612_v42 = vmul.f32 %v8063_v12, %v1343_v0  ;;  %1972 = vperm.xlu1 %4861, %v1738_v1   ;;  %4736 = vmatmul.mubr.msk.bf16.gmra.mxu0 %vm696_vm0, %v2149_v54  ;;  %v5073_v13 = vpop.eup %5072  ;;  %v1742_v54 = vsub.f32 1.0, %v5071_v30  ;;  %v8072_v0 = vunpack.c.h.bf16 %v8071_v19  ;;  %5092 = vpow2.f32 %v1150_v47 }
 0x17c   :  { %2007 = vperm.xlu0 %4860, %v1745_v14   ;;  %v5075_v1 = vpop.eup %5074  ;;  %v1749_v44 = vsub.f32 1.0, %v5073_v13 }
 0x17d   :  { %v1670_v35 = vpack.c.bf16 %v1613_v20, %v1612_v42  ;;  %v5077_v52 = vpop.eup %5076  ;;  %v1617_v14 = vmul.f32 %v8072_v0, %v6543_v63  ;;  %v1018_v20 = vsub.f32 0.0, %v954_v26  ;;  %v1204_v12 = vadd.f32 1.0, %v5075_v1 }
 0x17e   :  { %v1823_v37 = vpop.permute.xlu1 %1822  ;;  %v6571_v28 = vpop.permute.xlu0 %1857  ;;  %v1211_v22 = vadd.f32 1.0, %v5077_v52  ;;  %v8075_v63 = vmax.f32 %v8074_v5, 0.0  ;;  %v8092_v5 = vld [vmem:[#allocation11_spill] sm:$0xff] }
 0x17f   :  { %v2092_v32 = vmul.f32 %v1823_v37, %v8065_v29  ;;  %1502 = vperm.xlu1 %4861, %v5063_v50   ;;  %4805 = vmatprep.mubr.msk.bf16.mxu1 %vm696_vm0, %v1670_v35  ;;  %v5079_v58 = vpop.eup %5078  ;;  %v1140_v29 = vmul.f32 1.442695, %v1018_v20  ;;  %5094 = vrcp.f32 %v1204_v12 }
 0x180   :  { %1537 = vperm.xlu0 %4860, %v5065_v39   ;;  %v5081_v10 = vpop.eup %5080  ;;  %v2097_v37 = vmul.f32 %v6551_v40, %v8075_v63  ;;  %v8076_v39 = vld [vmem:[#allocation7_spill] sm:$0xff]  ;;  %5096 = vrcp.f32 %v1211_v22  ;;  %v8093_v63 = vmax.f32 %v8092_v5, 0.0 }
 0x181   :  { %v2150_v56 = vpack.c.bf16 %v2093_v46, %v2092_v32  ;;  %v8077_v38 = vmax.f32 %v8076_v39, 0.0  ;;  %v8078_v32 = vld [vmem:[#allocation76_spill] sm:$0xff]  ;;  %v1751_v40 = vsub.f32 1.0, %v5081_v10  ;;  %5098 = vpow2.f32 %v1140_v29 }
 0x182   :  { %v1353_v9 = vpop.permute.xlu1 %1352  ;;  %v6583_v61 = vpop.permute.xlu0 %1387  ;;  %v956_v21 = vadd.f32 %v6451_v8, %v8078_v32 }
 0x183   :  { %v1614_v17 = vmul.f32 %v8067_v27, %v1353_v9  ;;  %1982 = vperm.xlu1 %4861, %v1740_v6   ;;  %4739 = vmatprep.mubr.msk.bf16.mxu0 %vm696_vm0, %v2150_v56  ;;  %v1744_v56 = vsub.f32 1.0, %v5079_v58  ;;  %v5083_v6 = vpop.eup %5082  ;;  %v8079_v9 = vld [vmem:[#allocation5_spill] sm:$0xff] }
 0x184   :  { %2017 = vperm.xlu0 %4860, %v1747_v51   ;;  %v5085_v41 = vpop.eup %5084  ;;  %v8080_v51 = vunpack.c.h.bf16 %v8079_v9  ;;  %v8081_v25 = vunpack.c.l.bf16 %v8079_v9  ;;  %v1206_v27 = vadd.f32 1.0, %v5083_v6 }
 0x185   :  { %v1671_v3 = vpack.c.bf16 %v1615_v23, %v1614_v17  ;;  %v1020_v17 = vsub.f32 0.0, %v956_v21  ;;  %v5087_v16 = vpop.eup %5086 }
 0x186   :  { %v1833_v45 = vpop.permute.xlu1 %1832  ;;  %v6591_v11 = vpop.permute.xlu0 %1867  ;;  %v1619_v24 = vmul.f32 %v8080_v51, %v6563_v18  ;;  %5100 = vrcp.f32 %v1206_v27  ;;  %v8097_v27 = vld [vmem:[#allocation17_spill] sm:$0xff] }
 0x187   :  { %v2094_v34 = vmul.f32 %v1833_v45, %v8069_v62  ;;  %1512 = vperm.xlu1 %4861, %v5071_v30   ;;  %4806 = vmatmul.mubr.msk.bf16.gmra.mxu1 %vm696_vm0, %v1671_v3  ;;  %v1213_v3 = vadd.f32 1.0, %v5085_v41  ;;  %v5089_v33 = vpop.eup %5088  ;;  %v8082_v45 = vld [vmem:[#allocation8_spill] sm:$0xff]  ;;  %v1144_v26 = vmul.f32 1.442695, %v1020_v17  ;;  %v8098_v17 = vmax.f32 %v8097_v27, 0.0 }
 0x188   :  { %1547 = vperm.xlu0 %4860, %v5073_v13   ;;  %v8083_v13 = vmax.f32 %v8082_v45, 0.0 }
 0x189   :  { %v2151_v7 = vpack.c.bf16 %v2095_v55, %v2094_v34  ;;  %v8085_v55 = vmax.f32 %v8084_v60, 0.0  ;;  %v8086_v34 = vld [vmem:[#allocation77_spill] sm:$0xff]  ;;  %5102 = vrcp.f32 %v1213_v3 }
 0x18a   :  { %v1363_v49 = vpop.permute.xlu1 %1362  ;;  %v6601_v31 = vpop.permute.xlu0 %1397  ;;  %v2099_v18 = vmul.f32 %v6571_v28, %v8083_v13  ;;  %v958_v48 = vadd.f32 %v6451_v8, %v8086_v34  ;;  %v1753_v28 = vsub.f32 1.0, %v5089_v33  ;;  %5104 = vpow2.f32 %v1144_v26 }
 0x18b   :  { %v1616_v15 = vmul.f32 %v8073_v59, %v1363_v49  ;;  %1992 = vperm.xlu1 %4861, %v1742_v54   ;;  %4740 = vmatmul.mubr.msk.bf16.gmra.mxu0 %vm696_vm0, %v2151_v7  ;;  %v1746_v7 = vsub.f32 1.0, %v5087_v16  ;;  %v5091_v54 = vpop.eup %5090 }
 0x18c   :  { %2027 = vperm.xlu0 %4860, %v1749_v44   ;;  %v5093_v49 = vpop.eup %5092  ;;  %v8087_v44 = vld [vmem:[#allocation6_spill] sm:$0xff]  ;;  %v1208_v8 = vadd.f32 1.0, %v5091_v54  ;;  %v1022_v59 = vsub.f32 0.0, %v958_v48 }
 0x18d   :  { %v1672_v42 = vpack.c.bf16 %v1617_v14, %v1616_v15  ;;  %v8088_v52 = vunpack.c.h.bf16 %v8087_v44  ;;  %v8089_v0 = vunpack.c.l.bf16 %v8087_v44  ;;  %v5095_v20 = vpop.eup %5094  ;;  %v1215_v12 = vadd.f32 1.0, %v5093_v49  ;;  %v8104_v49 = vld [vmem:[#allocation20_spill] sm:$0xff] }
 0x18e   :  { %v1843_v35 = vpop.permute.xlu1 %1842  ;;  %v6609_v50 = vpop.permute.xlu0 %1877  ;;  %5106 = vrcp.f32 %v1208_v8  ;;  %v1148_v39 = vmul.f32 1.442695, %v1022_v59  ;;  %v8105_v44 = vmax.f32 %v8104_v49, 0.0  ;;  %v8127_v49 = vld [vmem:[#allocation24_spill] sm:$0xff] }
 0x18f   :  { %v2096_v46 = vmul.f32 %v1843_v35, %v8077_v38  ;;  %1522 = vperm.xlu1 %4861, %v5079_v58   ;;  %4809 = vmatprep.mubr.msk.bf16.mxu1 %vm696_vm0, %v1672_v42  ;;  %v1621_v19 = vmul.f32 %v8088_v52, %v6583_v61  ;;  %v5097_v22 = vpop.eup %5096  ;;  %v8090_v35 = vld [vmem:[#allocation12_spill] sm:$0xff]  ;;  %5108 = vrcp.f32 %v1215_v12 }
 0x190   :  { %1557 = vperm.xlu0 %4860, %v5081_v10   ;;  %v8091_v10 = vmax.f32 %v8090_v35, 0.0  ;;  %v5099_v29 = vpop.eup %5098  ;;  %5110 = vpow2.f32 %v1148_v39 }
 0x191   :  { %v2152_v36 = vpack.c.bf16 %v2097_v37, %v2096_v46  ;;  %v1748_v46 = vsub.f32 1.0, %v5095_v20  ;;  %v1210_v41 = vadd.f32 1.0, %v5099_v29 }
 0x192   :  { %v1373_v4 = vpop.permute.xlu1 %1372  ;;  %v6619_v53 = vpop.permute.xlu0 %1407  ;;  %v2101_v61 = vmul.f32 %v6591_v11, %v8091_v10 }
 0x193   :  { %v1618_v23 = vmul.f32 %v8081_v25, %v1373_v4  ;;  %2002 = vperm.xlu1 %4861, %v1744_v56   ;;  %4743 = vmatprep.mubr.msk.bf16.mxu0 %vm696_vm0, %v2152_v36  ;;  %v1755_v36 = vsub.f32 1.0, %v5097_v22  ;;  %v8094_v56 = vld [vmem:[#allocation10_spill] sm:$0xff]  ;;  %v5101_v51 = vpop.eup %5100  ;;  %5112 = vrcp.f32 %v1210_v41 }
 0x194   :  { %2037 = vperm.xlu0 %4860, %v1751_v40   ;;  %v8095_v11 = vunpack.c.h.bf16 %v8094_v56  ;;  %v8096_v4 = vunpack.c.l.bf16 %v8094_v56 }
 0x195   :  { %v1673_v43 = vpack.c.bf16 %v1619_v24, %v1618_v23 }
 0x196   :  { %v1853_v30 = vpop.permute.xlu1 %1852  ;;  %v6627_v57 = vpop.permute.xlu0 %1887  ;;  %v1623_v6 = vmul.f32 %v8095_v11, %v6601_v31  ;;  %v8099_v31 = vld [vmem:[#allocation14_spill] sm:$0xff] }
 0x197   :  { %v2098_v62 = vmul.f32 %v1853_v30, %v8085_v55  ;;  %1532 = vperm.xlu1 %4861, %v5087_v16   ;;  %4810 = vmatmul.mubr.msk.bf16.gmra.mxu1 %vm696_vm0, %v1673_v43  ;;  %v5103_v23 = vpop.eup %5102  ;;  %v2103_v43 = vmul.f32 %v6609_v50, %v8098_v17  ;;  %v8100_v16 = vmax.f32 %v8099_v31, 0.0  ;;  %v8101_v55 = vld [vmem:[#allocation13_spill] sm:$0xff]  ;;  %v2105_v52 = vmul.f32 %v6627_v57, %v8105_v44 }
 0x198   :  { %1567 = vperm.xlu0 %4860, %v5089_v33   ;;  %v1750_v33 = vsub.f32 1.0, %v5101_v51  ;;  %v5105_v45 = vpop.eup %5104  ;;  %v1757_v60 = vsub.f32 1.0, %v5103_v23  ;;  %v8103_v50 = vunpack.c.l.bf16 %v8101_v55  ;;  %v8128_v44 = vmax.f32 %v8127_v49, 0.0 }
 0x199   :  { %v2153_v2 = vpack.c.bf16 %v2099_v18, %v2098_v62  ;;  %v8102_v62 = vunpack.c.h.bf16 %v8101_v55  ;;  %v1212_v26 = vadd.f32 1.0, %v5105_v45  ;;  %v8122_v55 = vld [vmem:[#allocation22_spill] sm:$0xff] }
 0x19a   :  { %v1383_v1 = vpop.permute.xlu1 %1382  ;;  %v6637_v47 = vpop.permute.xlu0 %1417 }
 0x19b   :  { %v1620_v14 = vmul.f32 %v8089_v0, %v1383_v1  ;;  %2012 = vperm.xlu1 %4861, %v1746_v7   ;;  %4744 = vmatmul.mubr.msk.bf16.gmra.mxu0 %vm696_vm0, %v2153_v2  ;;  %v1625_v34 = vmul.f32 %v8102_v62, %v6619_v53  ;;  %v5107_v7 = vpop.eup %5106  ;;  %5114 = vrcp.f32 %v1212_v26  ;;  %v8123_v62 = vunpack.c.h.bf16 %v8122_v55 }
 0x19c   :  { %2047 = vperm.xlu0 %4860, %v1753_v28   ;;  %v5109_v28 = vpop.eup %5108  ;;  %v1752_v8 = vsub.f32 1.0, %v5107_v7 }
 0x19d   :  { %v1674_v15 = vpack.c.bf16 %v1621_v19, %v1620_v14  ;;  %v8106_v19 = vld [vmem:[#allocation15_spill] sm:$0xff]  ;;  %v5111_v59 = vpop.eup %5110  ;;  %v1759_v12 = vsub.f32 1.0, %v5109_v28 }
 0x19e   :  { %v1863_v42 = vpop.permute.xlu1 %1862  ;;  %v6645_v58 = vpop.permute.xlu0 %1897  ;;  %v8107_v0 = vmax.f32 %v8106_v19, 0.0 }
 0x19f   :  { %v2100_v37 = vmul.f32 %v1863_v42, %v8093_v63  ;;  %1542 = vperm.xlu1 %4861, %v5095_v20   ;;  %4813 = vmatprep.mubr.msk.bf16.mxu1 %vm696_vm0, %v1674_v15  ;;  %v8108_v42 = vld [vmem:[#allocation16_spill] sm:$0xff] }
 0x1a0   :  { %1577 = vperm.xlu0 %4860, %v5097_v22   ;;  %v8109_v22 = vunpack.c.h.bf16 %v8108_v42  ;;  %v8110_v57 = vunpack.c.l.bf16 %v8108_v42  ;;  %v5113_v63 = vpop.eup %5112 }
 0x1a1   :  { %v2154_v38 = vpack.c.bf16 %v2101_v61, %v2100_v37  ;;  %v1214_v61 = vadd.f32 1.0, %v5111_v59  ;;  %v1754_v11 = vsub.f32 1.0, %v5113_v63 }
 0x1a2   :  { %v1393_v32 = vpop.permute.xlu1 %1392  ;;  %v6653_v21 = vpop.permute.xlu0 %1427  ;;  %v1627_v35 = vmul.f32 %v8109_v22, %v6637_v47 }
 0x1a3   :  { %v1622_v40 = vmul.f32 %v8096_v4, %v1393_v32  ;;  %2022 = vperm.xlu1 %4861, %v1748_v46   ;;  %4747 = vmatprep.mubr.msk.bf16.mxu0 %vm696_vm0, %v2154_v38  ;;  %v8111_v38 = vld [vmem:[#allocation23_spill] sm:$0xff]  ;;  %5116 = vrcp.f32 %v1214_v61 }
 0x1a4   :  { %2057 = vperm.xlu0 %4860, %v1755_v36   ;;  %v8112_v46 = vmax.f32 %v8111_v38, 0.0  ;;  %v8113_v32 = vld [vmem:[#allocation19_spill] sm:$0xff] }
 0x1a5   :  { %v1675_v9 = vpack.c.bf16 %v1623_v6, %v1622_v40  ;;  %v8114_v36 = vmax.f32 %v8113_v32, 0.0  ;;  %v8115_v40 = vld [vmem:[#allocation18_spill] sm:$0xff]  ;;  %v8134_v61 = vld [vmem:[#allocation27_spill] sm:$0xff] }
 0x1a6   :  { %v1873_v24 = vpop.permute.xlu1 %1872  ;;  %v6661_v25 = vpop.permute.xlu0 %1907  ;;  %v2107_v29 = vmul.f32 %v6645_v58, %v8112_v46  ;;  %v8116_v41 = vunpack.c.h.bf16 %v8115_v40  ;;  %v8136_v46 = vld [vmem:[#allocation28_spill] sm:$0xff] }
 0x1a7   :  { %v2102_v3 = vmul.f32 %v1873_v24, %v8100_v16  ;;  %1552 = vperm.xlu1 %4861, %v5101_v51   ;;  %4814 = vmatmul.mubr.msk.bf16.gmra.mxu1 %vm696_vm0, %v1675_v9  ;;  %v8117_v51 = vunpack.c.l.bf16 %v8115_v40 }
 0x1a8   :  { %1587 = vperm.xlu0 %4860, %v5103_v23   ;;  %v1629_v9 = vmul.f32 %v8116_v41, %v6653_v21  ;;  %v5115_v23 = vpop.eup %5114 }
 0x1a9   :  { %v2155_v30 = vpack.c.bf16 %v2103_v43, %v2102_v3  ;;  %v8118_v43 = vld [vmem:[#allocation26_spill] sm:$0xff]  ;;  %v8120_v3 = vld [vmem:[#allocation21_spill] sm:$0xff]  ;;  %v1756_v45 = vsub.f32 1.0, %v5115_v23 }
 0x1aa   :  { %v1403_v13 = vpop.permute.xlu1 %1402  ;;  %v1438_v18 = vpop.permute.xlu0 %1437  ;;  %v8119_v31 = vmax.f32 %v8118_v43, 0.0 }
 0x1ab   :  { %v1624_v48 = vmul.f32 %v8103_v50, %v1403_v13  ;;  %2032 = vperm.xlu1 %4861, %v1750_v33   ;;  %4748 = vmatmul.mubr.msk.bf16.gmra.mxu0 %vm696_vm0, %v2155_v30  ;;  %v8121_v30 = vmax.f32 %v8120_v3, 0.0  ;;  %v8124_v50 = vunpack.c.l.bf16 %v8122_v55  ;;  %v8148_v55 = vld [vmem:[#allocation34_spill] sm:$0xff] }
 0x1ac   :  { %2067 = vperm.xlu0 %4860, %v1757_v60   ;;  %v2109_v16 = vmul.f32 %v6661_v25, %v8119_v31 }
 0x1ad   :  { %v1676_v2 = vpack.c.bf16 %v1625_v34, %v1624_v48  ;;  %v1631_v34 = vmul.f32 %v8123_v62, %v1438_v18  ;;  %v8149_v62 = vmax.f32 %v8148_v55, 0.0 }
 0x1ae   :  { %v1883_v54 = vpop.permute.xlu1 %1882  ;;  %v1918_v1 = vpop.permute.xlu0 %1917 }
 0x1af   :  { %v2104_v53 = vmul.f32 %v1883_v54, %v8107_v0  ;;  %1562 = vperm.xlu1 %4861, %v5107_v7   ;;  %4817 = vmatprep.mubr.msk.bf16.mxu1 %vm696_vm0, %v1676_v2  ;;  %v8125_v7 = vld [vmem:[#allocation29_spill] sm:$0xff] }
 0x1b0   :  { %1597 = vperm.xlu0 %4860, %v5109_v28   ;;  %v5117_v26 = vpop.eup %5116  ;;  %v8126_v54 = vmax.f32 %v8125_v7, 0.0 }
 0x1b1   :  { %v2156_v14 = vpack.c.bf16 %v2105_v52, %v2104_v53  ;;  %v1758_v0 = vsub.f32 1.0, %v5117_v26 }
 0x1b2   :  { %v1413_v15 = vpop.permute.xlu1 %1412  ;;  %v1448_v20 = vpop.permute.xlu0 %1447  ;;  %v2111_v28 = vmul.f32 %v1918_v1, %v8126_v54 }
 0x1b3   :  { %v1626_v10 = vmul.f32 %v8110_v57, %v1413_v15  ;;  %2042 = vperm.xlu1 %4861, %v1752_v8   ;;  %4751 = vmatprep.mubr.msk.bf16.mxu0 %vm696_vm0, %v2156_v14  ;;  %v8129_v14 = vld [vmem:[#allocation25_spill] sm:$0xff] }
 0x1b4   :  { %2077 = vperm.xlu0 %4860, %v1759_v12   ;;  %v8130_v8 = vunpack.c.h.bf16 %v8129_v14  ;;  %v8131_v15 = vunpack.c.l.bf16 %v8129_v14 }
 0x1b5   :  { %v1677_v5 = vpack.c.bf16 %v1627_v35, %v1626_v10  ;;  %v8132_v35 = vld [vmem:[#allocation32_spill] sm:$0xff] }
 0x1b6   :  { %v1893_v37 = vpop.permute.xlu1 %1892  ;;  %v1928_v39 = vpop.permute.xlu0 %1927  ;;  %v1633_v59 = vmul.f32 %v8130_v8, %v1448_v20  ;;  %v8133_v57 = vmax.f32 %v8132_v35, 0.0 }
 0x1b7   :  { %v2106_v56 = vmul.f32 %v1893_v37, %v8114_v36  ;;  %1572 = vperm.xlu1 %4861, %v5113_v63   ;;  %4818 = vmatmul.mubr.msk.bf16.gmra.mxu1 %vm696_vm0, %v1677_v5  ;;  %v8135_v5 = vmax.f32 %v8134_v61, 0.0  ;;  %v8138_v36 = vunpack.c.l.bf16 %v8136_v46 }
 0x1b8   :  { %v2113_v10 = vmul.f32 %v1928_v39, %v8133_v57  ;;  %v8139_v39 = vld [vmem:[#allocation35_spill] sm:$0xff] }
 0x1b9   :  { %v2157_v47 = vpack.c.bf16 %v2107_v29, %v2106_v56  ;;  %v8137_v29 = vunpack.c.h.bf16 %v8136_v46  ;;  %v8140_v40 = vmax.f32 %v8139_v39, 0.0 }
 0x1ba   :  { %v1423_v6 = vpop.permute.xlu1 %1422  ;;  %v1458_v4 = vpop.permute.xlu0 %1457 }
 0x1bb   :  { %v1628_v24 = vmul.f32 %v8117_v51, %v1423_v6  ;;  %2052 = vperm.xlu1 %4861, %v1754_v11   ;;  %4752 = vmatmul.mubr.msk.bf16.gmra.mxu0 %vm696_vm0, %v2157_v47  ;;  %v1635_v32 = vmul.f32 %v8137_v29, %v1458_v4  ;;  %v8143_v4 = vld [vmem:[#allocation31_spill] sm:$0xff] }
 0x1bc   :  { %v8144_v43 = vunpack.c.h.bf16 %v8143_v4 }
 0x1bd   :  { %v1678_v58 = vpack.c.bf16 %v1629_v9, %v1628_v24  ;;  %v8141_v9 = vld [vmem:[#allocation30_spill] sm:$0xff] }
 0x1be   :  { %v1903_v27 = vpop.permute.xlu1 %1902  ;;  %v1938_v17 = vpop.permute.xlu0 %1937  ;;  %v8142_v51 = vmax.f32 %v8141_v9, 0.0 }
 0x1bf   :  { %v2108_v33 = vmul.f32 %v1903_v27, %v8121_v30  ;;  %1582 = vperm.xlu1 %4861, %v5115_v23   ;;  %4821 = vmatprep.mubr.msk.bf16.mxu1 %vm696_vm0, %v1678_v58  ;;  %v2115_v41 = vmul.f32 %v1938_v17, %v8140_v40  ;;  %v8146_v17 = vld [vmem:[#allocation38_spill] sm:$0xff] }
 0x1c1   :  { %v2158_v21 = vpack.c.bf16 %v2109_v16, %v2108_v33  ;;  %v8145_v16 = vunpack.c.l.bf16 %v8143_v4 }
 0x1c2   :  { %v1433_v13 = vpop.permute.xlu1 %1432  ;;  %v1468_v60 = vpop.permute.xlu0 %1467 }
 0x1c3   :  { %v1630_v48 = vmul.f32 %v8124_v50, %v1433_v13  ;;  %2062 = vperm.xlu1 %4861, %v1756_v45   ;;  %4755 = vmatprep.mubr.msk.bf16.mxu0 %vm696_vm0, %v2158_v21  ;;  %v1637_v31 = vmul.f32 %v8144_v43, %v1468_v60  ;;  %v8147_v45 = vmax.f32 %v8146_v17, 0.0  ;;  %v8150_v60 = vld [vmem:[#allocation33_spill] sm:$0xff] }
 0x1c4   :  { %v8152_v7 = vunpack.c.l.bf16 %v8150_v60 }
 0x1c5   :  { %v1679_v25 = vpack.c.bf16 %v1631_v34, %v1630_v48 }
 0x1c6   :  { %v1913_v2 = vpop.permute.xlu1 %1912 }
 0x1c7   :  { %v2110_v52 = vmul.f32 %v1913_v2, %v8128_v44  ;;  %v1948_v19 = vpop.permute.xlu0 %1947  ;;  %1592 = vperm.xlu1 %4861, %v5117_v26   ;;  %4822 = vmatmul.mubr.msk.bf16.gmra.mxu1 %vm696_vm0, %v1679_v25  ;;  %v8151_v26 = vunpack.c.h.bf16 %v8150_v60 }
 0x1c8   :  { %v2117_v13 = vmul.f32 %v1948_v19, %v8147_v45 }
 0x1c9   :  { %v2159_v18 = vpack.c.bf16 %v2111_v28, %v2110_v52  ;;  %v8153_v52 = vld [vmem:[#allocation41_spill] sm:$0xff] }
 0x1ca   :  { %v1443_v53 = vpop.permute.xlu1 %1442  ;;  %v8154_v19 = vmax.f32 %v8153_v52, 0.0 }
 0x1cb   :  { %v1632_v12 = vmul.f32 %v8131_v15, %v1443_v53  ;;  %v1478_v42 = vpop.permute.xlu0 %1477  ;;  %2072 = vperm.xlu1 %4861, %v1758_v0   ;;  %4756 = vmatmul.mubr.msk.bf16.gmra.mxu0 %vm696_vm0, %v2159_v18  ;;  %v8155_v0 = vld [vmem:[#allocation36_spill] sm:$0xff] }
 0x1cc   :  { %v1639_v2 = vmul.f32 %v8151_v26, %v1478_v42  ;;  %v8156_v53 = vmax.f32 %v8155_v0, 0.0 }
 0x1cd   :  { %v1680_v1 = vpack.c.bf16 %v1633_v59, %v1632_v12  ;;  %v8157_v12 = vld [vmem:[#allocation37_spill] sm:$0xff] }
 0x1ce   :  { %v1923_v22 = vpop.permute.xlu1 %1922  ;;  %v8158_v42 = vunpack.c.h.bf16 %v8157_v12 }
 0x1cf   :  { %v2112_v63 = vmul.f32 %v1923_v22, %v8135_v5  ;;  %v1958_v37 = vpop.permute.xlu0 %1957  ;;  %4825 = vmatprep.mubr.msk.bf16.mxu1 %vm696_vm0, %v1680_v1  ;;  %v8159_v22 = vunpack.c.l.bf16 %v8157_v12  ;;  %v8160_v5 = vld [vmem:[#allocation44_spill] sm:$0xff] }
 0x1d0   :  { %v2119_v18 = vmul.f32 %v1958_v37, %v8154_v19 }
 0x1d1   :  { %v2160_v38 = vpack.c.bf16 %v2113_v10, %v2112_v63  ;;  %v8161_v63 = vmax.f32 %v8160_v5, 0.0 }
 0x1d2   :  { %v1453_v20 = vpop.permute.xlu1 %1452 }
 0x1d3   :  { %v1634_v56 = vmul.f32 %v8138_v36, %v1453_v20  ;;  %v1488_v47 = vpop.permute.xlu0 %1487  ;;  %4759 = vmatprep.mubr.msk.bf16.mxu0 %vm696_vm0, %v2160_v38  ;;  %v8162_v38 = vld [vmem:[#allocation39_spill] sm:$0xff] }
 0x1d4   :  { %v1641_v1 = vmul.f32 %v8158_v42, %v1488_v47  ;;  %v8163_v20 = vmax.f32 %v8162_v38, 0.0 }
 0x1d5   :  { %v1681_v11 = vpack.c.bf16 %v1635_v32, %v1634_v56  ;;  %v8164_v56 = vld [vmem:[#allocation40_spill] sm:$0xff] }
 0x1d6   :  { %v1933_v6 = vpop.permute.xlu1 %1932  ;;  %v8165_v47 = vunpack.c.h.bf16 %v8164_v56 }
 0x1d7   :  { %v2114_v24 = vmul.f32 %v1933_v6, %v8142_v51  ;;  %v1968_v58 = vpop.permute.xlu0 %1967  ;;  %4826 = vmatmul.mubr.msk.bf16.gmra.mxu1 %vm696_vm0, %v1681_v11  ;;  %v8166_v6 = vunpack.c.l.bf16 %v8164_v56  ;;  %v8167_v51 = vld [vmem:[#allocation47_spill] sm:$0xff] }
 0x1d8   :  { %v2121_v37 = vmul.f32 %v1968_v58, %v8161_v63 }
 0x1d9   :  { %v2161_v23 = vpack.c.bf16 %v2115_v41, %v2114_v24  ;;  %v8168_v24 = vmax.f32 %v8167_v51, 0.0 }
 0x1da   :  { %v1463_v27 = vpop.permute.xlu1 %1462 }
 0x1db   :  { %v1636_v3 = vmul.f32 %v8145_v16, %v1463_v27  ;;  %v1498_v30 = vpop.permute.xlu0 %1497  ;;  %4760 = vmatmul.mubr.msk.bf16.gmra.mxu0 %vm696_vm0, %v2161_v23  ;;  %v8169_v23 = vld [vmem:[#allocation42_spill] sm:$0xff] }
 0x1dc   :  { %v1643_v11 = vmul.f32 %v8165_v47, %v1498_v30  ;;  %v8170_v27 = vmax.f32 %v8169_v23, 0.0 }
 0x1dd   :  { %v1682_v33 = vpack.c.bf16 %v1637_v31, %v1636_v3  ;;  %v8171_v3 = vld [vmem:[#allocation43_spill] sm:$0xff] }
 0x1de   :  { %v1943_v21 = vpop.permute.xlu1 %1942  ;;  %v8172_v30 = vunpack.c.h.bf16 %v8171_v3 }
 0x1df   :  { %v2116_v34 = vmul.f32 %v1943_v21, %v8149_v62  ;;  %v1978_v50 = vpop.permute.xlu0 %1977  ;;  %4829 = vmatprep.mubr.msk.bf16.mxu1 %vm696_vm0, %v1682_v33  ;;  %v8173_v21 = vunpack.c.l.bf16 %v8171_v3  ;;  %v8174_v62 = vld [vmem:[#allocation50_spill] sm:$0xff] }
 0x1e0   :  { %v2123_v58 = vmul.f32 %v1978_v50, %v8168_v24 }
 0x1e1   :  { %v2162_v48 = vpack.c.bf16 %v2117_v13, %v2116_v34  ;;  %v8175_v34 = vmax.f32 %v8174_v62, 0.0 }
 0x1e2   :  { %v1473_v25 = vpop.permute.xlu1 %1472 }
 0x1e3   :  { %v1638_v54 = vmul.f32 %v8152_v7, %v1473_v25  ;;  %v1508_v28 = vpop.permute.xlu0 %1507  ;;  %4763 = vmatprep.mubr.msk.bf16.mxu0 %vm696_vm0, %v2162_v48  ;;  %v8176_v48 = vld [vmem:[#allocation45_spill] sm:$0xff] }
 0x1e4   :  { %v1645_v33 = vmul.f32 %v8172_v30, %v1508_v28  ;;  %v8177_v25 = vmax.f32 %v8176_v48, 0.0 }
 0x1e5   :  { %v1683_v49 = vpack.c.bf16 %v1639_v2, %v1638_v54  ;;  %v8178_v54 = vld [vmem:[#allocation46_spill] sm:$0xff] }
 0x1e6   :  { %v1953_v44 = vpop.permute.xlu1 %1952  ;;  %v8179_v28 = vunpack.c.h.bf16 %v8178_v54 }
 0x1e7   :  { %v2118_v14 = vmul.f32 %v1953_v44, %v8156_v53  ;;  %v1988_v8 = vpop.permute.xlu0 %1987  ;;  %4830 = vmatmul.mubr.msk.bf16.gmra.mxu1 %vm696_vm0, %v1683_v49  ;;  %v8180_v44 = vunpack.c.l.bf16 %v8178_v54  ;;  %v8181_v53 = vld [vmem:[#allocation53_spill] sm:$0xff] }
 0x1e8   :  { %v2125_v50 = vmul.f32 %v1988_v8, %v8175_v34 }
 0x1e9   :  { %v2163_v59 = vpack.c.bf16 %v2119_v18, %v2118_v14  ;;  %v8182_v14 = vmax.f32 %v8181_v53, 0.0 }
 0x1ea   :  { %v1483_v15 = vpop.permute.xlu1 %1482 }
 0x1eb   :  { %v1640_v35 = vmul.f32 %v8159_v22, %v1483_v15  ;;  %v1518_v57 = vpop.permute.xlu0 %1517  ;;  %4764 = vmatmul.mubr.msk.bf16.gmra.mxu0 %vm696_vm0, %v2163_v59  ;;  %v8183_v59 = vld [vmem:[#allocation48_spill] sm:$0xff] }
 0x1ec   :  { %v1647_v49 = vmul.f32 %v8179_v28, %v1518_v57  ;;  %v8184_v15 = vmax.f32 %v8183_v59, 0.0  ;;  %v8202_v28 = vld [vmem:[#allocation62_spill] sm:$0xff] }
 0x1ed   :  { %v1684_v10 = vpack.c.bf16 %v1641_v1, %v1640_v35  ;;  %v8185_v35 = vld [vmem:[#allocation49_spill] sm:$0xff] }
 0x1ee   :  { %v1963_v61 = vpop.permute.xlu1 %1962  ;;  %v8186_v57 = vunpack.c.h.bf16 %v8185_v35 }
 0x1ef   :  { %v2120_v46 = vmul.f32 %v1963_v61, %v8163_v20  ;;  %v1998_v29 = vpop.permute.xlu0 %1997  ;;  %4833 = vmatprep.mubr.msk.bf16.mxu1 %vm696_vm0, %v1684_v10  ;;  %v8187_v61 = vunpack.c.l.bf16 %v8185_v35  ;;  %v8188_v20 = vld [vmem:[#allocation56_spill] sm:$0xff]  ;;  %v8206_v35 = vld [vmem:[#allocation58_spill] sm:$0xff] }
 0x1f0   :  { %v2127_v8 = vmul.f32 %v1998_v29, %v8182_v14 }
 0x1f1   :  { %v2164_v32 = vpack.c.bf16 %v2121_v37, %v2120_v46  ;;  %v8189_v46 = vmax.f32 %v8188_v20, 0.0 }
 0x1f2   :  { %v1493_v36 = vpop.permute.xlu1 %1492 }
 0x1f3   :  { %v1642_v39 = vmul.f32 %v8166_v6, %v1493_v36  ;;  %v1528_v40 = vpop.permute.xlu0 %1527  ;;  %4767 = vmatprep.mubr.msk.bf16.mxu0 %vm696_vm0, %v2164_v32  ;;  %v8190_v32 = vld [vmem:[#allocation51_spill] sm:$0xff]  ;;  %v8192_v6 = vld [vmem:[#allocation52_spill] sm:$0xff] }
 0x1f4   :  { %v1649_v10 = vmul.f32 %v8186_v57, %v1528_v40  ;;  %v8191_v36 = vmax.f32 %v8190_v32, 0.0  ;;  %v8207_v57 = vunpack.c.h.bf16 %v8206_v35 }
 0x1f5   :  { %v1685_v41 = vpack.c.bf16 %v1643_v11, %v1642_v39  ;;  %v8193_v39 = vunpack.c.h.bf16 %v8192_v6 }
 0x1f6   :  { %v1973_v9 = vpop.permute.xlu1 %1972 }
 0x1f7   :  { %v2122_v4 = vmul.f32 %v1973_v9, %v8170_v27  ;;  %v2008_v43 = vpop.permute.xlu0 %2007  ;;  %4834 = vmatmul.mubr.msk.bf16.gmra.mxu1 %vm696_vm0, %v1685_v41  ;;  %v8194_v41 = vunpack.c.l.bf16 %v8192_v6  ;;  %v8195_v27 = vld [vmem:[#allocation59_spill] sm:$0xff] }
 0x1f8   :  { %v2129_v29 = vmul.f32 %v2008_v43, %v8189_v46  ;;  %v8209_v46 = vld [vmem:[#allocation65_spill] sm:$0xff] }
 0x1f9   :  { %v2165_v31 = vpack.c.bf16 %v2123_v58, %v2122_v4  ;;  %v8196_v4 = vmax.f32 %v8195_v27, 0.0 }
 0x1fa   :  { %v1503_v16 = vpop.permute.xlu1 %1502 }
 0x1fb   :  { %v1644_v17 = vmul.f32 %v8173_v21, %v1503_v16  ;;  %v1538_v45 = vpop.permute.xlu0 %1537  ;;  %4768 = vmatmul.mubr.msk.bf16.gmra.mxu0 %vm696_vm0, %v2165_v31  ;;  %v8197_v31 = vld [vmem:[#allocation54_spill] sm:$0xff] }
 0x1fc   :  { %v1651_v40 = vmul.f32 %v8193_v39, %v1538_v45  ;;  %v8198_v16 = vmax.f32 %v8197_v31, 0.0  ;;  %v8199_v45 = vld [vmem:[#allocation55_spill] sm:$0xff] }
 0x1fd   :  { %v1686_v13 = vpack.c.bf16 %v1645_v33, %v1644_v17  ;;  %v8201_v62 = vunpack.c.l.bf16 %v8199_v45 }
 0x1fe   :  { %v1983_v55 = vpop.permute.xlu1 %1982 }
 0x1ff   :  { %v2124_v60 = vmul.f32 %v1983_v55, %v8177_v25  ;;  %v2018_v26 = vpop.permute.xlu0 %2017  ;;  %4837 = vmatprep.mubr.msk.bf16.mxu1 %vm696_vm0, %v1686_v13  ;;  %v8200_v13 = vunpack.c.h.bf16 %v8199_v45 }
 0x200   :  { %v2131_v43 = vmul.f32 %v2018_v26, %v8196_v4 }
 0x201   :  { %v2166_v2 = vpack.c.bf16 %v2125_v50, %v2124_v60 }
 0x202   :  { %v1513_v7 = vpop.permute.xlu1 %1512 }
 0x203   :  { %v1646_v52 = vmul.f32 %v8180_v44, %v1513_v7  ;;  %v1548_v19 = vpop.permute.xlu0 %1547  ;;  %4771 = vmatprep.mubr.msk.bf16.mxu0 %vm696_vm0, %v2166_v2 }
 0x204   :  { %v1653_v55 = vmul.f32 %v8200_v13, %v1548_v19  ;;  %v8218_v13 = vld [vmem:[#allocation68_spill] sm:$0xff] }
 0x205   :  { %v1687_v18 = vpack.c.bf16 %v1647_v49, %v1646_v52  ;;  %v8203_v49 = vmax.f32 %v8202_v28, 0.0  ;;  %v8204_v52 = vld [vmem:[#allocation57_spill] sm:$0xff] }
 0x206   :  { %v1993_v0 = vpop.permute.xlu1 %1992  ;;  %v8205_v19 = vmax.f32 %v8204_v52, 0.0  ;;  %v8220_v52 = vld [vmem:[#allocation64_spill] sm:$0xff] }
 0x207   :  { %v2126_v12 = vmul.f32 %v1993_v0, %v8184_v15  ;;  %4838 = vmatmul.mubr.msk.bf16.gmra.mxu1 %vm696_vm0, %v1687_v18  ;;  %v2028_v42 = vpop.permute.xlu0 %2027 }
 0x208   :  { %v2133_v44 = vmul.f32 %v2028_v42, %v8203_v49 }
 0x209   :  { %v2167_v1 = vpack.c.bf16 %v2127_v8, %v2126_v12 }
 0x20a   :  { %v1523_v22 = vpop.permute.xlu1 %1522 }
 0x20b   :  { %v1648_v5 = vmul.f32 %v8187_v61, %v1523_v22  ;;  %4772 = vmatmul.mubr.msk.bf16.gmra.mxu0 %vm696_vm0, %v2167_v1  ;;  %v1558_v37 = vpop.permute.xlu0 %1557  ;;  %v8208_v61 = vunpack.c.l.bf16 %v8206_v35  ;;  %v8225_v35 = vld [vmem:[#allocation66_spill] sm:$0xff] }
 0x20d   :  { %v1688_v63 = vpack.c.bf16 %v1649_v10, %v1648_v5  ;;  %v1655_v10 = vmul.f32 %v8207_v57, %v1558_v37  ;;  %v8226_v57 = vmax.f32 %v8225_v35, 0.0 }
 0x20e   :  { %v2003_v38 = vpop.permute.xlu1 %2002 }
 0x20f   :  { %v2128_v56 = vmul.f32 %v2003_v38, %v8191_v36  ;;  %4841 = vmatprep.mubr.msk.bf16.mxu1 %vm696_vm0, %v1688_v63  ;;  %v2038_v51 = vpop.permute.xlu0 %2037  ;;  %v8211_v36 = vld [vmem:[#allocation60_spill] sm:$0xff] }
 0x211   :  { %v2168_v47 = vpack.c.bf16 %v2129_v29, %v2128_v56  ;;  %v8210_v29 = vmax.f32 %v8209_v46, 0.0  ;;  %v8212_v56 = vmax.f32 %v8211_v36, 0.0 }
 0x212   :  { %v1533_v11 = vpop.permute.xlu1 %1532 }
 0x213   :  { %v1650_v9 = vmul.f32 %v8194_v41, %v1533_v11  ;;  %4775 = vmatprep.mubr.msk.bf16.mxu0 %vm696_vm0, %v2168_v47  ;;  %v4795_v58 = vpop.f32.mrf.mxu1  ;;  %v1568_v21 = vpop.permute.xlu0 %1567  ;;  %v2135_v32 = vmul.f32 %v2038_v51, %v8210_v29  ;;  %v8213_v41 = vld [vmem:[#allocation61_spill] sm:$0xff] }
 0x215   :  { %v1689_v24 = vpack.c.bf16 %v1651_v40, %v1650_v9  ;;  %v2700_v30 = vpop.f32.mrf.mxu1  ;;  %v8214_v9 = vunpack.c.h.bf16 %v8213_v41 }
 0x216   :  { %v2013_v23 = vpop.permute.xlu1 %2012 }
 0x217   :  { %v2130_v3 = vmul.f32 %v2013_v23, %v8198_v16  ;;  %4842 = vmatmul.mubr.msk.bf16.gmra.mxu1 %vm696_vm0, %v1689_v24  ;;  %v4796_v25 = vpop.f32.mrf.mxu1  ;;  %v2048_v53 = vpop.permute.xlu0 %2047  ;;  %v1657_v24 = vmul.f32 %v8214_v9, %v1568_v21 }
 0x219   :  { %v2169_v33 = vpack.c.bf16 %v2131_v43, %v2130_v3  ;;  %v2703_v59 = vpop.f32.mrf.mxu1 }
 0x21a   :  { %v1543_v17 = vpop.permute.xlu1 %1542 }
 0x21b   :  { %v1652_v34 = vmul.f32 %v8201_v62, %v1543_v17  ;;  %v4729_v50 = vpop.f32.mrf.mxu0  ;;  %4776 = vmatmul.mubr.msk.bf16.gmra.mxu0 %vm696_vm0, %v2169_v33  ;;  %v1578_v20 = vpop.permute.xlu0 %1577  ;;  %v8216_v17 = vld [vmem:[#allocation63_spill] sm:$0xff] }
 0x21c   :  { %v6820_v48 = vadd.f32 %v4795_v58, %v4729_v50  ;;  %v8215_v58 = vunpack.c.l.bf16 %v8213_v41  ;;  %v8217_v21 = vmax.f32 %v8216_v17, 0.0 }
 0x21d   :  { %v1690_v60 = vpack.c.bf16 %v1653_v55, %v1652_v34  ;;  %v2312_v26 = vpop.f32.mrf.mxu0  ;;  %v8219_v55 = vmax.f32 %v8218_v13, 0.0 }
 0x21e   :  { %v4279_v2 = vpack.c.bf16 %v6820_v48, %v6820_v48  ;;  %v6824_v7 = vadd.f32 %v2700_v30, %v2312_v26  ;;  %v2023_v54 = vpop.permute.xlu1 %2022  ;;  %v2137_v45 = vmul.f32 %v2048_v53, %v8217_v21 }
 0x21f   :  { %v2132_v18 = vmul.f32 %v2023_v54, %v8205_v19  ;;  %v4730_v0 = vpop.f32.mrf.mxu0  ;;  %4845 = vmatprep.mubr.msk.bf16.mxu1 %vm696_vm0, %v1690_v60  ;;  %v2058_v4 = vpop.permute.xlu0 %2057  ;;  %v8221_v19 = vunpack.c.h.bf16 %v8220_v52 }
 0x220   :  { %3214 = vst.msk [vmem:[%s7722_s8 + $0x8] sm:$0xf] %vm3211_vm2, %v4279_v2  ;;  %v4277_v14 = vpack.c.bf16 %v6824_v7, %v6824_v7  ;;  %v6837_v8 = vadd.f32 %v4796_v25, %v4730_v0  ;;  %v8222_v0 = vunpack.c.l.bf16 %v8220_v52 }
 0x221   :  { %v2170_v15 = vpack.c.bf16 %v2133_v44, %v2132_v18  ;;  %v2315_v12 = vpop.f32.mrf.mxu0  ;;  %v1659_v18 = vmul.f32 %v8221_v19, %v1578_v20  ;;  %v8237_v19 = vld [vmem:[#allocation74_spill] sm:$0xff] }
 0x222   :  { %3212 = vst.msk [vmem:[%s7722_s8] sm:$0xf] %vm3211_vm2, %v4277_v14  ;;  %v4280_v42 = vpack.c.bf16 %v6837_v8, %v6837_v8  ;;  %v6845_v1 = vadd.f32 %v2703_v59, %v2315_v12  ;;  %v1553_v22 = vpop.permute.xlu1 %1552  ;;  %v8223_v12 = vld [vmem:[#allocation71_spill] sm:$0xff] }
 0x223   :  { %v1654_v5 = vmul.f32 %v8208_v61, %v1553_v22  ;;  %4779 = vmatprep.mubr.msk.bf16.mxu0 %vm696_vm0, %v2170_v15  ;;  %v1588_v54 = vpop.permute.xlu0 %1587 }
 0x224   :  { %3215 = vst.msk [vmem:[%s7722_s8 + $0xc] sm:$0xf] %vm3211_vm2, %v4280_v42  ;;  %v4278_v63 = vpack.c.bf16 %v6845_v1, %v6845_v1  ;;  %v8224_v42 = vmax.f32 %v8223_v12, 0.0 }
 0x225   :  { %v1691_v38 = vpack.c.bf16 %v1655_v10, %v1654_v5 }
 0x226   :  { %3213 = vst.msk [vmem:[%s7722_s8 + $0x4] sm:$0xf] %vm3211_vm2, %v4278_v63  ;;  %v2033_v37 = vpop.permute.xlu1 %2032  ;;  %v2139_v22 = vmul.f32 %v2058_v4, %v8224_v42  ;;  %v8232_v4 = vld [vmem:[#allocation73_spill] sm:$0xff] }
 0x227   :  { %v2134_v47 = vmul.f32 %v2033_v37, %v8212_v56  ;;  %v4799_v11 = vpop.f32.mrf.mxu1  ;;  %4846 = vmatmul.mubr.msk.bf16.gmra.mxu1 %vm696_vm0, %v1691_v38  ;;  %v2068_v5 = vpop.permute.xlu0 %2067  ;;  %v8227_v37 = vld [vmem:[#allocation67_spill] sm:$0xff] }
 0x228   :  { %v8228_v46 = vunpack.c.h.bf16 %v8227_v37 }
 0x229   :  { %v2171_v6 = vpack.c.bf16 %v2135_v32, %v2134_v47  ;;  %v2716_v39 = vpop.f32.mrf.mxu1  ;;  %v8229_v32 = vunpack.c.l.bf16 %v8227_v37 }
 0x22a   :  { %v1563_v40 = vpop.permute.xlu1 %1562  ;;  %v1661_v29 = vmul.f32 %v8228_v46, %v1588_v54 }
 0x22b   :  { %v1656_v23 = vmul.f32 %v8215_v58, %v1563_v40  ;;  %v4733_v27 = vpop.f32.mrf.mxu0  ;;  %4780 = vmatmul.mubr.msk.bf16.gmra.mxu0 %vm696_vm0, %v2171_v6  ;;  %v4800_v31 = vpop.f32.mrf.mxu1  ;;  %v8230_v58 = vld [vmem:[#allocation69_spill] sm:$0xff] }
 0x22c   :  { %v6872_v51 = vadd.f32 %v4799_v11, %v4733_v27  ;;  %v1598_v40 = vpop.permute.xlu0 %1597 }
 0x22d   :  { %v1692_v43 = vpack.c.bf16 %v1657_v24, %v1656_v23  ;;  %v2328_v16 = vpop.f32.mrf.mxu0  ;;  %v2719_v60 = vpop.f32.mrf.mxu1  ;;  %v8231_v23 = vmax.f32 %v8230_v58, 0.0 }
 0x22e   :  { %v4283_v3 = vpack.c.bf16 %v6872_v51, %v6872_v51  ;;  %v6876_v30 = vadd.f32 %v2716_v39, %v2328_v16  ;;  %v2043_v33 = vpop.permute.xlu1 %2042 }
 0x22f   :  { %v2136_v62 = vmul.f32 %v2043_v33, %v8219_v55  ;;  %v4734_v34 = vpop.f32.mrf.mxu0  ;;  %4849 = vmatprep.mubr.msk.bf16.mxu1 %vm696_vm0, %v1692_v43  ;;  %v2141_v27 = vmul.f32 %v2068_v5, %v8231_v23  ;;  %v8233_v43 = vmax.f32 %v8232_v4, 0.0  ;;  %v3663_v4 = vsel %vm696_vm0, %v6824_v7, 0.0 }
 0x230   :  { %3218 = vst.msk [vmem:[%s7722_s8 + $0x18] sm:$0xf] %vm3211_vm2, %v4283_v3  ;;  %v4281_v50 = vpack.c.bf16 %v6876_v30, %v6876_v30  ;;  %v6889_v25 = vadd.f32 %v4800_v31, %v4734_v34  ;;  %v8234_v34 = vld [vmem:[#allocation70_spill] sm:$0xff]  ;;  %v2078_v54 = vpop.permute.xlu0 %2077 }
 0x231   :  { %v2172_v26 = vpack.c.bf16 %v2137_v45, %v2136_v62  ;;  %v2331_v2 = vpop.f32.mrf.mxu0 }
 0x232   :  { %3216 = vst.msk [vmem:[%s7722_s8 + $0x10] sm:$0xf] %vm3211_vm2, %v4281_v50  ;;  %v4284_v28 = vpack.c.bf16 %v6889_v25, %v6889_v25  ;;  %v6897_v49 = vadd.f32 %v2719_v60, %v2331_v2  ;;  %v1573_v44 = vpop.permute.xlu1 %1572  ;;  %v8235_v50 = vunpack.c.h.bf16 %v8234_v34 }
 0x233   :  { %v1658_v53 = vmul.f32 %v8222_v0, %v1573_v44  ;;  %4783 = vmatprep.mubr.msk.bf16.mxu0 %vm696_vm0, %v2172_v26  ;;  %v8236_v26 = vunpack.c.l.bf16 %v8234_v34 }
 0x234   :  { %3219 = vst.msk [vmem:[%s7722_s8 + $0x1c] sm:$0xf] %vm3211_vm2, %v4284_v28  ;;  %v4282_v14 = vpack.c.bf16 %v6897_v49, %v6897_v49  ;;  %v1663_v60 = vmul.f32 %v8235_v50, %v1598_v40 }
 0x235   :  { %v1693_v59 = vpack.c.bf16 %v1659_v18, %v1658_v53  ;;  %v8238_v18 = vmax.f32 %v8237_v19, 0.0  ;;  %v8239_v53 = vld [vmem:[#allocation72_spill] sm:$0xff] }
 0x236   :  { %3217 = vst.msk [vmem:[%s7722_s8 + $0x14] sm:$0xf] %vm3211_vm2, %v4282_v14  ;;  %v2053_v15 = vpop.permute.xlu1 %2052  ;;  %v8240_v14 = vmax.f32 %v8239_v53, 0.0 }
 0x237   :  { %v2138_v10 = vmul.f32 %v2053_v15, %v8226_v57  ;;  %v4803_v61 = vpop.f32.mrf.mxu1  ;;  %4850 = vmatmul.mubr.msk.bf16.gmra.mxu1 %vm696_vm0, %v1693_v59  ;;  %v2143_v0 = vmul.f32 %v2078_v54, %v8238_v18 }
 0x239   :  { %v2173_v63 = vpack.c.bf16 %v2139_v22, %v2138_v10  ;;  %v2732_v38 = vpop.f32.mrf.mxu1 }
 0x23a   :  { %v1583_v20 = vpop.permute.xlu1 %1582 }
 0x23b   :  { %v1660_v36 = vmul.f32 %v8229_v32, %v1583_v20  ;;  %v4737_v56 = vpop.f32.mrf.mxu0  ;;  %4784 = vmatmul.mubr.msk.bf16.gmra.mxu0 %vm696_vm0, %v2173_v63  ;;  %v4804_v6 = vpop.f32.mrf.mxu1 }
 0x23c   :  { %v6924_v47 = vadd.f32 %v4803_v61, %v4737_v56 }
 0x23d   :  { %v1694_v11 = vpack.c.bf16 %v1661_v29, %v1660_v36  ;;  %v2344_v39 = vpop.f32.mrf.mxu0  ;;  %v2735_v17 = vpop.f32.mrf.mxu1 }
 0x23e   :  { %v4287_v41 = vpack.c.bf16 %v6924_v47, %v6924_v47  ;;  %v6928_v9 = vadd.f32 %v2732_v38, %v2344_v39  ;;  %v2063_v24 = vpop.permute.xlu1 %2062 }
 0x23f   :  { %v2140_v31 = vmul.f32 %v2063_v24, %v8233_v43  ;;  %v4738_v16 = vpop.f32.mrf.mxu0  ;;  %4853 = vmatprep.mubr.msk.bf16.mxu1 %vm696_vm0, %v1694_v11  ;;  %v3664_v24 = vsel %vm696_vm0, %v6845_v1, 0.0 }
 0x240   :  { %3222 = vst.msk [vmem:[%s7722_s8 + $0x28] sm:$0xf] %vm3211_vm2, %v4287_v41  ;;  %v4285_v3 = vpack.c.bf16 %v6928_v9, %v6928_v9  ;;  %v6941_v33 = vadd.f32 %v4804_v6, %v4738_v16  ;;  %v3665_v16 = vadd.f32 %v3664_v24, %v3663_v4 }
 0x241   :  { %v2174_v21 = vpack.c.bf16 %v2141_v27, %v2140_v31  ;;  %v2347_v45 = vpop.f32.mrf.mxu0 }
 0x242   :  { %3220 = vst.msk [vmem:[%s7722_s8 + $0x20] sm:$0xf] %vm3211_vm2, %v4285_v3  ;;  %v4288_v13 = vpack.c.bf16 %v6941_v33, %v6941_v33  ;;  %v6949_v55 = vadd.f32 %v2735_v17, %v2347_v45  ;;  %v1593_v62 = vpop.permute.xlu1 %1592 }
 0x243   :  { %v1662_v2 = vmul.f32 %v8236_v26, %v1593_v62  ;;  %4787 = vmatprep.mubr.msk.bf16.mxu0 %vm696_vm0, %v2174_v21  ;;  %v3670_v26 = vsel %vm696_vm0, %v6876_v30, 0.0 }
 0x244   :  { %3223 = vst.msk [vmem:[%s7722_s8 + $0x2c] sm:$0xf] %vm3211_vm2, %v4288_v13  ;;  %v4286_v28 = vpack.c.bf16 %v6949_v55, %v6949_v55  ;;  %v3666_v13 = vsel %vm696_vm0, %v6820_v48, 0.0 }
 0x245   :  { %v1695_v44 = vpack.c.bf16 %v1663_v60, %v1662_v2  ;;  %v3667_v34 = vadd.f32 %v3666_v13, %v3665_v16  ;;  %v3668_v60 = vsel %vm696_vm0, %v6837_v8, 0.0  ;;  %v3684_v13 = vsel %vm696_vm0, %v6941_v33, 0.0 }
 0x246   :  { %3221 = vst.msk [vmem:[%s7722_s8 + $0x24] sm:$0xf] %vm3211_vm2, %v4286_v28  ;;  %v2073_v52 = vpop.permute.xlu1 %2072  ;;  %v3672_v28 = vsel %vm696_vm0, %v6897_v49, 0.0 }
 0x247   :  { %v2142_v59 = vmul.f32 %v2073_v52, %v8240_v14  ;;  %v4807_v15 = vpop.f32.mrf.mxu1  ;;  %4854 = vmatmul.mubr.msk.bf16.gmra.mxu1 %vm696_vm0, %v1695_v44  ;;  %v3669_v2 = vadd.f32 %v3668_v60, %v3667_v34 }
 0x249   :  { %v2175_v12 = vpack.c.bf16 %v2143_v0, %v2142_v59  ;;  %v2748_v42 = vpop.f32.mrf.mxu1  ;;  %v3671_v44 = vadd.f32 %v3670_v26, %v3669_v2 }
 0x24b   :  { %v4741_v22 = vpop.f32.mrf.mxu0  ;;  %4788 = vmatmul.mubr.msk.bf16.gmra.mxu0 %vm696_vm0, %v2175_v12  ;;  %v4808_v57 = vpop.f32.mrf.mxu1  ;;  %v3673_v18 = vadd.f32 %v3672_v28, %v3671_v44  ;;  %v3674_v12 = vsel %vm696_vm0, %v6872_v51, 0.0 }
 0x24c   :  { %v6972_v35 = vadd.f32 %v4807_v15, %v4741_v22 }
 0x24d   :  { %v2360_v10 = vpop.f32.mrf.mxu0  ;;  %v2751_v37 = vpop.f32.mrf.mxu1 }
 0x24e   :  { %v4291_v61 = vpack.c.bf16 %v6972_v35, %v6972_v35  ;;  %v6976_v5 = vadd.f32 %v2748_v42, %v2360_v10 }
 0x24f   :  { %v4742_v63 = vpop.f32.mrf.mxu0 }
 0x250   :  { %3226 = vst.msk [vmem:[%s7722_s8 + $0x38] sm:$0xf] %vm3211_vm2, %v4291_v61  ;;  %v4289_v38 = vpack.c.bf16 %v6976_v5, %v6976_v5  ;;  %v6984_v20 = vadd.f32 %v4808_v57, %v4742_v63  ;;  %v3675_v57 = vadd.f32 %v3674_v12, %v3673_v18 }
 0x251   :  { %v2363_v46 = vpop.f32.mrf.mxu0 }
 0x252   :  { %3224 = vst.msk [vmem:[%s7722_s8 + $0x30] sm:$0xf] %vm3211_vm2, %v4289_v38  ;;  %v4292_v29 = vpack.c.bf16 %v6984_v20, %v6984_v20  ;;  %v6992_v32 = vadd.f32 %v2751_v37, %v2363_v46  ;;  %v3676_v37 = vsel %vm696_vm0, %v6889_v25, 0.0  ;;  %v3678_v46 = vsel %vm696_vm0, %v6928_v9, 0.0 }
 0x254   :  { %3227 = vst.msk [vmem:[%s7722_s8 + $0x3c] sm:$0xf] %vm3211_vm2, %v4292_v29  ;;  %v4290_v36 = vpack.c.bf16 %v6992_v32, %v6992_v32 }
 0x256   :  { %3225 = vst.msk [vmem:[%s7722_s8 + $0x34] sm:$0xf] %vm3211_vm2, %v4290_v36  ;;  %v3677_v36 = vadd.f32 %v3676_v37, %v3675_v57  ;;  %v3692_v57 = vsel %vm696_vm0, %v6984_v20, 0.0 }
 0x257   :  { %v4811_v56 = vpop.f32.mrf.mxu1 }
 0x259   :  { %v2764_v11 = vpop.f32.mrf.mxu1 }
 0x25b   :  { %v4745_v6 = vpop.f32.mrf.mxu0  ;;  %v4812_v40 = vpop.f32.mrf.mxu1 }
 0x25c   :  { %v7004_v39 = vadd.f32 %v4811_v56, %v4745_v6  ;;  %v3680_v56 = vsel %vm696_vm0, %v6949_v55, 0.0 }
 0x25d   :  { %v2376_v41 = vpop.f32.mrf.mxu0  ;;  %v2767_v3 = vpop.f32.mrf.mxu1 }
 0x25e   :  { %v4295_v58 = vpack.c.bf16 %v7004_v39, %v7004_v39  ;;  %v7010_v23 = vadd.f32 %v2764_v11, %v2376_v41  ;;  %v3679_v11 = vadd.f32 %v3678_v46, %v3677_v36 }
 0x25f   :  { %v4746_v27 = vpop.f32.mrf.mxu0 }
 0x260   :  { %3230 = vst.msk [vmem:[%s7722_s8 + $0x48] sm:$0xf] %vm3211_vm2, %v4295_v58  ;;  %v4293_v43 = vpack.c.bf16 %v7010_v23, %v7010_v23  ;;  %v7020_v31 = vadd.f32 %v4812_v40, %v4746_v27  ;;  %v3681_v40 = vadd.f32 %v3680_v56, %v3679_v11  ;;  %v3682_v58 = vsel %vm696_vm0, %v6924_v47, 0.0 }
 0x261   :  { %v2379_v17 = vpop.f32.mrf.mxu0 }
 0x262   :  { %3228 = vst.msk [vmem:[%s7722_s8 + $0x40] sm:$0xf] %vm3211_vm2, %v4293_v43  ;;  %v4296_v21 = vpack.c.bf16 %v7020_v31, %v7020_v31  ;;  %v7028_v45 = vadd.f32 %v2767_v3, %v2379_v17  ;;  %v3683_v4 = vadd.f32 %v3682_v58, %v3681_v40 }
 0x264   :  { %3231 = vst.msk [vmem:[%s7722_s8 + $0x4c] sm:$0xf] %vm3211_vm2, %v4296_v21  ;;  %v4294_v62 = vpack.c.bf16 %v7028_v45, %v7028_v45  ;;  %v3685_v60 = vadd.f32 %v3684_v13, %v3683_v4 }
 0x266   :  { %3229 = vst.msk [vmem:[%s7722_s8 + $0x44] sm:$0xf] %vm3211_vm2, %v4294_v62  ;;  %v3686_v62 = vsel %vm696_vm0, %v6976_v5, 0.0 }
 0x267   :  { %v4815_v50 = vpop.f32.mrf.mxu1 }
 0x269   :  { %v2780_v54 = vpop.f32.mrf.mxu1 }
 0x26b   :  { %v4749_v52 = vpop.f32.mrf.mxu0  ;;  %v4816_v0 = vpop.f32.mrf.mxu1 }
 0x26c   :  { %v7048_v19 = vadd.f32 %v4815_v50, %v4749_v52  ;;  %v3687_v52 = vadd.f32 %v3686_v62, %v3685_v60 }
 0x26d   :  { %v2392_v53 = vpop.f32.mrf.mxu0  ;;  %v2783_v10 = vpop.f32.mrf.mxu1 }
 0x26e   :  { %v4299_v14 = vpack.c.bf16 %v7048_v19, %v7048_v19  ;;  %v7052_v59 = vadd.f32 %v2780_v54, %v2392_v53  ;;  %v3688_v54 = vsel %vm696_vm0, %v6992_v32, 0.0 }
 0x26f   :  { %v4750_v15 = vpop.f32.mrf.mxu0 }
 0x270   :  { %3234 = vst.msk [vmem:[%s7722_s8 + $0x58] sm:$0xf] %vm3211_vm2, %v4299_v14  ;;  %v4297_v42 = vpack.c.bf16 %v7052_v59, %v7052_v59  ;;  %v7062_v22 = vadd.f32 %v4816_v0, %v4750_v15  ;;  %v3689_v0 = vadd.f32 %v3688_v54, %v3687_v52  ;;  %v3690_v14 = vsel %vm696_vm0, %v6972_v35, 0.0 }
 0x271   :  { %v2395_v61 = vpop.f32.mrf.mxu0  ;;  %v3702_v60 = vsel %vm696_vm0, %v7052_v59, 0.0 }
 0x272   :  { %3232 = vst.msk [vmem:[%s7722_s8 + $0x50] sm:$0xf] %vm3211_vm2, %v4297_v42  ;;  %v4300_v63 = vpack.c.bf16 %v7062_v22, %v7062_v22  ;;  %v7070_v38 = vadd.f32 %v2783_v10, %v2395_v61  ;;  %v3691_v15 = vadd.f32 %v3690_v14, %v3689_v0  ;;  %v3694_v10 = vsel %vm696_vm0, %v7010_v23, 0.0 }
 0x274   :  { %3235 = vst.msk [vmem:[%s7722_s8 + $0x5c] sm:$0xf] %vm3211_vm2, %v4300_v63  ;;  %v4298_v29 = vpack.c.bf16 %v7070_v38, %v7070_v38  ;;  %v3693_v63 = vadd.f32 %v3692_v57, %v3691_v15  ;;  %v3704_v54 = vsel %vm696_vm0, %v7070_v38, 0.0  ;;  %v3706_v57 = vsel %vm696_vm0, %v7048_v19, 0.0 }
 0x276   :  { %3233 = vst.msk [vmem:[%s7722_s8 + $0x54] sm:$0xf] %vm3211_vm2, %v4298_v29  ;;  %v3696_v29 = vsel %vm696_vm0, %v7028_v45, 0.0  ;;  %v3695_v11 = vadd.f32 %v3694_v10, %v3693_v63 }
 0x277   :  { %v4819_v6 = vpop.f32.mrf.mxu1 }
 0x279   :  { %v2796_v41 = vpop.f32.mrf.mxu1 }
 0x27b   :  { %v4753_v24 = vpop.f32.mrf.mxu0  ;;  %v4820_v43 = vpop.f32.mrf.mxu1 }
 0x27c   :  { %v7090_v27 = vadd.f32 %v4819_v6, %v4753_v24  ;;  %v3697_v24 = vadd.f32 %v3696_v29, %v3695_v11 }
 0x27d   :  { %v2408_v16 = vpop.f32.mrf.mxu0  ;;  %v2799_v26 = vpop.f32.mrf.mxu1 }
 0x27e   :  { %v4303_v3 = vpack.c.bf16 %v7090_v27, %v7090_v27  ;;  %v7094_v17 = vadd.f32 %v2796_v41, %v2408_v16 }
 0x27f   :  { %v4754_v21 = vpop.f32.mrf.mxu0 }
 0x280   :  { %3238 = vst.msk [vmem:[%s7722_s8 + $0x68] sm:$0xf] %vm3211_vm2, %v4303_v3  ;;  %v4301_v34 = vpack.c.bf16 %v7094_v17, %v7094_v17  ;;  %v7106_v50 = vadd.f32 %v4820_v43, %v4754_v21  ;;  %v3698_v3 = vsel %vm696_vm0, %v7004_v39, 0.0 }
 0x281   :  { %v2411_v2 = vpop.f32.mrf.mxu0  ;;  %v3699_v13 = vadd.f32 %v3698_v3, %v3697_v24 }
 0x282   :  { %3236 = vst.msk [vmem:[%s7722_s8 + $0x60] sm:$0xf] %vm3211_vm2, %v4301_v34  ;;  %v4304_v28 = vpack.c.bf16 %v7106_v50, %v7106_v50  ;;  %v7116_v44 = vadd.f32 %v2799_v26, %v2411_v2  ;;  %v3700_v34 = vsel %vm696_vm0, %v7020_v31, 0.0 }
 0x283   :  { %v3701_v26 = vadd.f32 %v3700_v34, %v3699_v13  ;;  %v3714_v34 = vsel %vm696_vm0, %v7090_v27, 0.0 }
 0x284   :  { %3239 = vst.msk [vmem:[%s7722_s8 + $0x6c] sm:$0xf] %vm3211_vm2, %v4304_v28  ;;  %v4302_v18 = vpack.c.bf16 %v7116_v44, %v7116_v44 }
 0x285   :  { %v3703_v28 = vadd.f32 %v3702_v60, %v3701_v26 }
 0x286   :  { %3237 = vst.msk [vmem:[%s7722_s8 + $0x64] sm:$0xf] %vm3211_vm2, %v4302_v18 }
 0x287   :  { %v4823_v53 = vpop.f32.mrf.mxu1  ;;  %v3705_v0 = vadd.f32 %v3704_v54, %v3703_v28 }
 0x289   :  { %v2812_v12 = vpop.f32.mrf.mxu1 }
 0x28b   :  { %v4757_v42 = vpop.f32.mrf.mxu0  ;;  %v4824_v37 = vpop.f32.mrf.mxu1 }
 0x28c   :  { %v7134_v61 = vadd.f32 %v4823_v53, %v4757_v42 }
 0x28d   :  { %v2424_v46 = vpop.f32.mrf.mxu0  ;;  %v2815_v58 = vpop.f32.mrf.mxu1 }
 0x28e   :  { %v4307_v36 = vpack.c.bf16 %v7134_v61, %v7134_v61  ;;  %v7140_v56 = vadd.f32 %v2812_v12, %v2424_v46 }
 0x28f   :  { %v4758_v6 = vpop.f32.mrf.mxu0 }
 0x290   :  { %3242 = vst.msk [vmem:[%s7722_s8 + $0x78] sm:$0xf] %vm3211_vm2, %v4307_v36  ;;  %v4305_v40 = vpack.c.bf16 %v7140_v56, %v7140_v56  ;;  %v7148_v41 = vadd.f32 %v4824_v37, %v4758_v6  ;;  %v3707_v37 = vadd.f32 %v3706_v57, %v3705_v0  ;;  %v3708_v6 = vsel %vm696_vm0, %v7062_v22, 0.0 }
 0x291   :  { %v2427_v4 = vpop.f32.mrf.mxu0 }
 0x292   :  { %3240 = vst.msk [vmem:[%s7722_s8 + $0x70] sm:$0xf] %vm3211_vm2, %v4305_v40  ;;  %v4308_v43 = vpack.c.bf16 %v7148_v41, %v7148_v41  ;;  %v7156_v16 = vadd.f32 %v2815_v58, %v2427_v4  ;;  %v3710_v40 = vsel %vm696_vm0, %v7094_v17, 0.0  ;;  %v3709_v58 = vadd.f32 %v3708_v6, %v3707_v37 }
 0x293   :  { %v3712_v4 = vsel %vm696_vm0, %v7116_v44, 0.0 }
 0x294   :  { %3243 = vst.msk [vmem:[%s7722_s8 + $0x7c] sm:$0xf] %vm3211_vm2, %v4308_v43  ;;  %v4306_v21 = vpack.c.bf16 %v7156_v16, %v7156_v16  ;;  %v3711_v43 = vadd.f32 %v3710_v40, %v3709_v58 }
 0x296   :  { %3241 = vst.msk [vmem:[%s7722_s8 + $0x74] sm:$0xf] %vm3211_vm2, %v4306_v21  ;;  %v3713_v21 = vadd.f32 %v3712_v4, %v3711_v43  ;;  %v3722_v4 = vsel %vm696_vm0, %v7134_v61, 0.0 }
 0x297   :  { %v4827_v62 = vpop.f32.mrf.mxu1 }
 0x298   :  { %v3715_v26 = vadd.f32 %v3714_v34, %v3713_v21 }
 0x299   :  { %v2828_v2 = vpop.f32.mrf.mxu1 }
 0x29b   :  { %v4761_v52 = vpop.f32.mrf.mxu0  ;;  %v4828_v53 = vpop.f32.mrf.mxu1 }
 0x29c   :  { %v7176_v18 = vadd.f32 %v4827_v62, %v4761_v52 }
 0x29d   :  { %v2440_v14 = vpop.f32.mrf.mxu0  ;;  %v2831_v46 = vpop.f32.mrf.mxu1 }
 0x29e   :  { %v4311_v15 = vpack.c.bf16 %v7176_v18, %v7176_v18  ;;  %v7180_v12 = vadd.f32 %v2828_v2, %v2440_v14  ;;  %v3718_v14 = vsel %vm696_vm0, %v7140_v56, 0.0 }
 0x29f   :  { %v4762_v42 = vpop.f32.mrf.mxu0 }
 0x2a0   :  { %3246 = vst.msk [vmem:[%s7722_s8 + $0x88] sm:$0xf] %vm3211_vm2, %v4311_v15  ;;  %v4309_v10 = vpack.c.bf16 %v7180_v12, %v7180_v12  ;;  %v7190_v63 = vadd.f32 %v4828_v53, %v4762_v42  ;;  %v3716_v53 = vsel %vm696_vm0, %v7106_v50, 0.0 }
 0x2a1   :  { %v2443_v29 = vpop.f32.mrf.mxu0  ;;  %v3717_v57 = vadd.f32 %v3716_v53, %v3715_v26 }
 0x2a2   :  { %3244 = vst.msk [vmem:[%s7722_s8 + $0x80] sm:$0xf] %vm3211_vm2, %v4309_v10  ;;  %v4312_v36 = vpack.c.bf16 %v7190_v63, %v7190_v63  ;;  %v7198_v11 = vadd.f32 %v2831_v46, %v2443_v29  ;;  %v3720_v46 = vsel %vm696_vm0, %v7156_v16, 0.0 }
 0x2a3   :  { %v3719_v6 = vadd.f32 %v3718_v14, %v3717_v57 }
 0x2a4   :  { %3247 = vst.msk [vmem:[%s7722_s8 + $0x8c] sm:$0xf] %vm3211_vm2, %v4312_v36  ;;  %v4310_v24 = vpack.c.bf16 %v7198_v11, %v7198_v11 }
 0x2a6   :  { %3245 = vst.msk [vmem:[%s7722_s8 + $0x84] sm:$0xf] %vm3211_vm2, %v4310_v24  ;;  %v3721_v24 = vadd.f32 %v3720_v46, %v3719_v6 }
 0x2a7   :  { %v4831_v3 = vpop.f32.mrf.mxu1 }
 0x2a8   :  { %v3723_v43 = vadd.f32 %v3722_v4, %v3721_v24  ;;  %v3730_v24 = vsel %vm696_vm0, %v7176_v18, 0.0 }
 0x2a9   :  { %v2844_v13 = vpop.f32.mrf.mxu1 }
 0x2ab   :  { %v4765_v62 = vpop.f32.mrf.mxu0  ;;  %v4832_v2 = vpop.f32.mrf.mxu1 }
 0x2ac   :  { %v7218_v60 = vadd.f32 %v4831_v3, %v4765_v62  ;;  %v3726_v62 = vsel %vm696_vm0, %v7180_v12, 0.0 }
 0x2ad   :  { %v2456_v54 = vpop.f32.mrf.mxu0  ;;  %v2847_v10 = vpop.f32.mrf.mxu1 }
 0x2ae   :  { %v4315_v28 = vpack.c.bf16 %v7218_v60, %v7218_v60  ;;  %v7222_v52 = vadd.f32 %v2844_v13, %v2456_v54  ;;  %v3724_v13 = vsel %vm696_vm0, %v7148_v41, 0.0 }
 0x2af   :  { %v4766_v0 = vpop.f32.mrf.mxu0  ;;  %v3725_v26 = vadd.f32 %v3724_v13, %v3723_v43 }
 0x2b0   :  { %3250 = vst.msk [vmem:[%s7722_s8 + $0x98] sm:$0xf] %vm3211_vm2, %v4315_v28  ;;  %v4313_v15 = vpack.c.bf16 %v7222_v52, %v7222_v52  ;;  %v7234_v42 = vadd.f32 %v4832_v2, %v4766_v0  ;;  %v3728_v28 = vsel %vm696_vm0, %v7198_v11, 0.0 }
 0x2b1   :  { %v2459_v37 = vpop.f32.mrf.mxu0  ;;  %v3727_v14 = vadd.f32 %v3726_v62, %v3725_v26 }
 0x2b2   :  { %3248 = vst.msk [vmem:[%s7722_s8 + $0x90] sm:$0xf] %vm3211_vm2, %v4313_v15  ;;  %v4316_v29 = vpack.c.bf16 %v7234_v42, %v7234_v42  ;;  %v7244_v36 = vadd.f32 %v2847_v10, %v2459_v37 }
 0x2b3   :  { %v3729_v37 = vadd.f32 %v3728_v28, %v3727_v14 }
 0x2b4   :  { %3251 = vst.msk [vmem:[%s7722_s8 + $0x9c] sm:$0xf] %vm3211_vm2, %v4316_v29  ;;  %v4314_v40 = vpack.c.bf16 %v7244_v36, %v7244_v36  ;;  %v3736_v26 = vsel %vm696_vm0, %v7244_v36, 0.0 }
 0x2b5   :  { %v3731_v4 = vadd.f32 %v3730_v24, %v3729_v37 }
 0x2b6   :  { %3249 = vst.msk [vmem:[%s7722_s8 + $0x94] sm:$0xf] %vm3211_vm2, %v4314_v40 }
 0x2b7   :  { %v4835_v58 = vpop.f32.mrf.mxu1 }
 0x2b9   :  { %v2860_v3 = vpop.f32.mrf.mxu1 }
 0x2bb   :  { %v4769_v21 = vpop.f32.mrf.mxu0  ;;  %v4836_v2 = vpop.f32.mrf.mxu1 }
 0x2bc   :  { %v7262_v34 = vadd.f32 %v4835_v58, %v4769_v21  ;;  %v3734_v21 = vsel %vm696_vm0, %v7222_v52, 0.0 }
 0x2bd   :  { %v2472_v54 = vpop.f32.mrf.mxu0  ;;  %v2863_v46 = vpop.f32.mrf.mxu1 }
 0x2be   :  { %v4319_v0 = vpack.c.bf16 %v7262_v34, %v7262_v34  ;;  %v7268_v53 = vadd.f32 %v2860_v3, %v2472_v54  ;;  %v3732_v3 = vsel %vm696_vm0, %v7190_v63, 0.0 }
 0x2bf   :  { %v4770_v15 = vpop.f32.mrf.mxu0  ;;  %v3733_v13 = vadd.f32 %v3732_v3, %v3731_v4 }
 0x2c0   :  { %3254 = vst.msk [vmem:[%s7722_s8 + $0xa8] sm:$0xf] %vm3211_vm2, %v4319_v0  ;;  %v4317_v57 = vpack.c.bf16 %v7268_v53, %v7268_v53  ;;  %v7276_v10 = vadd.f32 %v4836_v2, %v4770_v15 }
 0x2c1   :  { %v2475_v29 = vpop.f32.mrf.mxu0  ;;  %v3735_v2 = vadd.f32 %v3734_v21, %v3733_v13  ;;  %v3740_v13 = vsel %vm696_vm0, %v7234_v42, 0.0 }
 0x2c2   :  { %8241 = vst [vmem:[#allocation75_spill] sm:$0xff] %v7276_v10  ;;  %3252 = vst.msk [vmem:[%s7722_s8 + $0xa0] sm:$0xf] %vm3211_vm2, %v4317_v57  ;;  %v4320_v6 = vpack.c.bf16 %v7276_v10, %v7276_v10  ;;  %v7284_v40 = vadd.f32 %v2863_v46, %v2475_v29  ;;  %v3738_v29 = vsel %vm696_vm0, %v7218_v60, 0.0 }
 0x2c3   :  { %v3737_v0 = vadd.f32 %v3736_v26, %v3735_v2 }
 0x2c4   :  { %8242 = vst [vmem:[#allocation3_spill] sm:$0xff] %v7284_v40  ;;  %3255 = vst.msk [vmem:[%s7722_s8 + $0xac] sm:$0xf] %vm3211_vm2, %v4320_v6  ;;  %v4318_v58 = vpack.c.bf16 %v7284_v40, %v7284_v40 }
 0x2c6   :  { %3253 = vst.msk [vmem:[%s7722_s8 + $0xa4] sm:$0xf] %vm3211_vm2, %v4318_v58  ;;  %v3739_v58 = vadd.f32 %v3738_v29, %v3737_v0  ;;  %v3746_v29 = vsel %vm696_vm0, %v7262_v34, 0.0 }
 0x2c7   :  { %v4839_v43 = vpop.f32.mrf.mxu1 }
 0x2c8   :  { %v3741_v2 = vadd.f32 %v3740_v13, %v3739_v58 }
 0x2c9   :  { %v2876_v62 = vpop.f32.mrf.mxu1 }
 0x2cb   :  { %v4773_v54 = vpop.f32.mrf.mxu0  ;;  %v4840_v14 = vpop.f32.mrf.mxu1 }
 0x2cc   :  { %v7304_v28 = vadd.f32 %v4839_v43, %v4773_v54  ;;  %v3744_v54 = vsel %vm696_vm0, %v7284_v40, 0.0 }
 0x2cd   :  { %v2488_v15 = vpop.f32.mrf.mxu0  ;;  %v2879_v4 = vpop.f32.mrf.mxu1 }
 0x2ce   :  { %8243 = vst [vmem:[#allocation4_spill] sm:$0xff] %v7304_v28  ;;  %v4323_v57 = vpack.c.bf16 %v7304_v28, %v7304_v28  ;;  %v7308_v37 = vadd.f32 %v2876_v62, %v2488_v15  ;;  %v3742_v62 = vsel %vm696_vm0, %v7268_v53, 0.0 }
 0x2cf   :  { %v4774_v46 = vpop.f32.mrf.mxu0  ;;  %v3743_v0 = vadd.f32 %v3742_v62, %v3741_v2  ;;  %v3748_v62 = vsel %vm696_vm0, %v7276_v10, 0.0 }
 0x2d0   :  { %8244 = vst [vmem:[#allocation7_spill] sm:$0xff] %v7308_v37  ;;  %3258 = vst.msk [vmem:[%s7722_s8 + $0xb8] sm:$0xf] %vm3211_vm2, %v4323_v57  ;;  %v4321_v6 = vpack.c.bf16 %v7308_v37, %v7308_v37  ;;  %v7318_v24 = vadd.f32 %v4840_v14, %v4774_v46 }
 0x2d1   :  { %v2491_v43 = vpop.f32.mrf.mxu0  ;;  %v3745_v15 = vadd.f32 %v3744_v54, %v3743_v0 }
 0x2d2   :  { %8245 = vst [vmem:[#allocation76_spill] sm:$0xff] %v7318_v24  ;;  %3256 = vst.msk [vmem:[%s7722_s8 + $0xb0] sm:$0xf] %vm3211_vm2, %v4321_v6  ;;  %v4324_v3 = vpack.c.bf16 %v7318_v24, %v7318_v24  ;;  %v7326_v21 = vadd.f32 %v2879_v4, %v2491_v43 }
 0x2d3   :  { %v3747_v4 = vadd.f32 %v3746_v29, %v3745_v15 }
 0x2d4   :  { %8246 = vst [vmem:[#allocation5_spill] sm:$0xff] %v7326_v21  ;;  %3259 = vst.msk [vmem:[%s7722_s8 + $0xbc] sm:$0xf] %vm3211_vm2, %v4324_v3  ;;  %v4322_v26 = vpack.c.bf16 %v7326_v21, %v7326_v21 }
 0x2d5   :  { %v3749_v0 = vadd.f32 %v3748_v62, %v3747_v4 }
 0x2d6   :  { %3257 = vst.msk [vmem:[%s7722_s8 + $0xb4] sm:$0xf] %vm3211_vm2, %v4322_v26  ;;  %v3750_v26 = vsel %vm696_vm0, %v7308_v37, 0.0 }
 0x2d7   :  { %v4843_v14 = vpop.f32.mrf.mxu1 }
 0x2d9   :  { %v2892_v57 = vpop.f32.mrf.mxu1 }
 0x2db   :  { %v4777_v46 = vpop.f32.mrf.mxu0  ;;  %v4844_v58 = vpop.f32.mrf.mxu1 }
 0x2dc   :  { %v7346_v6 = vadd.f32 %v4843_v14, %v4777_v46 }
 0x2dd   :  { %v2504_v43 = vpop.f32.mrf.mxu0  ;;  %v2895_v14 = vpop.f32.mrf.mxu1 }
 0x2de   :  { %8247 = vst [vmem:[#allocation8_spill] sm:$0xff] %v7346_v6  ;;  %v4327_v3 = vpack.c.bf16 %v7346_v6, %v7346_v6  ;;  %v7350_v13 = vadd.f32 %v2892_v57, %v2504_v43  ;;  %v3752_v57 = vsel %vm696_vm0, %v7326_v21, 0.0  ;;  %v3751_v43 = vadd.f32 %v3750_v26, %v3749_v0 }
 0x2df   :  { %v4778_v40 = vpop.f32.mrf.mxu0  ;;  %v3756_v0 = vsel %vm696_vm0, %v7318_v24, 0.0 }
 0x2e0   :  { %8248 = vst [vmem:[#allocation9_spill] sm:$0xff] %v7350_v13  ;;  %3262 = vst.msk [vmem:[%s7722_s8 + $0xc8] sm:$0xf] %vm3211_vm2, %v4327_v3  ;;  %v4325_v2 = vpack.c.bf16 %v7350_v13, %v7350_v13  ;;  %v7362_v54 = vadd.f32 %v4844_v58, %v4778_v40  ;;  %v3753_v4 = vadd.f32 %v3752_v57, %v3751_v43  ;;  %v3754_v3 = vsel %vm696_vm0, %v7304_v28, 0.0 }
 0x2e1   :  { %v2507_v15 = vpop.f32.mrf.mxu0 }
 0x2e2   :  { %8249 = vst [vmem:[#allocation77_spill] sm:$0xff] %v7362_v54  ;;  %3260 = vst.msk [vmem:[%s7722_s8 + $0xc0] sm:$0xf] %vm3211_vm2, %v4325_v2  ;;  %v4328_v46 = vpack.c.bf16 %v7362_v54, %v7362_v54  ;;  %v7372_v29 = vadd.f32 %v2895_v14, %v2507_v15  ;;  %v3755_v62 = vadd.f32 %v3754_v3, %v3753_v4  ;;  %v3758_v14 = vsel %vm696_vm0, %v7350_v13, 0.0 }
 0x2e4   :  { %8250 = vst [vmem:[#allocation6_spill] sm:$0xff] %v7372_v29  ;;  %3263 = vst.msk [vmem:[%s7722_s8 + $0xcc] sm:$0xf] %vm3211_vm2, %v4328_v46  ;;  %v4326_v40 = vpack.c.bf16 %v7372_v29, %v7372_v29  ;;  %v3757_v57 = vadd.f32 %v3756_v0, %v3755_v62 }
 0x2e6   :  { %3261 = vst.msk [vmem:[%s7722_s8 + $0xc4] sm:$0xf] %vm3211_vm2, %v4326_v40  ;;  %v3760_v40 = vsel %vm696_vm0, %v7372_v29, 0.0  ;;  %v3759_v3 = vadd.f32 %v3758_v14, %v3757_v57 }
 0x2e7   :  { %v4847_v58 = vpop.f32.mrf.mxu1 }
 0x2e9   :  { %v2908_v26 = vpop.f32.mrf.mxu1 }
 0x2eb   :  { %v4781_v2 = vpop.f32.mrf.mxu0  ;;  %v4848_v46 = vpop.f32.mrf.mxu1 }
 0x2ec   :  { %v7390_v15 = vadd.f32 %v4847_v58, %v4781_v2  ;;  %v3761_v2 = vadd.f32 %v3760_v40, %v3759_v3 }
 0x2ed   :  { %v2520_v43 = vpop.f32.mrf.mxu0  ;;  %v2911_v0 = vpop.f32.mrf.mxu1 }
 0x2ee   :  { %8251 = vst [vmem:[#allocation12_spill] sm:$0xff] %v7390_v15  ;;  %v4331_v28 = vpack.c.bf16 %v7390_v15, %v7390_v15  ;;  %v7396_v4 = vadd.f32 %v2908_v26, %v2520_v43 }
 0x2ef   :  { %v4782_v21 = vpop.f32.mrf.mxu0 }
 0x2f0   :  { %8252 = vst [vmem:[#allocation11_spill] sm:$0xff] %v7396_v4  ;;  %3266 = vst.msk [vmem:[%s7722_s8 + $0xd8] sm:$0xf] %vm3211_vm2, %v4331_v28  ;;  %v4329_v58 = vpack.c.bf16 %v7396_v4, %v7396_v4  ;;  %v7404_v62 = vadd.f32 %v4848_v46, %v4782_v21  ;;  %v3762_v28 = vsel %vm696_vm0, %v7346_v6, 0.0  ;;  %v3766_v43 = vsel %vm696_vm0, %v7396_v4, 0.0 }
 0x2f1   :  { %v2523_v29 = vpop.f32.mrf.mxu0  ;;  %v3763_v57 = vadd.f32 %v3762_v28, %v3761_v2 }
 0x2f2   :  { %8253 = vst [vmem:[#allocation10_spill] sm:$0xff] %v7404_v62  ;;  %3264 = vst.msk [vmem:[%s7722_s8 + $0xd0] sm:$0xf] %vm3211_vm2, %v4329_v58  ;;  %v4332_v26 = vpack.c.bf16 %v7404_v62, %v7404_v62  ;;  %v7412_v14 = vadd.f32 %v2911_v0, %v2523_v29  ;;  %v3764_v29 = vsel %vm696_vm0, %v7362_v54, 0.0 }
 0x2f3   :  { %v3765_v40 = vadd.f32 %v3764_v29, %v3763_v57  ;;  %v3770_v57 = vsel %vm696_vm0, %v7390_v15, 0.0 }
 0x2f4   :  { %8254 = vst [vmem:[#allocation17_spill] sm:$0xff] %v7412_v14  ;;  %3267 = vst.msk [vmem:[%s7722_s8 + $0xdc] sm:$0xf] %vm3211_vm2, %v4332_v26  ;;  %v4330_v21 = vpack.c.bf16 %v7412_v14, %v7412_v14  ;;  %v3768_v58 = vsel %vm696_vm0, %v7412_v14, 0.0 }
 0x2f5   :  { %v3767_v0 = vadd.f32 %v3766_v43, %v3765_v40 }
 0x2f6   :  { %3265 = vst.msk [vmem:[%s7722_s8 + $0xd4] sm:$0xf] %vm3211_vm2, %v4330_v21 }
 0x2f7   :  { %v4851_v46 = vpop.f32.mrf.mxu1  ;;  %v3769_v28 = vadd.f32 %v3768_v58, %v3767_v0  ;;  %v3772_v0 = vsel %vm696_vm0, %v7404_v62, 0.0 }
 0x2f9   :  { %v2924_v3 = vpop.f32.mrf.mxu1  ;;  %v3771_v43 = vadd.f32 %v3770_v57, %v3769_v28 }
 0x2fb   :  { %v4785_v26 = vpop.f32.mrf.mxu0  ;;  %v4852_v6 = vpop.f32.mrf.mxu1 }
 0x2fc   :  { %v7432_v2 = vadd.f32 %v4851_v46, %v4785_v26 }
 0x2fd   :  { %v2536_v13 = vpop.f32.mrf.mxu0  ;;  %v2927_v40 = vpop.f32.mrf.mxu1 }
 0x2fe   :  { %v4335_v21 = vpack.c.bf16 %v7432_v2, %v7432_v2  ;;  %v7436_v24 = vadd.f32 %v2924_v3, %v2536_v13  ;;  %v3778_v62 = vsel %vm696_vm0, %v7432_v2, 0.0 }
 0x2ff   :  { %v4786_v54 = vpop.f32.mrf.mxu0 }
 0x300   :  { %3270 = vst.msk [vmem:[%s7722_s8 + $0xe8] sm:$0xf] %vm3211_vm2, %v4335_v21  ;;  %v4333_v46 = vpack.c.bf16 %v7436_v24, %v7436_v24  ;;  %v2936_v29 = vadd.f32 %v4852_v6, %v4786_v54  ;;  %v3774_v26 = vsel %vm696_vm0, %v7436_v24, 0.0  ;;  %v3773_v54 = vadd.f32 %v3772_v0, %v3771_v43 }
 0x301   :  { %v2539_v58 = vpop.f32.mrf.mxu0 }
 0x302   :  { %3268 = vst.msk [vmem:[%s7722_s8 + $0xe0] sm:$0xf] %vm3211_vm2, %v4333_v46  ;;  %v4336_v13 = vpack.c.bf16 %v2936_v29, %v2936_v29  ;;  %v2928_v3 = vadd.f32 %v2927_v40, %v2539_v58  ;;  %v3775_v21 = vadd.f32 %v3774_v26, %v3773_v54  ;;  %v3780_v10 = vsel %vm696_vm0, %v2936_v29, 0.0 }
 0x304   :  { %3271 = vst.msk [vmem:[%s7722_s8 + $0xec] sm:$0xf] %vm3211_vm2, %v4336_v13  ;;  %v4334_v6 = vpack.c.bf16 %v2928_v3, %v2928_v3  ;;  %v3776_v28 = vsel %vm696_vm0, %v2928_v3, 0.0 }
 0x305   :  { %v3777_v46 = vadd.f32 %v3776_v28, %v3775_v21 }
 0x306   :  { %3269 = vst.msk [vmem:[%s7722_s8 + $0xe4] sm:$0xf] %vm3211_vm2, %v4334_v6 }
 0x307   :  { %v4855_v57 = vpop.f32.mrf.mxu1  ;;  %v3779_v14 = vadd.f32 %v3778_v62, %v3777_v46 }
 0x309   :  { %v2940_v40 = vpop.f32.mrf.mxu1  ;;  %v3781_v28 = vadd.f32 %v3780_v10, %v3779_v14 }
 0x30b   :  { %v4789_v58 = vpop.f32.mrf.mxu0  ;;  %v4856_v13 = vpop.f32.mrf.mxu1 }
 0x30c   :  { %v2949_v15 = vadd.f32 %v4855_v57, %v4789_v58 }
 0x30d   :  { %v2552_v4 = vpop.f32.mrf.mxu0  ;;  %v2943_v21 = vpop.f32.mrf.mxu1 }
 0x30e   :  { %v4339_v43 = vpack.c.bf16 %v2949_v15, %v2949_v15  ;;  %v2941_v0 = vadd.f32 %v2940_v40, %v2552_v4  ;;  %v3786_v10 = vsel %vm696_vm0, %v2949_v15, 0.0 }
 0x30f   :  { %v4790_v37 = vpop.f32.mrf.mxu0 }
 0x310   :  { %3274 = vst.msk [vmem:[%s7722_s8 + $0xf8] sm:$0xf] %vm3211_vm2, %v4339_v43  ;;  %v4337_v26 = vpack.c.bf16 %v2941_v0, %v2941_v0  ;;  %v3782_v6 = vsel %vm696_vm0, %v2941_v0, 0.0  ;;  %v2952_v54 = vadd.f32 %v4856_v13, %v4790_v37 }
 0x311   :  { %v2555_v57 = vpop.f32.mrf.mxu0  ;;  %v3783_v46 = vadd.f32 %v3782_v6, %v3781_v28 }
 0x312   :  { %3272 = vst.msk [vmem:[%s7722_s8 + $0xf0] sm:$0xf] %vm3211_vm2, %v4337_v26  ;;  %v4340_v4 = vpack.c.bf16 %v2952_v54, %v2952_v54  ;;  %v2944_v62 = vadd.f32 %v2943_v21, %v2555_v57  ;;  %v3788_v13 = vsel %vm696_vm0, %v2952_v54, 0.0 }
 0x314   :  { %3275 = vst.msk [vmem:[%s7722_s8 + $0xfc] sm:$0xf] %vm3211_vm2, %v4340_v4  ;;  %v4338_v40 = vpack.c.bf16 %v2944_v62, %v2944_v62  ;;  %v3784_v58 = vsel %vm696_vm0, %v2944_v62, 0.0 }
 0x315   :  { %v3785_v37 = vadd.f32 %v3784_v58, %v3783_v46 }
 0x316   :  { %3273 = vst.msk [vmem:[%s7722_s8 + $0xf4] sm:$0xf] %vm3211_vm2, %v4338_v40 }
 0x317   :  { %v3787_v14 = vadd.f32 %v3786_v10, %v3785_v37 }
 0x319   :  { %v3789_v43 = vadd.f32 %v3788_v13, %v3787_v14 }
 0x31b   :  { %v3790_v26 = vrot.slane %v3789_v43, 4 }
 0x31d   :  { %v3791_v6 = vadd.f32 %v3790_v26, %v3789_v43 }
 0x31f   :  { %v3792_v28 = vrot.slane %v3791_v6, 2 }
 0x321   :  { %v3793_v21 = vadd.f32 %v3792_v28, %v3791_v6 }
 0x323   :  { %v3794_v57 = vrot.slane %v3793_v21, 1 }
 0x325   :  { %v3795_v4 = vadd.f32 %v3794_v57, %v3793_v21 }
 0x327   :  { %4131 = vst.msk [vmem:[%s7723_s9] sm:$0x1] %vm4130_vm3, %v3795_v4  ;;  %v7490_v46 = vmul.f32 0.001953125, %v3795_v4 }
 0x329   :  { %v7494_v40 = vsub.f32 %v7436_v24, %v7490_v46  ;;  %v7497_v58 = vsub.f32 %v2928_v3, %v7490_v46  ;;  %v7501_v37 = vsub.f32 %v7432_v2, %v7490_v46  ;;  %v7504_v10 = vsub.f32 %v2936_v29, %v7490_v46 }
 0x32a   :  { %v7507_v14 = vsub.f32 %v2941_v0, %v7490_v46  ;;  %v7510_v13 = vsub.f32 %v2944_v62, %v7490_v46  ;;  %v7513_v43 = vsub.f32 %v2949_v15, %v7490_v46  ;;  %v7516_v24 = vsub.f32 %v2952_v54, %v7490_v46 }
 0x32b   :  { %v3805_v3 = vsub.f32 %v6824_v7, %v7490_v46  ;;  %v3806_v2 = vsub.f32 %v6845_v1, %v7490_v46  ;;  %v3807_v29 = vsub.f32 %v6820_v48, %v7490_v46  ;;  %v3808_v0 = vsub.f32 %v6837_v8, %v7490_v46 }
 0x32c   :  { %v3809_v15 = vsub.f32 %v6876_v30, %v7490_v46  ;;  %v3810_v54 = vsub.f32 %v6897_v49, %v7490_v46  ;;  %v3811_v48 = vsub.f32 %v6872_v51, %v7490_v46  ;;  %v3812_v30 = vsub.f32 %v6889_v25, %v7490_v46 }
 0x32d   :  { %v3933_v62 = vmul.f32 %v3805_v3, %v3805_v3  ;;  %v3934_v26 = vmul.f32 %v3806_v2, %v3806_v2  ;;  %v3935_v6 = vmul.f32 %v3807_v29, %v3807_v29  ;;  %v3936_v28 = vmul.f32 %v3808_v0, %v3808_v0 }
 0x32e   :  { %v3937_v57 = vmul.f32 %v3809_v15, %v3809_v15  ;;  %v3938_v3 = vmul.f32 %v3810_v54, %v3810_v54  ;;  %v3813_v29 = vsub.f32 %v6928_v9, %v7490_v46  ;;  %v3939_v0 = vmul.f32 %v3811_v48, %v3811_v48 }
 0x32f   :  { %v3997_v7 = vsel %vm696_vm0, %v3933_v62, 0.0  ;;  %v3998_v1 = vsel %vm696_vm0, %v3934_v26, 0.0  ;;  %v4000_v8 = vsel %vm696_vm0, %v3935_v6, 0.0  ;;  %v4002_v2 = vsel %vm696_vm0, %v3936_v28, 0.0 }
 0x330   :  { %v3999_v21 = vadd.f32 %v3998_v1, %v3997_v7  ;;  %v4004_v62 = vsel %vm696_vm0, %v3937_v57, 0.0  ;;  %v3814_v51 = vsub.f32 %v6949_v55, %v7490_v46  ;;  %v3940_v15 = vmul.f32 %v3812_v30, %v3812_v30 }
 0x331   :  { %v4006_v6 = vsel %vm696_vm0, %v3938_v3, 0.0  ;;  %v3815_v25 = vsub.f32 %v6924_v47, %v7490_v46  ;;  %v3941_v54 = vmul.f32 %v3813_v29, %v3813_v29  ;;  %v4008_v28 = vsel %vm696_vm0, %v3939_v0, 0.0 }
 0x332   :  { %v4001_v4 = vadd.f32 %v4000_v8, %v3999_v21  ;;  %v3816_v9 = vsub.f32 %v6941_v33, %v7490_v46  ;;  %v3942_v21 = vmul.f32 %v3814_v51, %v3814_v51  ;;  %v4010_v48 = vsel %vm696_vm0, %v3940_v15, 0.0 }
 0x333   :  { %v3817_v55 = vsub.f32 %v6976_v5, %v7490_v46  ;;  %v3943_v8 = vmul.f32 %v3815_v25, %v3815_v25  ;;  %v3818_v47 = vsub.f32 %v6992_v32, %v7490_v46  ;;  %v3819_v33 = vsub.f32 %v6972_v35, %v7490_v46 }
 0x334   :  { %v4003_v49 = vadd.f32 %v4002_v2, %v4001_v4  ;;  %v4012_v4 = vsel %vm696_vm0, %v3941_v54, 0.0  ;;  %v3944_v3 = vmul.f32 %v3816_v9, %v3816_v9  ;;  %v4014_v2 = vsel %vm696_vm0, %v3942_v21, 0.0 }
 0x335   :  { %v3945_v29 = vmul.f32 %v3817_v55, %v3817_v55  ;;  %v4016_v0 = vsel %vm696_vm0, %v3943_v8, 0.0  ;;  %v3820_v5 = vsub.f32 %v6984_v20, %v7490_v46  ;;  %v3821_v32 = vsub.f32 %v7010_v23, %v7490_v46 }
 0x336   :  { %v4005_v26 = vadd.f32 %v4004_v62, %v4003_v49  ;;  %v4018_v51 = vsel %vm696_vm0, %v3944_v3, 0.0  ;;  %v3822_v35 = vsub.f32 %v7028_v45, %v7490_v46  ;;  %v3823_v20 = vsub.f32 %v7004_v39, %v7490_v46 }
 0x337   :  { %v3948_v54 = vmul.f32 %v3820_v5, %v3820_v5  ;;  %v3949_v9 = vmul.f32 %v3821_v32, %v3821_v32  ;;  %v3824_v23 = vsub.f32 %v7020_v31, %v7490_v46  ;;  %v3825_v45 = vsub.f32 %v7052_v59, %v7490_v46 }
 0x338   :  { %v4007_v7 = vadd.f32 %v4006_v6, %v4005_v26  ;;  %v3946_v26 = vmul.f32 %v3818_v47, %v3818_v47  ;;  %v3947_v6 = vmul.f32 %v3819_v33, %v3819_v33  ;;  %v3826_v39 = vsub.f32 %v7070_v38, %v7490_v46 }
 0x339   :  { %v4026_v55 = vsel %vm696_vm0, %v3948_v54, 0.0  ;;  %v3952_v3 = vmul.f32 %v3824_v23, %v3824_v23  ;;  %v3827_v31 = vsub.f32 %v7048_v19, %v7490_v46  ;;  %v3953_v33 = vmul.f32 %v3825_v45, %v3825_v45 }
 0x33a   :  { %v4009_v1 = vadd.f32 %v4008_v28, %v4007_v7  ;;  %v4020_v7 = vsel %vm696_vm0, %v3945_v29, 0.0  ;;  %v4022_v28 = vsel %vm696_vm0, %v3946_v26, 0.0  ;;  %v4024_v21 = vsel %vm696_vm0, %v3947_v6, 0.0 }
 0x33b   :  { %v3828_v59 = vsub.f32 %v7062_v22, %v7490_v46  ;;  %v4034_v5 = vsel %vm696_vm0, %v3952_v3, 0.0  ;;  %v3829_v38 = vsub.f32 %v7094_v17, %v7490_v46  ;;  %v3830_v19 = vsub.f32 %v7116_v44, %v7490_v46 }
 0x33c   :  { %v4011_v57 = vadd.f32 %v4010_v48, %v4009_v1  ;;  %v3831_v22 = vsub.f32 %v7090_v27, %v7490_v46  ;;  %v3832_v17 = vsub.f32 %v7106_v50, %v7490_v46  ;;  %v3833_v44 = vsub.f32 %v7140_v56, %v7490_v46 }
 0x33d   :  { %v3956_v6 = vmul.f32 %v3828_v59, %v3828_v59  ;;  %v3834_v27 = vsub.f32 %v7156_v16, %v7490_v46  ;;  %v3835_v50 = vsub.f32 %v7134_v61, %v7490_v46  ;;  %v3836_v56 = vsub.f32 %v7148_v41, %v7490_v46 }
 0x33e   :  { %v4013_v30 = vadd.f32 %v4012_v4, %v4011_v57  ;;  %v3950_v57 = vmul.f32 %v3822_v35, %v3822_v35  ;;  %v3951_v4 = vmul.f32 %v3823_v20, %v3823_v20  ;;  %v3957_v35 = vmul.f32 %v3829_v38, %v3829_v38 }
 0x33f   :  { %v4042_v20 = vsel %vm696_vm0, %v3956_v6, 0.0  ;;  %v3961_v45 = vmul.f32 %v3833_v44, %v3833_v44  ;;  %v3837_v16 = vsub.f32 %v7180_v12, %v7490_v46  ;;  %v3838_v61 = vsub.f32 %v7198_v11, %v7490_v46 }
 0x340   :  { %v4015_v49 = vadd.f32 %v4014_v2, %v4013_v30  ;;  %v4028_v30 = vsel %vm696_vm0, %v3949_v9, 0.0  ;;  %v4030_v2 = vsel %vm696_vm0, %v3950_v57, 0.0  ;;  %v4032_v29 = vsel %vm696_vm0, %v3951_v4, 0.0 }
 0x341   :  { %v3960_v57 = vmul.f32 %v3832_v17, %v3832_v17  ;;  %v3839_v41 = vsub.f32 %v7176_v18, %v7490_v46  ;;  %v3965_v59 = vmul.f32 %v3837_v16, %v3837_v16  ;;  %v3840_v12 = vsub.f32 %v7190_v63, %v7490_v46 }
 0x342   :  { %v4017_v62 = vadd.f32 %v4016_v0, %v4015_v49  ;;  %v3841_v11 = vsub.f32 %v7222_v52, %v7490_v46  ;;  %v3842_v18 = vsub.f32 %v7244_v36, %v7490_v46  ;;  %v3843_v63 = vsub.f32 %v7218_v60, %v7490_v46  ;;  %v8255_v60 = vld [vmem:[#allocation3_spill] sm:$0xff] }
 0x343   :  { %v3968_v6 = vmul.f32 %v3840_v12, %v3840_v12  ;;  %v3844_v52 = vsub.f32 %v7234_v42, %v7490_v46  ;;  %v3845_v36 = vsub.f32 %v7268_v53, %v7490_v46  ;;  %v3847_v42 = vsub.f32 %v7262_v34, %v7490_v46  ;;  %v8256_v53 = vld [vmem:[#allocation75_spill] sm:$0xff]  ;;  %v8258_v34 = vld [vmem:[#allocation5_spill] sm:$0xff] }
 0x344   :  { %v4019_v15 = vadd.f32 %v4018_v51, %v4017_v62  ;;  %v3954_v62 = vmul.f32 %v3826_v39, %v3826_v39  ;;  %v3955_v51 = vmul.f32 %v3827_v31, %v3827_v31  ;;  %v4050_v39 = vsel %vm696_vm0, %v3960_v57, 0.0 }
 0x345   :  { %v4066_v17 = vsel %vm696_vm0, %v3968_v6, 0.0  ;;  %v3973_v57 = vmul.f32 %v3845_v36, %v3845_v36 }
 0x346   :  { %v4021_v25 = vadd.f32 %v4020_v7, %v4019_v15  ;;  %v4036_v15 = vsel %vm696_vm0, %v3953_v33, 0.0  ;;  %v4038_v7 = vsel %vm696_vm0, %v3954_v62, 0.0  ;;  %v4040_v54 = vsel %vm696_vm0, %v3955_v51, 0.0 }
 0x347   :  { %v3964_v33 = vmul.f32 %v3836_v56, %v3836_v56  ;;  %v8257_v56 = vld [vmem:[#allocation7_spill] sm:$0xff] }
 0x348   :  { %v4023_v1 = vadd.f32 %v4022_v28, %v4021_v25 }
 0x349   :  { %v4058_v38 = vsel %vm696_vm0, %v3964_v33, 0.0  ;;  %v8259_v33 = vld [vmem:[#allocation4_spill] sm:$0xff] }
 0x34a   :  { %v4025_v48 = vadd.f32 %v4024_v21, %v4023_v1  ;;  %v3958_v1 = vmul.f32 %v3830_v19, %v3830_v19  ;;  %v3959_v21 = vmul.f32 %v3831_v22, %v3831_v22  ;;  %v3969_v22 = vmul.f32 %v3841_v11, %v3841_v11 }
 0x34c   :  { %v4027_v8 = vadd.f32 %v4026_v55, %v4025_v48  ;;  %v4044_v48 = vsel %vm696_vm0, %v3957_v35, 0.0  ;;  %v4046_v55 = vsel %vm696_vm0, %v3958_v1, 0.0  ;;  %v4048_v4 = vsel %vm696_vm0, %v3959_v21, 0.0 }
 0x34d   :  { %v3846_v21 = vsub.f32 %v8255_v60, %v7490_v46 }
 0x34e   :  { %v4029_v47 = vadd.f32 %v4028_v30, %v4027_v8 }
 0x350   :  { %v4031_v49 = vadd.f32 %v4030_v2, %v4029_v47  ;;  %v3962_v47 = vmul.f32 %v3834_v27, %v3834_v27  ;;  %v3963_v2 = vmul.f32 %v3835_v50, %v3835_v50  ;;  %v3848_v50 = vsub.f32 %v8256_v53, %v7490_v46  ;;  %v8267_v53 = vld [vmem:[#allocation12_spill] sm:$0xff] }
 0x352   :  { %v4033_v0 = vadd.f32 %v4032_v29, %v4031_v49  ;;  %v4052_v49 = vsel %vm696_vm0, %v3961_v45, 0.0  ;;  %v4054_v29 = vsel %vm696_vm0, %v3962_v47, 0.0  ;;  %v4056_v62 = vsel %vm696_vm0, %v3963_v2, 0.0 }
 0x353   :  { %v3974_v45 = vmul.f32 %v3846_v21, %v3846_v21  ;;  %v3849_v47 = vsub.f32 %v8257_v56, %v7490_v46  ;;  %v3850_v2 = vsub.f32 %v8258_v34, %v7490_v46  ;;  %v8268_v56 = vld [vmem:[#allocation10_spill] sm:$0xff] }
 0x354   :  { %v4035_v26 = vadd.f32 %v4034_v5, %v4033_v0 }
 0x355   :  { %v3978_v12 = vmul.f32 %v3850_v2, %v3850_v2 }
 0x356   :  { %v4037_v32 = vadd.f32 %v4036_v15, %v4035_v26  ;;  %v3966_v26 = vmul.f32 %v3838_v61, %v3838_v61  ;;  %v3967_v15 = vmul.f32 %v3839_v41, %v3839_v41 }
 0x358   :  { %v4039_v25 = vadd.f32 %v4038_v7, %v4037_v32  ;;  %v4060_v32 = vsel %vm696_vm0, %v3965_v59, 0.0  ;;  %v4062_v7 = vsel %vm696_vm0, %v3966_v26, 0.0  ;;  %v4064_v35 = vsel %vm696_vm0, %v3967_v15, 0.0 }
 0x35a   :  { %v4041_v28 = vadd.f32 %v4040_v54, %v4039_v25 }
 0x35c   :  { %v4043_v9 = vadd.f32 %v4042_v20, %v4041_v28  ;;  %v3970_v28 = vmul.f32 %v3842_v18, %v3842_v18  ;;  %v3971_v20 = vmul.f32 %v3843_v63, %v3843_v63  ;;  %v8262_v18 = vld [vmem:[#allocation6_spill] sm:$0xff] }
 0x35d   :  { %v3854_v6 = vsub.f32 %v8262_v18, %v7490_v46  ;;  %v3995_v18 = vmul.f32 %v7513_v43, %v7513_v43 }
 0x35e   :  { %v4045_v23 = vadd.f32 %v4044_v48, %v4043_v9  ;;  %v4068_v9 = vsel %vm696_vm0, %v3969_v22, 0.0  ;;  %v3972_v48 = vmul.f32 %v3844_v52, %v3844_v52  ;;  %v8263_v22 = vld [vmem:[#allocation8_spill] sm:$0xff] }
 0x35f   :  { %v3982_v36 = vmul.f32 %v3854_v6, %v3854_v6 }
 0x360   :  { %v4047_v8 = vadd.f32 %v4046_v55, %v4045_v23  ;;  %v4070_v23 = vsel %vm696_vm0, %v3970_v28, 0.0  ;;  %v4072_v55 = vsel %vm696_vm0, %v3971_v20, 0.0 }
 0x362   :  { %v4049_v30 = vadd.f32 %v4048_v4, %v4047_v8  ;;  %v4074_v4 = vsel %vm696_vm0, %v3972_v48, 0.0 }
 0x364   :  { %v4051_v3 = vadd.f32 %v4050_v39, %v4049_v30  ;;  %v3975_v39 = vmul.f32 %v3847_v42, %v3847_v42 }
 0x366   :  { %v4053_v31 = vadd.f32 %v4052_v49, %v4051_v3  ;;  %v4076_v3 = vsel %vm696_vm0, %v3973_v57, 0.0  ;;  %v3976_v49 = vmul.f32 %v3848_v50, %v3848_v50  ;;  %v4080_v41 = vsel %vm696_vm0, %v3975_v39, 0.0 }
 0x367   :  { %v3859_v50 = vsub.f32 %v8267_v53, %v7490_v46 }
 0x368   :  { %v4055_v0 = vadd.f32 %v4054_v29, %v4053_v31  ;;  %v4078_v31 = vsel %vm696_vm0, %v3974_v45, 0.0  ;;  %v3851_v29 = vsub.f32 %v8259_v33, %v7490_v46  ;;  %v4082_v26 = vsel %vm696_vm0, %v3976_v49, 0.0 }
 0x369   :  { %v3987_v34 = vmul.f32 %v3859_v50, %v3859_v50 }
 0x36a   :  { %v4057_v5 = vadd.f32 %v4056_v62, %v4055_v0  ;;  %v3977_v0 = vmul.f32 %v3849_v47, %v3849_v47  ;;  %v8260_v62 = vld [vmem:[#allocation76_spill] sm:$0xff]  ;;  %v3979_v15 = vmul.f32 %v3851_v29, %v3851_v29  ;;  %v3860_v47 = vsub.f32 %v8268_v56, %v7490_v46 }
 0x36b   :  { %v3989_v29 = vmul.f32 %v7494_v40, %v7494_v40 }
 0x36c   :  { %v4059_v51 = vadd.f32 %v4058_v38, %v4057_v5  ;;  %v3852_v5 = vsub.f32 %v8260_v62, %v7490_v46  ;;  %v4088_v52 = vsel %vm696_vm0, %v3979_v15, 0.0 }
 0x36e   :  { %v4061_v19 = vadd.f32 %v4060_v32, %v4059_v51  ;;  %v8261_v51 = vld [vmem:[#allocation9_spill] sm:$0xff]  ;;  %v4084_v32 = vsel %vm696_vm0, %v3977_v0, 0.0  ;;  %v4104_v0 = vsel %vm696_vm0, %v3987_v34, 0.0 }
 0x36f   :  { %v3853_v11 = vsub.f32 %v8261_v51, %v7490_v46 }
 0x370   :  { %v4063_v25 = vadd.f32 %v4062_v7, %v4061_v19  ;;  %v3980_v7 = vmul.f32 %v3852_v5, %v3852_v5  ;;  %v3991_v5 = vmul.f32 %v7501_v37, %v7501_v37 }
 0x372   :  { %v4065_v54 = vadd.f32 %v4064_v35, %v4063_v25  ;;  %v4086_v25 = vsel %vm696_vm0, %v3978_v12, 0.0  ;;  %v3855_v35 = vsub.f32 %v8263_v22, %v7490_v46  ;;  %v4090_v20 = vsel %vm696_vm0, %v3980_v7, 0.0 }
 0x373   :  { %v4108_v12 = vsel %vm696_vm0, %v3989_v29, 0.0  ;;  %v3996_v7 = vmul.f32 %v7516_v24, %v7516_v24 }
 0x374   :  { %v4067_v1 = vadd.f32 %v4066_v17, %v4065_v54  ;;  %v3981_v54 = vmul.f32 %v3853_v11, %v3853_v11  ;;  %v8264_v17 = vld [vmem:[#allocation77_spill] sm:$0xff]  ;;  %v3983_v21 = vmul.f32 %v3855_v35, %v3855_v35  ;;  %v3993_v11 = vmul.f32 %v7507_v14, %v7507_v14 }
 0x376   :  { %v4069_v44 = vadd.f32 %v4068_v9, %v4067_v1  ;;  %v3856_v1 = vsub.f32 %v8264_v17, %v7490_v46  ;;  %v4092_v48 = vsel %vm696_vm0, %v3981_v54, 0.0 }
 0x378   :  { %v4071_v27 = vadd.f32 %v4070_v23, %v4069_v44  ;;  %v8265_v44 = vld [vmem:[#allocation11_spill] sm:$0xff]  ;;  %v3984_v57 = vmul.f32 %v3856_v1, %v3856_v1 }
 0x379   :  { %v3857_v60 = vsub.f32 %v8265_v44, %v7490_v46 }
 0x37a   :  { %v4073_v8 = vadd.f32 %v4072_v55, %v4071_v27  ;;  %v8266_v27 = vld [vmem:[#allocation17_spill] sm:$0xff]  ;;  %v4094_v55 = vsel %vm696_vm0, %v3982_v36, 0.0 }
 0x37b   :  { %v3858_v42 = vsub.f32 %v8266_v27, %v7490_v46  ;;  %v3985_v45 = vmul.f32 %v3857_v60, %v3857_v60  ;;  %v3990_v46 = vmul.f32 %v7497_v58, %v7497_v58  ;;  %v4112_v58 = vsel %vm696_vm0, %v3991_v5, 0.0 }
 0x37c   :  { %v4075_v30 = vadd.f32 %v4074_v4, %v4073_v8  ;;  %v4096_v4 = vsel %vm696_vm0, %v3983_v21, 0.0 }
 0x37d   :  { %v3986_v39 = vmul.f32 %v3858_v42, %v3858_v42  ;;  %v4100_v2 = vsel %vm696_vm0, %v3985_v45, 0.0  ;;  %v4110_v40 = vsel %vm696_vm0, %v3990_v46, 0.0 }
 0x37e   :  { %v4077_v16 = vadd.f32 %v4076_v3, %v4075_v30  ;;  %v4098_v3 = vsel %vm696_vm0, %v3984_v57, 0.0 }
 0x380   :  { %v4079_v61 = vadd.f32 %v4078_v31, %v4077_v16  ;;  %v3988_v31 = vmul.f32 %v3860_v47, %v3860_v47 }
 0x382   :  { %v4081_v59 = vadd.f32 %v4080_v41, %v4079_v61  ;;  %v4102_v61 = vsel %vm696_vm0, %v3986_v39, 0.0 }
 0x384   :  { %v4083_v38 = vadd.f32 %v4082_v26, %v4081_v59  ;;  %v4106_v59 = vsel %vm696_vm0, %v3988_v31, 0.0 }
 0x386   :  { %v4085_v19 = vadd.f32 %v4084_v32, %v4083_v38  ;;  %v3992_v38 = vmul.f32 %v7504_v10, %v7504_v10  ;;  %v3994_v32 = vmul.f32 %v7510_v13, %v7510_v13  ;;  %v4116_v10 = vsel %vm696_vm0, %v3993_v11, 0.0 }
 0x387   :  { %v4122_v13 = vsel %vm696_vm0, %v3996_v7, 0.0 }
 0x388   :  { %v4087_v63 = vadd.f32 %v4086_v25, %v4085_v19  ;;  %v4114_v37 = vsel %vm696_vm0, %v3992_v38, 0.0  ;;  %v4118_v14 = vsel %vm696_vm0, %v3994_v32, 0.0 }
 0x38a   :  { %v4089_v28 = vadd.f32 %v4088_v52, %v4087_v63  ;;  %v4120_v63 = vsel %vm696_vm0, %v3995_v18, 0.0 }
 0x38c   :  { %v4091_v9 = vadd.f32 %v4090_v20, %v4089_v28 }
 0x38e   :  { %v4093_v23 = vadd.f32 %v4092_v48, %v4091_v9 }
 0x390   :  { %v4095_v8 = vadd.f32 %v4094_v55, %v4093_v23 }
 0x392   :  { %v4097_v30 = vadd.f32 %v4096_v4, %v4095_v8 }
 0x394   :  { %v4099_v16 = vadd.f32 %v4098_v3, %v4097_v30 }
 0x396   :  { %v4101_v49 = vadd.f32 %v4100_v2, %v4099_v16 }
 0x398   :  { %v4103_v33 = vadd.f32 %v4102_v61, %v4101_v49 }
 0x39a   :  { %v4105_v41 = vadd.f32 %v4104_v0, %v4103_v33 }
 0x39c   :  { %v4107_v62 = vadd.f32 %v4106_v59, %v4105_v41 }
 0x39e   :  { %v4109_v26 = vadd.f32 %v4108_v12, %v4107_v62 }
 0x3a0   :  { %v4111_v51 = vadd.f32 %v4110_v40, %v4109_v26 }
 0x3a2   :  { %v4113_v15 = vadd.f32 %v4112_v58, %v4111_v51 }
 0x3a4   :  { %v4115_v19 = vadd.f32 %v4114_v37, %v4113_v15 }
 0x3a6   :  { %v4117_v6 = vadd.f32 %v4116_v10, %v4115_v19 }
 0x3a8   :  { %v4119_v25 = vadd.f32 %v4118_v14, %v4117_v6 }
 0x3aa   :  { %v4121_v22 = vadd.f32 %v4120_v63, %v4119_v25 }
 0x3ac   :  { %v4123_v35 = vadd.f32 %v4122_v13, %v4121_v22 }
 0x3ae   :  { %v4124_v54 = vrot.slane %v4123_v35, 4 }
 0x3b0   :  { %v4125_v52 = vadd.f32 %v4124_v54, %v4123_v35 }
 0x3b2   :  { %v4126_v28 = vrot.slane %v4125_v52, 2 }
 0x3b4   :  { %v4127_v17 = vadd.f32 %v4126_v28, %v4125_v52 }
 0x3b6   :  { %v4128_v43 = vrot.slane %v4127_v17, 1 }
 0x3b8   :  { %v4129_v1 = vadd.f32 %v4128_v43, %v4127_v17 }
 0x3ba   :  { %4132 = vst.msk [vmem:[%s7724_s10] sm:$0x1] %vm4130_vm3, %v4129_v1 }

</bundles_post_ra>
